<compile_context>
chip_gen: v6e
topology: v6e:2x2x1
jax: 0.10.0
libtpu: 0.0.40
codegen_flags: <defaults>
</compile_context>

<pallas_src>
import functools

import jax
import jax.numpy as jnp
from jax.experimental import pallas as pl
from jax.experimental.pallas import tpu as pltpu


def _round_up(x, m):
    return ((x + m - 1) // m) * m


def _svd_learner_kernel(u_ref, vst_ref, p_ref, out_ref, tr_ref):
    """Builds the full (N+M, N+M) SVD_learner output in one invocation.

    u_ref   : (N, q)     left singular vectors
    vst_ref : (q, M)     diag(s) @ V^T  (singular values folded in)
    p_ref   : (N, M)     learnable_param
    out_ref : (N+M, N+M) assembled output
    tr_ref  : (Np, Mp)   VMEM scratch (Np, Mp multiples of 128) for the
                         tile-aligned transpose of upd
    """
    n, m = p_ref.shape
    nm = n + m

    # ---- adj_reconstructed * learnable_param --------------------------- MXU
    recon = jnp.dot(u_ref[...], vst_ref[...], preferred_element_type=jnp.float32)
    upd = recon * p_ref[...]                                        # (N, M)

    # ---- upd.T via a fully tile-aligned transpose through scratch ------ XLU
    tr_ref[...] = jnp.zeros_like(tr_ref)
    tr_ref[:n, :m] = upd                                            # offset-(0,0) store
    upd_t = jnp.transpose(tr_ref[...])[:m, :n]                      # (M, N)

    # ---- place upd.T at rows [N:], cols [M:] via 0/1 selection matmuls - MXU
    # Keeps every ref store either full-ref or offset-(0,0); ~120 MFLOP, cheap.
    col_src = jax.lax.broadcasted_iota(jnp.int32, (n, nm), 0)
    col_dst = jax.lax.broadcasted_iota(jnp.int32, (n, nm), 1)
    c_sel = jnp.where(col_dst - m == col_src, 1.0, 0.0)             # (N, N+M)
    row_dst = jax.lax.broadcasted_iota(jnp.int32, (nm, m), 0)
    row_src = jax.lax.broadcasted_iota(jnp.int32, (nm, m), 1)
    r_sel = jnp.where(row_dst - n == row_src, 1.0, 0.0)             # (N+M, M)

    bottom = jnp.dot(upd_t, c_sel, preferred_element_type=jnp.float32)      # (M, N+M)
    assembled = jnp.dot(r_sel, bottom, preferred_element_type=jnp.float32)  # (N+M, N+M)

    # ---- final stores: full slab (zeros + transposed block), then upd ----
    out_ref[...] = assembled
    out_ref[:n, :m] = upd


def _pallas_svd_block_assemble(u, vst, p):
    n, m = p.shape
    q = u.shape[1]
    nm = n + m
    dtype = jnp.float32
    tr_shape = (_round_up(n, 128), _round_up(m, 128))               # (512, 128)

    flops = 2 * n * q * m + 2 * m * n * nm + 2 * nm * m * nm
    bytes_accessed = 4 * (u.size + vst.size + p.size + nm * nm)

    return pl.pallas_call(
        _svd_learner_kernel,
        out_shape=jax.ShapeDtypeStruct((nm, nm), dtype),
        in_specs=[
            pl.BlockSpec(memory_space=pltpu.MemorySpace.VMEM),
            pl.BlockSpec(memory_space=pltpu.MemorySpace.VMEM),
            pl.BlockSpec(memory_space=pltpu.MemorySpace.VMEM),
        ],
        out_specs=pl.BlockSpec(memory_space=pltpu.MemorySpace.VMEM),
        scratch_shapes=[pltpu.VMEM(tr_shape, dtype)],
        cost_estimate=pl.CostEstimate(
            flops=flops, transcendentals=0, bytes_accessed=bytes_accessed),
        compiler_params=pltpu.CompilerParams(vmem_limit_bytes=32 * 1024 * 1024),
    )(u, vst, p)


def _svd_lowrank(a, q, niter, key):
    """Randomized rank-q SVD, same algorithm as torch.svd_lowrank (niter=2)."""
    n_cols = a.shape[1]
    omega = jax.random.normal(key, (n_cols, q), dtype=a.dtype)
    q_mat = jnp.linalg.qr(a @ omega)[0]                             # (N, q)
    for _ in range(niter):
        z = jnp.linalg.qr(a.T @ q_mat)[0]                           # (M, q)
        q_mat = jnp.linalg.qr(a @ z)[0]                             # (N, q)
    b = q_mat.T @ a                                                 # (q, M)
    u_b, s, vt = jnp.linalg.svd(b, full_matrices=False)
    return q_mat @ u_b, s, vt                                       # U, s, V^T


@functools.partial(jax.jit, static_argnames=("svd_q",))
def svd_learner_forward(adj1, learnable_param, rng_key, svd_q=15):
    # TODO(synk): training would need jax.custom_vjp around the pallas_call
    # (dP = recon * g); only the forward pass is implemented here.
    adj1 = adj1.astype(jnp.float32)
    u, s, vt = _svd_lowrank(adj1, svd_q, niter=2, key=rng_key)
    vst = (s[:, None] * vt).astype(jnp.float32)                     # diag(s) @ V^T, (q, M)
    p = learnable_param.astype(jnp.float32)
    return _pallas_svd_block_assemble(u.astype(jnp.float32), vst, p)


if __name__ == "__main__":
    # Shapes fixed by the module's hard-coded zeros(462,462)/zeros(102,102).
    N, M, Q = 462, 102, 15
    key = jax.random.PRNGKey(0)
    k_adj, k_svd = jax.random.split(key)

    adj1 = jax.random.uniform(k_adj, (N, M), dtype=jnp.float32)
    learnable_param = jnp.ones((N, M), dtype=jnp.float32)           # Parameter(ones_like(adj1))

    out = svd_learner_forward(adj1, learnable_param, k_svd, svd_q=Q)
    out = jax.block_until_ready(out)

    assert out.shape == (N + M, N + M), out.shape
    assert out.dtype == jnp.float32
    # Structural checks: zero blocks are exactly zero, lower-right is upd.T.
    assert bool(jnp.all(out[:N, M:] == 0.0))
    assert bool(jnp.all(out[N:, :M] == 0.0))
    assert bool(jnp.allclose(out[N:, M:], out[:N, :M].T, rtol=2e-2, atol=2e-2))
    # Value check against a plain-JAX reference built from the same factors.
    u_r, s_r, vt_r = _svd_lowrank(adj1, Q, niter=2, key=k_svd)
    ref_upd = (u_r @ (s_r[:, None] * vt_r)) * learnable_param
    assert bool(jnp.allclose(out[:N, :M], ref_upd, rtol=2e-2, atol=2e-2))
    print("KERNEL_OK")
</pallas_src>

<mosaic_0001>
module attributes {stable_mosaic.version = 11 : i64} {
  func.func @_svd_learner_kernel(%arg0: memref<462x15xf32, #tpu.memory_space<vmem>>, %arg1: memref<15x102xf32, #tpu.memory_space<vmem>>, %arg2: memref<462x102xf32, #tpu.memory_space<vmem>>, %arg3: memref<564x564xf32, #tpu.memory_space<vmem>>, %arg4: memref<512x128xf32, #tpu.memory_space<vmem>>) attributes {dimension_semantics = [], scalar_prefetch = 0 : i64, scratch_operands = 1 : i64, tpu.core_type = #tpu.core_type<tc>} {
    %c0 = arith.constant 0 : index
    %c0_0 = arith.constant 0 : index
    %0 = vector.load %arg0[%c0, %c0_0] : memref<462x15xf32, #tpu.memory_space<vmem>>, vector<462x15xf32>
    %c0_1 = arith.constant 0 : index
    %c0_2 = arith.constant 0 : index
    %1 = vector.load %arg1[%c0_1, %c0_2] : memref<15x102xf32, #tpu.memory_space<vmem>>, vector<15x102xf32>
    %cst = arith.constant dense<0.000000e+00> : vector<462x102xf32>
    %2 = tpu.matmul %0, %1, %cst {dimension_numbers = #tpu.dot_dimension_numbers<[1], [0], [0], [1], [0, 0, 1, 1], [], []>} : vector<462x15xf32>, vector<15x102xf32>, vector<462x102xf32> -> vector<462x102xf32>
    %c0_3 = arith.constant 0 : index
    %c0_4 = arith.constant 0 : index
    %3 = vector.load %arg2[%c0_3, %c0_4] : memref<462x102xf32, #tpu.memory_space<vmem>>, vector<462x102xf32>
    %4 = arith.mulf %2, %3 : vector<462x102xf32>
    %cst_5 = arith.constant 0.000000e+00 : f32
    %5 = vector.broadcast %cst_5 : f32 to vector<512x128xf32>
    %c0_6 = arith.constant 0 : index
    %c0_7 = arith.constant 0 : index
    %6 = vector.load %arg4[%c0_6, %c0_7] : memref<512x128xf32, #tpu.memory_space<vmem>>, vector<512x128xf32>
    tpu.vector_store %arg4[%c0_6, %c0_7], %5 {strides = array<i32>} : memref<512x128xf32, #tpu.memory_space<vmem>>, vector<512x128xf32>,
    %c0_8 = arith.constant 0 : index
    %c0_9 = arith.constant 0 : index
    %7 = vector.load %arg4[%c0_8, %c0_9] : memref<512x128xf32, #tpu.memory_space<vmem>>, vector<462x102xf32>
    tpu.vector_store %arg4[%c0_8, %c0_9], %4 {strides = array<i32>} : memref<512x128xf32, #tpu.memory_space<vmem>>, vector<462x102xf32>,
    %c0_10 = arith.constant 0 : index
    %c0_11 = arith.constant 0 : index
    %8 = vector.load %arg4[%c0_10, %c0_11] : memref<512x128xf32, #tpu.memory_space<vmem>>, vector<512x128xf32>
    %9 = tpu.transpose %8, [1, 0] : vector<512x128xf32> -> vector<128x512xf32>
    %10 = vector.extract_strided_slice %9 {offsets = [0, 0], sizes = [102, 462], strides = [1, 1]} : vector<128x512xf32> to vector<102x462xf32>
    %11 = tpu.iota {dimensions = array<i32: 0>} : vector<462x564xi32>
    %12 = tpu.iota {dimensions = array<i32: 1>} : vector<462x564xi32>
    %c102_i32 = arith.constant 102 : i32
    %13 = vector.broadcast %c102_i32 : i32 to vector<462x564xi32>
    %14 = arith.subi %12, %13 : vector<462x564xi32>
    %15 = arith.cmpi eq, %14, %11 : vector<462x564xi32>
    %cst_12 = arith.constant 1.000000e+00 : f32
    %cst_13 = arith.constant 0.000000e+00 : f32
    %16 = vector.broadcast %cst_12 : f32 to vector<462x564xf32>
    %17 = vector.broadcast %cst_13 : f32 to vector<462x564xf32>
    %18 = arith.select %15, %16, %17 : vector<462x564xi1>, vector<462x564xf32>
    %19 = tpu.iota {dimensions = array<i32: 0>} : vector<564x102xi32>
    %20 = tpu.iota {dimensions = array<i32: 1>} : vector<564x102xi32>
    %c462_i32 = arith.constant 462 : i32
    %21 = vector.broadcast %c462_i32 : i32 to vector<564x102xi32>
    %22 = arith.subi %19, %21 : vector<564x102xi32>
    %23 = arith.cmpi eq, %22, %20 : vector<564x102xi32>
    %cst_14 = arith.constant 1.000000e+00 : f32
    %cst_15 = arith.constant 0.000000e+00 : f32
    %24 = vector.broadcast %cst_14 : f32 to vector<564x102xf32>
    %25 = vector.broadcast %cst_15 : f32 to vector<564x102xf32>
    %26 = arith.select %23, %24, %25 : vector<564x102xi1>, vector<564x102xf32>
    %cst_16 = arith.constant dense<0.000000e+00> : vector<102x564xf32>
    %27 = tpu.matmul %10, %18, %cst_16 {dimension_numbers = #tpu.dot_dimension_numbers<[1], [0], [0], [1], [0, 0, 1, 1], [], []>} : vector<102x462xf32>, vector<462x564xf32>, vector<102x564xf32> -> vector<102x564xf32>
    %cst_17 = arith.constant dense<0.000000e+00> : vector<564x564xf32>
    %28 = tpu.matmul %26, %27, %cst_17 {dimension_numbers = #tpu.dot_dimension_numbers<[1], [0], [0], [1], [0, 0, 1, 1], [], []>} : vector<564x102xf32>, vector<102x564xf32>, vector<564x564xf32> -> vector<564x564xf32>
    %c0_18 = arith.constant 0 : index
    %c0_19 = arith.constant 0 : index
    %29 = vector.load %arg3[%c0_18, %c0_19] : memref<564x564xf32, #tpu.memory_space<vmem>>, vector<564x564xf32>
    tpu.vector_store %arg3[%c0_18, %c0_19], %28 {strides = array<i32>} : memref<564x564xf32, #tpu.memory_space<vmem>>, vector<564x564xf32>,
    %c0_20 = arith.constant 0 : index
    %c0_21 = arith.constant 0 : index
    %30 = vector.load %arg3[%c0_20, %c0_21] : memref<564x564xf32, #tpu.memory_space<vmem>>, vector<462x102xf32>
    tpu.vector_store %arg3[%c0_20, %c0_21], %4 {strides = array<i32>} : memref<564x564xf32, #tpu.memory_space<vmem>>, vector<462x102xf32>,
    return
  }
}

</mosaic_0001>

<bundles_post_ra>
// kernel: custom-call.48
= control target key start
LH: loop header
LB: loop body
LE: loop exit
PB: predicated region body
PF: predicated region fallthrough
CT: control target
= control target key end

     0   :  { %s626_s0 = inlined_call_operand.vmem [shape: f32[15,15], index: 0, kind: input, shape index: {}]   ;;  %s627_s1 = inlined_call_operand.vmem [shape: f32[15,15], index: 1, kind: output, shape index: {}]  }
   0x1   :  { %s15_s8 = scalar_lea.vmem %s626_s0, 8 }
   0x2   :  { %p352_p0 = scmp.gt.s32.totalorder %s626_s0, %s15_s8 }
   0x3   :  { %s554_s11 = smov (!%p352_p0), [#allocation0]   ;;  %s558_s14 = smov (!%p352_p0), %s626_s0  }
   0x4   :  { %353 = sbr.rel (%p352_p0) target bundleno = 17 (0x11), region = 89 }
   0x9 LB: > { %v49_v0 = vld [vmem:[%s560_s14] sm:$0xff]  ;;  %s51_s14 = scalar_lea.vmem %s560_s14, 8   ;;  %s560_s14 = sphi %s558_s14, %s51_s14   ;;  %s556_s11 = sphi %s554_s11, %s52_s11  }
   0xa   : > { %50 = vst [vmem:[%s556_s11] sm:$0xff] %v49_v0  ;;  %s52_s11 = scalar_lea.vmem %s556_s11, 8   ;;  %p46_p1 = scmp.gt.s32.totalorder %s51_s14, %s15_s8 }
   0xc   :  { %48 = sbr.rel (!%p46_p1) target bundleno = 9 (0x9), region = 95 }
  0x11 PF:  { %v65_v1 = vlaneseq  ;;  %v85_v2 = vld [vmem:[#allocation0 + $0x1] ss:$0 sm:$0xff]  ;;  %vm86_vm0 = vcmask 121856   ;;  %v96_v10 = vld [vmem:[#allocation0 + $0x2] ss:$0 sm:$0xff]  ;;  %v570_v41 = vmov 0.0   ;;  %s562_s16 = smov %s627_s1  }
  0x12   :  { %v71_v5 = vld [vmem:[#allocation0] sm:$0xff]  ;;  %v87_v6 = vsel %vm86_vm0, %v85_v2, 0.0  ;;  %v98_v11 = vsel %vm86_vm0, %v96_v10, 0.0  ;;  %v162_v37 = vld [vmem:[#allocation0 + $0x8] ss:$0 sm:$0xff]  ;;  %s566_s17 = smov [#allocation1]  }
  0x13   :  { %v590_v3 = vand.u32 127, %v65_v1  ;;  %v68_v4 = vshrl.u32 %v65_v1, 7  ;;  %v107_v15 = vld [vmem:[#allocation0 + $0x3] ss:$0 sm:$0xff]  ;;  %v118_v20 = vld [vmem:[#allocation0 + $0x4] ss:$0 sm:$0xff] }
  0x14   :  { %v109_v16 = vsel %vm86_vm0, %v107_v15, 0.0  ;;  %v120_v21 = vsel %vm86_vm0, %v118_v20, 0.0  ;;  %v129_v25 = vld [vmem:[#allocation0 + $0x5] ss:$0 sm:$0xff]  ;;  %v140_v30 = vld [vmem:[#allocation0 + $0x6] ss:$0 sm:$0xff] }
  0x15   :  { %vm70_vm1 = vcmp.eq.s32.totalorder %v590_v3, %v68_v4  ;;  %vm74_vm2 = vcmp.eq.s32.totalorder %v590_v3, 0  ;;  %vm90_vm3 = vcmp.eq.s32.totalorder %v590_v3, 1  ;;  %vm101_vm4 = vcmp.eq.s32.totalorder %v590_v3, 2  ;;  %v151_v36 = vld [vmem:[#allocation0 + $0x7] ss:$0 sm:$0xff] }
  0x16   :  { %v75_v7 = vsel %vm74_vm2, %v71_v5, 1.0  ;;  %vm112_vm5 = vcmp.eq.s32.totalorder %v590_v3, 3  ;;  %vm123_vm6 = vcmp.eq.s32.totalorder %v590_v3, 4  ;;  %v131_v26 = vsel %vm86_vm0, %v129_v25, 0.0  ;;  %v177_v47 = vld [vmem:[#allocation0 + $0x9] ss:$0 sm:$0xff] }
  0x17   :  { %v76_v8 = vsel %vm70_vm1, %v75_v7, 0.0  ;;  %vm134_vm7 = vcmp.eq.s32.totalorder %v590_v3, 5  ;;  %v142_v31 = vsel %vm86_vm0, %v140_v30, 0.0  ;;  %v81_v35 = vadd.s32 8, %v68_v4  ;;  %v192_v55 = vld [vmem:[#allocation0 + $0xa] ss:$0 sm:$0xff] }
  0x18   :  { %v91_v9 = vmul.f32 %v87_v6, %v76_v8  ;;  %vm145_vm8 = vcmp.eq.s32.totalorder %v590_v3, 6  ;;  %v153_v38 = vsel %vm86_vm0, %v151_v36, 0.0  ;;  %v164_v43 = vsel %vm86_vm0, %v162_v37, 0.0  ;;  %v207_v63 = vld [vmem:[#allocation0 + $0xb] ss:$0 sm:$0xff] }
  0x19   :  { %vm82_vm9 = vcmp.eq.s32.totalorder %v590_v3, %v81_v35  ;;  %vm156_vm10 = vcmp.eq.s32.totalorder %v590_v3, 7  ;;  %vm167_vm11 = vcmp.eq.s32.totalorder %v590_v3, 8  ;;  %v179_v50 = vsel %vm86_vm0, %v177_v47, 0.0 }
  0x1a   :  { %92 = vadd.xlane.f32.xlu0 %v91_v9  ;;  %v83_v42 = vsel %vm82_vm9, 1.0, %v570_v41  ;;  %vm182_vm12 = vcmp.eq.s32.totalorder %v590_v3, 9  ;;  %v194_v58 = vsel %vm86_vm0, %v192_v55, 0.0  ;;  %vm197_vm13 = vcmp.eq.s32.totalorder %v590_v3, 10 }
  0x1b   :  { %v172_v45 = vmul.f32 %v164_v43, %v83_v42  ;;  %v209_v2 = vsel %vm86_vm0, %v207_v63, 0.0  ;;  %vm212_vm14 = vcmp.eq.s32.totalorder %v590_v3, 11  ;;  %vm227_vm15 = vcmp.eq.s32.totalorder %v590_v3, 12 }
  0x1c   :  { %vm242_vm1 = vcmp.eq.s32.totalorder %v590_v3, 13  ;;  %vm257_vm2 = vcmp.eq.s32.totalorder %v590_v3, 14 }
  0xa3   :  { %v93_v12 = vpop.xlane.xlu0 %92 }
  0xa4   :  { %v94_v13 = vsel %vm90_vm3, %v93_v12, %v76_v8  ;;  %v222_v8 = vld [vmem:[#allocation0 + $0xc] ss:$0 sm:$0xff] }
  0xa5   :  { %v102_v14 = vmul.f32 %v98_v11, %v94_v13  ;;  %v224_v11 = vsel %vm86_vm0, %v222_v8, 0.0 }
  0xa7   :  { %103 = vadd.xlane.f32.xlu0 %v102_v14 }
 0x130   :  { %v104_v17 = vpop.xlane.xlu0 %103 }
 0x131   :  { %v105_v18 = vsel %vm101_vm4, %v104_v17, %v94_v13 }
 0x132   :  { %v113_v19 = vmul.f32 %v109_v16, %v105_v18  ;;  %v237_v16 = vld [vmem:[#allocation0 + $0xd] ss:$0 sm:$0xff] }
 0x134   :  { %114 = vadd.xlane.f32.xlu1 %v113_v19  ;;  %v239_v19 = vsel %vm86_vm0, %v237_v16, 0.0 }
 0x1bd   :  { %v115_v22 = vpop.xlane.xlu1 %114 }
 0x1be   :  { %v116_v23 = vsel %vm112_vm5, %v115_v22, %v105_v18 }
 0x1bf   :  { %v124_v24 = vmul.f32 %v120_v21, %v116_v23 }
 0x1c1   :  { %125 = vadd.xlane.f32.xlu1 %v124_v24  ;;  %v252_v24 = vld [vmem:[#allocation0 + $0xe] ss:$0 sm:$0xff] }
 0x24a   :  { %v126_v27 = vpop.xlane.xlu1 %125 }
 0x24b   :  { %v127_v28 = vsel %vm123_vm6, %v126_v27, %v116_v23  ;;  %v254_v27 = vsel %vm86_vm0, %v252_v24, 0.0 }
 0x24c   :  { %v135_v29 = vmul.f32 %v131_v26, %v127_v28 }
 0x24e   :  { %136 = vadd.xlane.f32.xlu0 %v135_v29 }
 0x2d7   :  { %v137_v32 = vpop.xlane.xlu0 %136 }
 0x2d8   :  { %v138_v33 = vsel %vm134_vm7, %v137_v32, %v127_v28 }
 0x2d9   :  { %v146_v34 = vmul.f32 %v142_v31, %v138_v33 }
 0x2db   :  { %147 = vadd.xlane.f32.xlu1 %v146_v34 }
 0x364   :  { %v148_v39 = vpop.xlane.xlu1 %147 }
 0x365   :  { %v149_v40 = vsel %vm145_vm8, %v148_v39, %v138_v33 }
 0x366   :  { %v157_v44 = vmul.f32 %v153_v38, %v149_v40 }
 0x368   :  { %158 = vadd.xlane.f32.xlu0 %v157_v44 }
 0x36c   :  { %173 = vadd.xlane.f32.xlu0 %v172_v45 }
 0x3f1   :  { %v159_v46 = vpop.xlane.xlu0 %158 }
 0x3f2   :  { %v160_v48 = vsel %vm156_vm10, %v159_v46, %v149_v40 }
 0x3f3   :  { %v168_v49 = vmul.f32 %v164_v43, %v160_v48 }
 0x3f5   :  { %169 = vadd.xlane.f32.xlu1 %v168_v49  ;;  %v174_v51 = vpop.xlane.xlu0 %173 }
 0x3f6   :  { %v175_v52 = vsel %vm167_vm11, %v174_v51, %v83_v42 }
 0x3f7   :  { %v187_v53 = vmul.f32 %v179_v50, %v175_v52 }
 0x3f9   :  { %188 = vadd.xlane.f32.xlu0 %v187_v53 }
 0x47e   :  { %v170_v54 = vpop.xlane.xlu1 %169 }
 0x47f   :  { %v171_v56 = vsel %vm167_vm11, %v170_v54, %v160_v48 }
 0x480   :  { %v183_v57 = vmul.f32 %v179_v50, %v171_v56 }
 0x482   :  { %184 = vadd.xlane.f32.xlu1 %v183_v57  ;;  %v189_v59 = vpop.xlane.xlu0 %188 }
 0x483   :  { %v190_v60 = vsel %vm182_vm12, %v189_v59, %v175_v52 }
 0x484   :  { %v202_v61 = vmul.f32 %v194_v58, %v190_v60 }
 0x486   :  { %203 = vadd.xlane.f32.xlu0 %v202_v61 }
 0x50b   :  { %v185_v62 = vpop.xlane.xlu1 %184 }
 0x50c   :  { %v186_v0 = vsel %vm182_vm12, %v185_v62, %v171_v56 }
 0x50d   :  { %v198_v1 = vmul.f32 %v194_v58, %v186_v0 }
 0x50f   :  { %199 = vadd.xlane.f32.xlu1 %v198_v1  ;;  %v204_v4 = vpop.xlane.xlu0 %203 }
 0x510   :  { %v205_v5 = vsel %vm197_vm13, %v204_v4, %v190_v60 }
 0x511   :  { %v217_v6 = vmul.f32 %v209_v2, %v205_v5 }
 0x513   :  { %218 = vadd.xlane.f32.xlu0 %v217_v6 }
 0x598   :  { %v200_v7 = vpop.xlane.xlu1 %199 }
 0x599   :  { %v201_v9 = vsel %vm197_vm13, %v200_v7, %v186_v0 }
 0x59a   :  { %v213_v10 = vmul.f32 %v209_v2, %v201_v9 }
 0x59c   :  { %214 = vadd.xlane.f32.xlu1 %v213_v10  ;;  %v219_v12 = vpop.xlane.xlu0 %218 }
 0x59d   :  { %v220_v13 = vsel %vm212_vm14, %v219_v12, %v205_v5 }
 0x59e   :  { %v232_v14 = vmul.f32 %v224_v11, %v220_v13 }
 0x5a0   :  { %233 = vadd.xlane.f32.xlu0 %v232_v14 }
 0x625   :  { %v215_v15 = vpop.xlane.xlu1 %214 }
 0x626   :  { %v216_v17 = vsel %vm212_vm14, %v215_v15, %v201_v9 }
 0x627   :  { %v228_v18 = vmul.f32 %v224_v11, %v216_v17 }
 0x629   :  { %229 = vadd.xlane.f32.xlu1 %v228_v18  ;;  %v234_v20 = vpop.xlane.xlu0 %233 }
 0x62a   :  { %v235_v21 = vsel %vm227_vm15, %v234_v20, %v220_v13 }
 0x62b   :  { %v247_v22 = vmul.f32 %v239_v19, %v235_v21 }
 0x62d   :  { %248 = vadd.xlane.f32.xlu0 %v247_v22 }
 0x6b2   :  { %v230_v23 = vpop.xlane.xlu1 %229 }
 0x6b3   :  { %v231_v25 = vsel %vm227_vm15, %v230_v23, %v216_v17 }
 0x6b4   :  { %v243_v26 = vmul.f32 %v239_v19, %v231_v25 }
 0x6b6   :  { %244 = vadd.xlane.f32.xlu1 %v243_v26  ;;  %v249_v28 = vpop.xlane.xlu0 %248 }
 0x6b7   :  { %v250_v29 = vsel %vm242_vm1, %v249_v28, %v235_v21 }
 0x6b8   :  { %v262_v30 = vmul.f32 %v254_v27, %v250_v29 }
 0x6ba   :  { %263 = vadd.xlane.f32.xlu0 %v262_v30 }
 0x73f   :  { %v245_v31 = vpop.xlane.xlu1 %244 }
 0x740   :  { %v246_v32 = vsel %vm242_vm1, %v245_v31, %v231_v25 }
 0x741   :  { %v258_v33 = vmul.f32 %v254_v27, %v246_v32 }
 0x743   :  { %259 = vadd.xlane.f32.xlu1 %v258_v33  ;;  %v264_v34 = vpop.xlane.xlu0 %263 }
 0x744   :  { %v265_v35 = vsel %vm257_vm2, %v264_v34, %v250_v29 }
 0x745   :  { %268 = vst [vmem:[#allocation1 + $0x8] sm:$0xff] %v265_v35 }
 0x7cc   :  { %v260_v36 = vpop.xlane.xlu1 %259 }
 0x7cd   :  { %v261_v37 = vsel %vm257_vm2, %v260_v36, %v246_v32  }
 0x7ce   :  { %266 = vst [vmem:[#allocation1] sm:$0xff] %v261_v37 }
 0x7cf LB:  { %s568_s17 = sphi %s566_s17, %s318_s17   ;;  %s564_s16 = sphi %s562_s16, %s319_s16  }
 0x7d5   : > { %v316_v38 = vld [vmem:[%s568_s17] sm:$0xff]  ;;  %s318_s17 = scalar_lea.vmem %s568_s17, 8  }
 0x7d6   : > { %317 = vst [vmem:[%s564_s16] sm:$0xff] %v316_v38  ;;  %s319_s16 = scalar_lea.vmem %s564_s16, 8   ;;  %p313_p2 = scmp.gt.s32.totalorder %s318_s17, [#allocation1 + $0x8] }
 0x7d8   :  { %315 = sbr.rel (!%p313_p2) target bundleno = 1999 (0x7cf), region = 117 }

// kernel: custom-call.47
= control target key start
LH: loop header
LB: loop body
LE: loop exit
PB: predicated region body
PF: predicated region fallthrough
CT: control target
= control target key end

     0   :  { %v4546_v6 = vmov 0.0   ;;  %s4737_s13 = smov 0   ;;  %s7278_s0 = inlined_call_operand.vmem [shape: f32[462,15], index: 0, kind: input, shape index: {}]   ;;  %s7279_s1 = inlined_call_operand.vmem [shape: f32[462,15], index: 1, kind: output, shape index: {0}]   ;;  %s7280_s2 = inlined_call_operand.vmem [shape: f32[15], index: 2, kind: output, shape index: {1}]  }
   0x1   :  { %v146_v0 = vld [vmem:[%s7278_s0] sm:$0xff]  ;;  %v148_v1 = vld [vmem:[%s7278_s0 + $0x8] sm:$0xff]  ;;  %v150_v2 = vld [vmem:[%s7278_s0 + $0x10] sm:$0xff]  ;;  %495 = vst [vmem:[#allocation2] sm:$0x1] %v4546_v6 }
   0x2   :  { %v152_v3 = vld [vmem:[%s7278_s0 + $0x18] sm:$0xff]  ;;  %v154_v4 = vld [vmem:[%s7278_s0 + $0x20] sm:$0xff]  ;;  %v156_v5 = vld [vmem:[%s7278_s0 + $0x28] sm:$0xff]  ;;  %266 = vst [vmem:[#allocation1] sm:$0xff] %v146_v0 }
   0x3   :  { %270 = vst [vmem:[#allocation1 + $0x8] sm:$0xff] %v148_v1  ;;  %274 = vst [vmem:[#allocation1 + $0x10] sm:$0xff] %v150_v2  ;;  %v158_v7 = vld [vmem:[%s7278_s0 + $0x30] sm:$0xff]  ;;  %v160_v8 = vld [vmem:[%s7278_s0 + $0x38] sm:$0xff] }
   0x4   :  { %v162_v9 = vld [vmem:[%s7278_s0 + $0x40] sm:$0xff]  ;;  %278 = vst [vmem:[#allocation1 + $0x18] sm:$0xff] %v152_v3  ;;  %282 = vst [vmem:[#allocation1 + $0x20] sm:$0xff] %v154_v4  ;;  %v164_v10 = vld [vmem:[%s7278_s0 + $0x48] sm:$0xff] }
   0x5   :  { %286 = vst [vmem:[#allocation1 + $0x28] sm:$0xff] %v156_v5  ;;  %v166_v11 = vld [vmem:[%s7278_s0 + $0x50] sm:$0xff]  ;;  %v168_v12 = vld [vmem:[%s7278_s0 + $0x58] sm:$0xff]  ;;  %290 = vst [vmem:[#allocation1 + $0x30] sm:$0xff] %v158_v7 }
   0x6   :  { %294 = vst [vmem:[#allocation1 + $0x38] sm:$0xff] %v160_v8  ;;  %298 = vst [vmem:[#allocation1 + $0x40] sm:$0xff] %v162_v9  ;;  %v170_v13 = vld [vmem:[%s7278_s0 + $0x60] sm:$0xff]  ;;  %v172_v14 = vld [vmem:[%s7278_s0 + $0x68] sm:$0xff] }
   0x7   :  { %v174_v15 = vld [vmem:[%s7278_s0 + $0x70] sm:$0xff]  ;;  %302 = vst [vmem:[#allocation1 + $0x48] sm:$0xff] %v164_v10  ;;  %306 = vst [vmem:[#allocation1 + $0x50] sm:$0xff] %v166_v11  ;;  %v176_v16 = vld [vmem:[%s7278_s0 + $0x78] sm:$0xff] }
   0x8   :  { %310 = vst [vmem:[#allocation1 + $0x58] sm:$0xff] %v168_v12  ;;  %v178_v17 = vld [vmem:[%s7278_s0 + $0x80] sm:$0xff]  ;;  %v180_v18 = vld [vmem:[%s7278_s0 + $0x88] sm:$0xff]  ;;  %314 = vst [vmem:[#allocation1 + $0x60] sm:$0xff] %v170_v13 }
   0x9   :  { %318 = vst [vmem:[#allocation1 + $0x68] sm:$0xff] %v172_v14  ;;  %322 = vst [vmem:[#allocation1 + $0x70] sm:$0xff] %v174_v15  ;;  %v182_v19 = vld [vmem:[%s7278_s0 + $0x90] sm:$0xff]  ;;  %v184_v20 = vld [vmem:[%s7278_s0 + $0x98] sm:$0xff] }
   0xa   :  { %v186_v21 = vld [vmem:[%s7278_s0 + $0xa0] sm:$0xff]  ;;  %326 = vst [vmem:[#allocation1 + $0x78] sm:$0xff] %v176_v16  ;;  %330 = vst [vmem:[#allocation1 + $0x80] sm:$0xff] %v178_v17  ;;  %v188_v22 = vld [vmem:[%s7278_s0 + $0xa8] sm:$0xff] }
   0xb   :  { %334 = vst [vmem:[#allocation1 + $0x88] sm:$0xff] %v180_v18  ;;  %v190_v23 = vld [vmem:[%s7278_s0 + $0xb0] sm:$0xff]  ;;  %v192_v24 = vld [vmem:[%s7278_s0 + $0xb8] sm:$0xff]  ;;  %338 = vst [vmem:[#allocation1 + $0x90] sm:$0xff] %v182_v19 }
   0xc   :  { %342 = vst [vmem:[#allocation1 + $0x98] sm:$0xff] %v184_v20  ;;  %346 = vst [vmem:[#allocation1 + $0xa0] sm:$0xff] %v186_v21  ;;  %v194_v25 = vld [vmem:[%s7278_s0 + $0xc0] sm:$0xff]  ;;  %v196_v26 = vld [vmem:[%s7278_s0 + $0xc8] sm:$0xff] }
   0xd   :  { %v198_v27 = vld [vmem:[%s7278_s0 + $0xd0] sm:$0xff]  ;;  %350 = vst [vmem:[#allocation1 + $0xa8] sm:$0xff] %v188_v22  ;;  %354 = vst [vmem:[#allocation1 + $0xb0] sm:$0xff] %v190_v23  ;;  %v200_v28 = vld [vmem:[%s7278_s0 + $0xd8] sm:$0xff] }
   0xe   :  { %358 = vst [vmem:[#allocation1 + $0xb8] sm:$0xff] %v192_v24  ;;  %v202_v29 = vld [vmem:[%s7278_s0 + $0xe0] sm:$0xff]  ;;  %v204_v30 = vld [vmem:[%s7278_s0 + $0xe8] sm:$0xff]  ;;  %362 = vst [vmem:[#allocation1 + $0xc0] sm:$0xff] %v194_v25 }
   0xf   :  { %366 = vst [vmem:[#allocation1 + $0xc8] sm:$0xff] %v196_v26  ;;  %370 = vst [vmem:[#allocation1 + $0xd0] sm:$0xff] %v198_v27  ;;  %v206_v31 = vld [vmem:[%s7278_s0 + $0xf0] sm:$0xff]  ;;  %v208_v32 = vld [vmem:[%s7278_s0 + $0xf8] sm:$0xff] }
  0x10   :  { %v210_v33 = vld [vmem:[%s7278_s0 + $0x100] sm:$0xff]  ;;  %374 = vst [vmem:[#allocation1 + $0xd8] sm:$0xff] %v200_v28  ;;  %378 = vst [vmem:[#allocation1 + $0xe0] sm:$0xff] %v202_v29  ;;  %v212_v34 = vld [vmem:[%s7278_s0 + $0x108] sm:$0xff] }
  0x11   :  { %382 = vst [vmem:[#allocation1 + $0xe8] sm:$0xff] %v204_v30  ;;  %v214_v35 = vld [vmem:[%s7278_s0 + $0x110] sm:$0xff]  ;;  %v216_v36 = vld [vmem:[%s7278_s0 + $0x118] sm:$0xff]  ;;  %386 = vst [vmem:[#allocation1 + $0xf0] sm:$0xff] %v206_v31 }
  0x12   :  { %390 = vst [vmem:[#allocation1 + $0xf8] sm:$0xff] %v208_v32  ;;  %394 = vst [vmem:[#allocation1 + $0x100] sm:$0xff] %v210_v33  ;;  %v218_v37 = vld [vmem:[%s7278_s0 + $0x120] sm:$0xff]  ;;  %v220_v38 = vld [vmem:[%s7278_s0 + $0x128] sm:$0xff] }
  0x13   :  { %v222_v39 = vld [vmem:[%s7278_s0 + $0x130] sm:$0xff]  ;;  %398 = vst [vmem:[#allocation1 + $0x108] sm:$0xff] %v212_v34  ;;  %402 = vst [vmem:[#allocation1 + $0x110] sm:$0xff] %v214_v35  ;;  %v224_v40 = vld [vmem:[%s7278_s0 + $0x138] sm:$0xff] }
  0x14   :  { %406 = vst [vmem:[#allocation1 + $0x118] sm:$0xff] %v216_v36  ;;  %v226_v41 = vld [vmem:[%s7278_s0 + $0x140] sm:$0xff]  ;;  %v228_v42 = vld [vmem:[%s7278_s0 + $0x148] sm:$0xff]  ;;  %410 = vst [vmem:[#allocation1 + $0x120] sm:$0xff] %v218_v37 }
  0x15   :  { %414 = vst [vmem:[#allocation1 + $0x128] sm:$0xff] %v220_v38  ;;  %418 = vst [vmem:[#allocation1 + $0x130] sm:$0xff] %v222_v39  ;;  %v230_v43 = vld [vmem:[%s7278_s0 + $0x150] sm:$0xff]  ;;  %v232_v44 = vld [vmem:[%s7278_s0 + $0x158] sm:$0xff] }
  0x16   :  { %v234_v45 = vld [vmem:[%s7278_s0 + $0x160] sm:$0xff]  ;;  %422 = vst [vmem:[#allocation1 + $0x138] sm:$0xff] %v224_v40  ;;  %426 = vst [vmem:[#allocation1 + $0x140] sm:$0xff] %v226_v41  ;;  %v236_v46 = vld [vmem:[%s7278_s0 + $0x168] sm:$0xff] }
  0x17   :  { %430 = vst [vmem:[#allocation1 + $0x148] sm:$0xff] %v228_v42  ;;  %v238_v47 = vld [vmem:[%s7278_s0 + $0x170] sm:$0xff]  ;;  %v240_v48 = vld [vmem:[%s7278_s0 + $0x178] sm:$0xff]  ;;  %434 = vst [vmem:[#allocation1 + $0x150] sm:$0xff] %v230_v43 }
  0x18   :  { %438 = vst [vmem:[#allocation1 + $0x158] sm:$0xff] %v232_v44  ;;  %442 = vst [vmem:[#allocation1 + $0x160] sm:$0xff] %v234_v45  ;;  %v242_v49 = vld [vmem:[%s7278_s0 + $0x180] sm:$0xff]  ;;  %v244_v50 = vld [vmem:[%s7278_s0 + $0x188] sm:$0xff] }
  0x19   :  { %v246_v51 = vld [vmem:[%s7278_s0 + $0x190] sm:$0xff]  ;;  %446 = vst [vmem:[#allocation1 + $0x168] sm:$0xff] %v236_v46  ;;  %450 = vst [vmem:[#allocation1 + $0x170] sm:$0xff] %v238_v47  ;;  %v248_v52 = vld [vmem:[%s7278_s0 + $0x198] sm:$0xff] }
  0x1a   :  { %454 = vst [vmem:[#allocation1 + $0x178] sm:$0xff] %v240_v48  ;;  %v250_v53 = vld [vmem:[%s7278_s0 + $0x1a0] sm:$0xff]  ;;  %v252_v54 = vld [vmem:[%s7278_s0 + $0x1a8] sm:$0xff]  ;;  %458 = vst [vmem:[#allocation1 + $0x180] sm:$0xff] %v242_v49 }
  0x1b   :  { %462 = vst [vmem:[#allocation1 + $0x188] sm:$0xff] %v244_v50  ;;  %466 = vst [vmem:[#allocation1 + $0x190] sm:$0xff] %v246_v51  ;;  %v254_v55 = vld [vmem:[%s7278_s0 + $0x1b0] sm:$0xff]  ;;  %v256_v56 = vld [vmem:[%s7278_s0 + $0x1b8] sm:$0xff] }
  0x1c   :  { %v258_v57 = vld [vmem:[%s7278_s0 + $0x1c0] sm:$0xff]  ;;  %470 = vst [vmem:[#allocation1 + $0x198] sm:$0xff] %v248_v52  ;;  %474 = vst [vmem:[#allocation1 + $0x1a0] sm:$0xff] %v250_v53  ;;  %v260_v58 = vld [vmem:[%s7278_s0 + $0x1c8] sm:$0xff] }
  0x1d   :  { %478 = vst [vmem:[#allocation1 + $0x1a8] sm:$0xff] %v252_v54  ;;  %482 = vst [vmem:[#allocation1 + $0x1b0] sm:$0xff] %v254_v55 }
  0x1e   :  { %486 = vst [vmem:[#allocation1 + $0x1b8] sm:$0xff] %v256_v56  ;;  %490 = vst [vmem:[#allocation1 + $0x1c0] sm:$0xff] %v258_v57 }
  0x1f   :  { %494 = vst [vmem:[#allocation1 + $0x1c8] sm:$0xff] %v260_v58 }
  0x20 LB: > { %v503_v59 = vlaneseq  ;;  %v502_v60 = vld [vmem:[#allocation1] sm:$0xff]  ;;  %v4746_v62 = vstv %s4544_s13  ;;  %v511_v63 = vld [vmem:[#allocation1 + $0x8] sm:$0xff]  ;;  %v521_v1 = vld [vmem:[#allocation1 + $0x10] sm:$0xff]  ;;  %s1100_s0 = scalar_lea.vmem [#allocation1], %s4544_s13  ;;  %s4888_s14 = smov [#allocation1]  ;;  %s4544_s13 = sphi %s4737_s13, %s501_s13  }
  0x21   : > { %v531_v3 = vld [vmem:[#allocation1 + $0x18] sm:$0xff]  ;;  %v541_v10 = vld [vmem:[#allocation1 + $0x20] sm:$0xff]  ;;  %v551_v16 = vld [vmem:[#allocation1 + $0x28] sm:$0xff]  ;;  %s2184_s15 = scalar_lea.vmem [#allocation4], %s4544_s13  ;;  %s5384_s16 = smov [#allocation1] }
  0x22   : > { %v4743_v61 = vshrl.u32 %v503_v59, 7  ;;  %v561_v21 = vld [vmem:[#allocation1 + $0x30] sm:$0xff]  ;;  %v571_v26 = vld [vmem:[#allocation1 + $0x38] sm:$0xff]  ;;  %v581_v31 = vld [vmem:[#allocation1 + $0x40] sm:$0xff]  ;;  %s5386_s17 = smov [#allocation4] }
  0x23   : > { %v591_v36 = vld [vmem:[#allocation1 + $0x48] sm:$0xff]  ;;  %v601_v41 = vld [vmem:[#allocation1 + $0x50] sm:$0xff]  ;;  %v611_v46 = vld [vmem:[#allocation1 + $0x58] sm:$0xff] }
  0x24   : > { %vm507_vm0 = vcmp.gt.s32.totalorder %v4743_v61, %v4746_v62  ;;  %v514_v0 = vadd.s32 8, %v4743_v61  ;;  %v524_v2 = vadd.s32 16, %v4743_v61  ;;  %v534_v4 = vadd.s32 24, %v4743_v61  ;;  %v621_v51 = vld [vmem:[#allocation1 + $0x60] sm:$0xff]  ;;  %v631_v56 = vld [vmem:[#allocation1 + $0x68] sm:$0xff] }
  0x25   : > { %v508_v5 = vsel %vm507_vm0, %v502_v60, 0.0  ;;  %v544_v6 = vadd.s32 32, %v4743_v61  ;;  %v554_v7 = vadd.s32 40, %v4743_v61  ;;  %v564_v8 = vadd.s32 48, %v4743_v61 }
  0x26   : > { %v509_v9 = vmul.f32 %v508_v5, %v508_v5  ;;  %vm516_vm1 = vcmp.gt.s32.totalorder %v514_v0, %v4746_v62  ;;  %vm526_vm2 = vcmp.gt.s32.totalorder %v524_v2, %v4746_v62  ;;  %vm536_vm3 = vcmp.gt.s32.totalorder %v534_v4, %v4746_v62  ;;  %v641_v0 = vld [vmem:[#allocation1 + $0x70] sm:$0xff]  ;;  %v651_v5 = vld [vmem:[#allocation1 + $0x78] sm:$0xff] }
  0x27   : > { %v517_v11 = vsel %vm516_vm1, %v511_v63, 0.0  ;;  %v527_v12 = vsel %vm526_vm2, %v521_v1, 0.0  ;;  %v537_v13 = vsel %vm536_vm3, %v531_v3, 0.0  ;;  %vm546_vm4 = vcmp.gt.s32.totalorder %v544_v6, %v4746_v62 }
  0x28   : > { %v518_v14 = vmul.f32 %v517_v11, %v517_v11  ;;  %v528_v15 = vmul.f32 %v527_v12, %v527_v12  ;;  %v547_v17 = vsel %vm546_vm4, %v541_v10, 0.0  ;;  %vm556_vm5 = vcmp.gt.s32.totalorder %v554_v7, %v4746_v62  ;;  %v661_v10 = vld [vmem:[#allocation1 + $0x80] sm:$0xff] }
  0x29   : > { %v574_v18 = vadd.s32 56, %v4743_v61  ;;  %v538_v20 = vmul.f32 %v537_v13, %v537_v13  ;;  %vm566_vm6 = vcmp.gt.s32.totalorder %v564_v8, %v4746_v62  ;;  %v584_v22 = vadd.s32 64, %v4743_v61 }
  0x2a   : > { %v519_v19 = vadd.f32 %v518_v14, %v509_v9  ;;  %v557_v23 = vsel %vm556_vm5, %v551_v16, 0.0  ;;  %v548_v25 = vmul.f32 %v547_v17, %v547_v17  ;;  %v594_v27 = vadd.s32 72, %v4743_v61 }
  0x2b   : > { %vm576_vm7 = vcmp.gt.s32.totalorder %v574_v18, %v4746_v62  ;;  %v567_v28 = vsel %vm566_vm6, %v561_v21, 0.0  ;;  %v558_v30 = vmul.f32 %v557_v23, %v557_v23  ;;  %vm586_vm8 = vcmp.gt.s32.totalorder %v584_v22, %v4746_v62 }
  0x2c   : > { %v529_v24 = vadd.f32 %v528_v15, %v519_v19  ;;  %v604_v32 = vadd.s32 80, %v4743_v61  ;;  %v577_v33 = vsel %vm576_vm7, %v571_v26, 0.0  ;;  %v568_v35 = vmul.f32 %v567_v28, %v567_v28  ;;  %v671_v15 = vld [vmem:[#allocation1 + $0x88] sm:$0xff] }
  0x2d   : > { %vm596_vm9 = vcmp.gt.s32.totalorder %v594_v27, %v4746_v62  ;;  %v614_v37 = vadd.s32 88, %v4743_v61  ;;  %v587_v38 = vsel %vm586_vm8, %v581_v31, 0.0  ;;  %v578_v40 = vmul.f32 %v577_v33, %v577_v33 }
  0x2e   : > { %v539_v29 = vadd.f32 %v538_v20, %v529_v24  ;;  %vm606_vm10 = vcmp.gt.s32.totalorder %v604_v32, %v4746_v62  ;;  %v624_v42 = vadd.s32 96, %v4743_v61  ;;  %v597_v43 = vsel %vm596_vm9, %v591_v36, 0.0  ;;  %v681_v20 = vld [vmem:[#allocation1 + $0x90] sm:$0xff] }
  0x2f   : > { %v588_v45 = vmul.f32 %v587_v38, %v587_v38  ;;  %vm616_vm11 = vcmp.gt.s32.totalorder %v614_v37, %v4746_v62  ;;  %v634_v47 = vadd.s32 104, %v4743_v61  ;;  %v607_v48 = vsel %vm606_vm10, %v601_v41, 0.0 }
  0x30   : > { %v549_v34 = vadd.f32 %v548_v25, %v539_v29  ;;  %v598_v50 = vmul.f32 %v597_v43, %v597_v43  ;;  %vm626_vm12 = vcmp.gt.s32.totalorder %v624_v42, %v4746_v62  ;;  %v644_v52 = vadd.s32 112, %v4743_v61  ;;  %v691_v25 = vld [vmem:[#allocation1 + $0x98] sm:$0xff] }
  0x31   : > { %v617_v53 = vsel %vm616_vm11, %v611_v46, 0.0  ;;  %v608_v55 = vmul.f32 %v607_v48, %v607_v48  ;;  %vm636_vm13 = vcmp.gt.s32.totalorder %v634_v47, %v4746_v62  ;;  %v654_v57 = vadd.s32 120, %v4743_v61 }
  0x32   : > { %v559_v39 = vadd.f32 %v558_v30, %v549_v34  ;;  %v627_v58 = vsel %vm626_vm12, %v621_v51, 0.0  ;;  %v618_v63 = vmul.f32 %v617_v53, %v617_v53  ;;  %vm646_vm14 = vcmp.gt.s32.totalorder %v644_v52, %v4746_v62  ;;  %v701_v30 = vld [vmem:[#allocation1 + $0xa0] sm:$0xff] }
  0x33   : > { %v664_v1 = vadd.s32 128, %v4743_v61  ;;  %v637_v2 = vsel %vm636_vm13, %v631_v56, 0.0  ;;  %v628_v4 = vmul.f32 %v627_v58, %v627_v58  ;;  %vm656_vm15 = vcmp.gt.s32.totalorder %v654_v57, %v4746_v62 }
  0x34   : > { %v569_v44 = vadd.f32 %v568_v35, %v559_v39  ;;  %v674_v6 = vadd.s32 136, %v4743_v61  ;;  %v647_v7 = vsel %vm646_vm14, %v641_v0, 0.0  ;;  %v638_v9 = vmul.f32 %v637_v2, %v637_v2  ;;  %v711_v35 = vld [vmem:[#allocation1 + $0xa8] sm:$0xff] }
  0x35   : > { %vm666_vm0 = vcmp.gt.s32.totalorder %v664_v1, %v4746_v62  ;;  %v684_v11 = vadd.s32 144, %v4743_v61  ;;  %v657_v12 = vsel %vm656_vm15, %v651_v5, 0.0  ;;  %v648_v14 = vmul.f32 %v647_v7, %v647_v7 }
  0x36   : > { %v579_v49 = vadd.f32 %v578_v40, %v569_v44  ;;  %vm676_vm1 = vcmp.gt.s32.totalorder %v674_v6, %v4746_v62  ;;  %v694_v16 = vadd.s32 152, %v4743_v61  ;;  %v667_v17 = vsel %vm666_vm0, %v661_v10, 0.0  ;;  %v721_v40 = vld [vmem:[#allocation1 + $0xb0] sm:$0xff] }
  0x37   : > { %v658_v19 = vmul.f32 %v657_v12, %v657_v12  ;;  %vm686_vm2 = vcmp.gt.s32.totalorder %v684_v11, %v4746_v62  ;;  %v704_v21 = vadd.s32 160, %v4743_v61  ;;  %v677_v22 = vsel %vm676_vm1, %v671_v15, 0.0 }
  0x38   : > { %v589_v54 = vadd.f32 %v588_v45, %v579_v49  ;;  %v668_v24 = vmul.f32 %v667_v17, %v667_v17  ;;  %vm696_vm3 = vcmp.gt.s32.totalorder %v694_v16, %v4746_v62  ;;  %v714_v26 = vadd.s32 168, %v4743_v61  ;;  %v731_v45 = vld [vmem:[#allocation1 + $0xb8] sm:$0xff] }
  0x39   : > { %v687_v27 = vsel %vm686_vm2, %v681_v20, 0.0  ;;  %v678_v29 = vmul.f32 %v677_v22, %v677_v22  ;;  %vm706_vm4 = vcmp.gt.s32.totalorder %v704_v21, %v4746_v62  ;;  %v724_v31 = vadd.s32 176, %v4743_v61 }
  0x3a   : > { %v599_v60 = vadd.f32 %v598_v50, %v589_v54  ;;  %v697_v32 = vsel %vm696_vm3, %v691_v25, 0.0  ;;  %v688_v34 = vmul.f32 %v687_v27, %v687_v27  ;;  %vm716_vm5 = vcmp.gt.s32.totalorder %v714_v26, %v4746_v62  ;;  %v741_v50 = vld [vmem:[#allocation1 + $0xc0] sm:$0xff] }
  0x3b   : > { %v734_v36 = vadd.s32 184, %v4743_v61  ;;  %v707_v37 = vsel %vm706_vm4, %v701_v30, 0.0  ;;  %v698_v39 = vmul.f32 %v697_v32, %v697_v32  ;;  %vm726_vm6 = vcmp.gt.s32.totalorder %v724_v31, %v4746_v62 }
  0x3c   : > { %v609_v3 = vadd.f32 %v608_v55, %v599_v60  ;;  %v744_v41 = vadd.s32 192, %v4743_v61  ;;  %v717_v42 = vsel %vm716_vm5, %v711_v35, 0.0  ;;  %v708_v44 = vmul.f32 %v707_v37, %v707_v37  ;;  %v751_v55 = vld [vmem:[#allocation1 + $0xc8] sm:$0xff] }
  0x3d   : > { %vm736_vm7 = vcmp.gt.s32.totalorder %v734_v36, %v4746_v62  ;;  %v754_v46 = vadd.s32 200, %v4743_v61  ;;  %v727_v47 = vsel %vm726_vm6, %v721_v40, 0.0  ;;  %v718_v49 = vmul.f32 %v717_v42, %v717_v42 }
  0x3e   : > { %v619_v8 = vadd.f32 %v618_v63, %v609_v3  ;;  %vm746_vm8 = vcmp.gt.s32.totalorder %v744_v41, %v4746_v62  ;;  %v764_v51 = vadd.s32 208, %v4743_v61  ;;  %v737_v52 = vsel %vm736_vm7, %v731_v45, 0.0  ;;  %v761_v63 = vld [vmem:[#allocation1 + $0xd0] sm:$0xff] }
  0x3f   : > { %v728_v54 = vmul.f32 %v727_v47, %v727_v47  ;;  %vm756_vm9 = vcmp.gt.s32.totalorder %v754_v46, %v4746_v62  ;;  %v774_v56 = vadd.s32 216, %v4743_v61  ;;  %v747_v57 = vsel %vm746_vm8, %v741_v50, 0.0 }
  0x40   : > { %v629_v13 = vadd.f32 %v628_v4, %v619_v8  ;;  %v738_v60 = vmul.f32 %v737_v52, %v737_v52  ;;  %vm766_vm10 = vcmp.gt.s32.totalorder %v764_v51, %v4746_v62  ;;  %v784_v0 = vadd.s32 224, %v4743_v61  ;;  %v771_v4 = vld [vmem:[#allocation1 + $0xd8] sm:$0xff] }
  0x41   : > { %v757_v1 = vsel %vm756_vm9, %v751_v55, 0.0  ;;  %v748_v3 = vmul.f32 %v747_v57, %v747_v57  ;;  %vm776_vm11 = vcmp.gt.s32.totalorder %v774_v56, %v4746_v62  ;;  %v794_v5 = vadd.s32 232, %v4743_v61 }
  0x42   : > { %v639_v18 = vadd.f32 %v638_v9, %v629_v13  ;;  %v767_v6 = vsel %vm766_vm10, %v761_v63, 0.0  ;;  %v758_v8 = vmul.f32 %v757_v1, %v757_v1  ;;  %v781_v9 = vld [vmem:[#allocation1 + $0xe0] sm:$0xff]  ;;  %vm786_vm12 = vcmp.gt.s32.totalorder %v784_v0, %v4746_v62 }
  0x43   : > { %v804_v10 = vadd.s32 240, %v4743_v61  ;;  %v777_v11 = vsel %vm776_vm11, %v771_v4, 0.0  ;;  %v768_v13 = vmul.f32 %v767_v6, %v767_v6  ;;  %vm796_vm13 = vcmp.gt.s32.totalorder %v794_v5, %v4746_v62 }
  0x44   : > { %v649_v23 = vadd.f32 %v648_v14, %v639_v18  ;;  %v791_v14 = vld [vmem:[#allocation1 + $0xe8] sm:$0xff]  ;;  %v814_v15 = vadd.s32 248, %v4743_v61  ;;  %v787_v16 = vsel %vm786_vm12, %v781_v9, 0.0  ;;  %v778_v18 = vmul.f32 %v777_v11, %v777_v11 }
  0x45   : > { %vm806_vm14 = vcmp.gt.s32.totalorder %v804_v10, %v4746_v62  ;;  %v824_v20 = vadd.s32 256, %v4743_v61  ;;  %v797_v21 = vsel %vm796_vm13, %v791_v14, 0.0  ;;  %v834_v25 = vadd.s32 264, %v4743_v61 }
  0x46   : > { %v659_v28 = vadd.f32 %v658_v19, %v649_v23  ;;  %v801_v19 = vld [vmem:[#allocation1 + $0xf0] sm:$0xff]  ;;  %v788_v23 = vmul.f32 %v787_v16, %v787_v16  ;;  %vm816_vm15 = vcmp.gt.s32.totalorder %v814_v15, %v4746_v62  ;;  %v844_v30 = vadd.s32 272, %v4743_v61 }
  0x47   : > { %v807_v26 = vsel %vm806_vm14, %v801_v19, 0.0  ;;  %vm826_vm0 = vcmp.gt.s32.totalorder %v824_v20, %v4746_v62  ;;  %vm836_vm1 = vcmp.gt.s32.totalorder %v834_v25, %v4746_v62  ;;  %v854_v35 = vadd.s32 280, %v4743_v61 }
  0x48   : > { %v669_v33 = vadd.f32 %v668_v24, %v659_v28  ;;  %v811_v24 = vld [vmem:[#allocation1 + $0xf8] sm:$0xff]  ;;  %v798_v28 = vmul.f32 %v797_v21, %v797_v21  ;;  %vm846_vm2 = vcmp.gt.s32.totalorder %v844_v30, %v4746_v62  ;;  %v864_v40 = vadd.s32 288, %v4743_v61 }
  0x49   : > { %v817_v31 = vsel %vm816_vm15, %v811_v24, 0.0  ;;  %vm856_vm3 = vcmp.gt.s32.totalorder %v854_v35, %v4746_v62  ;;  %v874_v45 = vadd.s32 296, %v4743_v61  ;;  %v884_v50 = vadd.s32 304, %v4743_v61 }
  0x4a   : > { %v679_v38 = vadd.f32 %v678_v29, %v669_v33  ;;  %v821_v29 = vld [vmem:[#allocation1 + $0x100] sm:$0xff]  ;;  %v808_v33 = vmul.f32 %v807_v26, %v807_v26  ;;  %vm866_vm4 = vcmp.gt.s32.totalorder %v864_v40, %v4746_v62  ;;  %v894_v55 = vadd.s32 312, %v4743_v61 }
  0x4b   : > { %v827_v36 = vsel %vm826_vm0, %v821_v29, 0.0  ;;  %vm876_vm5 = vcmp.gt.s32.totalorder %v874_v45, %v4746_v62  ;;  %vm886_vm6 = vcmp.gt.s32.totalorder %v884_v50, %v4746_v62  ;;  %v904_v63 = vadd.s32 320, %v4743_v61 }
  0x4c   : > { %v689_v43 = vadd.f32 %v688_v34, %v679_v38  ;;  %v831_v34 = vld [vmem:[#allocation1 + $0x108] sm:$0xff]  ;;  %v818_v38 = vmul.f32 %v817_v31, %v817_v31  ;;  %vm896_vm7 = vcmp.gt.s32.totalorder %v894_v55, %v4746_v62  ;;  %v914_v4 = vadd.s32 328, %v4743_v61 }
  0x4d   : > { %v837_v41 = vsel %vm836_vm1, %v831_v34, 0.0  ;;  %vm906_vm8 = vcmp.gt.s32.totalorder %v904_v63, %v4746_v62  ;;  %v924_v9 = vadd.s32 336, %v4743_v61  ;;  %v934_v14 = vadd.s32 344, %v4743_v61 }
  0x4e   : > { %v699_v48 = vadd.f32 %v698_v39, %v689_v43  ;;  %v841_v39 = vld [vmem:[#allocation1 + $0x110] sm:$0xff]  ;;  %v828_v43 = vmul.f32 %v827_v36, %v827_v36  ;;  %vm916_vm9 = vcmp.gt.s32.totalorder %v914_v4, %v4746_v62  ;;  %v944_v19 = vadd.s32 352, %v4743_v61 }
  0x4f   : > { %v847_v46 = vsel %vm846_vm2, %v841_v39, 0.0  ;;  %vm926_vm10 = vcmp.gt.s32.totalorder %v924_v9, %v4746_v62  ;;  %vm936_vm11 = vcmp.gt.s32.totalorder %v934_v14, %v4746_v62  ;;  %v954_v24 = vadd.s32 360, %v4743_v61 }
  0x50   : > { %v709_v53 = vadd.f32 %v708_v44, %v699_v48  ;;  %v851_v44 = vld [vmem:[#allocation1 + $0x118] sm:$0xff]  ;;  %v838_v48 = vmul.f32 %v837_v41, %v837_v41  ;;  %vm946_vm12 = vcmp.gt.s32.totalorder %v944_v19, %v4746_v62  ;;  %v964_v29 = vadd.s32 368, %v4743_v61 }
  0x51   : > { %v857_v51 = vsel %vm856_vm3, %v851_v44, 0.0  ;;  %vm956_vm13 = vcmp.gt.s32.totalorder %v954_v24, %v4746_v62  ;;  %v974_v34 = vadd.s32 376, %v4743_v61  ;;  %v984_v39 = vadd.s32 384, %v4743_v61 }
  0x52   : > { %v719_v58 = vadd.f32 %v718_v49, %v709_v53  ;;  %v861_v49 = vld [vmem:[#allocation1 + $0x120] sm:$0xff]  ;;  %v848_v53 = vmul.f32 %v847_v46, %v847_v46  ;;  %vm966_vm14 = vcmp.gt.s32.totalorder %v964_v29, %v4746_v62  ;;  %v994_v44 = vadd.s32 392, %v4743_v61 }
  0x53   : > { %v867_v56 = vsel %vm866_vm4, %v861_v49, 0.0  ;;  %vm976_vm15 = vcmp.gt.s32.totalorder %v974_v34, %v4746_v62  ;;  %vm986_vm0 = vcmp.gt.s32.totalorder %v984_v39, %v4746_v62  ;;  %v1004_v49 = vadd.s32 400, %v4743_v61 }
  0x54   : > { %v729_v2 = vadd.f32 %v728_v54, %v719_v58  ;;  %v871_v54 = vld [vmem:[#allocation1 + $0x128] sm:$0xff]  ;;  %v858_v58 = vmul.f32 %v857_v51, %v857_v51  ;;  %vm996_vm1 = vcmp.gt.s32.totalorder %v994_v44, %v4746_v62  ;;  %v1064_v19 = vadd.s32 448, %v4743_v61 }
  0x55   : > { %v877_v0 = vsel %vm876_vm5, %v871_v54, 0.0  ;;  %v1014_v54 = vadd.s32 408, %v4743_v61  ;;  %vm1006_vm2 = vcmp.gt.s32.totalorder %v1004_v49, %v4746_v62 }
  0x56   : > { %v739_v7 = vadd.f32 %v738_v60, %v729_v2  ;;  %v881_v60 = vld [vmem:[#allocation1 + $0x130] sm:$0xff]  ;;  %v868_v2 = vmul.f32 %v867_v56, %v867_v56 }
  0x57   : > { %v887_v5 = vsel %vm886_vm6, %v881_v60, 0.0  ;;  %v1024_v60 = vadd.s32 416, %v4743_v61  ;;  %vm1016_vm3 = vcmp.gt.s32.totalorder %v1014_v54, %v4746_v62 }
  0x58   : > { %v749_v12 = vadd.f32 %v748_v3, %v739_v7  ;;  %v891_v3 = vld [vmem:[#allocation1 + $0x138] sm:$0xff]  ;;  %v878_v7 = vmul.f32 %v877_v0, %v877_v0 }
  0x59   : > { %v897_v10 = vsel %vm896_vm7, %v891_v3, 0.0  ;;  %v1034_v3 = vadd.s32 424, %v4743_v61  ;;  %vm1026_vm4 = vcmp.gt.s32.totalorder %v1024_v60, %v4746_v62 }
  0x5a   : > { %v759_v17 = vadd.f32 %v758_v8, %v749_v12  ;;  %v901_v8 = vld [vmem:[#allocation1 + $0x140] sm:$0xff]  ;;  %v888_v12 = vmul.f32 %v887_v5, %v887_v5 }
  0x5b   : > { %v907_v15 = vsel %vm906_vm8, %v901_v8, 0.0  ;;  %v1044_v8 = vadd.s32 432, %v4743_v61  ;;  %vm1036_vm5 = vcmp.gt.s32.totalorder %v1034_v3, %v4746_v62 }
  0x5c   : > { %v769_v22 = vadd.f32 %v768_v13, %v759_v17  ;;  %v911_v13 = vld [vmem:[#allocation1 + $0x148] sm:$0xff]  ;;  %v898_v17 = vmul.f32 %v897_v10, %v897_v10 }
  0x5d   : > { %v917_v20 = vsel %vm916_vm9, %v911_v13, 0.0  ;;  %v1054_v13 = vadd.s32 440, %v4743_v61  ;;  %vm1046_vm6 = vcmp.gt.s32.totalorder %v1044_v8, %v4746_v62 }
  0x5e   : > { %v779_v27 = vadd.f32 %v778_v18, %v769_v22  ;;  %v921_v18 = vld [vmem:[#allocation1 + $0x150] sm:$0xff]  ;;  %v908_v22 = vmul.f32 %v907_v15, %v907_v15  ;;  %v1074_v15 = vadd.s32 456, %v4743_v61  ;;  %v4886_v61 = vmov %v4743_v61 }
  0x5f   : > { %v927_v25 = vsel %vm926_vm10, %v921_v18, 0.0  ;;  %v1041_v18 = vld [vmem:[#allocation1 + $0x1b0] sm:$0xff]  ;;  %vm1056_vm7 = vcmp.gt.s32.totalorder %v1054_v13, %v4746_v62  ;;  %vm1066_vm10 = vcmp.gt.s32.totalorder %v1064_v19, %v4746_v62  ;;  %v1158_v19 = vadd.s32 8, %v4886_v61 }
  0x60   : > { %v789_v32 = vadd.f32 %v788_v23, %v779_v27  ;;  %v931_v23 = vld [vmem:[#allocation1 + $0x158] sm:$0xff]  ;;  %v918_v27 = vmul.f32 %v917_v20, %v917_v20  ;;  %v1047_v24 = vsel %vm1046_vm6, %v1041_v18, 0.0  ;;  %vm1076_vm8 = vcmp.gt.s32.totalorder %v1074_v15, %v4746_v62 }
  0x61   : > { %v937_v30 = vsel %vm936_vm11, %v931_v23, 0.0  ;;  %v1051_v23 = vld [vmem:[#allocation1 + $0x1b8] sm:$0xff]  ;;  %vm1077_vm9 = vcmp.lt.s32.totalorder %v1074_v15, 462  ;;  %v1194_v18 = vadd.s32 24, %v4886_v61 }
  0x62   : > { %v799_v37 = vadd.f32 %v798_v28, %v789_v32  ;;  %v941_v28 = vld [vmem:[#allocation1 + $0x160] sm:$0xff]  ;;  %v928_v32 = vmul.f32 %v927_v25, %v927_v25  ;;  %vm1078_vm11 = vmand %vm1076_vm8, %vm1077_vm9 }
  0x63   : > { %v947_v35 = vsel %vm946_vm12, %v941_v28, 0.0  ;;  %v1057_v28 = vsel %vm1056_vm7, %v1051_v23, 0.0  ;;  %v4176_v23 = vld [vmem:[%s4888_s14 + $0x10] sm:$0xff] }
  0x64   : > { %v809_v42 = vadd.f32 %v808_v33, %v799_v37  ;;  %v951_v33 = vld [vmem:[#allocation1 + $0x168] sm:$0xff]  ;;  %v938_v37 = vmul.f32 %v937_v30, %v937_v30  ;;  %v1048_v30 = vmul.f32 %v1047_v24, %v1047_v24  ;;  %v1058_v34 = vmul.f32 %v1057_v28, %v1057_v28  ;;  %v1140_v24 = vld [vmem:[%s4888_s14] sm:$0xff] }
  0x65   : > { %v957_v40 = vsel %vm956_vm13, %v951_v33, 0.0  ;;  %v4178_v28 = vld [vmem:[%s4888_s14 + $0x20] sm:$0xff] }
  0x66   : > { %v819_v47 = vadd.f32 %v818_v38, %v809_v42  ;;  %v961_v38 = vld [vmem:[#allocation1 + $0x170] sm:$0xff]  ;;  %v948_v42 = vmul.f32 %v947_v35, %v947_v35 }
  0x67   : > { %v967_v45 = vsel %vm966_vm14, %v961_v38, 0.0 }
  0x68   : > { %v829_v52 = vadd.f32 %v828_v43, %v819_v47  ;;  %v971_v43 = vld [vmem:[#allocation1 + $0x178] sm:$0xff]  ;;  %v958_v47 = vmul.f32 %v957_v40, %v957_v40 }
  0x69   : > { %v977_v50 = vsel %vm976_vm15, %v971_v43, 0.0 }
  0x6a   : > { %v839_v57 = vadd.f32 %v838_v48, %v829_v52  ;;  %v981_v48 = vld [vmem:[#allocation1 + $0x180] sm:$0xff]  ;;  %v968_v52 = vmul.f32 %v967_v45, %v967_v45 }
  0x6b   : > { %v987_v55 = vsel %vm986_vm0, %v981_v48, 0.0  ;;  %v1101_v48 = vld [vmem:[%s1100_s0] ss:$0 sm:$0xff] }
  0x6c   : > { %v849_v1 = vadd.f32 %v848_v53, %v839_v57  ;;  %v991_v53 = vld [vmem:[#allocation1 + $0x188] sm:$0xff]  ;;  %v978_v57 = vmul.f32 %v977_v50, %v977_v50  ;;  %v1102_v49 = vand.u32 2147483647, %v1101_v48 }
  0x6d   : > { %v997_v63 = vsel %vm996_vm1, %v991_v53, 0.0  ;;  %vm1127_vm1 = vcmp.lt.f32.partialorder %v1101_v48, 0.0 }
  0x6e   : > { %v859_v6 = vadd.f32 %v858_v58, %v849_v1  ;;  %v1001_v58 = vld [vmem:[#allocation1 + $0x190] sm:$0xff]  ;;  %v988_v1 = vmul.f32 %v987_v55, %v987_v55  ;;  %v1103_v54 = vmax.f32 %v1102_v49, 0.0 }
  0x6f   : > { %v1007_v4 = vsel %vm1006_vm2, %v1001_v58, 0.0 }
  0x70   : > { %v869_v11 = vadd.f32 %v868_v2, %v859_v6  ;;  %v1011_v2 = vld [vmem:[#allocation1 + $0x198] sm:$0xff]  ;;  %v998_v6 = vmul.f32 %v997_v63, %v997_v63 }
  0x71   : > { %v1017_v9 = vsel %vm1016_vm3, %v1011_v2, 0.0  ;;  %vm1143_vm3 = vcmp.gt.s32.totalorder %v4886_v61, %v4746_v62 }
  0x72   : > { %v879_v16 = vadd.f32 %v878_v7, %v869_v11  ;;  %v1021_v7 = vld [vmem:[#allocation1 + $0x1a0] sm:$0xff]  ;;  %v1008_v11 = vmul.f32 %v1007_v4, %v1007_v4 }
  0x73   : > { %v1027_v14 = vsel %vm1026_vm4, %v1021_v7, 0.0  ;;  %vm1196_vm4 = vcmp.gt.s32.totalorder %v1194_v18, %v4746_v62 }
  0x74   : > { %v889_v21 = vadd.f32 %v888_v12, %v879_v16  ;;  %v1031_v12 = vld [vmem:[#allocation1 + $0x1a8] sm:$0xff] }
  0x75   : > { %v1037_v20 = vsel %vm1036_vm5, %v1031_v12, 0.0  ;;  %vm1160_vm5 = vcmp.gt.s32.totalorder %v1158_v19, %v4746_v62 }
  0x76   : > { %v899_v26 = vadd.f32 %v898_v17, %v889_v21  ;;  %v1018_v17 = vmul.f32 %v1017_v9, %v1017_v9 }
  0x78   : > { %v909_v31 = vadd.f32 %v908_v22, %v899_v26  ;;  %v1028_v22 = vmul.f32 %v1027_v14, %v1027_v14  ;;  %v1038_v26 = vmul.f32 %v1037_v20, %v1037_v20  ;;  %v1230_v20 = vadd.s32 40, %v4886_v61 }
  0x7a   : > { %v919_v36 = vadd.f32 %v918_v27, %v909_v31  ;;  %v1061_v27 = vld [vmem:[#allocation1 + $0x1c0] sm:$0xff]  ;;  %v1071_v31 = vld [vmem:[#allocation1 + $0x1c8] sm:$0xff]  ;;  %vm1232_vm6 = vcmp.gt.s32.totalorder %v1230_v20, %v4746_v62 }
  0x7b   : > { %v1079_v35 = vsel %vm1078_vm11, %v1071_v31, 0.0  ;;  %v1144_v31 = vsel %vm1143_vm3, %v1140_v24, 0.0  ;;  %v4186_v24 = vld [vmem:[%s4888_s14 + $0x60] sm:$0xff] }
  0x7c   : > { %v929_v41 = vadd.f32 %v928_v32, %v919_v36  ;;  %v1067_v32 = vsel %vm1066_vm10, %v1061_v27, 0.0  ;;  %v1080_v39 = vmul.f32 %v1079_v35, %v1079_v35  ;;  %v4179_v27 = vld [vmem:[%s4888_s14 + $0x28] sm:$0xff] }
  0x7d   : > { %v1233_v35 = vsel %vm1232_vm6, %v4179_v27, 0.0 }
  0x7e   : > { %v939_v46 = vadd.f32 %v938_v37, %v929_v41  ;;  %v1068_v37 = vmul.f32 %v1067_v32, %v1067_v32 }
  0x80   : > { %v949_v51 = vadd.f32 %v948_v42, %v939_v46 }
  0x82   : > { %v959_v56 = vadd.f32 %v958_v47, %v949_v51 }
  0x84   : > { %v969_v0 = vadd.f32 %v968_v52, %v959_v56 }
  0x86   : > { %v979_v5 = vadd.f32 %v978_v57, %v969_v0 }
  0x88   : > { %v989_v10 = vadd.f32 %v988_v1, %v979_v5 }
  0x8a   : > { %v999_v16 = vadd.f32 %v998_v6, %v989_v10 }
  0x8c   : > { %v1009_v21 = vadd.f32 %v1008_v11, %v999_v16 }
  0x8e   : > { %v1019_v25 = vadd.f32 %v1018_v17, %v1009_v21  ;;  %v1176_v17 = vadd.s32 16, %v4886_v61  ;;  %v1212_v21 = vadd.s32 32, %v4886_v61 }
  0x90   : > { %v1029_v29 = vadd.f32 %v1028_v22, %v1019_v25  ;;  %v4896_v22 = vand.u32 127, %v503_v59  ;;  %vm1178_vm2 = vcmp.gt.s32.totalorder %v1176_v17, %v4746_v62  ;;  %v4177_v25 = vld [vmem:[%s4888_s14 + $0x18] sm:$0xff]  ;;  %vm1214_vm7 = vcmp.gt.s32.totalorder %v1212_v21, %v4746_v62 }
  0x91   : > { %v1266_v59 = vadd.s32 56, %v4886_v61  ;;  %v1197_v32 = vsel %vm1196_vm4, %v4177_v25, 0.0  ;;  %v1410_v25 = vadd.s32 120, %v4886_v61 }
  0x92   : > { %v1039_v33 = vadd.f32 %v1038_v26, %v1029_v29  ;;  %v4175_v26 = vld [vmem:[%s4888_s14 + $0x8] sm:$0xff]  ;;  %v1248_v29 = vadd.s32 48, %v4886_v61  ;;  %vm4915_vm8 = vcmp.eq.s32.totalorder %v4896_v22, %v4746_v62 }
  0x93   : > { %vm1268_vm9 = vcmp.gt.s32.totalorder %v1266_v59, %v4746_v62 }
  0x94   : > { %v1049_v36 = vadd.f32 %v1048_v30, %v1039_v33  ;;  %v1179_v30 = vsel %vm1178_vm2, %v4176_v23, 0.0  ;;  %v1161_v33 = vsel %vm1160_vm5, %v4175_v26, 0.0  ;;  %vm1250_vm10 = vcmp.gt.s32.totalorder %v1248_v29, %v4746_v62  ;;  %v4187_v23 = vld [vmem:[%s4888_s14 + $0x68] sm:$0xff] }
  0x95   : > { %v1392_v26 = vadd.s32 112, %v4886_v61  ;;  %vm1412_vm2 = vcmp.gt.s32.totalorder %v1410_v25, %v4746_v62 }
  0x96   : > { %v1059_v38 = vadd.f32 %v1058_v34, %v1049_v36  ;;  %v1215_v36 = vsel %vm1214_vm7, %v4178_v28, 0.0 }
  0x97   : > { %vm1394_vm3 = vcmp.gt.s32.totalorder %v1392_v26, %v4746_v62 }
  0x98   : > { %v1069_v40 = vadd.f32 %v1068_v37, %v1059_v38  ;;  %v1302_v38 = vadd.s32 72, %v4886_v61 }
  0x9a   : > { %v1081_v41 = vadd.f32 %v1080_v39, %v1069_v40  ;;  %v1284_v39 = vadd.s32 64, %v4886_v61  ;;  %vm1304_vm11 = vcmp.gt.s32.totalorder %v1302_v38, %v4746_v62  ;;  %v1446_v38 = vadd.s32 136, %v4886_v61 }
  0x9c   : > { %v1082_v42 = vrot.slane %v1081_v41, 4  ;;  %vm1448_vm4 = vcmp.gt.s32.totalorder %v1446_v38, %v4746_v62 }
  0x9e   : > { %v1083_v43 = vadd.f32 %v1082_v42, %v1081_v41 }
  0xa0   : > { %v1084_v44 = vrot.slane %v1083_v43, 2 }
  0xa2   : > { %v1085_v45 = vadd.f32 %v1084_v44, %v1083_v43  ;;  %v4181_v44 = vld [vmem:[%s4888_s14 + $0x38] sm:$0xff] }
  0xa4   : > { %v1086_v46 = vrot.slane %v1085_v45, 1 }
  0xa6   : > { %v4864_v47 = vadd.f32 %v1086_v46, %v1085_v45  ;;  %v4180_v45 = vld [vmem:[%s4888_s14 + $0x30] sm:$0xff] }
  0xa8   : > { %4527 = vrsqrt.f32 %v4864_v47  ;;  %vm1090_vm12 = vcmp.eq.f32.partialorder %v4864_v47, inf  ;;  %v1093_v51 = vand.u32 2147483648, %v4864_v47  ;;  %vm1092_vm13 = vcmp.eq.f32.partialorder %v4864_v47, 0.0 }
  0xb5   : > { %v4528_v50 = vpop.eup %4527 }
  0xb6   : > { %v1089_v52 = vmul.f32 %v4528_v50, %v4864_v47 }
  0xb8   : > { %v1091_v53 = vsel %vm1090_vm12, %v4864_v47, %v1089_v52  ;;  %vm1286_vm12 = vcmp.gt.s32.totalorder %v1284_v39, %v4746_v62  ;;  %v1428_v39 = vadd.s32 128, %v4886_v61 }
  0xb9   : > { %v1094_v55 = vsel %vm1092_vm13, %v1093_v51, %v1091_v53 }
  0xba   : > { %v1104_v56 = vand.u32 2147483647, %v1094_v55  ;;  %v1269_v55 = vsel %vm1268_vm9, %v4181_v44, 0.0  ;;  %vm1430_vm5 = vcmp.gt.s32.totalorder %v1428_v39, %v4746_v62 }
  0xbc   : > { %v1105_v57 = vmax.f32 %v1103_v54, %v1104_v56 }
  0xbe   : > { %4529 = vrcp.f32 %v1105_v57  ;;  %vm1117_vm0 = vcmp.eq.f32.partialorder %v1105_v57, 0.0 }
  0xcb   : > { %v4530_v58 = vpop.eup %4529 }
  0xcc   : > { %v1107_v60 = vmul.f32 %v4530_v58, %v1102_v49  ;;  %v1110_v63 = vmul.f32 0.0, %v4530_v58  ;;  %v1114_v0 = vmul.f32 %v4530_v58, %v1104_v56  ;;  %v1251_v56 = vsel %vm1250_vm10, %v4180_v45, 0.0  ;;  %v4182_v58 = vld [vmem:[%s4888_s14 + $0x40] sm:$0xff] }
  0xce   : > { %v1108_v1 = vmul.f32 %v1107_v60, %v1107_v60  ;;  %v1111_v2 = vmul.f32 %v1110_v63, %v1110_v63  ;;  %v1115_v3 = vmul.f32 %v1114_v0, %v1114_v0  ;;  %v1338_v60 = vadd.s32 88, %v4886_v61 }
  0xcf   : > { %v1320_v63 = vadd.s32 80, %v4886_v61 }
  0xd0   : > { %v1112_v4 = vadd.f32 %v1111_v2, %v1108_v1 }
  0xd2   : > { %v1116_v5 = vadd.f32 %v1115_v3, %v1112_v4 }
  0xd4   : > { %4531 = vrsqrt.f32 %v1116_v5  ;;  %vm1120_vm14 = vcmp.eq.f32.partialorder %v1116_v5, inf  ;;  %v1123_v7 = vand.u32 2147483648, %v1116_v5  ;;  %vm1122_vm15 = vcmp.eq.f32.partialorder %v1116_v5, 0.0 }
  0xe1   : > { %v4532_v6 = vpop.eup %4531 }
  0xe2   : > { %v1119_v8 = vmul.f32 %v4532_v6, %v1116_v5 }
  0xe4   : > { %v1121_v9 = vsel %vm1120_vm14, %v1116_v5, %v1119_v8  ;;  %v4185_v8 = vld [vmem:[%s4888_s14 + $0x58] sm:$0xff]  ;;  %vm1340_vm14 = vcmp.gt.s32.totalorder %v1338_v60, %v4746_v62 }
  0xe5   : > { %v1124_v10 = vsel %vm1122_vm15, %v1123_v7, %v1121_v9  ;;  %v1287_v7 = vsel %vm1286_vm12, %v4182_v58, 0.0  ;;  %v4184_v9 = vld [vmem:[%s4888_s14 + $0x50] sm:$0xff]  ;;  %vm1322_vm15 = vcmp.gt.s32.totalorder %v1320_v63, %v4746_v62  ;;  %v1341_v20 = vsel %vm1340_vm14, %v4185_v8, 0.0 }
  0xe6   : > { %v1125_v11 = vmul.f32 %v1124_v10, %v1105_v57  ;;  %v4183_v57 = vld [vmem:[%s4888_s14 + $0x48] sm:$0xff]  ;;  %v1374_v10 = vadd.s32 104, %v4886_v61  ;;  %v1323_v21 = vsel %vm1322_vm15, %v4184_v9, 0.0 }
  0xe7   : > { %v1305_v6 = vsel %vm1304_vm11, %v4183_v57, 0.0 }
  0xe8   : > { %v1126_v12 = vsel %vm1117_vm0, 0.0, %v1125_v11  ;;  %v1356_v11 = vadd.s32 96, %v4886_v61  ;;  %vm1376_vm0 = vcmp.gt.s32.totalorder %v1374_v10, %v4746_v62 }
  0xe9   : > { %v1128_v13 = vxor.u32 2147483648, %v1126_v12 }
  0xeb   : > { %v4877_v14 = vsel %vm1127_vm1, %v1126_v12, %v1128_v13  ;;  %vm1358_vm1 = vcmp.gt.s32.totalorder %v1356_v11, %v4746_v62 }
  0xec   : > { %v4882_v15 = vsel %vm1092_vm13, %v1101_v48, %v4877_v14 }
  0xed   : > { %7312 = vst [vmem:[#allocation5_spill] sm:$0xff] %v4882_v15  ;;  %v1135_v16 = vsub.f32 %v1101_v48, %v4882_v15 }
  0xef   : > { %4533 = vrcp.f32 %v1135_v16 }
  0xf0   : > { %4535 = vrcp.f32 %v4877_v14 }
  0xfc   : > { %v4919_v37 = vpop.eup %4533 }
  0xfd   : > { %v1181_v40 = vmul.f32 %v4919_v37, %v1179_v30  ;;  %v1146_v41 = vmul.f32 %v4919_v37, %v1144_v31  ;;  %v1199_v42 = vmul.f32 %v4919_v37, %v1197_v32  ;;  %v1163_v43 = vmul.f32 %v4919_v37, %v1161_v33 }
  0xfe   : > { %v1235_v46 = vmul.f32 %v4919_v37, %v1233_v35  ;;  %v1217_v48 = vmul.f32 %v4919_v37, %v1215_v36  ;;  %v1271_v4 = vmul.f32 %v4919_v37, %v1269_v55  ;;  %v1253_v5 = vmul.f32 %v4919_v37, %v1251_v56  ;;  %v4189_v35 = vld [vmem:[%s4888_s14 + $0x78] sm:$0xff]  ;;  %v4188_v36 = vld [vmem:[%s4888_s14 + $0x70] sm:$0xff] }
  0xff   : > { %v1182_v49 = vsel %vm1092_vm13, 0.0, %v1181_v40  ;;  %v1147_v50 = vsel %vm1092_vm13, 0.0, %v1146_v41  ;;  %v1200_v51 = vsel %vm1092_vm13, 0.0, %v1199_v42  ;;  %v1164_v52 = vsel %vm1092_vm13, 0.0, %v1163_v43 }
 0x100   : > { %v1187_v53 = vsel %vm4915_vm8, %v1182_v49, 0.0  ;;  %v1152_v54 = vsel %vm4915_vm8, %v1147_v50, 0.0  ;;  %v1205_v0 = vsel %vm4915_vm8, %v1200_v51, 0.0  ;;  %v1169_v1 = vsel %vm4915_vm8, %v1164_v52, 0.0  ;;  %v4191_v49 = vld [vmem:[%s4888_s14 + $0x88] sm:$0xff]  ;;  %v4190_v50 = vld [vmem:[%s4888_s14 + $0x80] sm:$0xff] }
 0x101   : > { %1188 = vadd.xlane.f32.xlu1 %v1187_v53  ;;  %1153 = vadd.xlane.f32.xlu0 %v1152_v54  ;;  %v1236_v2 = vsel %vm1092_vm13, 0.0, %v1235_v46  ;;  %v1218_v3 = vsel %vm1092_vm13, 0.0, %v1217_v48  ;;  %v1272_v16 = vsel %vm1092_vm13, 0.0, %v1271_v4  ;;  %v1254_v17 = vsel %vm1092_vm13, 0.0, %v1253_v5 }
 0x102   : > { %v1241_v12 = vsel %vm4915_vm8, %v1236_v2, 0.0  ;;  %v1223_v13 = vsel %vm4915_vm8, %v1218_v3, 0.0  ;;  %v1307_v18 = vmul.f32 %v4919_v37, %v1305_v6  ;;  %v1289_v19 = vmul.f32 %v4919_v37, %v1287_v7 }
 0x103   : > { %v1277_v27 = vsel %vm4915_vm8, %v1272_v16, 0.0  ;;  %v1259_v28 = vsel %vm4915_vm8, %v1254_v17, 0.0  ;;  %v1343_v30 = vmul.f32 %v4919_v37, %v1341_v20  ;;  %v1325_v31 = vmul.f32 %v4919_v37, %v1323_v21 }
 0x104   : > { %v1308_v59 = vsel %vm1092_vm13, 0.0, %v1307_v18  ;;  %v1290_v29 = vsel %vm1092_vm13, 0.0, %v1289_v19  ;;  %v1377_v32 = vsel %vm1376_vm0, %v4187_v23, 0.0  ;;  %v1359_v33 = vsel %vm1358_vm1, %v4186_v24, 0.0 }
 0x105   : > { %1206 = vadd.xlane.f32.xlu1 %v1205_v0  ;;  %1170 = vadd.xlane.f32.xlu0 %v1169_v1  ;;  %v1313_v40 = vsel %vm4915_vm8, %v1308_v59, 0.0  ;;  %v1295_v41 = vsel %vm4915_vm8, %v1290_v29, 0.0  ;;  %v1344_v42 = vsel %vm1092_vm13, 0.0, %v1343_v30  ;;  %v1326_v43 = vsel %vm1092_vm13, 0.0, %v1325_v31  ;;  %v4193_v0 = vld [vmem:[%s4888_s14 + $0x98] sm:$0xff]  ;;  %v4192_v1 = vld [vmem:[%s4888_s14 + $0x90] sm:$0xff] }
 0x106   : > { %v1379_v44 = vmul.f32 %v4919_v37, %v1377_v32  ;;  %v1361_v45 = vmul.f32 %v4919_v37, %v1359_v33  ;;  %v1413_v46 = vsel %vm1412_vm2, %v4189_v35, 0.0  ;;  %v1395_v48 = vsel %vm1394_vm3, %v4188_v36, 0.0 }
 0x107   : > { %v1482_v51 = vadd.s32 152, %v4886_v61  ;;  %v1464_v52 = vadd.s32 144, %v4886_v61  ;;  %v1349_v53 = vsel %vm4915_vm8, %v1344_v42, 0.0  ;;  %v1331_v54 = vsel %vm4915_vm8, %v1326_v43, 0.0 }
 0x108   : > { %v1380_v55 = vsel %vm1092_vm13, 0.0, %v1379_v44  ;;  %v1362_v56 = vsel %vm1092_vm13, 0.0, %v1361_v45  ;;  %v1415_v57 = vmul.f32 %v4919_v37, %v1413_v46  ;;  %v1397_v58 = vmul.f32 %v4919_v37, %v1395_v48 }
 0x109   : > { %1242 = vadd.xlane.f32.xlu1 %v1241_v12  ;;  %1224 = vadd.xlane.f32.xlu0 %v1223_v13  ;;  %v1449_v60 = vsel %vm1448_vm4, %v4191_v49, 0.0  ;;  %v1431_v63 = vsel %vm1430_vm5, %v4190_v50, 0.0  ;;  %vm1484_vm6 = vcmp.gt.s32.totalorder %v1482_v51, %v4746_v62  ;;  %vm1466_vm7 = vcmp.gt.s32.totalorder %v1464_v52, %v4746_v62  ;;  %v4195_v12 = vld [vmem:[%s4888_s14 + $0xa8] sm:$0xff]  ;;  %v4194_v13 = vld [vmem:[%s4888_s14 + $0xa0] sm:$0xff] }
 0x10a   : > { %v1518_v2 = vadd.s32 168, %v4886_v61  ;;  %v1500_v3 = vadd.s32 160, %v4886_v61  ;;  %v1385_v4 = vsel %vm4915_vm8, %v1380_v55, 0.0  ;;  %v1367_v5 = vsel %vm4915_vm8, %v1362_v56, 0.0 }
 0x10b   : > { %v1416_v6 = vsel %vm1092_vm13, 0.0, %v1415_v57  ;;  %v1398_v7 = vsel %vm1092_vm13, 0.0, %v1397_v58  ;;  %v1451_v8 = vmul.f32 %v4919_v37, %v1449_v60  ;;  %v1433_v9 = vmul.f32 %v4919_v37, %v1431_v63 }
 0x10c   : > { %v1485_v10 = vsel %vm1484_vm6, %v4193_v0, 0.0  ;;  %v1467_v11 = vsel %vm1466_vm7, %v4192_v1, 0.0  ;;  %vm1520_vm9 = vcmp.gt.s32.totalorder %v1518_v2, %v4746_v62  ;;  %vm1502_vm10 = vcmp.gt.s32.totalorder %v1500_v3, %v4746_v62 }
 0x10d   : > { %1278 = vadd.xlane.f32.xlu1 %v1277_v27  ;;  %1260 = vadd.xlane.f32.xlu0 %v1259_v28  ;;  %v1554_v16 = vadd.s32 184, %v4886_v61  ;;  %v1536_v17 = vadd.s32 176, %v4886_v61  ;;  %v1421_v18 = vsel %vm4915_vm8, %v1416_v6, 0.0  ;;  %v1403_v19 = vsel %vm4915_vm8, %v1398_v7, 0.0  ;;  %v4197_v27 = vld [vmem:[%s4888_s14 + $0xb8] sm:$0xff]  ;;  %v4196_v28 = vld [vmem:[%s4888_s14 + $0xb0] sm:$0xff] }
 0x10e   : > { %v1452_v20 = vsel %vm1092_vm13, 0.0, %v1451_v8  ;;  %v1434_v21 = vsel %vm1092_vm13, 0.0, %v1433_v9  ;;  %v1487_v23 = vmul.f32 %v4919_v37, %v1485_v10  ;;  %v1469_v24 = vmul.f32 %v4919_v37, %v1467_v11 }
 0x10f   : > { %v1521_v25 = vsel %vm1520_vm9, %v4195_v12, 0.0  ;;  %v1503_v26 = vsel %vm1502_vm10, %v4194_v13, 0.0  ;;  %vm1556_vm11 = vcmp.gt.s32.totalorder %v1554_v16, %v4746_v62  ;;  %vm1538_vm12 = vcmp.gt.s32.totalorder %v1536_v17, %v4746_v62 }
 0x110   : > { %v1590_v59 = vadd.s32 200, %v4886_v61  ;;  %v1572_v29 = vadd.s32 192, %v4886_v61  ;;  %v1457_v30 = vsel %vm4915_vm8, %v1452_v20, 0.0  ;;  %v1439_v31 = vsel %vm4915_vm8, %v1434_v21, 0.0 }
 0x111   : > { %1314 = vadd.xlane.f32.xlu1 %v1313_v40  ;;  %1296 = vadd.xlane.f32.xlu0 %v1295_v41  ;;  %v1488_v32 = vsel %vm1092_vm13, 0.0, %v1487_v23  ;;  %v1470_v33 = vsel %vm1092_vm13, 0.0, %v1469_v24  ;;  %v1523_v35 = vmul.f32 %v4919_v37, %v1521_v25  ;;  %v1505_v36 = vmul.f32 %v4919_v37, %v1503_v26  ;;  %v4199_v40 = vld [vmem:[%s4888_s14 + $0xc8] sm:$0xff]  ;;  %v4198_v41 = vld [vmem:[%s4888_s14 + $0xc0] sm:$0xff] }
 0x112   : > { %v1557_v38 = vsel %vm1556_vm11, %v4197_v27, 0.0  ;;  %v1539_v39 = vsel %vm1538_vm12, %v4196_v28, 0.0  ;;  %vm1592_vm14 = vcmp.gt.s32.totalorder %v1590_v59, %v4746_v62  ;;  %vm1574_vm15 = vcmp.gt.s32.totalorder %v1572_v29, %v4746_v62 }
 0x113   : > { %v1626_v42 = vadd.s32 216, %v4886_v61  ;;  %v1608_v43 = vadd.s32 208, %v4886_v61  ;;  %v1493_v44 = vsel %vm4915_vm8, %v1488_v32, 0.0  ;;  %v1475_v45 = vsel %vm4915_vm8, %v1470_v33, 0.0 }
 0x114   : > { %v1524_v46 = vsel %vm1092_vm13, 0.0, %v1523_v35  ;;  %v1506_v48 = vsel %vm1092_vm13, 0.0, %v1505_v36  ;;  %v1559_v49 = vmul.f32 %v4919_v37, %v1557_v38  ;;  %v1541_v50 = vmul.f32 %v4919_v37, %v1539_v39 }
 0x115   : > { %1350 = vadd.xlane.f32.xlu1 %v1349_v53  ;;  %1332 = vadd.xlane.f32.xlu0 %v1331_v54  ;;  %v1593_v51 = vsel %vm1592_vm14, %v4199_v40, 0.0  ;;  %v1575_v52 = vsel %vm1574_vm15, %v4198_v41, 0.0  ;;  %v4201_v53 = vld [vmem:[%s4888_s14 + $0xd8] sm:$0xff]  ;;  %vm1628_vm0 = vcmp.gt.s32.totalorder %v1626_v42, %v4746_v62  ;;  %v4200_v54 = vld [vmem:[%s4888_s14 + $0xd0] sm:$0xff]  ;;  %vm1610_vm1 = vcmp.gt.s32.totalorder %v1608_v43, %v4746_v62 }
 0x116   : > { %v1662_v55 = vadd.s32 232, %v4886_v61  ;;  %v1644_v56 = vadd.s32 224, %v4886_v61  ;;  %v1529_v57 = vsel %vm4915_vm8, %v1524_v46, 0.0  ;;  %v1511_v58 = vsel %vm4915_vm8, %v1506_v48, 0.0 }
 0x117   : > { %v1560_v60 = vsel %vm1092_vm13, 0.0, %v1559_v49  ;;  %v1542_v63 = vsel %vm1092_vm13, 0.0, %v1541_v50  ;;  %v1595_v0 = vmul.f32 %v4919_v37, %v1593_v51  ;;  %v1577_v1 = vmul.f32 %v4919_v37, %v1575_v52 }
 0x118   : > { %v1629_v2 = vsel %vm1628_vm0, %v4201_v53, 0.0  ;;  %v1611_v3 = vsel %vm1610_vm1, %v4200_v54, 0.0  ;;  %vm1664_vm2 = vcmp.gt.s32.totalorder %v1662_v55, %v4746_v62  ;;  %vm1646_vm3 = vcmp.gt.s32.totalorder %v1644_v56, %v4746_v62 }
 0x119   : > { %1386 = vadd.xlane.f32.xlu1 %v1385_v4  ;;  %1368 = vadd.xlane.f32.xlu0 %v1367_v5  ;;  %v4203_v4 = vld [vmem:[%s4888_s14 + $0xe8] sm:$0xff]  ;;  %v4202_v5 = vld [vmem:[%s4888_s14 + $0xe0] sm:$0xff]  ;;  %v1698_v6 = vadd.s32 248, %v4886_v61  ;;  %v1680_v7 = vadd.s32 240, %v4886_v61  ;;  %v1565_v8 = vsel %vm4915_vm8, %v1560_v60, 0.0  ;;  %v1547_v9 = vsel %vm4915_vm8, %v1542_v63, 0.0 }
 0x11a   : > { %v1596_v10 = vsel %vm1092_vm13, 0.0, %v1595_v0  ;;  %v1578_v11 = vsel %vm1092_vm13, 0.0, %v1577_v1  ;;  %v1631_v12 = vmul.f32 %v4919_v37, %v1629_v2  ;;  %v1613_v13 = vmul.f32 %v4919_v37, %v1611_v3 }
 0x11b   : > { %v1665_v16 = vsel %vm1664_vm2, %v4203_v4, 0.0  ;;  %v1647_v17 = vsel %vm1646_vm3, %v4202_v5, 0.0  ;;  %vm1700_vm4 = vcmp.gt.s32.totalorder %v1698_v6, %v4746_v62  ;;  %vm1682_vm5 = vcmp.gt.s32.totalorder %v1680_v7, %v4746_v62 }
 0x11c   : > { %v1734_v20 = vadd.s32 264, %v4886_v61  ;;  %v1716_v21 = vadd.s32 256, %v4886_v61  ;;  %v1601_v23 = vsel %vm4915_vm8, %v1596_v10, 0.0  ;;  %v1583_v24 = vsel %vm4915_vm8, %v1578_v11, 0.0 }
 0x11d   : > { %1422 = vadd.xlane.f32.xlu1 %v1421_v18  ;;  %1404 = vadd.xlane.f32.xlu0 %v1403_v19  ;;  %v4205_v18 = vld [vmem:[%s4888_s14 + $0xf8] sm:$0xff]  ;;  %v4204_v19 = vld [vmem:[%s4888_s14 + $0xf0] sm:$0xff]  ;;  %v1632_v25 = vsel %vm1092_vm13, 0.0, %v1631_v12  ;;  %v1614_v26 = vsel %vm1092_vm13, 0.0, %v1613_v13  ;;  %v1667_v27 = vmul.f32 %v4919_v37, %v1665_v16  ;;  %v1649_v28 = vmul.f32 %v4919_v37, %v1647_v17 }
 0x11e   : > { %v1701_v59 = vsel %vm1700_vm4, %v4205_v18, 0.0  ;;  %v1683_v29 = vsel %vm1682_vm5, %v4204_v19, 0.0  ;;  %vm1736_vm6 = vcmp.gt.s32.totalorder %v1734_v20, %v4746_v62  ;;  %vm1718_vm7 = vcmp.gt.s32.totalorder %v1716_v21, %v4746_v62 }
 0x11f   : > { %v1770_v32 = vadd.s32 280, %v4886_v61  ;;  %v1752_v33 = vadd.s32 272, %v4886_v61  ;;  %v1637_v35 = vsel %vm4915_vm8, %v1632_v25, 0.0  ;;  %v1619_v36 = vsel %vm4915_vm8, %v1614_v26, 0.0 }
 0x120   : > { %v1668_v38 = vsel %vm1092_vm13, 0.0, %v1667_v27  ;;  %v1650_v39 = vsel %vm1092_vm13, 0.0, %v1649_v28  ;;  %v1703_v40 = vmul.f32 %v4919_v37, %v1701_v59  ;;  %v1685_v41 = vmul.f32 %v4919_v37, %v1683_v29 }
 0x121   : > { %1458 = vadd.xlane.f32.xlu1 %v1457_v30  ;;  %1440 = vadd.xlane.f32.xlu0 %v1439_v31  ;;  %v4207_v30 = vld [vmem:[%s4888_s14 + $0x108] sm:$0xff]  ;;  %v4206_v31 = vld [vmem:[%s4888_s14 + $0x100] sm:$0xff]  ;;  %vm1772_vm9 = vcmp.gt.s32.totalorder %v1770_v32, %v4746_v62  ;;  %vm1754_vm10 = vcmp.gt.s32.totalorder %v1752_v33, %v4746_v62  ;;  %v1806_v46 = vadd.s32 296, %v4886_v61  ;;  %v1788_v48 = vadd.s32 288, %v4886_v61 }
 0x122   : > { %v1737_v42 = vsel %vm1736_vm6, %v4207_v30, 0.0  ;;  %v1719_v43 = vsel %vm1718_vm7, %v4206_v31, 0.0  ;;  %v1673_v49 = vsel %vm4915_vm8, %v1668_v38, 0.0  ;;  %v1655_v50 = vsel %vm4915_vm8, %v1650_v39, 0.0 }
 0x123   : > { %v1704_v51 = vsel %vm1092_vm13, 0.0, %v1703_v40  ;;  %v1686_v52 = vsel %vm1092_vm13, 0.0, %v1685_v41  ;;  %v1739_v53 = vmul.f32 %v4919_v37, %v1737_v42  ;;  %v1721_v54 = vmul.f32 %v4919_v37, %v1719_v43 }
 0x124   : > { %vm1808_vm11 = vcmp.gt.s32.totalorder %v1806_v46, %v4746_v62  ;;  %vm1790_vm12 = vcmp.gt.s32.totalorder %v1788_v48, %v4746_v62  ;;  %v1842_v60 = vadd.s32 312, %v4886_v61  ;;  %v1824_v63 = vadd.s32 304, %v4886_v61 }
 0x125   : > { %1494 = vadd.xlane.f32.xlu1 %v1493_v44  ;;  %1476 = vadd.xlane.f32.xlu0 %v1475_v45  ;;  %v4209_v44 = vld [vmem:[%s4888_s14 + $0x118] sm:$0xff]  ;;  %v4208_v45 = vld [vmem:[%s4888_s14 + $0x110] sm:$0xff]  ;;  %v1709_v0 = vsel %vm4915_vm8, %v1704_v51, 0.0  ;;  %v1691_v1 = vsel %vm4915_vm8, %v1686_v52, 0.0  ;;  %v1740_v2 = vsel %vm1092_vm13, 0.0, %v1739_v53  ;;  %v1722_v3 = vsel %vm1092_vm13, 0.0, %v1721_v54 }
 0x126   : > { %v1773_v55 = vsel %vm1772_vm9, %v4209_v44, 0.0  ;;  %v1755_v56 = vsel %vm1754_vm10, %v4208_v45, 0.0  ;;  %vm1844_vm14 = vcmp.gt.s32.totalorder %v1842_v60, %v4746_v62  ;;  %vm1826_vm15 = vcmp.gt.s32.totalorder %v1824_v63, %v4746_v62 }
 0x127   : > { %v1775_v4 = vmul.f32 %v4919_v37, %v1773_v55  ;;  %v1757_v5 = vmul.f32 %v4919_v37, %v1755_v56  ;;  %v1878_v10 = vadd.s32 328, %v4886_v61  ;;  %v1860_v11 = vadd.s32 320, %v4886_v61 }
 0x128   : > { %v1745_v12 = vsel %vm4915_vm8, %v1740_v2, 0.0  ;;  %v1727_v13 = vsel %vm4915_vm8, %v1722_v3, 0.0  ;;  %v1914_v25 = vadd.s32 344, %v4886_v61  ;;  %v1896_v26 = vadd.s32 336, %v4886_v61 }
 0x129   : > { %1530 = vadd.xlane.f32.xlu1 %v1529_v57  ;;  %1512 = vadd.xlane.f32.xlu0 %v1511_v58  ;;  %v4211_v57 = vld [vmem:[%s4888_s14 + $0x128] sm:$0xff]  ;;  %v4210_v58 = vld [vmem:[%s4888_s14 + $0x120] sm:$0xff]  ;;  %v1776_v16 = vsel %vm1092_vm13, 0.0, %v1775_v4  ;;  %v1758_v17 = vsel %vm1092_vm13, 0.0, %v1757_v5  ;;  %vm1880_vm0 = vcmp.gt.s32.totalorder %v1878_v10, %v4746_v62  ;;  %vm1862_vm1 = vcmp.gt.s32.totalorder %v1860_v11, %v4746_v62 }
 0x12a   : > { %v1809_v6 = vsel %vm1808_vm11, %v4211_v57, 0.0  ;;  %v1791_v7 = vsel %vm1790_vm12, %v4210_v58, 0.0  ;;  %v1781_v27 = vsel %vm4915_vm8, %v1776_v16, 0.0  ;;  %v1763_v28 = vsel %vm4915_vm8, %v1758_v17, 0.0 }
 0x12b   : > { %v1811_v18 = vmul.f32 %v4919_v37, %v1809_v6  ;;  %v1793_v19 = vmul.f32 %v4919_v37, %v1791_v7  ;;  %vm1916_vm2 = vcmp.gt.s32.totalorder %v1914_v25, %v4746_v62  ;;  %vm1898_vm3 = vcmp.gt.s32.totalorder %v1896_v26, %v4746_v62 }
 0x12c   : > { %v1950_v38 = vadd.s32 360, %v4886_v61  ;;  %v1932_v39 = vadd.s32 352, %v4886_v61  ;;  %v1986_v51 = vadd.s32 376, %v4886_v61  ;;  %v1968_v52 = vadd.s32 368, %v4886_v61 }
 0x12d   : > { %1566 = vadd.xlane.f32.xlu1 %v1565_v8  ;;  %1548 = vadd.xlane.f32.xlu0 %v1547_v9  ;;  %v4213_v8 = vld [vmem:[%s4888_s14 + $0x138] sm:$0xff]  ;;  %v4212_v9 = vld [vmem:[%s4888_s14 + $0x130] sm:$0xff]  ;;  %v1812_v59 = vsel %vm1092_vm13, 0.0, %v1811_v18  ;;  %v1794_v29 = vsel %vm1092_vm13, 0.0, %v1793_v19  ;;  %v2022_v2 = vadd.s32 392, %v4886_v61  ;;  %v2004_v3 = vadd.s32 384, %v4886_v61 }
 0x12e   : > { %v1845_v20 = vsel %vm1844_vm14, %v4213_v8, 0.0  ;;  %v1827_v21 = vsel %vm1826_vm15, %v4212_v9, 0.0  ;;  %v1817_v40 = vsel %vm4915_vm8, %v1812_v59, 0.0  ;;  %v1799_v41 = vsel %vm4915_vm8, %v1794_v29, 0.0 }
 0x12f   : > { %v1847_v30 = vmul.f32 %v4919_v37, %v1845_v20  ;;  %v1829_v31 = vmul.f32 %v4919_v37, %v1827_v21  ;;  %vm1952_vm4 = vcmp.gt.s32.totalorder %v1950_v38, %v4746_v62  ;;  %vm1934_vm5 = vcmp.gt.s32.totalorder %v1932_v39, %v4746_v62 }
 0x130   : > { %vm1988_vm6 = vcmp.gt.s32.totalorder %v1986_v51, %v4746_v62  ;;  %vm1970_vm7 = vcmp.gt.s32.totalorder %v1968_v52, %v4746_v62  ;;  %vm2024_vm9 = vcmp.gt.s32.totalorder %v2022_v2, %v4746_v62  ;;  %vm2006_vm10 = vcmp.gt.s32.totalorder %v2004_v3, %v4746_v62 }
 0x131   : > { %1602 = vadd.xlane.f32.xlu1 %v1601_v23  ;;  %1584 = vadd.xlane.f32.xlu0 %v1583_v24  ;;  %v4215_v23 = vld [vmem:[%s4888_s14 + $0x148] sm:$0xff]  ;;  %v4214_v24 = vld [vmem:[%s4888_s14 + $0x140] sm:$0xff]  ;;  %v1848_v42 = vsel %vm1092_vm13, 0.0, %v1847_v30  ;;  %v1830_v43 = vsel %vm1092_vm13, 0.0, %v1829_v31  ;;  %v2058_v16 = vadd.s32 408, %v4886_v61  ;;  %v2040_v17 = vadd.s32 400, %v4886_v61 }
 0x132   : > { %v1881_v32 = vsel %vm1880_vm0, %v4215_v23, 0.0  ;;  %v1863_v33 = vsel %vm1862_vm1, %v4214_v24, 0.0  ;;  %v1853_v53 = vsel %vm4915_vm8, %v1848_v42, 0.0  ;;  %v1835_v54 = vsel %vm4915_vm8, %v1830_v43, 0.0 }
 0x133   : > { %v1883_v44 = vmul.f32 %v4919_v37, %v1881_v32  ;;  %v1865_v45 = vmul.f32 %v4919_v37, %v1863_v33  ;;  %vm2060_vm11 = vcmp.gt.s32.totalorder %v2058_v16, %v4746_v62  ;;  %vm2042_vm12 = vcmp.gt.s32.totalorder %v2040_v17, %v4746_v62 }
 0x134   : > { %v2094_v59 = vadd.s32 424, %v4886_v61  ;;  %v2076_v29 = vadd.s32 416, %v4886_v61  ;;  %v2130_v42 = vadd.s32 440, %v4886_v61  ;;  %v2112_v43 = vadd.s32 432, %v4886_v61 }
 0x135   : > { %1638 = vadd.xlane.f32.xlu1 %v1637_v35  ;;  %1620 = vadd.xlane.f32.xlu0 %v1619_v36  ;;  %v4217_v35 = vld [vmem:[%s4888_s14 + $0x158] sm:$0xff]  ;;  %v4216_v36 = vld [vmem:[%s4888_s14 + $0x150] sm:$0xff]  ;;  %v1884_v55 = vsel %vm1092_vm13, 0.0, %v1883_v44  ;;  %v1866_v56 = vsel %vm1092_vm13, 0.0, %v1865_v45 }
 0x136   : > { %v1917_v46 = vsel %vm1916_vm2, %v4217_v35, 0.0  ;;  %v1899_v48 = vsel %vm1898_vm3, %v4216_v36, 0.0  ;;  %v1889_v4 = vsel %vm4915_vm8, %v1884_v55, 0.0  ;;  %v1871_v5 = vsel %vm4915_vm8, %v1866_v56, 0.0  ;;  %v4228_v55 = vld [vmem:[%s4888_s14 + $0x1b0] sm:$0xff] }
 0x137   : > { %v1919_v57 = vmul.f32 %v4919_v37, %v1917_v46  ;;  %v1901_v58 = vmul.f32 %v4919_v37, %v1899_v48  ;;  %vm2096_vm14 = vcmp.gt.s32.totalorder %v2094_v59, %v4746_v62  ;;  %vm2078_vm15 = vcmp.gt.s32.totalorder %v2076_v29, %v4746_v62 }
 0x138   : > { %v2166_v46 = vadd.s32 456, %v4886_v61  ;;  %vm2132_vm0 = vcmp.gt.s32.totalorder %v2130_v42, %v4746_v62  ;;  %vm2114_vm1 = vcmp.gt.s32.totalorder %v2112_v43, %v4746_v62  ;;  %v2148_v56 = vadd.s32 448, %v4886_v61 }
 0x139   : > { %1674 = vadd.xlane.f32.xlu1 %v1673_v49  ;;  %1656 = vadd.xlane.f32.xlu0 %v1655_v50  ;;  %v4219_v49 = vld [vmem:[%s4888_s14 + $0x168] sm:$0xff]  ;;  %v4218_v50 = vld [vmem:[%s4888_s14 + $0x160] sm:$0xff]  ;;  %v1920_v6 = vsel %vm1092_vm13, 0.0, %v1919_v57  ;;  %v1902_v7 = vsel %vm1092_vm13, 0.0, %v1901_v58  ;;  %v2115_v3 = vsel %vm2114_vm1, %v4228_v55, 0.0  ;;  %v2204_v61 = vmov %v4743_v61 }
 0x13a   : > { %v1953_v60 = vsel %vm1952_vm4, %v4219_v49, 0.0  ;;  %v1935_v63 = vsel %vm1934_vm5, %v4218_v50, 0.0  ;;  %v1925_v18 = vsel %vm4915_vm8, %v1920_v6, 0.0  ;;  %v1907_v19 = vsel %vm4915_vm8, %v1902_v7, 0.0  ;;  %v4230_v6 = vld [vmem:[%s4888_s14 + $0x1c0] sm:$0xff] }
 0x13b   : > { %v1955_v8 = vmul.f32 %v4919_v37, %v1953_v60  ;;  %v1937_v9 = vmul.f32 %v4919_v37, %v1935_v63  ;;  %vm2168_vm2 = vcmp.gt.s32.totalorder %v2166_v46, %v4746_v62  ;;  %vm2169_vm3 = vcmp.lt.s32.totalorder %v2166_v46, 462 }
 0x13c   : > { %vm5335_vm4 = vmand %vm2168_vm2, %vm2169_vm3  ;;  %vm2150_vm5 = vcmp.gt.s32.totalorder %v2148_v56, %v4746_v62 }
 0x13d   : > { %1710 = vadd.xlane.f32.xlu1 %v1709_v0  ;;  %1692 = vadd.xlane.f32.xlu0 %v1691_v1  ;;  %v4221_v0 = vld [vmem:[%s4888_s14 + $0x178] sm:$0xff]  ;;  %v4220_v1 = vld [vmem:[%s4888_s14 + $0x170] sm:$0xff]  ;;  %v1956_v20 = vsel %vm1092_vm13, 0.0, %v1955_v8  ;;  %v1938_v21 = vsel %vm1092_vm13, 0.0, %v1937_v9  ;;  %v2151_v16 = vsel %vm2150_vm5, %v4230_v6, 0.0 }
 0x13e   : > { %v1989_v10 = vsel %vm1988_vm6, %v4221_v0, 0.0  ;;  %v1971_v11 = vsel %vm1970_vm7, %v4220_v1, 0.0  ;;  %v1961_v30 = vsel %vm4915_vm8, %v1956_v20, 0.0  ;;  %v1943_v31 = vsel %vm4915_vm8, %v1938_v21, 0.0 }
 0x13f   : > { %v1991_v23 = vmul.f32 %v4919_v37, %v1989_v10  ;;  %v1973_v24 = vmul.f32 %v4919_v37, %v1971_v11 }
 0x141   : > { %1746 = vadd.xlane.f32.xlu1 %v1745_v12  ;;  %1728 = vadd.xlane.f32.xlu0 %v1727_v13  ;;  %v4223_v12 = vld [vmem:[%s4888_s14 + $0x188] sm:$0xff]  ;;  %v4222_v13 = vld [vmem:[%s4888_s14 + $0x180] sm:$0xff]  ;;  %v1992_v32 = vsel %vm1092_vm13, 0.0, %v1991_v23  ;;  %v1974_v33 = vsel %vm1092_vm13, 0.0, %v1973_v24  ;;  %v2153_v23 = vmul.f32 %v4919_v37, %v2151_v16 }
 0x142   : > { %v2025_v25 = vsel %vm2024_vm9, %v4223_v12, 0.0  ;;  %v2007_v26 = vsel %vm2006_vm10, %v4222_v13, 0.0  ;;  %v1997_v44 = vsel %vm4915_vm8, %v1992_v32, 0.0  ;;  %v1979_v45 = vsel %vm4915_vm8, %v1974_v33, 0.0 }
 0x143   : > { %v2027_v35 = vmul.f32 %v4919_v37, %v2025_v25  ;;  %v2009_v36 = vmul.f32 %v4919_v37, %v2007_v26  ;;  %v2117_v12 = vmul.f32 %v4919_v37, %v2115_v3 }
 0x145   : > { %1782 = vadd.xlane.f32.xlu1 %v1781_v27  ;;  %1764 = vadd.xlane.f32.xlu0 %v1763_v28  ;;  %v4225_v27 = vld [vmem:[%s4888_s14 + $0x198] sm:$0xff]  ;;  %v4224_v28 = vld [vmem:[%s4888_s14 + $0x190] sm:$0xff]  ;;  %v2028_v48 = vsel %vm1092_vm13, 0.0, %v2027_v35  ;;  %v2010_v49 = vsel %vm1092_vm13, 0.0, %v2009_v36  ;;  %v2118_v20 = vsel %vm1092_vm13, 0.0, %v2117_v12 }
 0x146   : > { %v2061_v38 = vsel %vm2060_vm11, %v4225_v27, 0.0  ;;  %v2043_v39 = vsel %vm2042_vm12, %v4224_v28, 0.0  ;;  %v2033_v57 = vsel %vm4915_vm8, %v2028_v48, 0.0  ;;  %v2015_v58 = vsel %vm4915_vm8, %v2010_v49, 0.0 }
 0x147   : > { %v2063_v50 = vmul.f32 %v4919_v37, %v2061_v38  ;;  %v2045_v51 = vmul.f32 %v4919_v37, %v2043_v39  ;;  %v2123_v25 = vsel %vm4915_vm8, %v2118_v20, 0.0  ;;  %v2154_v27 = vsel %vm1092_vm13, 0.0, %v2153_v23  ;;  %v4537_v38 = vld [vmem:[%s1100_s0] ss:$0 sm:$0xff] }
 0x148   : > { %v1130_v39 = vsub.f32 %v4877_v14, %v4537_v38  ;;  %v4235_v38 = vld [vmem:[%s5384_s16 + $0x10] sm:$0xff] }
 0x149   : > { %1818 = vadd.xlane.f32.xlu1 %v1817_v40  ;;  %1800 = vadd.xlane.f32.xlu0 %v1799_v41  ;;  %v4227_v40 = vld [vmem:[%s4888_s14 + $0x1a8] sm:$0xff]  ;;  %v4226_v41 = vld [vmem:[%s4888_s14 + $0x1a0] sm:$0xff]  ;;  %v2064_v60 = vsel %vm1092_vm13, 0.0, %v2063_v50  ;;  %v2046_v63 = vsel %vm1092_vm13, 0.0, %v2045_v51 }
 0x14a   : > { %v2097_v52 = vsel %vm2096_vm14, %v4227_v40, 0.0  ;;  %v2069_v7 = vsel %vm4915_vm8, %v2064_v60, 0.0  ;;  %v2051_v8 = vsel %vm4915_vm8, %v2046_v63, 0.0  ;;  %v4536_v40 = vpop.eup %4535 }
 0x14b   : > { %v2099_v0 = vmul.f32 %v4919_v37, %v2097_v52 }
 0x14d   : > { %1854 = vadd.xlane.f32.xlu1 %v1853_v53  ;;  %1836 = vadd.xlane.f32.xlu0 %v1835_v54  ;;  %v2079_v53 = vsel %vm2078_vm15, %v4226_v41, 0.0  ;;  %v4229_v54 = vld [vmem:[%s4888_s14 + $0x1b8] sm:$0xff]  ;;  %v2100_v9 = vsel %vm1092_vm13, 0.0, %v2099_v0  ;;  %v1132_v41 = vmul.f32 %v4536_v40, %v1130_v39  ;;  %vm5625_vm15 = vcmp.gt.s32.totalorder %v4896_v22, %v4746_v62 }
 0x14e   : > { %v2081_v1 = vmul.f32 %v4919_v37, %v2079_v53  ;;  %v2133_v2 = vsel %vm2132_vm0, %v4229_v54, 0.0  ;;  %v2105_v17 = vsel %vm4915_vm8, %v2100_v9, 0.0 }
 0x14f   : > { %v2135_v11 = vmul.f32 %v4919_v37, %v2133_v2 }
 0x150   : > { %v2082_v10 = vsel %vm1092_vm13, 0.0, %v2081_v1 }
 0x151   : > { %1890 = vadd.xlane.f32.xlu1 %v1889_v4  ;;  %1872 = vadd.xlane.f32.xlu0 %v1871_v5  ;;  %v4231_v4 = vld [vmem:[%s4888_s14 + $0x1c8] sm:$0xff] }
 0x152   : > { %v2171_v13 = vsel %vm5335_vm4, %v4231_v4, 0.0 }
 0x153   : > { %v2173_v21 = vmul.f32 %v4919_v37, %v2171_v13  ;;  %v2159_v37 = vsel %vm4915_vm8, %v2154_v27, 0.0 }
 0x155   : > { %1926 = vadd.xlane.f32.xlu1 %v1925_v18  ;;  %1908 = vadd.xlane.f32.xlu0 %v1907_v19  ;;  %v2087_v18 = vsel %vm4915_vm8, %v2082_v10, 0.0  ;;  %v2136_v19 = vsel %vm1092_vm13, 0.0, %v2135_v11  ;;  %v2174_v26 = vsel %vm1092_vm13, 0.0, %v2173_v21 }
 0x156   : > { %v2141_v24 = vsel %vm4915_vm8, %v2136_v19, 0.0  ;;  %v2179_v28 = vsel %vm4915_vm8, %v2174_v26, 0.0 }
 0x159   : > { %1962 = vadd.xlane.f32.xlu1 %v1961_v30  ;;  %1944 = vadd.xlane.f32.xlu0 %v1943_v31 }
 0x15d   : > { %1998 = vadd.xlane.f32.xlu1 %v1997_v44  ;;  %1980 = vadd.xlane.f32.xlu0 %v1979_v45  ;;  %v1134_v44 = vsel %vm1092_vm13, 0.0, %v1132_v41 }
 0x15e   : > { %v2190_v45 = vsel %vm4915_vm8, %v1134_v44, 0.0  ;;  %v4237_v44 = vld [vmem:[%s5384_s16 + $0x18] sm:$0xff] }
 0x161   : > { %2034 = vadd.xlane.f32.xlu1 %v2033_v57  ;;  %2016 = vadd.xlane.f32.xlu0 %v2015_v58 }
 0x165   : > { %2070 = vadd.xlane.f32.xlu1 %v2069_v7  ;;  %2052 = vadd.xlane.f32.xlu0 %v2051_v8 }
 0x169   : > { %2106 = vadd.xlane.f32.xlu1 %v2105_v17  ;;  %2088 = vadd.xlane.f32.xlu0 %v2087_v18 }
 0x16d   : > { %2142 = vadd.xlane.f32.xlu1 %v2141_v24  ;;  %2124 = vadd.xlane.f32.xlu0 %v2123_v25 }
 0x171   : > { %2180 = vadd.xlane.f32.xlu1 %v2179_v28  ;;  %2160 = vadd.xlane.f32.xlu0 %v2159_v37 }
 0x175   : > { %2191 = vadd.xlane.f32.xlu0 %v2190_v45 }
 0x18a   : > { %v1189_v59 = vpop.xlane.xlu1 %1188  ;;  %v1154_v29 = vpop.xlane.xlu0 %1153 }
 0x18b   : > { %1191 = vst [vmem:[#allocation4 + $0x10] sm:$0xff] %v1189_v59  ;;  %1155 = vst [vmem:[#allocation4] sm:$0xff] %v1154_v29 }
 0x18e   : > { %v1207_v30 = vpop.xlane.xlu1 %1206  ;;  %v1171_v31 = vpop.xlane.xlu0 %1170 }
 0x18f   : > { %1209 = vst [vmem:[#allocation4 + $0x18] sm:$0xff] %v1207_v30  ;;  %1173 = vst [vmem:[#allocation4 + $0x8] sm:$0xff] %v1171_v31 }
 0x192   : > { %v1243_v32 = vpop.xlane.xlu1 %1242  ;;  %v1225_v33 = vpop.xlane.xlu0 %1224 }
 0x193   : > { %1245 = vst [vmem:[#allocation4 + $0x28] sm:$0xff] %v1243_v32  ;;  %1227 = vst [vmem:[#allocation4 + $0x20] sm:$0xff] %v1225_v33  ;;  %v4547_v33 = vmov 1.0  }
 0x196   : > { %v1279_v35 = vpop.xlane.xlu1 %1278  ;;  %v1261_v36 = vpop.xlane.xlu0 %1260 }
 0x197   : > { %1281 = vst [vmem:[#allocation4 + $0x38] sm:$0xff] %v1279_v35  ;;  %1263 = vst [vmem:[#allocation4 + $0x30] sm:$0xff] %v1261_v36  ;;  %v2207_v35 = vld [vmem:[%s5384_s16] sm:$0xff]  ;;  %v4233_v36 = vld [vmem:[%s5384_s16 + $0x8] sm:$0xff] }
 0x19a   : > { %v1315_v42 = vpop.xlane.xlu1 %1314  ;;  %v1297_v43 = vpop.xlane.xlu0 %1296 }
 0x19b   : > { %1317 = vst [vmem:[#allocation4 + $0x48] sm:$0xff] %v1315_v42  ;;  %1299 = vst [vmem:[#allocation4 + $0x40] sm:$0xff] %v1297_v43 }
 0x19e   : > { %v1351_v46 = vpop.xlane.xlu1 %1350  ;;  %v1333_v48 = vpop.xlane.xlu0 %1332 }
 0x19f   : > { %1353 = vst [vmem:[#allocation4 + $0x58] sm:$0xff] %v1351_v46  ;;  %1335 = vst [vmem:[#allocation4 + $0x50] sm:$0xff] %v1333_v48 }
 0x1a2   : > { %v1387_v14 = vpop.xlane.xlu1 %1386  ;;  %v1369_v49 = vpop.xlane.xlu0 %1368 }
 0x1a3   : > { %1389 = vst [vmem:[#allocation4 + $0x68] sm:$0xff] %v1387_v14  ;;  %1371 = vst [vmem:[#allocation4 + $0x60] sm:$0xff] %v1369_v49  ;;  %v4239_v14 = vld [vmem:[%s5384_s16 + $0x20] sm:$0xff] }
 0x1a6   : > { %v1423_v50 = vpop.xlane.xlu1 %1422  ;;  %v1405_v51 = vpop.xlane.xlu0 %1404 }
 0x1a7   : > { %1425 = vst [vmem:[#allocation4 + $0x78] sm:$0xff] %v1423_v50  ;;  %1407 = vst [vmem:[#allocation4 + $0x70] sm:$0xff] %v1405_v51 }
 0x1aa   : > { %v1459_v47 = vpop.xlane.xlu1 %1458  ;;  %v1441_v52 = vpop.xlane.xlu0 %1440 }
 0x1ab   : > { %1461 = vst [vmem:[#allocation4 + $0x88] sm:$0xff] %v1459_v47  ;;  %1443 = vst [vmem:[#allocation4 + $0x80] sm:$0xff] %v1441_v52  ;;  %v4241_v47 = vld [vmem:[%s5384_s16 + $0x28] sm:$0xff] }
 0x1ae   : > { %v1495_v53 = vpop.xlane.xlu1 %1494  ;;  %v1477_v54 = vpop.xlane.xlu0 %1476 }
 0x1af   : > { %1497 = vst [vmem:[#allocation4 + $0x98] sm:$0xff] %v1495_v53  ;;  %1479 = vst [vmem:[#allocation4 + $0x90] sm:$0xff] %v1477_v54 }
 0x1b2   : > { %v1531_v55 = vpop.xlane.xlu1 %1530  ;;  %v1513_v56 = vpop.xlane.xlu0 %1512 }
 0x1b3   : > { %1533 = vst [vmem:[#allocation4 + $0xa8] sm:$0xff] %v1531_v55  ;;  %1515 = vst [vmem:[#allocation4 + $0xa0] sm:$0xff] %v1513_v56  ;;  %v4243_v55 = vld [vmem:[%s5384_s16 + $0x30] sm:$0xff] }
 0x1b6   : > { %v1567_v57 = vpop.xlane.xlu1 %1566  ;;  %v1549_v58 = vpop.xlane.xlu0 %1548 }
 0x1b7   : > { %1569 = vst [vmem:[#allocation4 + $0xb8] sm:$0xff] %v1567_v57  ;;  %1551 = vst [vmem:[#allocation4 + $0xb0] sm:$0xff] %v1549_v58 }
 0x1ba   : > { %v1603_v60 = vpop.xlane.xlu1 %1602  ;;  %v1585_v63 = vpop.xlane.xlu0 %1584 }
 0x1bb   : > { %1605 = vst [vmem:[#allocation4 + $0xc8] sm:$0xff] %v1603_v60  ;;  %1587 = vst [vmem:[#allocation4 + $0xc0] sm:$0xff] %v1585_v63  ;;  %v4245_v60 = vld [vmem:[%s5384_s16 + $0x38] sm:$0xff] }
 0x1be   : > { %v1639_v0 = vpop.xlane.xlu1 %1638  ;;  %v1621_v1 = vpop.xlane.xlu0 %1620 }
 0x1bf   : > { %1641 = vst [vmem:[#allocation4 + $0xd8] sm:$0xff] %v1639_v0  ;;  %1623 = vst [vmem:[#allocation4 + $0xd0] sm:$0xff] %v1621_v1 }
 0x1c2   : > { %v1675_v2 = vpop.xlane.xlu1 %1674  ;;  %v1657_v3 = vpop.xlane.xlu0 %1656 }
 0x1c3   : > { %1677 = vst [vmem:[#allocation4 + $0xe8] sm:$0xff] %v1675_v2  ;;  %1659 = vst [vmem:[#allocation4 + $0xe0] sm:$0xff] %v1657_v3  ;;  %v4247_v2 = vld [vmem:[%s5384_s16 + $0x40] sm:$0xff] }
 0x1c6   : > { %v1711_v4 = vpop.xlane.xlu1 %1710  ;;  %v1693_v5 = vpop.xlane.xlu0 %1692 }
 0x1c7   : > { %1713 = vst [vmem:[#allocation4 + $0xf8] sm:$0xff] %v1711_v4  ;;  %1695 = vst [vmem:[#allocation4 + $0xf0] sm:$0xff] %v1693_v5 }
 0x1ca   : > { %v1747_v6 = vpop.xlane.xlu1 %1746  ;;  %v1729_v7 = vpop.xlane.xlu0 %1728 }
 0x1cb   : > { %1749 = vst [vmem:[#allocation4 + $0x108] sm:$0xff] %v1747_v6  ;;  %1731 = vst [vmem:[#allocation4 + $0x100] sm:$0xff] %v1729_v7  ;;  %v4249_v6 = vld [vmem:[%s5384_s16 + $0x48] sm:$0xff] }
 0x1ce   : > { %v1783_v8 = vpop.xlane.xlu1 %1782  ;;  %v1765_v9 = vpop.xlane.xlu0 %1764 }
 0x1cf   : > { %1785 = vst [vmem:[#allocation4 + $0x118] sm:$0xff] %v1783_v8  ;;  %1767 = vst [vmem:[#allocation4 + $0x110] sm:$0xff] %v1765_v9 }
 0x1d2   : > { %v1819_v10 = vpop.xlane.xlu1 %1818  ;;  %v1801_v11 = vpop.xlane.xlu0 %1800 }
 0x1d3   : > { %1821 = vst [vmem:[#allocation4 + $0x128] sm:$0xff] %v1819_v10  ;;  %1803 = vst [vmem:[#allocation4 + $0x120] sm:$0xff] %v1801_v11  ;;  %v4251_v10 = vld [vmem:[%s5384_s16 + $0x50] sm:$0xff] }
 0x1d6   : > { %v1855_v12 = vpop.xlane.xlu1 %1854  ;;  %v1837_v13 = vpop.xlane.xlu0 %1836 }
 0x1d7   : > { %1857 = vst [vmem:[#allocation4 + $0x138] sm:$0xff] %v1855_v12  ;;  %1839 = vst [vmem:[#allocation4 + $0x130] sm:$0xff] %v1837_v13 }
 0x1da   : > { %v1891_v16 = vpop.xlane.xlu1 %1890  ;;  %v1873_v17 = vpop.xlane.xlu0 %1872 }
 0x1db   : > { %1893 = vst [vmem:[#allocation4 + $0x148] sm:$0xff] %v1891_v16  ;;  %1875 = vst [vmem:[#allocation4 + $0x140] sm:$0xff] %v1873_v17  ;;  %v4253_v16 = vld [vmem:[%s5384_s16 + $0x58] sm:$0xff] }
 0x1de   : > { %v1927_v18 = vpop.xlane.xlu1 %1926  ;;  %v1909_v19 = vpop.xlane.xlu0 %1908 }
 0x1df   : > { %1929 = vst [vmem:[#allocation4 + $0x158] sm:$0xff] %v1927_v18  ;;  %1911 = vst [vmem:[#allocation4 + $0x150] sm:$0xff] %v1909_v19 }
 0x1e2   : > { %v1963_v20 = vpop.xlane.xlu1 %1962  ;;  %v1945_v21 = vpop.xlane.xlu0 %1944 }
 0x1e3   : > { %1965 = vst [vmem:[#allocation4 + $0x168] sm:$0xff] %v1963_v20  ;;  %1947 = vst [vmem:[#allocation4 + $0x160] sm:$0xff] %v1945_v21  ;;  %v4255_v20 = vld [vmem:[%s5384_s16 + $0x60] sm:$0xff] }
 0x1e6   : > { %v1999_v23 = vpop.xlane.xlu1 %1998  ;;  %v1981_v24 = vpop.xlane.xlu0 %1980 }
 0x1e7   : > { %2001 = vst [vmem:[#allocation4 + $0x178] sm:$0xff] %v1999_v23  ;;  %1983 = vst [vmem:[#allocation4 + $0x170] sm:$0xff] %v1981_v24 }
 0x1ea   : > { %v2035_v25 = vpop.xlane.xlu1 %2034  ;;  %v2017_v26 = vpop.xlane.xlu0 %2016 }
 0x1eb   : > { %2037 = vst [vmem:[#allocation4 + $0x188] sm:$0xff] %v2035_v25  ;;  %2019 = vst [vmem:[#allocation4 + $0x180] sm:$0xff] %v2017_v26  ;;  %v4257_v25 = vld [vmem:[%s5384_s16 + $0x68] sm:$0xff] }
 0x1ee   : > { %v2071_v27 = vpop.xlane.xlu1 %2070  ;;  %v2053_v28 = vpop.xlane.xlu0 %2052 }
 0x1ef   : > { %2073 = vst [vmem:[#allocation4 + $0x198] sm:$0xff] %v2071_v27  ;;  %2055 = vst [vmem:[#allocation4 + $0x190] sm:$0xff] %v2053_v28 }
 0x1f2   : > { %v2107_v37 = vpop.xlane.xlu1 %2106  ;;  %v2089_v59 = vpop.xlane.xlu0 %2088 }
 0x1f3   : > { %2109 = vst [vmem:[#allocation4 + $0x1a8] sm:$0xff] %v2107_v37  ;;  %2091 = vst [vmem:[#allocation4 + $0x1a0] sm:$0xff] %v2089_v59  ;;  %v4259_v37 = vld [vmem:[%s5384_s16 + $0x70] sm:$0xff] }
 0x1f6   : > { %v2143_v29 = vpop.xlane.xlu1 %2142  ;;  %v2125_v30 = vpop.xlane.xlu0 %2124 }
 0x1f7   : > { %2145 = vst [vmem:[#allocation4 + $0x1b8] sm:$0xff] %v2143_v29  ;;  %2127 = vst [vmem:[#allocation4 + $0x1b0] sm:$0xff] %v2125_v30 }
 0x1fa   : > { %v2181_v31 = vpop.xlane.xlu1 %2180  ;;  %v2161_v32 = vpop.xlane.xlu0 %2160 }
 0x1fb   : > { %2183 = vst [vmem:[#allocation4 + $0x1c8] sm:$0xff] %v2181_v31  ;;  %2163 = vst [vmem:[#allocation4 + $0x1c0] sm:$0xff] %v2161_v32  ;;  %v4261_v31 = vld [vmem:[%s5384_s16 + $0x78] sm:$0xff] }
 0x1fc   : > { %2185 = vst [vmem:[%s2184_s15] sm:$0x1] %v4547_v33 }
 0x203   : > { %v2206_v39 = vld [vmem:[%s5386_s17] sm:$0xff]  ;;  %v4232_v40 = vld [vmem:[%s5386_s17 + $0x8] sm:$0xff]  ;;  %v4234_v41 = vld [vmem:[%s5386_s17 + $0x10] sm:$0xff] }
 0x204   : > { %v2208_v42 = vmul.f32 %v2207_v35, %v2206_v39  ;;  %v2214_v43 = vmul.f32 %v4233_v36, %v4232_v40  ;;  %v4236_v45 = vld [vmem:[%s5386_s17 + $0x18] sm:$0xff]  ;;  %v2221_v48 = vmul.f32 %v4235_v38, %v4234_v41  ;;  %v4238_v49 = vld [vmem:[%s5386_s17 + $0x20] sm:$0xff]  ;;  %v4240_v52 = vld [vmem:[%s5386_s17 + $0x28] sm:$0xff] }
 0x205   : > { %v2228_v51 = vmul.f32 %v4237_v44, %v4236_v45  ;;  %v2235_v54 = vmul.f32 %v4239_v14, %v4238_v49  ;;  %v4242_v56 = vld [vmem:[%s5386_s17 + $0x30] sm:$0xff]  ;;  %v2242_v58 = vmul.f32 %v4241_v47, %v4240_v52  ;;  %v4244_v63 = vld [vmem:[%s5386_s17 + $0x38] sm:$0xff]  ;;  %v4246_v3 = vld [vmem:[%s5386_s17 + $0x40] sm:$0xff] }
 0x206   : > { %v2215_v46 = vadd.f32 %v2214_v43, %v2208_v42  ;;  %v2249_v1 = vmul.f32 %v4243_v55, %v4242_v56  ;;  %v2256_v5 = vmul.f32 %v4245_v60, %v4244_v63  ;;  %v4248_v7 = vld [vmem:[%s5386_s17 + $0x48] sm:$0xff]  ;;  %v2263_v9 = vmul.f32 %v4247_v2, %v4246_v3  ;;  %v4250_v11 = vld [vmem:[%s5386_s17 + $0x50] sm:$0xff]  ;;  %v4252_v17 = vld [vmem:[%s5386_s17 + $0x58] sm:$0xff] }
 0x207   : > { %v2270_v13 = vmul.f32 %v4249_v6, %v4248_v7  ;;  %v2277_v19 = vmul.f32 %v4251_v10, %v4250_v11  ;;  %v4254_v21 = vld [vmem:[%s5386_s17 + $0x60] sm:$0xff]  ;;  %v2284_v24 = vmul.f32 %v4253_v16, %v4252_v17  ;;  %v4256_v26 = vld [vmem:[%s5386_s17 + $0x68] sm:$0xff]  ;;  %v4258_v59 = vld [vmem:[%s5386_s17 + $0x70] sm:$0xff] }
 0x208   : > { %v2222_v50 = vadd.f32 %v2221_v48, %v2215_v46  ;;  %v2291_v28 = vmul.f32 %v4255_v20, %v4254_v21  ;;  %v2298_v30 = vmul.f32 %v4257_v25, %v4256_v26  ;;  %v4260_v32 = vld [vmem:[%s5386_s17 + $0x78] sm:$0xff]  ;;  %v2305_v35 = vmul.f32 %v4259_v37, %v4258_v59  ;;  %v4263_v36 = vld [vmem:[%s5384_s16 + $0x80] sm:$0xff]  ;;  %v4265_v41 = vld [vmem:[%s5384_s16 + $0x88] sm:$0xff] }
 0x209   : > { %v4262_v38 = vld [vmem:[%s5386_s17 + $0x80] sm:$0xff]  ;;  %v2312_v40 = vmul.f32 %v4261_v31, %v4260_v32  ;;  %v4264_v42 = vld [vmem:[%s5386_s17 + $0x88] sm:$0xff]  ;;  %v4267_v45 = vld [vmem:[%s5384_s16 + $0x90] sm:$0xff] }
 0x20a   : > { %v2229_v53 = vadd.f32 %v2228_v51, %v2222_v50  ;;  %v2319_v44 = vmul.f32 %v4263_v36, %v4262_v38  ;;  %v4266_v46 = vld [vmem:[%s5386_s17 + $0x90] sm:$0xff]  ;;  %v2326_v14 = vmul.f32 %v4265_v41, %v4264_v42  ;;  %v4269_v49 = vld [vmem:[%s5384_s16 + $0x98] sm:$0xff]  ;;  %v4271_v52 = vld [vmem:[%s5384_s16 + $0xa0] sm:$0xff] }
 0x20b   : > { %v4268_v50 = vld [vmem:[%s5386_s17 + $0x98] sm:$0xff]  ;;  %v2333_v47 = vmul.f32 %v4267_v45, %v4266_v46  ;;  %v4273_v56 = vld [vmem:[%s5384_s16 + $0xa8] sm:$0xff]  ;;  %v4275_v63 = vld [vmem:[%s5384_s16 + $0xb0] sm:$0xff] }
 0x20c   : > { %v2236_v57 = vadd.f32 %v2235_v54, %v2229_v53  ;;  %v4270_v53 = vld [vmem:[%s5386_s17 + $0xa0] sm:$0xff]  ;;  %v2340_v55 = vmul.f32 %v4269_v49, %v4268_v50  ;;  %v4277_v3 = vld [vmem:[%s5384_s16 + $0xb8] sm:$0xff]  ;;  %v2197_v11 = vld [vmem:[#allocation2] ss:$0 sm:$0xff] }
 0x20d   : > { %v2347_v60 = vmul.f32 %v4271_v52, %v4270_v53  ;;  %v4279_v7 = vld [vmem:[%s5384_s16 + $0xc0] sm:$0xff]  ;;  %v4280_v16 = vld [vmem:[%s5386_s17 + $0xc8] sm:$0xff]  ;;  %v4282_v20 = vld [vmem:[%s5386_s17 + $0xd0] sm:$0xff] }
 0x20e   : > { %v2243_v0 = vadd.f32 %v2242_v58, %v2236_v57  ;;  %v4272_v57 = vld [vmem:[%s5386_s17 + $0xa8] sm:$0xff]  ;;  %v4285_v25 = vld [vmem:[%s5384_s16 + $0xd8] sm:$0xff]  ;;  %v4287_v37 = vld [vmem:[%s5384_s16 + $0xe0] sm:$0xff] }
 0x20f   : > { %v2354_v2 = vmul.f32 %v4273_v56, %v4272_v57  ;;  %v4284_v26 = vld [vmem:[%s5386_s17 + $0xd8] sm:$0xff]  ;;  %v4286_v59 = vld [vmem:[%s5386_s17 + $0xe0] sm:$0xff]  ;;  %v4289_v31 = vld [vmem:[%s5384_s16 + $0xe8] sm:$0xff] }
 0x210   : > { %v2250_v4 = vadd.f32 %v2249_v1, %v2243_v0  ;;  %v4274_v0 = vld [vmem:[%s5386_s17 + $0xb0] sm:$0xff]  ;;  %v4288_v32 = vld [vmem:[%s5386_s17 + $0xe8] sm:$0xff]  ;;  %v4293_v41 = vld [vmem:[%s5384_s16 + $0xf8] sm:$0xff] }
 0x211   : > { %v2361_v6 = vmul.f32 %v4275_v63, %v4274_v0  ;;  %v4291_v36 = vld [vmem:[%s5384_s16 + $0xf0] sm:$0xff]  ;;  %v4292_v42 = vld [vmem:[%s5386_s17 + $0xf8] sm:$0xff]  ;;  %v4295_v45 = vld [vmem:[%s5384_s16 + $0x100] sm:$0xff] }
 0x212   : > { %v2257_v8 = vadd.f32 %v2256_v5, %v2250_v4  ;;  %v4276_v4 = vld [vmem:[%s5386_s17 + $0xb8] sm:$0xff]  ;;  %v4290_v38 = vld [vmem:[%s5386_s17 + $0xf0] sm:$0xff]  ;;  %v4294_v46 = vld [vmem:[%s5386_s17 + $0x100] sm:$0xff] }
 0x213   : > { %v2368_v10 = vmul.f32 %v4277_v3, %v4276_v4  ;;  %v4297_v49 = vld [vmem:[%s5384_s16 + $0x108] sm:$0xff]  ;;  %v4299_v52 = vld [vmem:[%s5384_s16 + $0x110] sm:$0xff]  ;;  %v4301_v56 = vld [vmem:[%s5384_s16 + $0x118] sm:$0xff] }
 0x214   : > { %v2264_v12 = vadd.f32 %v2263_v9, %v2257_v8  ;;  %v4278_v8 = vld [vmem:[%s5386_s17 + $0xc0] sm:$0xff]  ;;  %v4296_v50 = vld [vmem:[%s5386_s17 + $0x108] sm:$0xff]  ;;  %v4298_v53 = vld [vmem:[%s5386_s17 + $0x110] sm:$0xff] }
 0x215   : > { %v4300_v57 = vld [vmem:[%s5386_s17 + $0x118] sm:$0xff]  ;;  %v4303_v63 = vld [vmem:[%s5384_s16 + $0x120] sm:$0xff]  ;;  %v4305_v3 = vld [vmem:[%s5384_s16 + $0x128] sm:$0xff] }
 0x216   : > { %v2271_v18 = vadd.f32 %v2270_v13, %v2264_v12  ;;  %v5438_v12 = vpop.xlane.xlu0 %2191  ;;  %v4281_v13 = vld [vmem:[%s5384_s16 + $0xc8] sm:$0xff]  ;;  %v4302_v0 = vld [vmem:[%s5386_s17 + $0x120] sm:$0xff] }
 0x217   : > { %v2198_v21 = vsel %vm4915_vm8, %v5438_v12, %v2197_v11  ;;  %v4304_v4 = vld [vmem:[%s5386_s17 + $0x128] sm:$0xff]  ;;  %v4309_v11 = vld [vmem:[%s5384_s16 + $0x138] sm:$0xff] }
 0x218   : > { %v2278_v23 = vadd.f32 %v2277_v19, %v2271_v18  ;;  %v2375_v18 = vmul.f32 %v4279_v7, %v4278_v8  ;;  %v4283_v19 = vld [vmem:[%s5384_s16 + $0xd0] sm:$0xff]  ;;  %2199 = vst [vmem:[#allocation2] sm:$0x1] %v2198_v21 }
 0x219   : > { %v4307_v7 = vld [vmem:[%s5384_s16 + $0x130] sm:$0xff] }
 0x21a   : > { %v2285_v27 = vadd.f32 %v2284_v24, %v2278_v23  ;;  %v2382_v24 = vmul.f32 %v4281_v13, %v4280_v16  ;;  %v4306_v8 = vld [vmem:[%s5386_s17 + $0x130] sm:$0xff]  ;;  %v4308_v13 = vld [vmem:[%s5386_s17 + $0x138] sm:$0xff] }
 0x21b   : > { %v2480_v21 = vmul.f32 %v4309_v11, %v4308_v13 }
 0x21c   : > { %v2292_v29 = vadd.f32 %v2291_v28, %v2285_v27  ;;  %v2389_v28 = vmul.f32 %v4283_v19, %v4282_v20  ;;  %v4310_v19 = vld [vmem:[%s5386_s17 + $0x140] sm:$0xff] }
 0x21e   : > { %v2299_v33 = vadd.f32 %v2298_v30, %v2292_v29  ;;  %v2396_v30 = vmul.f32 %v4285_v25, %v4284_v26 }
 0x220   : > { %v2306_v39 = vadd.f32 %v2305_v35, %v2299_v33  ;;  %v2403_v35 = vmul.f32 %v4287_v37, %v4286_v59 }
 0x222   : > { %v2313_v43 = vadd.f32 %v2312_v40, %v2306_v39  ;;  %v2410_v40 = vmul.f32 %v4289_v31, %v4288_v32 }
 0x224   : > { %v2320_v48 = vadd.f32 %v2319_v44, %v2313_v43  ;;  %v2417_v44 = vmul.f32 %v4291_v36, %v4290_v38 }
 0x226   : > { %v2327_v51 = vadd.f32 %v2326_v14, %v2320_v48  ;;  %v2424_v14 = vmul.f32 %v4293_v41, %v4292_v42 }
 0x228   : > { %v2334_v54 = vadd.f32 %v2333_v47, %v2327_v51  ;;  %v2431_v47 = vmul.f32 %v4295_v45, %v4294_v46 }
 0x22a   : > { %v2341_v58 = vadd.f32 %v2340_v55, %v2334_v54  ;;  %v2438_v55 = vmul.f32 %v4297_v49, %v4296_v50 }
 0x22c   : > { %v2348_v1 = vadd.f32 %v2347_v60, %v2341_v58  ;;  %v2445_v60 = vmul.f32 %v4299_v52, %v4298_v53 }
 0x22e   : > { %v2355_v5 = vadd.f32 %v2354_v2, %v2348_v1  ;;  %v2452_v2 = vmul.f32 %v4301_v56, %v4300_v57 }
 0x230   : > { %v2362_v9 = vadd.f32 %v2361_v6, %v2355_v5  ;;  %v2459_v6 = vmul.f32 %v4303_v63, %v4302_v0 }
 0x232   : > { %v2369_v17 = vadd.f32 %v2368_v10, %v2362_v9  ;;  %v2466_v10 = vmul.f32 %v4305_v3, %v4304_v4 }
 0x234   : > { %v2376_v23 = vadd.f32 %v2375_v18, %v2369_v17  ;;  %v2473_v17 = vmul.f32 %v4307_v7, %v4306_v8  ;;  %v4311_v18 = vld [vmem:[%s5384_s16 + $0x140] sm:$0xff] }
 0x235   : > { %v2487_v26 = vmul.f32 %v4311_v18, %v4310_v19 }
 0x236   : > { %v2383_v27 = vadd.f32 %v2382_v24, %v2376_v23  ;;  %v4313_v23 = vld [vmem:[%s5384_s16 + $0x148] sm:$0xff] }
 0x237   : > { %v4312_v24 = vld [vmem:[%s5386_s17 + $0x148] sm:$0xff] }
 0x238   : > { %v2390_v29 = vadd.f32 %v2389_v28, %v2383_v27  ;;  %v4315_v27 = vld [vmem:[%s5384_s16 + $0x150] sm:$0xff]  ;;  %v2494_v59 = vmul.f32 %v4313_v23, %v4312_v24 }
 0x239   : > { %v4314_v28 = vld [vmem:[%s5386_s17 + $0x150] sm:$0xff] }
 0x23a   : > { %v2397_v33 = vadd.f32 %v2396_v30, %v2390_v29  ;;  %v4317_v29 = vld [vmem:[%s5384_s16 + $0x158] sm:$0xff]  ;;  %v2501_v32 = vmul.f32 %v4315_v27, %v4314_v28  ;;  %v4345_v27 = vld [vmem:[%s5384_s16 + $0x1c8] sm:$0xff]  ;;  %v4342_v28 = vld [vmem:[%s5386_s17 + $0x1c0] sm:$0xff] }
 0x23b   : > { %v4316_v30 = vld [vmem:[%s5386_s17 + $0x158] sm:$0xff] }
 0x23c   : > { %v2404_v39 = vadd.f32 %v2403_v35, %v2397_v33  ;;  %v4319_v33 = vld [vmem:[%s5384_s16 + $0x160] sm:$0xff]  ;;  %v2508_v38 = vmul.f32 %v4317_v29, %v4316_v30 }
 0x23d   : > { %v4318_v35 = vld [vmem:[%s5386_s17 + $0x160] sm:$0xff] }
 0x23e   : > { %v2411_v43 = vadd.f32 %v2410_v40, %v2404_v39  ;;  %v4321_v39 = vld [vmem:[%s5384_s16 + $0x168] sm:$0xff]  ;;  %v2515_v42 = vmul.f32 %v4319_v33, %v4318_v35 }
 0x23f   : > { %v4320_v40 = vld [vmem:[%s5386_s17 + $0x168] sm:$0xff] }
 0x240   : > { %v2418_v48 = vadd.f32 %v2417_v44, %v2411_v43  ;;  %v4322_v43 = vld [vmem:[%s5386_s17 + $0x170] sm:$0xff]  ;;  %v2522_v45 = vmul.f32 %v4321_v39, %v4320_v40 }
 0x241   : > { %v4323_v44 = vld [vmem:[%s5384_s16 + $0x170] sm:$0xff] }
 0x242   : > { %v2425_v51 = vadd.f32 %v2424_v14, %v2418_v48  ;;  %v4324_v48 = vld [vmem:[%s5386_s17 + $0x178] sm:$0xff]  ;;  %v2529_v50 = vmul.f32 %v4323_v44, %v4322_v43 }
 0x243   : > { %v4325_v14 = vld [vmem:[%s5384_s16 + $0x178] sm:$0xff] }
 0x244   : > { %v2432_v54 = vadd.f32 %v2431_v47, %v2425_v51  ;;  %v4326_v51 = vld [vmem:[%s5386_s17 + $0x180] sm:$0xff]  ;;  %v2536_v53 = vmul.f32 %v4325_v14, %v4324_v48 }
 0x245   : > { %v4327_v47 = vld [vmem:[%s5384_s16 + $0x180] sm:$0xff] }
 0x246   : > { %v2439_v58 = vadd.f32 %v2438_v55, %v2432_v54  ;;  %v4328_v54 = vld [vmem:[%s5386_s17 + $0x188] sm:$0xff]  ;;  %v2543_v57 = vmul.f32 %v4327_v47, %v4326_v51 }
 0x247   : > { %v4329_v55 = vld [vmem:[%s5384_s16 + $0x188] sm:$0xff] }
 0x248   : > { %v2446_v1 = vadd.f32 %v2445_v60, %v2439_v58  ;;  %v4330_v58 = vld [vmem:[%s5386_s17 + $0x190] sm:$0xff]  ;;  %v2550_v0 = vmul.f32 %v4329_v55, %v4328_v54 }
 0x249   : > { %v4331_v60 = vld [vmem:[%s5384_s16 + $0x190] sm:$0xff] }
 0x24a   : > { %v2453_v5 = vadd.f32 %v2452_v2, %v2446_v1  ;;  %v4332_v1 = vld [vmem:[%s5386_s17 + $0x198] sm:$0xff]  ;;  %v2557_v4 = vmul.f32 %v4331_v60, %v4330_v58 }
 0x24b   : > { %v4333_v2 = vld [vmem:[%s5384_s16 + $0x198] sm:$0xff] }
 0x24c   : > { %v2460_v9 = vadd.f32 %v2459_v6, %v2453_v5  ;;  %v4334_v5 = vld [vmem:[%s5386_s17 + $0x1a0] sm:$0xff]  ;;  %v2564_v8 = vmul.f32 %v4333_v2, %v4332_v1 }
 0x24d   : > { %v4335_v6 = vld [vmem:[%s5384_s16 + $0x1a0] sm:$0xff] }
 0x24e   : > { %v2467_v16 = vadd.f32 %v2466_v10, %v2460_v9  ;;  %v4336_v9 = vld [vmem:[%s5386_s17 + $0x1a8] sm:$0xff]  ;;  %v2571_v13 = vmul.f32 %v4335_v6, %v4334_v5 }
 0x24f   : > { %v4337_v10 = vld [vmem:[%s5384_s16 + $0x1a8] sm:$0xff] }
 0x250   : > { %v2474_v20 = vadd.f32 %v2473_v17, %v2467_v16  ;;  %v4338_v16 = vld [vmem:[%s5386_s17 + $0x1b0] sm:$0xff]  ;;  %v2578_v19 = vmul.f32 %v4337_v10, %v4336_v9 }
 0x251   : > { %v4339_v17 = vld [vmem:[%s5384_s16 + $0x1b0] sm:$0xff] }
 0x252   : > { %v2481_v25 = vadd.f32 %v2480_v21, %v2474_v20  ;;  %v4340_v20 = vld [vmem:[%s5386_s17 + $0x1b8] sm:$0xff]  ;;  %v2585_v24 = vmul.f32 %v4339_v17, %v4338_v16 }
 0x253   : > { %v4341_v21 = vld [vmem:[%s5384_s16 + $0x1b8] sm:$0xff] }
 0x254   : > { %v2488_v37 = vadd.f32 %v2487_v26, %v2481_v25  ;;  %v2601_v25 = vadd.s32 456, %v2204_v61  ;;  %v4344_v26 = vld [vmem:[%s5386_s17 + $0x1c8] sm:$0xff]  ;;  %v2592_v29 = vmul.f32 %v4341_v21, %v4340_v20  ;;  %v5511_v61 = vmov %v4743_v61  ;;  %s5647_s17 = smov %s5386_s17 }
 0x255   : > { %v2606_v30 = vmul.f32 %v4345_v27, %v4344_v26  ;;  %v5517_v39 = vadd.s32 16, %v5511_v61  ;;  %v5520_v40 = vadd.s32 24, %v5511_v61  ;;  %v5529_v43 = vadd.s32 48, %v5511_v61 }
 0x256   : > { %v2495_v31 = vadd.f32 %v2494_v59, %v2488_v37  ;;  %v4343_v37 = vld [vmem:[%s5384_s16 + $0x1c0] sm:$0xff]  ;;  %vm2607_vm13 = vcmp.lt.s32.totalorder %v2601_v25, 462  ;;  %v5532_v44 = vadd.s32 56, %v5511_v61  ;;  %vm2637_vm6 = vcmp.ge.s32.totalorder %v5511_v61, %v4746_v62  ;;  %s5644_s16 = smov %s5384_s16 }
 0x257   : > { %v2608_v35 = vsel %vm2607_vm13, %v2606_v30, 0.0  ;;  %v5540_v48 = vadd.s32 72, %v5511_v61  ;;  %v5543_v14 = vadd.s32 80, %v5511_v61  ;;  %v5554_v51 = vadd.s32 104, %v5511_v61  ;;  %v5686_v30 = vld [vmem:[%s5647_s17] sm:$0xff]  ;;  %vm5703_vm4 = vmand %vm4915_vm8, %vm2637_vm6  ;;  %s3838_s18 = scalar_lea.vmem %s5644_s16, %s4544_s13  ;;  %s501_s13 = sadd.s32 1, %s4544_s13  }
 0x258   : > { %v2502_v36 = vadd.f32 %v2501_v32, %v2495_v31  ;;  %v2599_v32 = vmul.f32 %v4343_v37, %v4342_v28  ;;  %v5557_v47 = vadd.s32 112, %v5511_v61  ;;  %vm2679_vm9 = vcmp.ge.s32.totalorder %v5517_v39, %v4746_v62  ;;  %p498_p0 = scmp.ge.s32.totalorder %s501_s13, 15  }
 0x259   : > { %v5565_v54 = vadd.s32 128, %v5511_v61  ;;  %v5568_v55 = vadd.s32 136, %v5511_v61  ;;  %vm2700_vm10 = vcmp.ge.s32.totalorder %v5520_v40, %v4746_v62  ;;  %v5579_v58 = vadd.s32 160, %v5511_v61 }
 0x25a   : > { %v2509_v41 = vadd.f32 %v2508_v38, %v2502_v36  ;;  %v5514_v36 = vadd.s32 8, %v5511_v61  ;;  %v5582_v60 = vadd.s32 168, %v5511_v61  ;;  %v5590_v1 = vadd.s32 184, %v5511_v61 }
 0x25b   : > { %v5593_v2 = vadd.s32 192, %v5511_v61  ;;  %v5604_v5 = vadd.s32 216, %v5511_v61  ;;  %v5607_v6 = vadd.s32 224, %v5511_v61  ;;  %vm2763_vm14 = vcmp.ge.s32.totalorder %v5529_v43, %v4746_v62 }
 0x25c   : > { %v2516_v46 = vadd.f32 %v2515_v42, %v2509_v41  ;;  %v5523_v41 = vadd.s32 32, %v5511_v61  ;;  %v5526_v42 = vadd.s32 40, %v5511_v61  ;;  %vm2658_vm7 = vcmp.ge.s32.totalorder %v5514_v36, %v4746_v62 }
 0x25d   : > { %v5615_v9 = vadd.s32 240, %v5511_v61  ;;  %v5618_v10 = vadd.s32 248, %v5511_v61  ;;  %vm2784_vm0 = vcmp.ge.s32.totalorder %v5532_v44, %v4746_v62  ;;  %v5632_v16 = vadd.s32 264, %v5511_v61  ;;  %vm5740_vm13 = vmand %vm4915_vm8, %vm2658_vm7 }
 0x25e   : > { %v2523_v49 = vadd.f32 %v2522_v45, %v2516_v46  ;;  %v5535_v45 = vadd.s32 64, %v5511_v61  ;;  %vm2721_vm11 = vcmp.ge.s32.totalorder %v5523_v41, %v4746_v62  ;;  %vm2742_vm12 = vcmp.ge.s32.totalorder %v5526_v42, %v4746_v62  ;;  %vm5764_vm7 = vmand %vm4915_vm8, %vm2679_vm9 }
 0x25f   : > { %7319 = vst [vmem:[#allocation8_spill] sm:$0xff] %v5615_v9  ;;  %7320 = vst [vmem:[#allocation9_spill] sm:$0xff] %v5618_v10  ;;  %v5635_v17 = vadd.s32 272, %v5511_v61  ;;  %v5652_v20 = vadd.s32 296, %v5511_v61  ;;  %v5655_v21 = vadd.s32 304, %v5511_v61  ;;  %vm2826_vm2 = vcmp.ge.s32.totalorder %v5540_v48, %v4746_v62  ;;  %v5875_v9 = vld [vmem:[%s5647_s17 + $0x48] sm:$0xff] }
 0x260   : > { %v2530_v52 = vadd.f32 %v2529_v50, %v2523_v49  ;;  %v5546_v49 = vadd.s32 88, %v5511_v61  ;;  %v5551_v50 = vadd.s32 96, %v5511_v61  ;;  %7324 = vst [vmem:[#allocation11_spill] sm:$0xff] %v5632_v16  ;;  %vm2805_vm1 = vcmp.ge.s32.totalorder %v5535_v45, %v4746_v62  ;;  %vm5793_vm9 = vmand %vm4915_vm8, %vm2700_vm10 }
 0x261   : > { %7325 = vst [vmem:[#allocation12_spill] sm:$0xff] %v5635_v17  ;;  %7328 = vst [vmem:[#allocation15_spill] sm:$0xff] %v5652_v20  ;;  %v5666_v25 = vadd.s32 328, %v5511_v61  ;;  %v5669_v26 = vadd.s32 336, %v5511_v61  ;;  %v5672_v27 = vadd.s32 344, %v5511_v61  ;;  %vm2847_vm3 = vcmp.ge.s32.totalorder %v5543_v14, %v4746_v62 }
 0x262   : > { %v2537_v56 = vadd.f32 %v2536_v53, %v2530_v52  ;;  %v5560_v52 = vadd.s32 120, %v5511_v61  ;;  %7329 = vst [vmem:[#allocation16_spill] sm:$0xff] %v5655_v21  ;;  %v5677_v37 = vadd.s32 352, %v5511_v61  ;;  %v5721_v15 = vadd.s32 400, %v5511_v61  ;;  %vm5814_vm10 = vmand %vm4915_vm8, %vm2721_vm11 }
 0x263   : > { %7332 = vst [vmem:[#allocation19_spill] sm:$0xff] %v5666_v25  ;;  %7333 = vst [vmem:[#allocation20_spill] sm:$0xff] %v5669_v26  ;;  %v5754_v36 = vadd.s32 424, %v5511_v61  ;;  %v5783_v39 = vadd.s32 448, %v5511_v61  ;;  %vm2994_vm6 = vcmp.ge.s32.totalorder %v5568_v55, %v4746_v62 }
 0x264   : > { %v2544_v63 = vadd.f32 %v2543_v57, %v2537_v56  ;;  %v5571_v56 = vadd.s32 144, %v5511_v61  ;;  %v5576_v57 = vadd.s32 152, %v5511_v61  ;;  %7334 = vst [vmem:[#allocation21_spill] sm:$0xff] %v5672_v27  ;;  %7335 = vst [vmem:[#allocation22_spill] sm:$0xff] %v5677_v37  ;;  %v5730_v37 = vld [vmem:[%s5647_s17 + $0x30] sm:$0xff]  ;;  %v5733_v27 = vld [vmem:[%s5647_s17 + $0x38] sm:$0xff] }
 0x265   : > { %7343 = vst [vmem:[#allocation28_spill] sm:$0xff] %v5721_v15  ;;  %v5748_v15 = vadd.s32 408, %v5511_v61  ;;  %7348 = vst [vmem:[#allocation31_spill] sm:$0xff] %v5754_v36  ;;  %v5777_v36 = vadd.s32 432, %v5511_v61 }
 0x266   : > { %v2551_v3 = vadd.f32 %v2550_v0, %v2544_v63  ;;  %7317 = vst [vmem:[#allocation6_spill] sm:$0xff] %v5576_v57  ;;  %v5585_v63 = vadd.s32 176, %v5511_v61  ;;  %7353 = vst [vmem:[#allocation34_spill] sm:$0xff] %v5783_v39  ;;  %vm3036_vm5 = vcmp.ge.s32.totalorder %v5576_v57, %v4746_v62  ;;  %v5916_v57 = vld [vmem:[%s5647_s17 + $0x68] sm:$0xff] }
 0x267   : > { %7346 = vst [vmem:[#allocation29_spill] sm:$0xff] %v5748_v15  ;;  %v5772_v15 = vld [vmem:[%s5644_s16 + $0x28] sm:$0xff]  ;;  %7351 = vst [vmem:[#allocation32_spill] sm:$0xff] %v5777_v36  ;;  %v4365_v36 = vld [vmem:[%s5644_s16 + $0x38] sm:$0xff] }
 0x268   : > { %v2558_v7 = vadd.f32 %v2557_v4, %v2551_v3  ;;  %v5596_v3 = vadd.s32 200, %v5511_v61  ;;  %v5601_v4 = vadd.s32 208, %v5511_v61  ;;  %vm5833_vm11 = vmand %vm4915_vm8, %vm2742_vm12 }
 0x269   : > { %vm5844_vm12 = vmand %vm4915_vm8, %vm2763_vm14 }
 0x26a   : > { %v2565_v11 = vadd.f32 %v2564_v8, %v2558_v7  ;;  %v5610_v7 = vadd.s32 232, %v5511_v61  ;;  %vm5857_vm14 = vmand %vm4915_vm8, %vm2784_vm0 }
 0x26b   : > { %vm5891_vm0 = vmand %vm4915_vm8, %vm2805_vm1 }
 0x26c   : > { %v2572_v18 = vadd.f32 %v2571_v13, %v2565_v11  ;;  %7318 = vst [vmem:[#allocation7_spill] sm:$0xff] %v5610_v7  ;;  %v5621_v11 = vadd.s32 256, %v5511_v61  ;;  %v5878_v7 = vld [vmem:[%s5647_s17 + $0x50] sm:$0xff]  ;;  %vm5929_vm1 = vmand %vm4915_vm8, %vm2826_vm2 }
 0x26d   : > { %vm5956_vm2 = vmand %vm4915_vm8, %vm2847_vm3  ;;  %vm7371_vm3 = vcmp.ge.s32.totalorder %v5546_v49, %v4746_v62 }
 0x26e   : > { %v2579_v23 = vadd.f32 %v2578_v19, %v2572_v18  ;;  %7321 = vst [vmem:[#allocation10_spill] sm:$0xff] %v5621_v11  ;;  %v5638_v18 = vadd.s32 280, %v5511_v61  ;;  %v5641_v19 = vadd.s32 288, %v5511_v61 }
 0x270   : > { %v2586_v59 = vadd.f32 %v2585_v24, %v2579_v23  ;;  %7326 = vst [vmem:[#allocation13_spill] sm:$0xff] %v5638_v18  ;;  %7327 = vst [vmem:[#allocation14_spill] sm:$0xff] %v5641_v19  ;;  %v5658_v23 = vadd.s32 312, %v5511_v61  ;;  %v5663_v24 = vadd.s32 320, %v5511_v61  ;;  %v4389_v18 = vld [vmem:[%s5644_s16 + $0x78] sm:$0xff] }
 0x272   : > { %v2593_v31 = vadd.f32 %v2592_v29, %v2586_v59  ;;  %7330 = vst [vmem:[#allocation17_spill] sm:$0xff] %v5658_v23  ;;  %7331 = vst [vmem:[#allocation18_spill] sm:$0xff] %v5663_v24  ;;  %v5680_v59 = vadd.s32 360, %v5511_v61  ;;  %v5683_v29 = vadd.s32 368, %v5511_v61  ;;  %v5769_v24 = vld [vmem:[%s5644_s16 + $0x20] sm:$0xff]  ;;  %v4362_v23 = vld [vmem:[%s5644_s16 + $0x30] sm:$0xff] }
 0x274   : > { %v2600_v33 = vadd.f32 %v2599_v32, %v2593_v31  ;;  %7336 = vst [vmem:[#allocation23_spill] sm:$0xff] %v5680_v59  ;;  %7337 = vst [vmem:[#allocation24_spill] sm:$0xff] %v5683_v29  ;;  %v5689_v31 = vld [vmem:[%s5647_s17 + $0x8] sm:$0xff]  ;;  %v5692_v32 = vld [vmem:[%s5647_s17 + $0x10] sm:$0xff] }
 0x275   : > { %v5724_v29 = vld [vmem:[%s5647_s17 + $0x20] sm:$0xff]  ;;  %v5727_v59 = vld [vmem:[%s5647_s17 + $0x28] sm:$0xff] }
 0x276   : > { %v2609_v38 = vadd.f32 %v2608_v35, %v2600_v33  ;;  %v5695_v33 = vld [vmem:[%s5647_s17 + $0x18] sm:$0xff]  ;;  %v2627_v35 = vld [vmem:[%s5644_s16] sm:$0xff] }
 0x278   : > { %v2610_v46 = vrot.slane %v2609_v38, 4 }
 0x27a   : > { %v2611_v53 = vadd.f32 %v2610_v46, %v2609_v38  ;;  %v4347_v46 = vld [vmem:[%s5644_s16 + $0x8] sm:$0xff]  ;;  %v5919_v38 = vld [vmem:[%s5647_s17 + $0x70] sm:$0xff] }
 0x27c   : > { %v2612_v0 = vrot.slane %v2611_v53, 2 }
 0x27e   : > { %v2613_v8 = vadd.f32 %v2612_v0, %v2611_v53  ;;  %v4350_v53 = vld [vmem:[%s5644_s16 + $0x10] sm:$0xff]  ;;  %v5712_v0 = vadd.s32 376, %v5511_v61 }
 0x280   : > { %v2614_v22 = vrot.slane %v2613_v8, 1  ;;  %7340 = vst [vmem:[#allocation25_spill] sm:$0xff] %v5712_v0  ;;  %v5751_v0 = vadd.s32 416, %v5511_v61 }
 0x282   : > { %v2615_v28 = vadd.f32 %v2614_v22, %v2613_v8  ;;  %v5715_v8 = vadd.s32 384, %v5511_v61  ;;  %v5718_v22 = vadd.s32 392, %v5511_v61  ;;  %7347 = vst [vmem:[#allocation30_spill] sm:$0xff] %v5751_v0 }
 0x284   : > { %7341 = vst [vmem:[#allocation26_spill] sm:$0xff] %v5715_v8  ;;  %7342 = vst [vmem:[#allocation27_spill] sm:$0xff] %v5718_v22  ;;  %v4353_v22 = vld [vmem:[%s5644_s16 + $0x18] sm:$0xff]  ;;  %v5757_v26 = vmul.f32 %v2615_v28, %v5438_v12  ;;  %v5780_v12 = vadd.s32 440, %v5511_v61  ;;  %v5786_v28 = vadd.s32 456, %v5511_v61 }
 0x286   : > { %7352 = vst [vmem:[#allocation33_spill] sm:$0xff] %v5780_v12  ;;  %7354 = vst [vmem:[#allocation35_spill] sm:$0xff] %v5786_v28  ;;  %v2626_v39 = vmul.f32 %v5686_v30, %v5757_v26  ;;  %v2646_v61 = vmul.f32 %v5689_v31, %v5757_v26  ;;  %v2667_v40 = vmul.f32 %v5692_v32, %v5757_v26 }
 0x287   : > { %v2688_v28 = vmul.f32 %v5695_v33, %v5757_v26  ;;  %v2709_v21 = vmul.f32 %v5724_v29, %v5757_v26  ;;  %v2730_v20 = vmul.f32 %v5727_v59, %v5757_v26  ;;  %v2751_v19 = vmul.f32 %v5730_v37, %v5757_v26 }
 0x288   : > { %v2772_v41 = vmul.f32 %v5733_v27, %v5757_v26  ;;  %v2630_v17 = vsub.f32 %v2627_v35, %v2626_v39  ;;  %v2651_v16 = vsub.f32 %v4347_v46, %v2646_v61  ;;  %v2672_v11 = vsub.f32 %v4350_v53, %v2667_v40 }
 0x289   : > { %v2693_v10 = vsub.f32 %v4353_v22, %v2688_v28  ;;  %v2714_v39 = vsub.f32 %v5769_v24, %v2709_v21  ;;  %v2735_v61 = vsub.f32 %v5772_v15, %v2730_v20  ;;  %v2756_v28 = vsub.f32 %v4362_v23, %v2751_v19 }
 0x28a   : > { %v2777_v40 = vsub.f32 %v4365_v36, %v2772_v41  ;;  %v2631_v21 = vsel %vm5625_vm15, %v2630_v17, %v2627_v35  ;;  %v2652_v19 = vsel %vm5625_vm15, %v2651_v16, %v4347_v46  ;;  %v2673_v44 = vsel %vm5625_vm15, %v2672_v11, %v4350_v53  ;;  %v5872_v41 = vld [vmem:[%s5647_s17 + $0x40] sm:$0xff]  ;;  %v5881_v17 = vld [vmem:[%s5647_s17 + $0x58] sm:$0xff]  ;;  %v5896_v11 = vld [vmem:[%s5644_s16 + $0x48] sm:$0xff] }
 0x28b   : > { %v2694_v20 = vsel %vm5625_vm15, %v2693_v10, %v4353_v22  ;;  %v5884_v16 = vld [vmem:[%s5644_s16 + $0x40] sm:$0xff]  ;;  %v2639_v35 = vsel %vm5703_vm4, %v5686_v30, %v2631_v21  ;;  %v2660_v45 = vsel %vm5740_vm13, %v5689_v31, %v2652_v19  ;;  %v2681_v46 = vsel %vm5764_vm7, %v5692_v32, %v2673_v44  ;;  %v5922_v30 = vld [vmem:[%s5647_s17 + $0x78] sm:$0xff]  ;;  %v4374_v31 = vld [vmem:[%s5644_s16 + $0x50] sm:$0xff] }
 0x28c   : > { %v2702_v53 = vsel %vm5793_vm9, %v5695_v33, %v2694_v20  ;;  %v5913_v22 = vld [vmem:[%s5647_s17 + $0x60] sm:$0xff]  ;;  %v4377_v32 = vld [vmem:[%s5644_s16 + $0x58] sm:$0xff]  ;;  %vm3057_vm4 = vcmp.ge.s32.totalorder %v5579_v58, %v4746_v62  ;;  %2640 = vst [vmem:[%s5644_s16] sm:$0xff] %v2639_v35  ;;  %4348 = vst [vmem:[%s5644_s16 + $0x8] sm:$0xff] %v2660_v45  ;;  %v2715_v48 = vsel %vm5625_vm15, %v2714_v39, %v5769_v24 }
 0x28d   : > { %4351 = vst [vmem:[%s5644_s16 + $0x10] sm:$0xff] %v2681_v46  ;;  %4354 = vst [vmem:[%s5644_s16 + $0x18] sm:$0xff] %v2702_v53  ;;  %v2736_v33 = vsel %vm5625_vm15, %v2735_v61, %v5772_v15  ;;  %v2757_v0 = vsel %vm5625_vm15, %v2756_v28, %v4362_v23  ;;  %v2778_v8 = vsel %vm5625_vm15, %v2777_v40, %v4365_v36  ;;  %v5961_v39 = vld [vmem:[%s5644_s16 + $0x60] sm:$0xff]  ;;  %v5964_v15 = vld [vmem:[%s5644_s16 + $0x68] sm:$0xff] }
 0x28e   : > { %v2723_v23 = vsel %vm5814_vm10, %v5724_v29, %v2715_v48  ;;  %v2744_v14 = vsel %vm5833_vm11, %v5727_v59, %v2736_v33  ;;  %v2765_v36 = vsel %vm5844_vm12, %v5730_v37, %v2757_v0  ;;  %v2786_v61 = vsel %vm5857_vm14, %v5733_v27, %v2778_v8  ;;  %vm5985_vm7 = vmand %vm4915_vm8, %vm7371_vm3  ;;  %v4386_v29 = vld [vmem:[%s5644_s16 + $0x70] sm:$0xff]  ;;  %v4413_v21 = vld [vmem:[%s5644_s16 + $0xb8] sm:$0xff] }
 0x28f   : > { %4357 = vst [vmem:[%s5644_s16 + $0x20] sm:$0xff] %v2723_v23  ;;  %4360 = vst [vmem:[%s5644_s16 + $0x28] sm:$0xff] %v2744_v14  ;;  %v2793_v27 = vmul.f32 %v5872_v41, %v5757_v26  ;;  %v2814_v49 = vmul.f32 %v5875_v9, %v5757_v26  ;;  %v2835_v37 = vmul.f32 %v5878_v7, %v5757_v26  ;;  %v6072_v23 = vld [vmem:[%s5647_s17 + $0x80] sm:$0xff]  ;;  %v6075_v14 = vld [vmem:[%s5647_s17 + $0x88] sm:$0xff] }
 0x290   : > { %4363 = vst [vmem:[%s5644_s16 + $0x30] sm:$0xff] %v2765_v36  ;;  %4366 = vst [vmem:[%s5644_s16 + $0x38] sm:$0xff] %v2786_v61  ;;  %v2856_v59 = vmul.f32 %v5881_v17, %v5757_v26  ;;  %vm7374_vm10 = vcmp.ge.s32.totalorder %v5551_v50, %v4746_v62  ;;  %v2877_v28 = vmul.f32 %v5913_v22, %v5757_v26  ;;  %v6081_v36 = vld [vmem:[%s5647_s17 + $0x98] sm:$0xff]  ;;  %v6119_v10 = vld [vmem:[%s5647_s17 + $0xb0] sm:$0xff] }
 0x291   : > { %vm6010_vm11 = vmand %vm4915_vm8, %vm7374_vm10  ;;  %v2898_v40 = vmul.f32 %v5916_v57, %v5757_v26  ;;  %v2919_v43 = vmul.f32 %v5919_v38, %v5757_v26  ;;  %v2940_v50 = vmul.f32 %v5922_v30, %v5757_v26  ;;  %vm7377_vm14 = vcmp.ge.s32.totalorder %v5554_v51, %v4746_v62 }
 0x292   : > { %vm6029_vm3 = vmand %vm4915_vm8, %vm7377_vm14  ;;  %v2798_v19 = vsub.f32 %v5884_v16, %v2793_v27  ;;  %v2819_v44 = vsub.f32 %v5896_v11, %v2814_v49  ;;  %v2840_v20 = vsub.f32 %v4374_v31, %v2835_v37  ;;  %v2861_v35 = vsub.f32 %v4377_v32, %v2856_v59  ;;  %v6113_v37 = vld [vmem:[%s5647_s17 + $0xa0] sm:$0xff]  ;;  %v6116_v59 = vld [vmem:[%s5647_s17 + $0xa8] sm:$0xff] }
 0x293   : > { %vm7380_vm12 = vcmp.ge.s32.totalorder %v5557_v47, %v4746_v62  ;;  %v2882_v45 = vsub.f32 %v5961_v39, %v2877_v28  ;;  %v2903_v46 = vsub.f32 %v5964_v15, %v2898_v40  ;;  %v2924_v53 = vsub.f32 %v4386_v29, %v2919_v43  ;;  %v6161_v28 = vld [vmem:[%s5644_s16 + $0xa0] sm:$0xff] }
 0x294   : > { %vm6042_vm14 = vmand %vm4915_vm8, %vm7380_vm12  ;;  %v2945_v48 = vsub.f32 %v4389_v18, %v2940_v50  ;;  %vm7383_vm9 = vcmp.ge.s32.totalorder %v5560_v52, %v4746_v62  ;;  %v2799_v33 = vsel %vm5625_vm15, %v2798_v19, %v5884_v16  ;;  %v2820_v0 = vsel %vm5625_vm15, %v2819_v44, %v5896_v11  ;;  %v6078_v16 = vld [vmem:[%s5647_s17 + $0x90] sm:$0xff]  ;;  %v6084_v11 = vld [vmem:[%s5644_s16 + $0x80] sm:$0xff] }
 0x295   : > { %vm6055_vm12 = vmand %vm4915_vm8, %vm7383_vm9  ;;  %v2841_v52 = vsel %vm5625_vm15, %v2840_v20, %v4374_v31  ;;  %v2862_v8 = vsel %vm5625_vm15, %v2861_v35, %v4377_v32  ;;  %vm7386_vm9 = vcmp.ge.s32.totalorder %v5565_v54, %v4746_v62  ;;  %v6096_v32 = vld [vmem:[%s5644_s16 + $0x88] sm:$0xff]  ;;  %vm3204_vm10 = vcmp.ge.s32.totalorder %v5604_v5, %v4746_v62  ;;  %v6319_v31 = vld [vmem:[%s5647_s17 + $0xf0] sm:$0xff] }
 0x296   : > { %vm6091_vm13 = vmand %vm4915_vm8, %vm7386_vm9  ;;  %v2807_v61 = vsel %vm5891_vm0, %v5872_v41, %v2799_v33  ;;  %v2828_v54 = vsel %vm5929_vm1, %v5875_v9, %v2820_v0  ;;  %v2849_v27 = vsel %vm5956_vm2, %v5878_v7, %v2841_v52  ;;  %v2870_v49 = vsel %vm5985_vm7, %v5881_v17, %v2862_v8  ;;  %v6122_v41 = vld [vmem:[%s5647_s17 + $0xb8] sm:$0xff]  ;;  %v4398_v9 = vld [vmem:[%s5644_s16 + $0x90] sm:$0xff] }
 0x297   : > { %vm6129_vm0 = vmand %vm4915_vm8, %vm2994_vm6  ;;  %v4401_v17 = vld [vmem:[%s5644_s16 + $0x98] sm:$0xff]  ;;  %vm3225_vm1 = vcmp.ge.s32.totalorder %v5607_v6, %v4746_v62  ;;  %4369 = vst [vmem:[%s5644_s16 + $0x40] sm:$0xff] %v2807_v61  ;;  %v2883_v55 = vsel %vm5625_vm15, %v2882_v45, %v5961_v39  ;;  %v2904_v25 = vsel %vm5625_vm15, %v2903_v46, %v5964_v15  ;;  %v2925_v24 = vsel %vm5625_vm15, %v2924_v53, %v4386_v29  ;;  %v6164_v15 = vld [vmem:[%s5644_s16 + $0xa8] sm:$0xff] }
 0x298   : > { %4372 = vst [vmem:[%s5644_s16 + $0x48] sm:$0xff] %v2828_v54  ;;  %4375 = vst [vmem:[%s5644_s16 + $0x50] sm:$0xff] %v2849_v27  ;;  %v2946_v12 = vsel %vm5625_vm15, %v2945_v48, %v4389_v18  ;;  %vm7391_vm6 = vcmp.ge.s32.totalorder %v5571_v56, %v4746_v62  ;;  %v7394_v29 = vld [vmem:[#allocation7_spill] sm:$0xff]  ;;  %v2891_v18 = vsel %vm6010_vm11, %v5913_v22, %v2883_v55  ;;  %v4410_v22 = vld [vmem:[%s5644_s16 + $0xb0] sm:$0xff] }
 0x299   : > { %4378 = vst [vmem:[%s5644_s16 + $0x58] sm:$0xff] %v2870_v49  ;;  %vm6156_vm2 = vmand %vm4915_vm8, %vm7391_vm6  ;;  %vm3246_vm7 = vcmp.ge.s32.totalorder %v7394_v29, %v4746_v62  ;;  %v2912_v56 = vsel %vm6029_vm3, %v5916_v57, %v2904_v25  ;;  %v2933_v40 = vsel %vm6042_vm14, %v5919_v38, %v2925_v24  ;;  %v2954_v43 = vsel %vm6055_vm12, %v5922_v30, %v2946_v12  ;;  %v7398_v57 = vld [vmem:[#allocation8_spill] sm:$0xff]  ;;  %v7401_v35 = vld [vmem:[#allocation9_spill] sm:$0xff] }
 0x29a   : > { %vm6185_vm9 = vmand %vm4915_vm8, %vm3036_vm5  ;;  %4381 = vst [vmem:[%s5644_s16 + $0x60] sm:$0xff] %v2891_v18  ;;  %v2961_v38 = vmul.f32 %v6072_v23, %v5757_v26  ;;  %v2982_v30 = vmul.f32 %v6075_v14, %v5757_v26  ;;  %v3003_v19 = vmul.f32 %v6078_v16, %v5757_v26  ;;  %v3024_v44 = vmul.f32 %v6081_v36, %v5757_v26  ;;  %v7405_v48 = vld [vmem:[#allocation10_spill] sm:$0xff]  ;;  %v7409_v8 = vld [vmem:[#allocation11_spill] sm:$0xff] }
 0x29b   : > { %4384 = vst [vmem:[%s5644_s16 + $0x68] sm:$0xff] %v2912_v56  ;;  %4387 = vst [vmem:[%s5644_s16 + $0x70] sm:$0xff] %v2933_v40  ;;  %v3045_v51 = vmul.f32 %v6113_v37, %v5757_v26  ;;  %v3066_v45 = vmul.f32 %v6116_v59, %v5757_v26  ;;  %v3087_v46 = vmul.f32 %v6119_v10, %v5757_v26  ;;  %v7413_v55 = vld [vmem:[#allocation12_spill] sm:$0xff]  ;;  %v6281_v40 = vld [vmem:[%s5647_s17 + $0xd8] sm:$0xff] }
 0x29c   : > { %4390 = vst [vmem:[%s5644_s16 + $0x78] sm:$0xff] %v2954_v43  ;;  %vm6210_vm5 = vmand %vm4915_vm8, %vm3057_vm4  ;;  %v3108_v58 = vmul.f32 %v6122_v41, %v5757_v26  ;;  %vm7402_vm4 = vcmp.ge.s32.totalorder %v5582_v60, %v4746_v62  ;;  %v2966_v47 = vsub.f32 %v6084_v11, %v2961_v38  ;;  %v2987_v33 = vsub.f32 %v6096_v32, %v2982_v30  ;;  %v6272_v18 = vld [vmem:[%s5647_s17 + $0xc0] sm:$0xff]  ;;  %v6275_v56 = vld [vmem:[%s5647_s17 + $0xc8] sm:$0xff] }
 0x29d   : > { %vm6229_vm14 = vmand %vm4915_vm8, %vm7402_vm4  ;;  %v3008_v0 = vsub.f32 %v4398_v9, %v3003_v19  ;;  %v3029_v52 = vsub.f32 %v4401_v17, %v3024_v44  ;;  %vm7406_vm6 = vcmp.ge.s32.totalorder %v5585_v63, %v4746_v62  ;;  %v3050_v61 = vsub.f32 %v6161_v28, %v3045_v51  ;;  %v7417_v43 = vld [vmem:[#allocation13_spill] sm:$0xff]  ;;  %v6313_v19 = vld [vmem:[%s5647_s17 + $0xe0] sm:$0xff] }
 0x29e   : > { %vm6242_vm4 = vmand %vm4915_vm8, %vm7406_vm6  ;;  %v3071_v54 = vsub.f32 %v6164_v15, %v3066_v45  ;;  %v3092_v27 = vsub.f32 %v4410_v22, %v3087_v46  ;;  %v3113_v49 = vsub.f32 %v4413_v21, %v3108_v58  ;;  %vm7410_vm3 = vcmp.ge.s32.totalorder %v5590_v1, %v4746_v62  ;;  %v6316_v44 = vld [vmem:[%s5647_s17 + $0xe8] sm:$0xff]  ;;  %v7421_v7 = vld [vmem:[#allocation14_spill] sm:$0xff] }
 0x29f   : > { %vm6255_vm6 = vmand %vm4915_vm8, %vm7410_vm3  ;;  %v2967_v25 = vsel %vm5625_vm15, %v2966_v47, %v6084_v11  ;;  %v2988_v24 = vsel %vm5625_vm15, %v2987_v33, %v6096_v32  ;;  %v3009_v1 = vsel %vm5625_vm15, %v3008_v0, %v4398_v9  ;;  %v3030_v12 = vsel %vm5625_vm15, %v3029_v52, %v4401_v17  ;;  %v6278_v11 = vld [vmem:[%s5647_s17 + $0xd0] sm:$0xff]  ;;  %v6284_v32 = vld [vmem:[%s5644_s16 + $0xc0] sm:$0xff] }
 0x2a0   : > { %vm7414_vm3 = vcmp.ge.s32.totalorder %v5593_v2, %v4746_v62  ;;  %v6296_v17 = vld [vmem:[%s5644_s16 + $0xc8] sm:$0xff]  ;;  %vm3372_vm12 = vcmp.ge.s32.totalorder %v7417_v43, %v4746_v62  ;;  %v2975_v50 = vsel %vm6091_vm13, %v6072_v23, %v2967_v25  ;;  %v2996_v2 = vsel %vm6129_vm0, %v6075_v14, %v2988_v24  ;;  %v6322_v23 = vld [vmem:[%s5647_s17 + $0xf8] sm:$0xff]  ;;  %v6361_v45 = vld [vmem:[%s5644_s16 + $0xe0] sm:$0xff] }
 0x2a1   : > { %vm6291_vm11 = vmand %vm4915_vm8, %vm7414_vm3  ;;  %v3017_v38 = vsel %vm6156_vm2, %v6078_v16, %v3009_v1  ;;  %v3038_v30 = vsel %vm6185_vm9, %v6081_v36, %v3030_v12  ;;  %vm7418_vm13 = vcmp.ge.s32.totalorder %v5596_v3, %v4746_v62  ;;  %v4422_v16 = vld [vmem:[%s5644_s16 + $0xd0] sm:$0xff]  ;;  %v4425_v36 = vld [vmem:[%s5644_s16 + $0xd8] sm:$0xff]  ;;  %vm3393_vm2 = vcmp.ge.s32.totalorder %v7421_v7, %v4746_v62  ;;  %4393 = vst [vmem:[%s5644_s16 + $0x80] sm:$0xff] %v2975_v50 }
 0x2a2   : > { %vm6329_vm0 = vmand %vm4915_vm8, %vm7418_vm13  ;;  %4396 = vst [vmem:[%s5644_s16 + $0x88] sm:$0xff] %v2996_v2  ;;  %v3051_v3 = vsel %vm5625_vm15, %v3050_v61, %v6161_v28  ;;  %v3072_v39 = vsel %vm5625_vm15, %v3071_v54, %v6164_v15  ;;  %v3093_v42 = vsel %vm5625_vm15, %v3092_v27, %v4410_v22  ;;  %v3114_v51 = vsel %vm5625_vm15, %v3113_v49, %v4413_v21  ;;  %v6364_v15 = vld [vmem:[%s5644_s16 + $0xe8] sm:$0xff]  ;;  %v7425_v22 = vld [vmem:[#allocation15_spill] sm:$0xff] }
 0x2a3   : > { %4399 = vst [vmem:[%s5644_s16 + $0x90] sm:$0xff] %v3017_v38  ;;  %4402 = vst [vmem:[%s5644_s16 + $0x98] sm:$0xff] %v3038_v30  ;;  %vm7422_vm9 = vcmp.ge.s32.totalorder %v5601_v4, %v4746_v62  ;;  %vm3414_vm13 = vcmp.ge.s32.totalorder %v7425_v22, %v4746_v62  ;;  %v3059_v21 = vsel %vm6210_vm5, %v6113_v37, %v3051_v3  ;;  %v4434_v37 = vld [vmem:[%s5644_s16 + $0xf0] sm:$0xff]  ;;  %v4437_v53 = vld [vmem:[%s5644_s16 + $0xf8] sm:$0xff] }
 0x2a4   : > { %vm6356_vm3 = vmand %vm4915_vm8, %vm7422_vm9  ;;  %v3080_v4 = vsel %vm6229_vm14, %v6116_v59, %v3072_v39  ;;  %v3101_v46 = vsel %vm6242_vm4, %v6119_v10, %v3093_v42  ;;  %v3122_v58 = vsel %vm6255_vm6, %v6122_v41, %v3114_v51  ;;  %v7428_v59 = vld [vmem:[#allocation16_spill] sm:$0xff]  ;;  %4405 = vst [vmem:[%s5644_s16 + $0xa0] sm:$0xff] %v3059_v21  ;;  %v3129_v10 = vmul.f32 %v6272_v18, %v5757_v26  ;;  %v7431_v0 = vld [vmem:[#allocation17_spill] sm:$0xff] }
 0x2a5   : > { %vm6385_vm9 = vmand %vm4915_vm8, %vm3204_vm10  ;;  %4408 = vst [vmem:[%s5644_s16 + $0xa8] sm:$0xff] %v3080_v4  ;;  %v3150_v5 = vmul.f32 %v6275_v56, %v5757_v26  ;;  %v3171_v41 = vmul.f32 %v6278_v11, %v5757_v26  ;;  %v3192_v47 = vmul.f32 %v6281_v40, %v5757_v26  ;;  %v3213_v52 = vmul.f32 %v6313_v19, %v5757_v26  ;;  %v7434_v27 = vld [vmem:[#allocation18_spill] sm:$0xff]  ;;  %v7438_v1 = vld [vmem:[#allocation19_spill] sm:$0xff] }
 0x2a6   : > { %4411 = vst [vmem:[%s5644_s16 + $0xb0] sm:$0xff] %v3101_v46  ;;  %4414 = vst [vmem:[%s5644_s16 + $0xb8] sm:$0xff] %v3122_v58  ;;  %v3234_v60 = vmul.f32 %v6316_v44, %v5757_v26  ;;  %v3255_v61 = vmul.f32 %v6319_v31, %v5757_v26  ;;  %v3276_v6 = vmul.f32 %v6322_v23, %v5757_v26  ;;  %v7442_v30 = vld [vmem:[#allocation20_spill] sm:$0xff]  ;;  %v6481_v4 = vld [vmem:[%s5647_s17 + $0x118] sm:$0xff] }
 0x2a7   : > { %vm6410_vm10 = vmand %vm4915_vm8, %vm3225_vm1  ;;  %v3134_v49 = vsub.f32 %v6284_v32, %v3129_v10  ;;  %v3155_v63 = vsub.f32 %v6296_v17, %v3150_v5  ;;  %v3176_v25 = vsub.f32 %v4422_v16, %v3171_v41  ;;  %v3197_v24 = vsub.f32 %v4425_v36, %v3192_v47  ;;  %v6472_v51 = vld [vmem:[%s5647_s17 + $0x100] sm:$0xff]  ;;  %v6475_v21 = vld [vmem:[%s5647_s17 + $0x108] sm:$0xff] }
 0x2a8   : > { %vm6429_vm1 = vmand %vm4915_vm8, %vm3246_vm7  ;;  %vm7435_vm6 = vcmp.ge.s32.totalorder %v7398_v57, %v4746_v62  ;;  %v3218_v12 = vsub.f32 %v6361_v45, %v3213_v52  ;;  %v3239_v50 = vsub.f32 %v6364_v15, %v3234_v60  ;;  %v3260_v2 = vsub.f32 %v4434_v37, %v3255_v61  ;;  %v7446_v46 = vld [vmem:[#allocation21_spill] sm:$0xff]  ;;  %v6513_v41 = vld [vmem:[%s5647_s17 + $0x120] sm:$0xff] }
 0x2a9   : > { %vm6442_vm7 = vmand %vm4915_vm8, %vm7435_vm6  ;;  %v3281_v38 = vsub.f32 %v4437_v53, %v3276_v6  ;;  %vm7439_vm14 = vcmp.ge.s32.totalorder %v7401_v35, %v4746_v62  ;;  %v3135_v3 = vsel %vm5625_vm15, %v3134_v49, %v6284_v32  ;;  %v3156_v39 = vsel %vm5625_vm15, %v3155_v63, %v6296_v17  ;;  %v6478_v32 = vld [vmem:[%s5647_s17 + $0x110] sm:$0xff]  ;;  %v6484_v17 = vld [vmem:[%s5644_s16 + $0x100] sm:$0xff] }
 0x2aa   : > { %vm6455_vm6 = vmand %vm4915_vm8, %vm7439_vm14  ;;  %v3177_v35 = vsel %vm5625_vm15, %v3176_v25, %v4422_v16  ;;  %v3198_v42 = vsel %vm5625_vm15, %v3197_v24, %v4425_v36  ;;  %vm7443_vm14 = vcmp.ge.s32.totalorder %v7405_v48, %v4746_v62  ;;  %v6496_v36 = vld [vmem:[%s5644_s16 + $0x108] sm:$0xff]  ;;  %vm3540_vm4 = vcmp.ge.s32.totalorder %v7446_v46, %v4746_v62  ;;  %v6519_v9 = vld [vmem:[%s5647_s17 + $0x130] sm:$0xff] }
 0x2ab   : > { %vm6491_vm5 = vmand %vm4915_vm8, %vm7443_vm14  ;;  %v3143_v58 = vsel %vm6291_vm11, %v6272_v18, %v3135_v3  ;;  %v3164_v48 = vsel %vm6329_vm0, %v6275_v56, %v3156_v39  ;;  %v3185_v10 = vsel %vm6356_vm3, %v6278_v11, %v3177_v35  ;;  %v3206_v5 = vsel %vm6385_vm9, %v6281_v40, %v3198_v42  ;;  %v6516_v47 = vld [vmem:[%s5647_s17 + $0x128] sm:$0xff]  ;;  %v6522_v18 = vld [vmem:[%s5647_s17 + $0x138] sm:$0xff] }
 0x2ac   : > { %vm7447_vm11 = vcmp.ge.s32.totalorder %v7409_v8, %v4746_v62  ;;  %v4446_v11 = vld [vmem:[%s5644_s16 + $0x110] sm:$0xff]  ;;  %v4449_v40 = vld [vmem:[%s5644_s16 + $0x118] sm:$0xff]  ;;  %4417 = vst [vmem:[%s5644_s16 + $0xc0] sm:$0xff] %v3143_v58  ;;  %4420 = vst [vmem:[%s5644_s16 + $0xc8] sm:$0xff] %v3164_v48  ;;  %v3219_v8 = vsel %vm5625_vm15, %v3218_v12, %v6361_v45  ;;  %v3240_v28 = vsel %vm5625_vm15, %v3239_v50, %v6364_v15 }
 0x2ad   : > { %vm6529_vm0 = vmand %vm4915_vm8, %vm7447_vm11  ;;  %v7450_v14 = vld [vmem:[#allocation22_spill] sm:$0xff]  ;;  %4423 = vst [vmem:[%s5644_s16 + $0xd0] sm:$0xff] %v3185_v10  ;;  %v3261_v20 = vsel %vm5625_vm15, %v3260_v2, %v4434_v37  ;;  %v3282_v52 = vsel %vm5625_vm15, %v3281_v38, %v4437_v53  ;;  %vm7451_vm9 = vcmp.ge.s32.totalorder %v7413_v55, %v4746_v62  ;;  %v6561_v60 = vld [vmem:[%s5644_s16 + $0x120] sm:$0xff]  ;;  %v3227_v53 = vsel %vm6410_vm10, %v6313_v19, %v3219_v8 }
 0x2ae   : > { %vm3561_vm3 = vcmp.ge.s32.totalorder %v7450_v14, %v4746_v62  ;;  %4426 = vst [vmem:[%s5644_s16 + $0xd8] sm:$0xff] %v3206_v5  ;;  %vm6556_vm14 = vmand %vm4915_vm8, %vm7451_vm9  ;;  %v6564_v15 = vld [vmem:[%s5644_s16 + $0x128] sm:$0xff]  ;;  %v7454_v37 = vld [vmem:[#allocation23_spill] sm:$0xff]  ;;  %v3248_v55 = vsel %vm6429_vm1, %v6316_v44, %v3240_v28  ;;  %v3269_v61 = vsel %vm6442_vm7, %v6319_v31, %v3261_v20  ;;  %v3290_v6 = vsel %vm6455_vm6, %v6322_v23, %v3282_v52 }
 0x2af   : > { %vm3582_vm11 = vcmp.ge.s32.totalorder %v7454_v37, %v4746_v62  ;;  %vm6585_vm9 = vmand %vm4915_vm8, %vm3372_vm12  ;;  %v4458_v19 = vld [vmem:[%s5644_s16 + $0x130] sm:$0xff]  ;;  %v4461_v54 = vld [vmem:[%s5644_s16 + $0x138] sm:$0xff]  ;;  %4429 = vst [vmem:[%s5644_s16 + $0xe0] sm:$0xff] %v3227_v53  ;;  %v3297_v31 = vmul.f32 %v6472_v51, %v5757_v26  ;;  %v3318_v43 = vmul.f32 %v6475_v21, %v5757_v26  ;;  %v3339_v23 = vmul.f32 %v6478_v32, %v5757_v26 }
 0x2b0   : > { %v7457_v44 = vld [vmem:[#allocation24_spill] sm:$0xff]  ;;  %4432 = vst [vmem:[%s5644_s16 + $0xe8] sm:$0xff] %v3248_v55  ;;  %4435 = vst [vmem:[%s5644_s16 + $0xf0] sm:$0xff] %v3269_v61  ;;  %v3360_v49 = vmul.f32 %v6481_v4, %v5757_v26  ;;  %v7460_v25 = vld [vmem:[#allocation25_spill] sm:$0xff]  ;;  %v3381_v24 = vmul.f32 %v6513_v41, %v5757_v26  ;;  %v3402_v29 = vmul.f32 %v6516_v47, %v5757_v26 }
 0x2b1   : > { %4438 = vst [vmem:[%s5644_s16 + $0xf8] sm:$0xff] %v3290_v6  ;;  %vm6610_vm12 = vmand %vm4915_vm8, %vm3393_vm2  ;;  %v3423_v12 = vmul.f32 %v6519_v9, %v5757_v26  ;;  %v3444_v7 = vmul.f32 %v6522_v18, %v5757_v26  ;;  %v7463_v2 = vld [vmem:[#allocation26_spill] sm:$0xff]  ;;  %v3302_v38 = vsub.f32 %v6484_v17, %v3297_v31  ;;  %v3323_v57 = vsub.f32 %v6496_v36, %v3318_v43  ;;  %v7467_v35 = vld [vmem:[#allocation27_spill] sm:$0xff] }
 0x2b2   : > { %vm6629_vm2 = vmand %vm4915_vm8, %vm3414_vm13  ;;  %v3344_v3 = vsub.f32 %v4446_v11, %v3339_v23  ;;  %v3365_v39 = vsub.f32 %v4449_v40, %v3360_v49  ;;  %vm7464_vm6 = vcmp.ge.s32.totalorder %v7428_v59, %v4746_v62  ;;  %v3386_v42 = vsub.f32 %v6561_v60, %v3381_v24  ;;  %v7471_v5 = vld [vmem:[#allocation28_spill] sm:$0xff]  ;;  %v6681_v55 = vld [vmem:[%s5647_s17 + $0x158] sm:$0xff] }
 0x2b3   : > { %vm6642_vm13 = vmand %vm4915_vm8, %vm7464_vm6  ;;  %v3407_v58 = vsub.f32 %v6564_v15, %v3402_v29  ;;  %v3428_v48 = vsub.f32 %v4458_v19, %v3423_v12  ;;  %v3449_v10 = vsub.f32 %v4461_v54, %v3444_v7  ;;  %vm7468_vm1 = vcmp.ge.s32.totalorder %v7431_v0, %v4746_v62  ;;  %v6672_v52 = vld [vmem:[%s5647_s17 + $0x140] sm:$0xff]  ;;  %v6675_v53 = vld [vmem:[%s5647_s17 + $0x148] sm:$0xff] }
 0x2b4   : > { %vm6655_vm6 = vmand %vm4915_vm8, %vm7468_vm1  ;;  %v3303_v8 = vsel %vm5625_vm15, %v3302_v38, %v6484_v17  ;;  %v3324_v28 = vsel %vm5625_vm15, %v3323_v57, %v6496_v36  ;;  %v3345_v0 = vsel %vm5625_vm15, %v3344_v3, %v4446_v11  ;;  %v3366_v20 = vsel %vm5625_vm15, %v3365_v39, %v4449_v40  ;;  %v6678_v17 = vld [vmem:[%s5647_s17 + $0x150] sm:$0xff]  ;;  %v4464_v36 = vld [vmem:[%s5644_s16 + $0x140] sm:$0xff] }
 0x2b5   : > { %vm7472_vm1 = vcmp.ge.s32.totalorder %v7434_v27, %v4746_v62  ;;  %v4467_v40 = vld [vmem:[%s5644_s16 + $0x148] sm:$0xff]  ;;  %v3311_v6 = vsel %vm6491_vm5, %v6472_v51, %v3303_v8  ;;  %v3332_v27 = vsel %vm6529_vm0, %v6475_v21, %v3324_v28  ;;  %v3353_v31 = vsel %vm6556_vm14, %v6478_v32, %v3345_v0  ;;  %v6709_v23 = vld [vmem:[%s5647_s17 + $0x160] sm:$0xff]  ;;  %v6715_v16 = vld [vmem:[%s5647_s17 + $0x170] sm:$0xff] }
 0x2b6   : > { %vm6689_vm10 = vmand %vm4915_vm8, %vm7472_vm1  ;;  %v7475_v61 = vld [vmem:[#allocation29_spill] sm:$0xff]  ;;  %v3374_v43 = vsel %vm6585_vm9, %v6481_v4, %v3366_v20  ;;  %v6718_v51 = vld [vmem:[%s5647_s17 + $0x178] sm:$0xff]  ;;  %vm7476_vm5 = vcmp.ge.s32.totalorder %v7438_v1, %v4746_v62  ;;  %4441 = vst [vmem:[%s5644_s16 + $0x100] sm:$0xff] %v3311_v6  ;;  %v3387_v1 = vsel %vm5625_vm15, %v3386_v42, %v6561_v60  ;;  %v3408_v45 = vsel %vm5625_vm15, %v3407_v58, %v6564_v15 }
 0x2b7   : > { %vm3708_vm7 = vcmp.ge.s32.totalorder %v7475_v61, %v4746_v62  ;;  %v6712_v49 = vld [vmem:[%s5647_s17 + $0x168] sm:$0xff]  ;;  %vm6725_vm0 = vmand %vm4915_vm8, %vm7476_vm5  ;;  %v4470_v32 = vld [vmem:[%s5644_s16 + $0x150] sm:$0xff]  ;;  %4444 = vst [vmem:[%s5644_s16 + $0x108] sm:$0xff] %v3332_v27  ;;  %v3429_v33 = vsel %vm5625_vm15, %v3428_v48, %v4458_v19  ;;  %v3450_v24 = vsel %vm5625_vm15, %v3449_v10, %v4461_v54  ;;  %vm7480_vm9 = vcmp.ge.s32.totalorder %v7442_v30, %v4746_v62 }
 0x2b8   : > { %v4473_v4 = vld [vmem:[%s5644_s16 + $0x158] sm:$0xff]  ;;  %4447 = vst [vmem:[%s5644_s16 + $0x110] sm:$0xff] %v3353_v31  ;;  %4450 = vst [vmem:[%s5644_s16 + $0x118] sm:$0xff] %v3374_v43  ;;  %v6757_v29 = vld [vmem:[%s5644_s16 + $0x160] sm:$0xff]  ;;  %v3395_v54 = vsel %vm6610_vm12, %v6513_v41, %v3387_v1  ;;  %v3416_v30 = vsel %vm6629_vm2, %v6516_v47, %v3408_v45  ;;  %v3437_v12 = vsel %vm6642_vm13, %v6519_v9, %v3429_v33 }
 0x2b9   : > { %v7479_v56 = vld [vmem:[#allocation30_spill] sm:$0xff]  ;;  %vm6752_vm1 = vmand %vm4915_vm8, %vm7480_vm9  ;;  %v6760_v15 = vld [vmem:[%s5644_s16 + $0x168] sm:$0xff]  ;;  %v3458_v7 = vsel %vm6655_vm6, %v6522_v18, %v3450_v24  ;;  %4453 = vst [vmem:[%s5644_s16 + $0x120] sm:$0xff] %v3395_v54  ;;  %v3465_v9 = vmul.f32 %v6672_v52, %v5757_v26  ;;  %v3486_v46 = vmul.f32 %v6675_v53, %v5757_v26  ;;  %v3507_v18 = vmul.f32 %v6678_v17, %v5757_v26 }
 0x2ba   : > { %vm3729_vm14 = vcmp.ge.s32.totalorder %v7479_v56, %v4746_v62  ;;  %v7483_v19 = vld [vmem:[#allocation31_spill] sm:$0xff]  ;;  %vm6781_vm9 = vmand %vm4915_vm8, %vm3540_vm4  ;;  %v4482_v41 = vld [vmem:[%s5644_s16 + $0x170] sm:$0xff]  ;;  %4456 = vst [vmem:[%s5644_s16 + $0x128] sm:$0xff] %v3416_v30  ;;  %v3528_v38 = vmul.f32 %v6681_v55, %v5757_v26  ;;  %v3549_v39 = vmul.f32 %v6709_v23, %v5757_v26  ;;  %v3570_v22 = vmul.f32 %v6712_v49, %v5757_v26 }
 0x2bb   : > { %vm3750_vm5 = vcmp.ge.s32.totalorder %v7483_v19, %v4746_v62  ;;  %v4485_v50 = vld [vmem:[%s5644_s16 + $0x178] sm:$0xff]  ;;  %v7486_v47 = vld [vmem:[#allocation32_spill] sm:$0xff]  ;;  %4459 = vst [vmem:[%s5644_s16 + $0x130] sm:$0xff] %v3437_v12  ;;  %4462 = vst [vmem:[%s5644_s16 + $0x138] sm:$0xff] %v3458_v7  ;;  %v3591_v42 = vmul.f32 %v6715_v16, %v5757_v26  ;;  %v3612_v14 = vmul.f32 %v6718_v51, %v5757_v26 }
 0x2bc   : > { %vm3771_vm12 = vcmp.ge.s32.totalorder %v7486_v47, %v4746_v62  ;;  %vm6806_vm4 = vmand %vm4915_vm8, %vm3561_vm3  ;;  %v7489_v3 = vld [vmem:[#allocation33_spill] sm:$0xff]  ;;  %v3470_v48 = vsub.f32 %v4464_v36, %v3465_v9  ;;  %v3491_v10 = vsub.f32 %v4467_v40, %v3486_v46  ;;  %v3512_v59 = vsub.f32 %v4470_v32, %v3507_v18  ;;  %v6858_v1 = vld [vmem:[%s5647_s17 + $0x180] sm:$0xff] }
 0x2bd   : > { %vm6825_vm3 = vmand %vm4915_vm8, %vm3582_vm11  ;;  %v3533_v8 = vsub.f32 %v4473_v4, %v3528_v38  ;;  %vm7492_vm13 = vcmp.ge.s32.totalorder %v7457_v44, %v4746_v62  ;;  %v3554_v28 = vsub.f32 %v6757_v29, %v3549_v39  ;;  %v3575_v0 = vsub.f32 %v6760_v15, %v3570_v22  ;;  %v6861_v45 = vld [vmem:[%s5647_s17 + $0x188] sm:$0xff]  ;;  %v6864_v33 = vld [vmem:[%s5647_s17 + $0x190] sm:$0xff] }
 0x2be   : > { %vm6834_vm6 = vmand %vm4915_vm8, %vm7492_vm13  ;;  %v3596_v20 = vsub.f32 %v4482_v41, %v3591_v42  ;;  %v3617_v6 = vsub.f32 %v4485_v50, %v3612_v14  ;;  %vm7495_vm11 = vcmp.ge.s32.totalorder %v7460_v25, %v4746_v62  ;;  %v3471_v27 = vsel %vm5625_vm15, %v3470_v48, %v4464_v36  ;;  %v6867_v36 = vld [vmem:[%s5647_s17 + $0x198] sm:$0xff]  ;;  %v6893_v12 = vld [vmem:[%s5647_s17 + $0x1a0] sm:$0xff] }
 0x2bf   : > { %vm6845_vm2 = vmand %vm4915_vm8, %vm7495_vm11  ;;  %v3492_v31 = vsel %vm5625_vm15, %v3491_v10, %v4467_v40  ;;  %v3513_v43 = vsel %vm5625_vm15, %v3512_v59, %v4470_v32  ;;  %v3534_v25 = vsel %vm5625_vm15, %v3533_v8, %v4473_v4  ;;  %v4488_v40 = vld [vmem:[%s5644_s16 + $0x180] sm:$0xff]  ;;  %vm7498_vm13 = vcmp.ge.s32.totalorder %v7463_v2, %v4746_v62  ;;  %v4491_v4 = vld [vmem:[%s5644_s16 + $0x188] sm:$0xff] }
 0x2c0   : > { %vm6875_vm11 = vmand %vm4915_vm8, %vm7498_vm13  ;;  %v3479_v24 = vsel %vm6689_vm10, %v6672_v52, %v3471_v27  ;;  %v3500_v54 = vsel %vm6725_vm0, %v6675_v53, %v3492_v31  ;;  %v3521_v2 = vsel %vm6752_vm1, %v6678_v17, %v3513_v43  ;;  %v3542_v30 = vsel %vm6781_vm9, %v6681_v55, %v3534_v25  ;;  %v6896_v7 = vld [vmem:[%s5647_s17 + $0x1a8] sm:$0xff]  ;;  %v6899_v11 = vld [vmem:[%s5647_s17 + $0x1b0] sm:$0xff] }
 0x2c1   : > { %v6902_v52 = vld [vmem:[%s5647_s17 + $0x1b8] sm:$0xff]  ;;  %vm7501_vm10 = vcmp.ge.s32.totalorder %v7467_v35, %v4746_v62  ;;  %v4494_v17 = vld [vmem:[%s5644_s16 + $0x190] sm:$0xff]  ;;  %4465 = vst [vmem:[%s5644_s16 + $0x140] sm:$0xff] %v3479_v24  ;;  %4468 = vst [vmem:[%s5644_s16 + $0x148] sm:$0xff] %v3500_v54  ;;  %v3555_v35 = vsel %vm5625_vm15, %v3554_v28, %v6757_v29  ;;  %v3576_v60 = vsel %vm5625_vm15, %v3575_v0, %v6760_v15 }
 0x2c2   : > { %vm6909_vm0 = vmand %vm4915_vm8, %vm7501_vm10  ;;  %v4497_v55 = vld [vmem:[%s5644_s16 + $0x198] sm:$0xff]  ;;  %4471 = vst [vmem:[%s5644_s16 + $0x150] sm:$0xff] %v3521_v2  ;;  %v3597_v63 = vsel %vm5625_vm15, %v3596_v20, %v4482_v41  ;;  %v3618_v9 = vsel %vm5625_vm15, %v3617_v6, %v4485_v50  ;;  %vm7505_vm9 = vcmp.ge.s32.totalorder %v7471_v5, %v4746_v62  ;;  %v4500_v46 = vld [vmem:[%s5644_s16 + $0x1a0] sm:$0xff]  ;;  %v3563_v41 = vsel %vm6806_vm4, %v6709_v23, %v3555_v35 }
 0x2c3   : > { %v7504_v21 = vld [vmem:[#allocation34_spill] sm:$0xff]  ;;  %4474 = vst [vmem:[%s5644_s16 + $0x158] sm:$0xff] %v3542_v30  ;;  %vm6936_vm13 = vmand %vm4915_vm8, %vm7505_vm9  ;;  %v4503_v18 = vld [vmem:[%s5644_s16 + $0x1a8] sm:$0xff]  ;;  %v3584_v50 = vsel %vm6825_vm3, %v6712_v49, %v3576_v60  ;;  %v3605_v5 = vsel %vm6834_vm6, %v6715_v16, %v3597_v63  ;;  %v3626_v38 = vsel %vm6845_vm2, %v6718_v51, %v3618_v9  ;;  %v3633_v49 = vmul.f32 %v6858_v1, %v5757_v26 }
 0x2c4   : > { %vm3813_vm1 = vcmp.ge.s32.totalorder %v7504_v21, %v4746_v62  ;;  %v7508_v15 = vld [vmem:[#allocation35_spill] sm:$0xff]  ;;  %vm6961_vm9 = vmand %vm4915_vm8, %vm3708_vm7  ;;  %v4506_v23 = vld [vmem:[%s5644_s16 + $0x1b0] sm:$0xff]  ;;  %4477 = vst [vmem:[%s5644_s16 + $0x160] sm:$0xff] %v3563_v41  ;;  %v3654_v16 = vmul.f32 %v6861_v45, %v5757_v26  ;;  %v3675_v61 = vmul.f32 %v6864_v33, %v5757_v26  ;;  %v3696_v51 = vmul.f32 %v6867_v36, %v5757_v26 }
 0x2c5   : > { %vm3834_vm10 = vcmp.ge.s32.totalorder %v7508_v15, %v4746_v62  ;;  %v4509_v39 = vld [vmem:[%s5644_s16 + $0x1b8] sm:$0xff]  ;;  %4480 = vst [vmem:[%s5644_s16 + $0x168] sm:$0xff] %v3584_v50  ;;  %4483 = vst [vmem:[%s5644_s16 + $0x170] sm:$0xff] %v3605_v5  ;;  %v3717_v42 = vmul.f32 %v6893_v12, %v5757_v26  ;;  %v3738_v14 = vmul.f32 %v6896_v7, %v5757_v26  ;;  %v4511_v24 = vld [vmem:[%s5647_s17 + $0x1c0] sm:$0xff] }
 0x2c6   : > { %4486 = vst [vmem:[%s5644_s16 + $0x178] sm:$0xff] %v3626_v38  ;;  %vm6984_vm7 = vmand %vm4915_vm8, %vm3729_vm14  ;;  %v3759_v58 = vmul.f32 %v6899_v11, %v5757_v26  ;;  %v3780_v48 = vmul.f32 %v6902_v52, %v5757_v26  ;;  %v3638_v10 = vsub.f32 %v4488_v40, %v3633_v49  ;;  %v3659_v59 = vsub.f32 %v4491_v4, %v3654_v16  ;;  %v4514_v32 = vld [vmem:[%s5647_s17 + $0x1c8] sm:$0xff]  ;;  %v4512_v54 = vld [vmem:[%s5644_s16 + $0x1c0] sm:$0xff] }
 0x2c7   : > { %vm7001_vm14 = vmand %vm4915_vm8, %vm3750_vm5  ;;  %v3680_v8 = vsub.f32 %v4494_v17, %v3675_v61  ;;  %v3701_v37 = vsub.f32 %v4497_v55, %v3696_v51  ;;  %v3722_v19 = vsub.f32 %v4500_v46, %v3717_v42  ;;  %v3743_v0 = vsub.f32 %v4503_v18, %v3738_v14  ;;  %v4515_v2 = vld [vmem:[%s5644_s16 + $0x1c8] sm:$0xff]  ;;  %v3850_v29 = vld [vmem:[#allocation2] sm:$0x1] (%p498_p0) }
 0x2c8   : > { %vm7010_vm4 = vmand %vm4915_vm8, %vm3771_vm12  ;;  %v3764_v20 = vsub.f32 %v4506_v23, %v3759_v58  ;;  %v3785_v6 = vsub.f32 %v4509_v39, %v3780_v48  ;;  %vm7517_vm5 = vcmp.ge.s32.totalorder %v7489_v3, %v4746_v62  ;;  %v3639_v44 = vsel %vm5625_vm15, %v3638_v10, %v4488_v40  ;;  %v7520_v9 = vld [vmem:[#allocation5_spill] sm:$0xff]  ;;  %3853 = vst [vmem:[#allocation3] sm:$0x1] (%p498_p0), %v3850_v29 }
 0x2c9   : > { %vm7019_vm2 = vmand %vm4915_vm8, %vm7517_vm5  ;;  %v3660_v27 = vsel %vm5625_vm15, %v3659_v59, %v4491_v4  ;;  %v3681_v31 = vsel %vm5625_vm15, %v3680_v8, %v4494_v17  ;;  %v3702_v3 = vsel %vm5625_vm15, %v3701_v37, %v4497_v55  ;;  %v3647_v43 = vsel %vm6875_vm11, %v6858_v1, %v3639_v44 }
 0x2ca   : > { %v3668_v25 = vsel %vm6909_vm0, %v6861_v45, %v3660_v27  ;;  %v3689_v40 = vsel %vm6936_vm13, %v6864_v33, %v3681_v31  ;;  %v3710_v4 = vsel %vm6961_vm9, %v6867_v36, %v3702_v3  ;;  %4489 = vst [vmem:[%s5644_s16 + $0x180] sm:$0xff] %v3647_v43  ;;  %v3723_v1 = vsel %vm5625_vm15, %v3722_v19, %v4500_v46  ;;  %vm3814_vm12 = vmand %vm4915_vm8, %vm3813_vm1 }
 0x2cb   : > { %4492 = vst [vmem:[%s5644_s16 + $0x188] sm:$0xff] %v3668_v25  ;;  %4495 = vst [vmem:[%s5644_s16 + $0x190] sm:$0xff] %v3689_v40  ;;  %v3744_v45 = vsel %vm5625_vm15, %v3743_v0, %v4503_v18  ;;  %v3765_v33 = vsel %vm5625_vm15, %v3764_v20, %v4506_v23  ;;  %v3786_v36 = vsel %vm5625_vm15, %v3785_v6, %v4509_v39 }
 0x2cc   : > { %4498 = vst [vmem:[%s5644_s16 + $0x198] sm:$0xff] %v3710_v4  ;;  %v3731_v30 = vsel %vm6984_vm7, %v6893_v12, %v3723_v1  ;;  %v3752_v53 = vsel %vm7001_vm14, %v6896_v7, %v3744_v45  ;;  %v3773_v17 = vsel %vm7010_vm4, %v6899_v11, %v3765_v33  ;;  %v3794_v55 = vsel %vm7019_vm2, %v6902_v52, %v3786_v36  ;;  %vm3835_vm3 = vmand %vm4915_vm8, %vm3834_vm10 }
 0x2cd   : > { %4501 = vst [vmem:[%s5644_s16 + $0x1a0] sm:$0xff] %v3731_v30  ;;  %4504 = vst [vmem:[%s5644_s16 + $0x1a8] sm:$0xff] %v3752_v53  ;;  %v3801_v12 = vmul.f32 %v4511_v24, %v5757_v26  ;;  %v3822_v7 = vmul.f32 %v4514_v32, %v5757_v26 }
 0x2ce   : > { %4507 = vst [vmem:[%s5644_s16 + $0x1b0] sm:$0xff] %v3773_v17  ;;  %4510 = vst [vmem:[%s5644_s16 + $0x1b8] sm:$0xff] %v3794_v55 }
 0x2cf   : > { %v3806_v11 = vsub.f32 %v4512_v54, %v3801_v12  ;;  %v3827_v52 = vsub.f32 %v4515_v2, %v3822_v7 }
 0x2d1   : > { %v3807_v35 = vsel %vm5625_vm15, %v3806_v11, %v4512_v54  ;;  %v3828_v26 = vsel %vm5625_vm15, %v3827_v52, %v4515_v2 }
 0x2d2   : > { %v3815_v60 = vsel %vm3814_vm12, %v4511_v24, %v3807_v35  ;;  %v3836_v63 = vsel %vm3835_vm3, %v4514_v32, %v3828_v26 }
 0x2d3   : > { %4513 = vst [vmem:[%s5644_s16 + $0x1c0] sm:$0xff] %v3815_v60  ;;  %4516 = vst [vmem:[%s5644_s16 + $0x1c8] sm:$0xff] %v3836_v63  ;;  %v4133_v60 = vld [vmem:[#allocation3] sm:$0x1] (%p498_p0) }
 0x2d4   :  { %4134 = vst [vmem:[%s7280_s2] sm:$0x1] (%p498_p0), %v4133_v60 }
 0x2d8   :  { %500 = sbr.rel (!%p498_p0) target bundleno = 32 (0x20), region = 652 }
 0x2da   : > { %v3839_v21 = vld [vmem:[%s3838_s18] ss:$0 sm:$0xff] }
 0x2db   : > { %v3844_v62 = vsel %vm4915_vm8, %v7520_v9, %v3839_v21 }
 0x2dc   : > { %3845 = vst [vmem:[%s3838_s18] sm:$0x1] %v3844_v62 }
 0x2e3   :  { %v3996_v13 = vld [vmem:[#allocation1] sm:$0xff]  ;;  %v3998_v46 = vld [vmem:[#allocation1 + $0x8] sm:$0xff]  ;;  %v4000_v34 = vld [vmem:[#allocation1 + $0x10] sm:$0xff] }
 0x2e4   :  { %3997 = vst [vmem:[%s7279_s1] sm:$0xff] %v3996_v13  ;;  %3999 = vst [vmem:[%s7279_s1 + $0x8] sm:$0xff] %v3998_v46  ;;  %v4002_v18 = vld [vmem:[#allocation1 + $0x18] sm:$0xff]  ;;  %v4004_v15 = vld [vmem:[#allocation1 + $0x20] sm:$0xff] }
 0x2e5   :  { %4001 = vst [vmem:[%s7279_s1 + $0x10] sm:$0xff] %v4000_v34  ;;  %4003 = vst [vmem:[%s7279_s1 + $0x18] sm:$0xff] %v4002_v18  ;;  %v4006_v41 = vld [vmem:[#allocation1 + $0x28] sm:$0xff]  ;;  %v4008_v50 = vld [vmem:[#allocation1 + $0x30] sm:$0xff] }
 0x2e6   :  { %4005 = vst [vmem:[%s7279_s1 + $0x20] sm:$0xff] %v4004_v15  ;;  %v4010_v5 = vld [vmem:[#allocation1 + $0x38] sm:$0xff]  ;;  %4007 = vst [vmem:[%s7279_s1 + $0x28] sm:$0xff] %v4006_v41  ;;  %v4012_v38 = vld [vmem:[#allocation1 + $0x40] sm:$0xff] }
 0x2e7   :  { %4009 = vst [vmem:[%s7279_s1 + $0x30] sm:$0xff] %v4008_v50  ;;  %4011 = vst [vmem:[%s7279_s1 + $0x38] sm:$0xff] %v4010_v5  ;;  %v4014_v57 = vld [vmem:[#allocation1 + $0x48] sm:$0xff]  ;;  %v4016_v23 = vld [vmem:[#allocation1 + $0x50] sm:$0xff] }
 0x2e8   :  { %4013 = vst [vmem:[%s7279_s1 + $0x40] sm:$0xff] %v4012_v38  ;;  %4015 = vst [vmem:[%s7279_s1 + $0x48] sm:$0xff] %v4014_v57  ;;  %v4018_v39 = vld [vmem:[#allocation1 + $0x58] sm:$0xff]  ;;  %v4020_v49 = vld [vmem:[#allocation1 + $0x60] sm:$0xff] }
 0x2e9   :  { %4017 = vst [vmem:[%s7279_s1 + $0x50] sm:$0xff] %v4016_v23  ;;  %v4022_v16 = vld [vmem:[#allocation1 + $0x68] sm:$0xff]  ;;  %4019 = vst [vmem:[%s7279_s1 + $0x58] sm:$0xff] %v4018_v39  ;;  %v4024_v61 = vld [vmem:[#allocation1 + $0x70] sm:$0xff] }
 0x2ea   :  { %4021 = vst [vmem:[%s7279_s1 + $0x60] sm:$0xff] %v4020_v49  ;;  %4023 = vst [vmem:[%s7279_s1 + $0x68] sm:$0xff] %v4022_v16  ;;  %v4026_v51 = vld [vmem:[#allocation1 + $0x78] sm:$0xff]  ;;  %v4028_v22 = vld [vmem:[#allocation1 + $0x80] sm:$0xff] }
 0x2eb   :  { %4025 = vst [vmem:[%s7279_s1 + $0x70] sm:$0xff] %v4024_v61  ;;  %4027 = vst [vmem:[%s7279_s1 + $0x78] sm:$0xff] %v4026_v51  ;;  %v4030_v42 = vld [vmem:[#allocation1 + $0x88] sm:$0xff]  ;;  %v4032_v14 = vld [vmem:[#allocation1 + $0x90] sm:$0xff] }
 0x2ec   :  { %4029 = vst [vmem:[%s7279_s1 + $0x80] sm:$0xff] %v4028_v22  ;;  %v4034_v58 = vld [vmem:[#allocation1 + $0x98] sm:$0xff]  ;;  %4031 = vst [vmem:[%s7279_s1 + $0x88] sm:$0xff] %v4030_v42  ;;  %v4036_v48 = vld [vmem:[#allocation1 + $0xa0] sm:$0xff] }
 0x2ed   :  { %4033 = vst [vmem:[%s7279_s1 + $0x90] sm:$0xff] %v4032_v14  ;;  %4035 = vst [vmem:[%s7279_s1 + $0x98] sm:$0xff] %v4034_v58  ;;  %v4038_v56 = vld [vmem:[#allocation1 + $0xa8] sm:$0xff]  ;;  %v4040_v10 = vld [vmem:[#allocation1 + $0xb0] sm:$0xff] }
 0x2ee   :  { %4037 = vst [vmem:[%s7279_s1 + $0xa0] sm:$0xff] %v4036_v48  ;;  %4039 = vst [vmem:[%s7279_s1 + $0xa8] sm:$0xff] %v4038_v56  ;;  %v4042_v59 = vld [vmem:[#allocation1 + $0xb8] sm:$0xff]  ;;  %v4044_v8 = vld [vmem:[#allocation1 + $0xc0] sm:$0xff] }
 0x2ef   :  { %4041 = vst [vmem:[%s7279_s1 + $0xb0] sm:$0xff] %v4040_v10  ;;  %v4046_v37 = vld [vmem:[#allocation1 + $0xc8] sm:$0xff]  ;;  %4043 = vst [vmem:[%s7279_s1 + $0xb8] sm:$0xff] %v4042_v59  ;;  %v4048_v28 = vld [vmem:[#allocation1 + $0xd0] sm:$0xff] }
 0x2f0   :  { %4045 = vst [vmem:[%s7279_s1 + $0xc0] sm:$0xff] %v4044_v8  ;;  %4047 = vst [vmem:[%s7279_s1 + $0xc8] sm:$0xff] %v4046_v37  ;;  %v4050_v19 = vld [vmem:[#allocation1 + $0xd8] sm:$0xff]  ;;  %v4052_v0 = vld [vmem:[#allocation1 + $0xe0] sm:$0xff] }
 0x2f1   :  { %4049 = vst [vmem:[%s7279_s1 + $0xd0] sm:$0xff] %v4048_v28  ;;  %4051 = vst [vmem:[%s7279_s1 + $0xd8] sm:$0xff] %v4050_v19  ;;  %v4054_v20 = vld [vmem:[#allocation1 + $0xe8] sm:$0xff]  ;;  %v4056_v6 = vld [vmem:[#allocation1 + $0xf0] sm:$0xff] }
 0x2f2   :  { %4053 = vst [vmem:[%s7279_s1 + $0xe0] sm:$0xff] %v4052_v0  ;;  %v4058_v47 = vld [vmem:[#allocation1 + $0xf8] sm:$0xff]  ;;  %4055 = vst [vmem:[%s7279_s1 + $0xe8] sm:$0xff] %v4054_v20  ;;  %v4060_v44 = vld [vmem:[#allocation1 + $0x100] sm:$0xff] }
 0x2f3   :  { %4057 = vst [vmem:[%s7279_s1 + $0xf0] sm:$0xff] %v4056_v6  ;;  %4059 = vst [vmem:[%s7279_s1 + $0xf8] sm:$0xff] %v4058_v47  ;;  %v4062_v27 = vld [vmem:[#allocation1 + $0x108] sm:$0xff]  ;;  %v4064_v31 = vld [vmem:[#allocation1 + $0x110] sm:$0xff] }
 0x2f4   :  { %4061 = vst [vmem:[%s7279_s1 + $0x100] sm:$0xff] %v4060_v44  ;;  %4063 = vst [vmem:[%s7279_s1 + $0x108] sm:$0xff] %v4062_v27  ;;  %v4066_v3 = vld [vmem:[#allocation1 + $0x118] sm:$0xff]  ;;  %v4068_v43 = vld [vmem:[#allocation1 + $0x120] sm:$0xff] }
 0x2f5   :  { %4065 = vst [vmem:[%s7279_s1 + $0x110] sm:$0xff] %v4064_v31  ;;  %v4070_v25 = vld [vmem:[#allocation1 + $0x128] sm:$0xff]  ;;  %4067 = vst [vmem:[%s7279_s1 + $0x118] sm:$0xff] %v4066_v3  ;;  %v4072_v40 = vld [vmem:[#allocation1 + $0x130] sm:$0xff] }
 0x2f6   :  { %4069 = vst [vmem:[%s7279_s1 + $0x120] sm:$0xff] %v4068_v43  ;;  %4071 = vst [vmem:[%s7279_s1 + $0x128] sm:$0xff] %v4070_v25  ;;  %v4074_v4 = vld [vmem:[#allocation1 + $0x138] sm:$0xff]  ;;  %v4076_v24 = vld [vmem:[#allocation1 + $0x140] sm:$0xff] }
 0x2f7   :  { %4073 = vst [vmem:[%s7279_s1 + $0x130] sm:$0xff] %v4072_v40  ;;  %4075 = vst [vmem:[%s7279_s1 + $0x138] sm:$0xff] %v4074_v4  ;;  %v4078_v1 = vld [vmem:[#allocation1 + $0x148] sm:$0xff]  ;;  %v4080_v45 = vld [vmem:[#allocation1 + $0x150] sm:$0xff] }
 0x2f8   :  { %4077 = vst [vmem:[%s7279_s1 + $0x140] sm:$0xff] %v4076_v24  ;;  %v4082_v33 = vld [vmem:[#allocation1 + $0x158] sm:$0xff]  ;;  %4079 = vst [vmem:[%s7279_s1 + $0x148] sm:$0xff] %v4078_v1  ;;  %v4084_v36 = vld [vmem:[#allocation1 + $0x160] sm:$0xff] }
 0x2f9   :  { %4081 = vst [vmem:[%s7279_s1 + $0x150] sm:$0xff] %v4080_v45  ;;  %4083 = vst [vmem:[%s7279_s1 + $0x158] sm:$0xff] %v4082_v33  ;;  %v4086_v32 = vld [vmem:[#allocation1 + $0x168] sm:$0xff]  ;;  %v4088_v54 = vld [vmem:[#allocation1 + $0x170] sm:$0xff] }
 0x2fa   :  { %4085 = vst [vmem:[%s7279_s1 + $0x160] sm:$0xff] %v4084_v36  ;;  %4087 = vst [vmem:[%s7279_s1 + $0x168] sm:$0xff] %v4086_v32  ;;  %v4090_v2 = vld [vmem:[#allocation1 + $0x178] sm:$0xff]  ;;  %v4092_v30 = vld [vmem:[#allocation1 + $0x180] sm:$0xff] }
 0x2fb   :  { %4089 = vst [vmem:[%s7279_s1 + $0x170] sm:$0xff] %v4088_v54  ;;  %v4094_v53 = vld [vmem:[#allocation1 + $0x188] sm:$0xff]  ;;  %4091 = vst [vmem:[%s7279_s1 + $0x178] sm:$0xff] %v4090_v2  ;;  %v4096_v17 = vld [vmem:[#allocation1 + $0x190] sm:$0xff] }
 0x2fc   :  { %4093 = vst [vmem:[%s7279_s1 + $0x180] sm:$0xff] %v4092_v30  ;;  %4095 = vst [vmem:[%s7279_s1 + $0x188] sm:$0xff] %v4094_v53  ;;  %v4098_v55 = vld [vmem:[#allocation1 + $0x198] sm:$0xff]  ;;  %v4100_v12 = vld [vmem:[#allocation1 + $0x1a0] sm:$0xff] }
 0x2fd   :  { %4097 = vst [vmem:[%s7279_s1 + $0x190] sm:$0xff] %v4096_v17  ;;  %4099 = vst [vmem:[%s7279_s1 + $0x198] sm:$0xff] %v4098_v55  ;;  %v4102_v7 = vld [vmem:[#allocation1 + $0x1a8] sm:$0xff]  ;;  %v4104_v11 = vld [vmem:[#allocation1 + $0x1b0] sm:$0xff] }
 0x2fe   :  { %4101 = vst [vmem:[%s7279_s1 + $0x1a0] sm:$0xff] %v4100_v12  ;;  %v4106_v52 = vld [vmem:[#allocation1 + $0x1b8] sm:$0xff]  ;;  %4103 = vst [vmem:[%s7279_s1 + $0x1a8] sm:$0xff] %v4102_v7  ;;  %v4108_v35 = vld [vmem:[#allocation1 + $0x1c0] sm:$0xff] }
 0x2ff   :  { %4105 = vst [vmem:[%s7279_s1 + $0x1b0] sm:$0xff] %v4104_v11  ;;  %4107 = vst [vmem:[%s7279_s1 + $0x1b8] sm:$0xff] %v4106_v52  ;;  %v4110_v26 = vld [vmem:[#allocation1 + $0x1c8] sm:$0xff] }
 0x300   :  { %4109 = vst [vmem:[%s7279_s1 + $0x1c0] sm:$0xff] %v4108_v35  ;;  %4111 = vst [vmem:[%s7279_s1 + $0x1c8] sm:$0xff] %v4110_v26 }

// kernel: custom-call.49
= control target key start
LH: loop header
LB: loop body
LE: loop exit
PB: predicated region body
PF: predicated region fallthrough
CT: control target
= control target key end

     0   :  { %v1215_v6 = vmov 0.0   ;;  %s1271_s7 = smov 0   ;;  %s1788_s0 = inlined_call_operand.vmem [shape: f32[102,15], index: 0, kind: input, shape index: {}]   ;;  %s1789_s1 = inlined_call_operand.vmem [shape: f32[102,15], index: 1, kind: output, shape index: {0}]   ;;  %s1790_s2 = inlined_call_operand.vmem [shape: f32[15], index: 2, kind: output, shape index: {1}]  }
   0x1   :  { %v56_v0 = vld [vmem:[%s1788_s0] sm:$0xff]  ;;  %v58_v1 = vld [vmem:[%s1788_s0 + $0x8] sm:$0xff]  ;;  %v60_v2 = vld [vmem:[%s1788_s0 + $0x10] sm:$0xff]  ;;  %135 = vst [vmem:[#allocation2] sm:$0x1] %v1215_v6 }
   0x2   :  { %v62_v3 = vld [vmem:[%s1788_s0 + $0x18] sm:$0xff]  ;;  %v64_v4 = vld [vmem:[%s1788_s0 + $0x20] sm:$0xff]  ;;  %v66_v5 = vld [vmem:[%s1788_s0 + $0x28] sm:$0xff]  ;;  %86 = vst [vmem:[#allocation1] sm:$0xff] %v56_v0 }
   0x3   :  { %90 = vst [vmem:[#allocation1 + $0x8] sm:$0xff] %v58_v1  ;;  %94 = vst [vmem:[#allocation1 + $0x10] sm:$0xff] %v60_v2  ;;  %v68_v7 = vld [vmem:[%s1788_s0 + $0x30] sm:$0xff]  ;;  %v70_v8 = vld [vmem:[%s1788_s0 + $0x38] sm:$0xff] }
   0x4   :  { %v72_v9 = vld [vmem:[%s1788_s0 + $0x40] sm:$0xff]  ;;  %98 = vst [vmem:[#allocation1 + $0x18] sm:$0xff] %v62_v3  ;;  %102 = vst [vmem:[#allocation1 + $0x20] sm:$0xff] %v64_v4  ;;  %v74_v10 = vld [vmem:[%s1788_s0 + $0x48] sm:$0xff] }
   0x5   :  { %106 = vst [vmem:[#allocation1 + $0x28] sm:$0xff] %v66_v5  ;;  %v76_v11 = vld [vmem:[%s1788_s0 + $0x50] sm:$0xff]  ;;  %v78_v12 = vld [vmem:[%s1788_s0 + $0x58] sm:$0xff]  ;;  %110 = vst [vmem:[#allocation1 + $0x30] sm:$0xff] %v68_v7 }
   0x6   :  { %114 = vst [vmem:[#allocation1 + $0x38] sm:$0xff] %v70_v8  ;;  %118 = vst [vmem:[#allocation1 + $0x40] sm:$0xff] %v72_v9  ;;  %v80_v13 = vld [vmem:[%s1788_s0 + $0x60] sm:$0xff] }
   0x7   :  { %122 = vst [vmem:[#allocation1 + $0x48] sm:$0xff] %v74_v10  ;;  %126 = vst [vmem:[#allocation1 + $0x50] sm:$0xff] %v76_v11 }
   0x8   :  { %130 = vst [vmem:[#allocation1 + $0x58] sm:$0xff] %v78_v12  ;;  %134 = vst [vmem:[#allocation1 + $0x60] sm:$0xff] %v80_v13 }
   0x9 LB: > { %v143_v14 = vlaneseq  ;;  %v142_v15 = vld [vmem:[#allocation1] sm:$0xff]  ;;  %v1280_v17 = vstv %s1213_s7  ;;  %s290_s0 = scalar_lea.vmem [#allocation1], %s1213_s7  ;;  %s1334_s8 = smov [#allocation1]  ;;  %s1213_s7 = sphi %s1271_s7, %s141_s7  }
   0xa   : > { %v151_v18 = vld [vmem:[#allocation1 + $0x8] sm:$0xff]  ;;  %v161_v20 = vld [vmem:[#allocation1 + $0x10] sm:$0xff]  ;;  %s564_s9 = scalar_lea.vmem [#allocation4], %s1213_s7  ;;  %s1461_s10 = smov [#allocation1] }
   0xb   : > { %v1277_v16 = vshrl.u32 %v143_v14, 7  ;;  %v171_v22 = vld [vmem:[#allocation1 + $0x18] sm:$0xff]  ;;  %v181_v29 = vld [vmem:[#allocation1 + $0x20] sm:$0xff]  ;;  %s1463_s11 = smov [#allocation4] }
   0xc   : > { %v191_v35 = vld [vmem:[#allocation1 + $0x28] sm:$0xff]  ;;  %v201_v40 = vld [vmem:[#allocation1 + $0x30] sm:$0xff] }
   0xd   : > { %vm147_vm0 = vcmp.gt.s32.totalorder %v1277_v16, %v1280_v17  ;;  %v154_v19 = vadd.s32 8, %v1277_v16  ;;  %v164_v21 = vadd.s32 16, %v1277_v16  ;;  %v174_v23 = vadd.s32 24, %v1277_v16  ;;  %v211_v45 = vld [vmem:[#allocation1 + $0x38] sm:$0xff]  ;;  %v221_v50 = vld [vmem:[#allocation1 + $0x40] sm:$0xff] }
   0xe   : > { %v148_v24 = vsel %vm147_vm0, %v142_v15, 0.0  ;;  %v184_v25 = vadd.s32 32, %v1277_v16  ;;  %v194_v26 = vadd.s32 40, %v1277_v16  ;;  %v204_v27 = vadd.s32 48, %v1277_v16  ;;  %v231_v56 = vld [vmem:[#allocation1 + $0x48] sm:$0xff]  ;;  %v241_v61 = vld [vmem:[#allocation1 + $0x50] sm:$0xff] }
   0xf   : > { %v149_v28 = vmul.f32 %v148_v24, %v148_v24  ;;  %vm156_vm1 = vcmp.gt.s32.totalorder %v154_v19, %v1280_v17  ;;  %vm166_vm2 = vcmp.gt.s32.totalorder %v164_v21, %v1280_v17  ;;  %vm176_vm3 = vcmp.gt.s32.totalorder %v174_v23, %v1280_v17  ;;  %v251_v1 = vld [vmem:[#allocation1 + $0x58] sm:$0xff]  ;;  %v261_v5 = vld [vmem:[#allocation1 + $0x60] sm:$0xff] }
  0x10   : > { %v157_v30 = vsel %vm156_vm1, %v151_v18, 0.0  ;;  %v167_v31 = vsel %vm166_vm2, %v161_v20, 0.0  ;;  %v177_v32 = vsel %vm176_vm3, %v171_v22, 0.0  ;;  %vm186_vm4 = vcmp.gt.s32.totalorder %v184_v25, %v1280_v17  ;;  %v1312_v25 = vld [vmem:[%s290_s0] ss:$0 sm:$0xff] }
  0x11   : > { %v158_v33 = vmul.f32 %v157_v30, %v157_v30  ;;  %v168_v34 = vmul.f32 %v167_v31, %v167_v31  ;;  %v187_v36 = vsel %vm186_vm4, %v181_v29, 0.0  ;;  %vm196_vm5 = vcmp.gt.s32.totalorder %v194_v26, %v1280_v17 }
  0x12   : > { %v214_v37 = vadd.s32 56, %v1277_v16  ;;  %v178_v39 = vmul.f32 %v177_v32, %v177_v32  ;;  %vm206_vm6 = vcmp.gt.s32.totalorder %v204_v27, %v1280_v17  ;;  %v224_v41 = vadd.s32 64, %v1277_v16 }
  0x13   : > { %v159_v38 = vadd.f32 %v158_v33, %v149_v28  ;;  %v197_v42 = vsel %vm196_vm5, %v191_v35, 0.0  ;;  %v188_v44 = vmul.f32 %v187_v36, %v187_v36  ;;  %v234_v46 = vadd.s32 72, %v1277_v16 }
  0x14   : > { %vm216_vm7 = vcmp.gt.s32.totalorder %v214_v37, %v1280_v17  ;;  %v207_v47 = vsel %vm206_vm6, %v201_v40, 0.0  ;;  %v198_v49 = vmul.f32 %v197_v42, %v197_v42  ;;  %vm226_vm8 = vcmp.gt.s32.totalorder %v224_v41, %v1280_v17 }
  0x15   : > { %v169_v43 = vadd.f32 %v168_v34, %v159_v38  ;;  %v244_v51 = vadd.s32 80, %v1277_v16  ;;  %v217_v52 = vsel %vm216_vm7, %v211_v45, 0.0  ;;  %v264_v53 = vadd.s32 96, %v1277_v16 }
  0x16   : > { %v208_v55 = vmul.f32 %v207_v47, %v207_v47  ;;  %vm236_vm9 = vcmp.gt.s32.totalorder %v234_v46, %v1280_v17  ;;  %v254_v57 = vadd.s32 88, %v1277_v16  ;;  %v227_v58 = vsel %vm226_vm8, %v221_v50, 0.0 }
  0x17   : > { %v179_v48 = vadd.f32 %v178_v39, %v169_v43  ;;  %v218_v60 = vmul.f32 %v217_v52, %v217_v52  ;;  %vm246_vm10 = vcmp.gt.s32.totalorder %v244_v51, %v1280_v17  ;;  %v237_v62 = vsel %vm236_vm9, %v231_v56, 0.0 }
  0x18   : > { %vm266_vm11 = vcmp.gt.s32.totalorder %v264_v53, %v1280_v17  ;;  %vm267_vm12 = vcmp.lt.s32.totalorder %v264_v53, 102  ;;  %v228_v0 = vmul.f32 %v227_v58, %v227_v58  ;;  %vm256_vm13 = vcmp.gt.s32.totalorder %v254_v57, %v1280_v17 }
  0x19   : > { %v189_v54 = vadd.f32 %v188_v44, %v179_v48  ;;  %v247_v2 = vsel %vm246_vm10, %v241_v61, 0.0  ;;  %v238_v4 = vmul.f32 %v237_v62, %v237_v62  ;;  %vm268_vm14 = vmand %vm266_vm11, %vm267_vm12  ;;  %v257_v6 = vsel %vm256_vm13, %v251_v1, 0.0  ;;  %v1116_v62 = vld [vmem:[%s1334_s8 + $0x10] sm:$0xff]  ;;  %v1118_v1 = vld [vmem:[%s1334_s8 + $0x20] sm:$0xff] }
  0x1a   : > { %v248_v8 = vmul.f32 %v247_v2, %v247_v2  ;;  %v269_v9 = vsel %vm268_vm14, %v261_v5, 0.0  ;;  %v258_v11 = vmul.f32 %v257_v6, %v257_v6  ;;  %v292_v26 = vand.u32 2147483647, %v1312_v25  ;;  %v1119_v2 = vld [vmem:[%s1334_s8 + $0x28] sm:$0xff] }
  0x1b   : > { %v199_v59 = vadd.f32 %v198_v49, %v189_v54  ;;  %v270_v13 = vmul.f32 %v269_v9, %v269_v9  ;;  %vm317_vm4 = vcmp.lt.f32.partialorder %v1312_v25, 0.0  ;;  %v329_v16 = vmov %v1277_v16 }
  0x1c   : > { %v293_v31 = vmax.f32 %v292_v26, 0.0  ;;  %v348_v56 = vadd.s32 8, %v329_v16  ;;  %v384_v57 = vadd.s32 24, %v329_v16  ;;  %v402_v58 = vadd.s32 32, %v329_v16 }
  0x1d   : > { %v209_v63 = vadd.f32 %v208_v55, %v199_v59  ;;  %v366_v55 = vadd.s32 16, %v329_v16  ;;  %v420_v59 = vadd.s32 40, %v329_v16  ;;  %v1338_v61 = vand.u32 127, %v143_v14 }
  0x1e   : > { %vm333_vm5 = vcmp.gt.s32.totalorder %v329_v16, %v1280_v17  ;;  %vm350_vm7 = vcmp.gt.s32.totalorder %v348_v56, %v1280_v17  ;;  %vm386_vm8 = vcmp.gt.s32.totalorder %v384_v57, %v1280_v17  ;;  %vm404_vm9 = vcmp.gt.s32.totalorder %v402_v58, %v1280_v17 }
  0x1f   : > { %v219_v3 = vadd.f32 %v218_v60, %v209_v63  ;;  %v330_v60 = vld [vmem:[%s1334_s8] sm:$0xff]  ;;  %vm368_vm6 = vcmp.gt.s32.totalorder %v366_v55, %v1280_v17  ;;  %v1115_v63 = vld [vmem:[%s1334_s8 + $0x8] sm:$0xff]  ;;  %vm422_vm10 = vcmp.gt.s32.totalorder %v420_v59, %v1280_v17  ;;  %v456_v14 = vadd.s32 56, %v329_v16 }
  0x20   : > { %v369_v5 = vsel %vm368_vm6, %v1116_v62, 0.0  ;;  %v351_v6 = vsel %vm350_vm7, %v1115_v63, 0.0  ;;  %vm1353_vm11 = vcmp.eq.s32.totalorder %v1338_v61, %v1280_v17  ;;  %v405_v9 = vsel %vm404_vm9, %v1118_v1, 0.0 }
  0x21   : > { %v229_v7 = vadd.f32 %v228_v0, %v219_v3  ;;  %v1117_v0 = vld [vmem:[%s1334_s8 + $0x18] sm:$0xff]  ;;  %v438_v3 = vadd.s32 48, %v329_v16  ;;  %vm458_vm13 = vcmp.gt.s32.totalorder %v456_v14, %v1280_v17 }
  0x23   : > { %v239_v10 = vadd.f32 %v238_v4, %v229_v7  ;;  %v334_v4 = vsel %vm333_vm5, %v330_v60, 0.0  ;;  %v387_v7 = vsel %vm386_vm8, %v1117_v0, 0.0  ;;  %vm440_vm12 = vcmp.gt.s32.totalorder %v438_v3, %v1280_v17  ;;  %v1126_v60 = vld [vmem:[%s1334_s8 + $0x60] sm:$0xff] }
  0x25   : > { %v249_v12 = vadd.f32 %v248_v8, %v239_v10  ;;  %v423_v10 = vsel %vm422_vm10, %v1119_v2, 0.0 }
  0x27   : > { %v259_v15 = vadd.f32 %v258_v11, %v249_v12  ;;  %v474_v12 = vadd.s32 64, %v329_v16 }
  0x29   : > { %v271_v18 = vadd.f32 %v270_v13, %v259_v15  ;;  %v492_v13 = vadd.s32 72, %v329_v16  ;;  %vm476_vm14 = vcmp.gt.s32.totalorder %v474_v12, %v1280_v17 }
  0x2b   : > { %v272_v19 = vrot.slane %v271_v18, 4 }
  0x2d   : > { %v273_v20 = vadd.f32 %v272_v19, %v271_v18 }
  0x2f   : > { %v274_v21 = vrot.slane %v273_v20, 2 }
  0x31   : > { %v275_v22 = vadd.f32 %v274_v21, %v273_v20  ;;  %v1120_v21 = vld [vmem:[%s1334_s8 + $0x30] sm:$0xff] }
  0x33   : > { %v276_v23 = vrot.slane %v275_v22, 1 }
  0x35   : > { %v1308_v24 = vadd.f32 %v276_v23, %v275_v22  ;;  %v1121_v22 = vld [vmem:[%s1334_s8 + $0x38] sm:$0xff] }
  0x37   : > { %1197 = vrsqrt.f32 %v1308_v24  ;;  %vm280_vm15 = vcmp.eq.f32.partialorder %v1308_v24, inf  ;;  %v283_v28 = vand.u32 2147483648, %v1308_v24  ;;  %vm282_vm0 = vcmp.eq.f32.partialorder %v1308_v24, 0.0 }
  0x44   : > { %v1198_v27 = vpop.eup %1197 }
  0x45   : > { %v279_v29 = vmul.f32 %v1198_v27, %v1308_v24 }
  0x47   : > { %v281_v30 = vsel %vm280_vm15, %v1308_v24, %v279_v29  ;;  %vm494_vm15 = vcmp.gt.s32.totalorder %v492_v13, %v1280_v17 }
  0x48   : > { %v284_v32 = vsel %vm282_vm0, %v283_v28, %v281_v30 }
  0x49   : > { %v294_v33 = vand.u32 2147483647, %v284_v32 }
  0x4b   : > { %v295_v34 = vmax.f32 %v293_v31, %v294_v33 }
  0x4d   : > { %1199 = vrcp.f32 %v295_v34  ;;  %vm307_vm3 = vcmp.eq.f32.partialorder %v295_v34, 0.0 }
  0x5a   : > { %v1200_v35 = vpop.eup %1199 }
  0x5b   : > { %v297_v36 = vmul.f32 %v1200_v35, %v292_v26  ;;  %v300_v37 = vmul.f32 0.0, %v1200_v35  ;;  %v304_v38 = vmul.f32 %v1200_v35, %v294_v33  ;;  %v441_v33 = vsel %vm440_vm12, %v1120_v21, 0.0  ;;  %v1122_v35 = vld [vmem:[%s1334_s8 + $0x40] sm:$0xff] }
  0x5d   : > { %v298_v39 = vmul.f32 %v297_v36, %v297_v36  ;;  %v301_v40 = vmul.f32 %v300_v37, %v300_v37  ;;  %v305_v41 = vmul.f32 %v304_v38, %v304_v38  ;;  %v1123_v36 = vld [vmem:[%s1334_s8 + $0x48] sm:$0xff]  ;;  %v510_v37 = vadd.s32 80, %v329_v16 }
  0x5e   : > { %v528_v38 = vadd.s32 88, %v329_v16 }
  0x5f   : > { %v302_v42 = vadd.f32 %v301_v40, %v298_v39 }
  0x61   : > { %v306_v43 = vadd.f32 %v305_v41, %v302_v42  ;;  %v546_v41 = vadd.s32 96, %v329_v16  ;;  %v584_v16 = vmov %v1277_v16 }
  0x63   : > { %1201 = vrsqrt.f32 %v306_v43  ;;  %vm310_vm1 = vcmp.eq.f32.partialorder %v306_v43, inf  ;;  %v313_v45 = vand.u32 2147483648, %v306_v43  ;;  %vm312_vm2 = vcmp.eq.f32.partialorder %v306_v43, 0.0 }
  0x70   : > { %v1202_v44 = vpop.eup %1201 }
  0x71   : > { %v309_v46 = vmul.f32 %v1202_v44, %v306_v43 }
  0x73   : > { %v311_v47 = vsel %vm310_vm1, %v306_v43, %v309_v46  ;;  %v477_v46 = vsel %vm476_vm14, %v1122_v35, 0.0  ;;  %vm512_vm1 = vcmp.gt.s32.totalorder %v510_v37, %v1280_v17 }
  0x74   : > { %v314_v48 = vsel %vm312_vm2, %v313_v45, %v311_v47  ;;  %v495_v47 = vsel %vm494_vm15, %v1123_v36, 0.0  ;;  %vm530_vm2 = vcmp.gt.s32.totalorder %v528_v38, %v1280_v17  ;;  %v1216_v38 = vmov 1.0  }
  0x75   : > { %v315_v49 = vmul.f32 %v314_v48, %v295_v34  ;;  %v459_v34 = vsel %vm458_vm13, %v1121_v22, 0.0  ;;  %v1124_v48 = vld [vmem:[%s1334_s8 + $0x50] sm:$0xff]  ;;  %vm1528_vm13 = vcmp.gt.s32.totalorder %v1338_v61, %v1280_v17 }
  0x76   : > { %v513_v58 = vsel %vm512_vm1, %v1124_v48, 0.0 }
  0x77   : > { %v316_v50 = vsel %vm307_vm3, 0.0, %v315_v49  ;;  %v1125_v49 = vld [vmem:[%s1334_s8 + $0x58] sm:$0xff]  ;;  %vm548_vm3 = vcmp.gt.s32.totalorder %v546_v41, %v1280_v17 }
  0x78   : > { %v318_v51 = vxor.u32 2147483648, %v316_v50  ;;  %v531_v59 = vsel %vm530_vm2, %v1125_v49, 0.0  ;;  %v1132_v49 = vld [vmem:[%s1461_s10 + $0x18] sm:$0xff] }
  0x7a   : > { %v1323_v52 = vsel %vm317_vm4, %v316_v50, %v318_v51  ;;  %vm549_vm4 = vcmp.lt.s32.totalorder %v546_v41, 102 }
  0x7b   : > { %v1329_v53 = vsel %vm282_vm0, %v1312_v25, %v1323_v52  ;;  %vm1416_vm5 = vmand %vm548_vm3, %vm549_vm4  ;;  %v320_v1 = vsub.f32 %v1323_v52, %v1312_v25 }
  0x7c   : > { %v325_v54 = vsub.f32 %v1312_v25, %v1329_v53 }
  0x7e   : > { %1203 = vrcp.f32 %v325_v54 }
  0x7f   : > { %1205 = vrcp.f32 %v1323_v52 }
  0x8b   : > { %v1357_v11 = vpop.eup %1203 }
  0x8c   : > { %v336_v15 = vmul.f32 %v1357_v11, %v334_v4  ;;  %v371_v18 = vmul.f32 %v1357_v11, %v369_v5  ;;  %v353_v19 = vmul.f32 %v1357_v11, %v351_v6  ;;  %v389_v20 = vmul.f32 %v1357_v11, %v387_v7  ;;  %v1206_v2 = vpop.eup %1205 }
  0x8d   : > { %v407_v23 = vmul.f32 %v1357_v11, %v405_v9  ;;  %v425_v26 = vmul.f32 %v1357_v11, %v423_v10  ;;  %v443_v44 = vmul.f32 %v1357_v11, %v441_v33  ;;  %v461_v45 = vmul.f32 %v1357_v11, %v459_v34  ;;  %v577_v34 = vld [vmem:[#allocation2] ss:$0 sm:$0xff] }
  0x8e   : > { %v337_v27 = vsel %vm282_vm0, 0.0, %v336_v15  ;;  %v372_v28 = vsel %vm282_vm0, 0.0, %v371_v18  ;;  %v354_v29 = vsel %vm282_vm0, 0.0, %v353_v19  ;;  %v390_v30 = vsel %vm282_vm0, 0.0, %v389_v20 }
  0x8f   : > { %v342_v31 = vsel %vm1353_vm11, %v337_v27, 0.0  ;;  %v377_v32 = vsel %vm1353_vm11, %v372_v28, 0.0  ;;  %v359_v39 = vsel %vm1353_vm11, %v354_v29, 0.0  ;;  %v395_v40 = vsel %vm1353_vm11, %v390_v30, 0.0 }
  0x90   : > { %343 = vadd.xlane.f32.xlu0 %v342_v31  ;;  %378 = vadd.xlane.f32.xlu1 %v377_v32  ;;  %v408_v42 = vsel %vm282_vm0, 0.0, %v407_v23  ;;  %v426_v43 = vsel %vm282_vm0, 0.0, %v425_v26  ;;  %v444_v54 = vsel %vm282_vm0, 0.0, %v443_v44  ;;  %v462_v55 = vsel %vm282_vm0, 0.0, %v461_v45  ;;  %v1130_v45 = vld [vmem:[%s1461_s10 + $0x10] sm:$0xff] }
  0x91   : > { %v413_v50 = vsel %vm1353_vm11, %v408_v42, 0.0  ;;  %v431_v51 = vsel %vm1353_vm11, %v426_v43, 0.0  ;;  %v479_v56 = vmul.f32 %v1357_v11, %v477_v46  ;;  %v497_v57 = vmul.f32 %v1357_v11, %v495_v47 }
  0x92   : > { %v449_v63 = vsel %vm1353_vm11, %v444_v54, 0.0  ;;  %v467_v0 = vsel %vm1353_vm11, %v462_v55, 0.0  ;;  %v515_v4 = vmul.f32 %v1357_v11, %v513_v58  ;;  %v533_v5 = vmul.f32 %v1357_v11, %v531_v59  ;;  %v1134_v54 = vld [vmem:[%s1461_s10 + $0x20] sm:$0xff]  ;;  %v1136_v58 = vld [vmem:[%s1461_s10 + $0x28] sm:$0xff] }
  0x93   : > { %v480_v3 = vsel %vm282_vm0, 0.0, %v479_v56  ;;  %v498_v14 = vsel %vm282_vm0, 0.0, %v497_v57  ;;  %v551_v6 = vsel %vm1416_vm5, %v1126_v60, 0.0  ;;  %v322_v12 = vmul.f32 %v1206_v2, %v320_v1 }
  0x94   : > { %360 = vadd.xlane.f32.xlu0 %v359_v39  ;;  %396 = vadd.xlane.f32.xlu1 %v395_v40  ;;  %v485_v7 = vsel %vm1353_vm11, %v480_v3, 0.0  ;;  %v503_v25 = vsel %vm1353_vm11, %v498_v14, 0.0  ;;  %v516_v52 = vsel %vm282_vm0, 0.0, %v515_v4  ;;  %v534_v9 = vsel %vm282_vm0, 0.0, %v533_v5  ;;  %v587_v39 = vld [vmem:[%s1461_s10] sm:$0xff]  ;;  %v1128_v40 = vld [vmem:[%s1461_s10 + $0x8] sm:$0xff] }
  0x95   : > { %v553_v10 = vmul.f32 %v1357_v11, %v551_v6  ;;  %v521_v13 = vsel %vm1353_vm11, %v516_v52, 0.0  ;;  %v539_v15 = vsel %vm1353_vm11, %v534_v9, 0.0  ;;  %v324_v19 = vsel %vm282_vm0, 0.0, %v322_v12  ;;  %v1140_v3 = vld [vmem:[%s1461_s10 + $0x38] sm:$0xff]  ;;  %v1142_v6 = vld [vmem:[%s1461_s10 + $0x40] sm:$0xff]  ;;  %v1144_v9 = vld [vmem:[%s1461_s10 + $0x48] sm:$0xff] }
  0x96   : > { %v570_v20 = vsel %vm1353_vm11, %v324_v19, 0.0 }
  0x97   : > { %v554_v18 = vsel %vm282_vm0, 0.0, %v553_v10 }
  0x98   : > { %414 = vadd.xlane.f32.xlu0 %v413_v50  ;;  %432 = vadd.xlane.f32.xlu1 %v431_v51  ;;  %v559_v11 = vsel %vm1353_vm11, %v554_v18, 0.0 }
  0x9c   : > { %450 = vadd.xlane.f32.xlu0 %v449_v63  ;;  %468 = vadd.xlane.f32.xlu1 %v467_v0  ;;  %v1138_v63 = vld [vmem:[%s1461_s10 + $0x30] sm:$0xff] }
  0xa0   : > { %486 = vadd.xlane.f32.xlu0 %v485_v7  ;;  %504 = vadd.xlane.f32.xlu1 %v503_v25 }
  0xa4   : > { %522 = vadd.xlane.f32.xlu0 %v521_v13  ;;  %540 = vadd.xlane.f32.xlu1 %v539_v15  ;;  %v1146_v15 = vld [vmem:[%s1461_s10 + $0x50] sm:$0xff] }
  0xa8   : > { %560 = vadd.xlane.f32.xlu0 %v559_v11  ;;  %571 = vadd.xlane.f32.xlu1 %v570_v20  ;;  %v666_v11 = vadd.s32 96, %v584_v16  ;;  %v685_v16 = vmov %v1277_v16 }
  0xa9   : > { %vm702_vm6 = vcmp.ge.s32.totalorder %v685_v16, %v1280_v17 }
  0xaa   : > { %vm672_vm0 = vcmp.lt.s32.totalorder %v666_v11, 102  ;;  %vm1506_vm9 = vmand %vm1353_vm11, %vm702_vm6 }
 0x119   : > { %v344_v21 = vpop.xlane.xlu0 %343  ;;  %v379_v22 = vpop.xlane.xlu1 %378 }
 0x11a   : > { %345 = vst [vmem:[#allocation4] sm:$0xff] %v344_v21  ;;  %381 = vst [vmem:[#allocation4 + $0x10] sm:$0xff] %v379_v22  ;;  %v1150_v21 = vld [vmem:[%s1461_s10 + $0x60] sm:$0xff] }
 0x11d   : > { %v361_v23 = vpop.xlane.xlu0 %360  ;;  %v397_v26 = vpop.xlane.xlu1 %396 }
 0x11e   : > { %363 = vst [vmem:[#allocation4 + $0x8] sm:$0xff] %v361_v23  ;;  %399 = vst [vmem:[#allocation4 + $0x18] sm:$0xff] %v397_v26  ;;  %v1148_v23 = vld [vmem:[%s1461_s10 + $0x58] sm:$0xff]  ;;  %s1496_s10 = smov %s1461_s10 }
 0x11f   : > { %s958_s12 = scalar_lea.vmem %s1496_s10, %s1213_s7  ;;  %s141_s7 = sadd.s32 1, %s1213_s7  }
 0x120   : > { %p138_p0 = scmp.ge.s32.totalorder %s141_s7, 15  }
 0x121   : > { %v415_v24 = vpop.xlane.xlu0 %414  ;;  %v433_v27 = vpop.xlane.xlu1 %432 }
 0x122   : > { %417 = vst [vmem:[#allocation4 + $0x20] sm:$0xff] %v415_v24  ;;  %435 = vst [vmem:[#allocation4 + $0x28] sm:$0xff] %v433_v27 }
 0x125   : > { %v451_v28 = vpop.xlane.xlu0 %450  ;;  %v469_v29 = vpop.xlane.xlu1 %468 }
 0x126   : > { %453 = vst [vmem:[#allocation4 + $0x30] sm:$0xff] %v451_v28  ;;  %471 = vst [vmem:[#allocation4 + $0x38] sm:$0xff] %v469_v29 }
 0x129   : > { %v487_v30 = vpop.xlane.xlu0 %486  ;;  %v505_v31 = vpop.xlane.xlu1 %504 }
 0x12a   : > { %489 = vst [vmem:[#allocation4 + $0x40] sm:$0xff] %v487_v30  ;;  %507 = vst [vmem:[#allocation4 + $0x48] sm:$0xff] %v505_v31 }
 0x12d   : > { %v523_v32 = vpop.xlane.xlu0 %522  ;;  %v541_v33 = vpop.xlane.xlu1 %540 }
 0x12e   : > { %525 = vst [vmem:[#allocation4 + $0x50] sm:$0xff] %v523_v32  ;;  %543 = vst [vmem:[#allocation4 + $0x58] sm:$0xff] %v541_v33 }
 0x131   : > { %v561_v35 = vpop.xlane.xlu0 %560  ;;  %v1455_v36 = vpop.xlane.xlu1 %571 }
 0x132   : > { %563 = vst [vmem:[#allocation4 + $0x60] sm:$0xff] %v561_v35  ;;  %v578_v37 = vsel %vm1353_vm11, %v1455_v36, %v577_v34  ;;  %v706_v35 = vadd.s32 8, %v685_v16 }
 0x133   : > { %565 = vst [vmem:[%s564_s9] sm:$0x1] %v1216_v38  ;;  %579 = vst [vmem:[#allocation2] sm:$0x1] %v578_v37  ;;  %v727_v38 = vadd.s32 16, %v685_v16 }
 0x134   : > { %vm723_vm7 = vcmp.ge.s32.totalorder %v706_v35, %v1280_v17 }
 0x135   : > { %vm744_vm8 = vcmp.ge.s32.totalorder %v727_v38, %v1280_v17  ;;  %vm1521_vm12 = vmand %vm1353_vm11, %vm723_vm7  ;;  %v1176_v38 = vld [vmem:[%s1496_s10 + $0x48] sm:$0xff] }
 0x136   : > { %vm1538_vm14 = vmand %vm1353_vm11, %vm744_vm8 }
 0x13a   : > { %v586_v41 = vld [vmem:[%s1463_s11] sm:$0xff]  ;;  %v1127_v42 = vld [vmem:[%s1463_s11 + $0x8] sm:$0xff]  ;;  %v1129_v47 = vld [vmem:[%s1463_s11 + $0x10] sm:$0xff] }
 0x13b   : > { %v588_v43 = vmul.f32 %v587_v39, %v586_v41  ;;  %v594_v44 = vmul.f32 %v1128_v40, %v1127_v42  ;;  %v1131_v48 = vld [vmem:[%s1463_s11 + $0x18] sm:$0xff]  ;;  %v601_v50 = vmul.f32 %v1130_v45, %v1129_v47  ;;  %v1133_v51 = vld [vmem:[%s1463_s11 + $0x20] sm:$0xff]  ;;  %v1135_v57 = vld [vmem:[%s1463_s11 + $0x28] sm:$0xff]  ;;  %v748_v39 = vadd.s32 24, %v685_v16 }
 0x13c   : > { %v608_v56 = vmul.f32 %v1132_v49, %v1131_v48  ;;  %v615_v60 = vmul.f32 %v1134_v54, %v1133_v51  ;;  %v1137_v62 = vld [vmem:[%s1463_s11 + $0x30] sm:$0xff]  ;;  %v622_v1 = vmul.f32 %v1136_v58, %v1135_v57  ;;  %v1139_v2 = vld [vmem:[%s1463_s11 + $0x38] sm:$0xff]  ;;  %v1141_v5 = vld [vmem:[%s1463_s11 + $0x40] sm:$0xff]  ;;  %v769_v41 = vadd.s32 32, %v685_v16 }
 0x13d   : > { %v595_v46 = vadd.f32 %v594_v44, %v588_v43  ;;  %v629_v4 = vmul.f32 %v1138_v63, %v1137_v62  ;;  %v636_v25 = vmul.f32 %v1140_v3, %v1139_v2  ;;  %v1143_v52 = vld [vmem:[%s1463_s11 + $0x48] sm:$0xff]  ;;  %v643_v12 = vmul.f32 %v1142_v6, %v1141_v5  ;;  %v1145_v13 = vld [vmem:[%s1463_s11 + $0x50] sm:$0xff]  ;;  %v1149_v20 = vld [vmem:[%s1463_s11 + $0x60] sm:$0xff] }
 0x13e   : > { %v650_v19 = vmul.f32 %v1144_v9, %v1143_v52  ;;  %v1147_v22 = vld [vmem:[%s1463_s11 + $0x58] sm:$0xff]  ;;  %v657_v24 = vmul.f32 %v1146_v15, %v1145_v13  ;;  %v671_v27 = vmul.f32 %v1150_v21, %v1149_v20  ;;  %v790_v42 = vadd.s32 40, %v685_v16  ;;  %s1502_s11 = smov %s1463_s11  ;;  %v1152_v57 = vld [vmem:[%s1496_s10 + $0x8] sm:$0xff]  ;;  %v1155_v58 = vld [vmem:[%s1496_s10 + $0x10] sm:$0xff] }
 0x13f   : > { %v602_v55 = vadd.f32 %v601_v50, %v595_v46  ;;  %v664_v29 = vmul.f32 %v1148_v23, %v1147_v22  ;;  %v811_v43 = vadd.s32 48, %v685_v16  ;;  %v832_v45 = vadd.s32 56, %v685_v16  ;;  %v690_v61 = vld [vmem:[%s1502_s11] sm:$0xff]  ;;  %v1151_v62 = vld [vmem:[%s1502_s11 + $0x8] sm:$0xff]  ;;  %v1167_v2 = vld [vmem:[%s1496_s10 + $0x30] sm:$0xff] }
 0x140   : > { %v673_v31 = vsel %vm672_vm0, %v671_v27, 0.0  ;;  %v1499_v46 = vadd.s32 64, %v685_v16  ;;  %vm765_vm10 = vcmp.ge.s32.totalorder %v748_v39, %v1280_v17  ;;  %v1511_v48 = vadd.s32 72, %v685_v16  ;;  %v1170_v3 = vld [vmem:[%s1496_s10 + $0x38] sm:$0xff]  ;;  %v1160_v6 = vld [vmem:[%s1502_s11 + $0x20] sm:$0xff]  ;;  %v1166_v52 = vld [vmem:[%s1502_s11 + $0x30] sm:$0xff] }
 0x141   : > { %v609_v59 = vadd.f32 %v608_v56, %v602_v55  ;;  %v1513_v49 = vadd.s32 80, %v685_v16  ;;  %v1515_v50 = vadd.s32 88, %v685_v16  ;;  %v692_v55 = vld [vmem:[%s1496_s10] sm:$0xff]  ;;  %vm786_vm15 = vcmp.ge.s32.totalorder %v769_v41, %v1280_v17  ;;  %vm1551_vm2 = vmand %vm1353_vm11, %vm765_vm10  ;;  %v1157_v5 = vld [vmem:[%s1502_s11 + $0x18] sm:$0xff] }
 0x142   : > { %vm807_vm1 = vcmp.ge.s32.totalorder %v790_v42, %v1280_v17  ;;  %vm828_vm3 = vcmp.ge.s32.totalorder %v811_v43, %v1280_v17  ;;  %vm849_vm4 = vcmp.ge.s32.totalorder %v832_v45, %v1280_v17  ;;  %vm870_vm5 = vcmp.ge.s32.totalorder %v1499_v46, %v1280_v17  ;;  %v1169_v9 = vld [vmem:[%s1502_s11 + $0x38] sm:$0xff]  ;;  %vm1588_vm8 = vmand %vm1353_vm11, %vm786_vm15  ;;  %v1179_v39 = vld [vmem:[%s1496_s10 + $0x50] sm:$0xff] }
 0x143   : > { %v616_v0 = vadd.f32 %v615_v60, %v609_v59  ;;  %v1158_v60 = vld [vmem:[%s1496_s10 + $0x18] sm:$0xff]  ;;  %vm891_vm0 = vcmp.ge.s32.totalorder %v1511_v48, %v1280_v17  ;;  %vm912_vm6 = vcmp.ge.s32.totalorder %v1513_v49, %v1280_v17  ;;  %vm933_vm7 = vcmp.ge.s32.totalorder %v1515_v50, %v1280_v17  ;;  %vm1600_vm10 = vmand %vm1353_vm11, %vm807_vm1 }
 0x144   : > { %vm1608_vm15 = vmand %vm1353_vm11, %vm828_vm3  ;;  %v1182_v47 = vld [vmem:[%s1496_s10 + $0x58] sm:$0xff] }
 0x145   : > { %v623_v14 = vadd.f32 %v622_v1, %v616_v0  ;;  %v1161_v0 = vld [vmem:[%s1496_s10 + $0x20] sm:$0xff]  ;;  %v1164_v1 = vld [vmem:[%s1496_s10 + $0x28] sm:$0xff]  ;;  %vm1616_vm1 = vmand %vm1353_vm11, %vm849_vm4 }
 0x146   : > { %vm1645_vm3 = vmand %vm1353_vm11, %vm870_vm5  ;;  %v1181_v59 = vld [vmem:[%s1502_s11 + $0x58] sm:$0xff] }
 0x147   : > { %v630_v7 = vadd.f32 %v629_v4, %v623_v14  ;;  %v1154_v4 = vld [vmem:[%s1502_s11 + $0x10] sm:$0xff] }
 0x149   : > { %v637_v10 = vadd.f32 %v636_v25, %v630_v7  ;;  %v1575_v7 = vadd.s32 96, %v685_v16  ;;  %v1163_v25 = vld [vmem:[%s1502_s11 + $0x28] sm:$0xff] }
 0x14b   : > { %v644_v18 = vadd.f32 %v643_v12, %v637_v10 }
 0x14d   : > { %v651_v26 = vadd.f32 %v650_v19, %v644_v18 }
 0x14f   : > { %v658_v28 = vadd.f32 %v657_v24, %v651_v26 }
 0x151   : > { %v665_v30 = vadd.f32 %v664_v29, %v658_v28 }
 0x153   : > { %v674_v32 = vadd.f32 %v673_v31, %v665_v30 }
 0x155   : > { %v675_v33 = vrot.slane %v674_v32, 4 }
 0x157   : > { %v676_v34 = vadd.f32 %v675_v33, %v674_v32 }
 0x159   : > { %v677_v37 = vrot.slane %v676_v34, 2 }
 0x15b   : > { %v678_v40 = vadd.f32 %v677_v37, %v676_v34  ;;  %v1173_v37 = vld [vmem:[%s1496_s10 + $0x40] sm:$0xff] }
 0x15d   : > { %v679_v44 = vrot.slane %v678_v40, 1 }
 0x15f   : > { %v680_v51 = vadd.f32 %v679_v44, %v678_v40  ;;  %v1172_v44 = vld [vmem:[%s1502_s11 + $0x40] sm:$0xff] }
 0x161   : > { %v1564_v14 = vmul.f32 %v680_v51, %v1455_v36 }
 0x163   : > { %v691_v36 = vmul.f32 %v690_v61, %v1564_v14  ;;  %v711_v10 = vmul.f32 %v1151_v62, %v1564_v14  ;;  %v732_v12 = vmul.f32 %v1154_v4, %v1564_v14  ;;  %v753_v13 = vmul.f32 %v1157_v5, %v1564_v14 }
 0x164   : > { %v774_v16 = vmul.f32 %v1160_v6, %v1564_v14  ;;  %v795_v18 = vmul.f32 %v1163_v25, %v1564_v14  ;;  %v816_v19 = vmul.f32 %v1166_v52, %v1564_v14  ;;  %v837_v11 = vmul.f32 %v1169_v9, %v1564_v14 }
 0x165   : > { %v695_v21 = vsub.f32 %v692_v55, %v691_v36  ;;  %v716_v22 = vsub.f32 %v1152_v57, %v711_v10  ;;  %v737_v23 = vsub.f32 %v1155_v58, %v732_v12  ;;  %v758_v26 = vsub.f32 %v1158_v60, %v753_v13 }
 0x166   : > { %v779_v27 = vsub.f32 %v1161_v0, %v774_v16  ;;  %v800_v28 = vsub.f32 %v1164_v1, %v795_v18  ;;  %v821_v29 = vsub.f32 %v1167_v2, %v816_v19  ;;  %v842_v30 = vsub.f32 %v1170_v3, %v837_v11 }
 0x167   : > { %v696_v32 = vsel %vm1528_vm13, %v695_v21, %v692_v55  ;;  %v717_v33 = vsel %vm1528_vm13, %v716_v22, %v1152_v57  ;;  %v738_v34 = vsel %vm1528_vm13, %v737_v23, %v1155_v58  ;;  %v759_v35 = vsel %vm1528_vm13, %v758_v26, %v1158_v60  ;;  %v1175_v57 = vld [vmem:[%s1502_s11 + $0x48] sm:$0xff]  ;;  %v1178_v58 = vld [vmem:[%s1502_s11 + $0x50] sm:$0xff] }
 0x168   : > { %v704_v40 = vsel %vm1506_vm9, %v690_v61, %v696_v32  ;;  %v725_v41 = vsel %vm1521_vm12, %v1151_v62, %v717_v33  ;;  %v746_v42 = vsel %vm1538_vm14, %v1154_v4, %v738_v34  ;;  %v767_v43 = vsel %vm1551_vm2, %v1157_v5, %v759_v35  ;;  %vm1679_vm9 = vmand %vm1353_vm11, %vm891_vm0  ;;  %v970_v22 = vld [vmem:[#allocation2] sm:$0x1] (%p138_p0) }
 0x169   : > { %705 = vst [vmem:[%s1496_s10] sm:$0xff] %v704_v40  ;;  %1153 = vst [vmem:[%s1496_s10 + $0x8] sm:$0xff] %v725_v41  ;;  %v780_v51 = vsel %vm1528_vm13, %v779_v27, %v1161_v0  ;;  %v801_v46 = vsel %vm1528_vm13, %v800_v28, %v1164_v1  ;;  %v822_v54 = vsel %vm1528_vm13, %v821_v29, %v1167_v2  ;;  %v1184_v0 = vld [vmem:[%s1502_s11 + $0x60] sm:$0xff] }
 0x16a   : > { %1156 = vst [vmem:[%s1496_s10 + $0x10] sm:$0xff] %v746_v42  ;;  %1159 = vst [vmem:[%s1496_s10 + $0x18] sm:$0xff] %v767_v43  ;;  %v843_v55 = vsel %vm1528_vm13, %v842_v30, %v1170_v3  ;;  %v788_v60 = vsel %vm1588_vm8, %v1160_v6, %v780_v51  ;;  %v809_v61 = vsel %vm1600_vm10, %v1163_v25, %v801_v46  ;;  %v1185_v2 = vld [vmem:[%s1496_s10 + $0x60] sm:$0xff] }
 0x16b   : > { %v830_v62 = vsel %vm1608_vm15, %v1166_v52, %v822_v54  ;;  %v851_v63 = vsel %vm1616_vm1, %v1169_v9, %v843_v55  ;;  %1162 = vst [vmem:[%s1496_s10 + $0x20] sm:$0xff] %v788_v60  ;;  %1165 = vst [vmem:[%s1496_s10 + $0x28] sm:$0xff] %v809_v61  ;;  %v858_v3 = vmul.f32 %v1172_v44, %v1564_v14 }
 0x16c   : > { %1168 = vst [vmem:[%s1496_s10 + $0x30] sm:$0xff] %v830_v62  ;;  %1171 = vst [vmem:[%s1496_s10 + $0x38] sm:$0xff] %v851_v63  ;;  %v879_v4 = vmul.f32 %v1175_v57, %v1564_v14  ;;  %v900_v5 = vmul.f32 %v1178_v58, %v1564_v14  ;;  %v921_v6 = vmul.f32 %v1181_v59, %v1564_v14 }
 0x16d   : > { %vm1697_vm12 = vmand %vm1353_vm11, %vm912_vm6  ;;  %vm954_vm14 = vcmp.ge.s32.totalorder %v1575_v7, %v1280_v17  ;;  %v942_v25 = vmul.f32 %v1184_v0, %v1564_v14  ;;  %v863_v49 = vsub.f32 %v1173_v37, %v858_v3  ;;  %973 = vst [vmem:[#allocation3] sm:$0x1] (%p138_p0), %v970_v22 }
 0x16e   : > { %vm1709_vm2 = vmand %vm1353_vm11, %vm933_vm7  ;;  %v884_v9 = vsub.f32 %v1176_v38, %v879_v4  ;;  %v905_v36 = vsub.f32 %v1179_v39, %v900_v5  ;;  %v926_v10 = vsub.f32 %v1182_v47, %v921_v6 }
 0x16f   : > { %v947_v7 = vsub.f32 %v1185_v2, %v942_v25  ;;  %vm955_vm4 = vmand %vm1353_vm11, %vm954_vm14  ;;  %v864_v17 = vsel %vm1528_vm13, %v863_v49, %v1173_v37 }
 0x170   : > { %v885_v50 = vsel %vm1528_vm13, %v884_v9, %v1176_v38  ;;  %v906_v14 = vsel %vm1528_vm13, %v905_v36, %v1179_v39  ;;  %v927_v12 = vsel %vm1528_vm13, %v926_v10, %v1182_v47  ;;  %v872_v13 = vsel %vm1645_vm3, %v1172_v44, %v864_v17 }
 0x171   : > { %v893_v15 = vsel %vm1679_vm9, %v1175_v57, %v885_v50  ;;  %v914_v16 = vsel %vm1697_vm12, %v1178_v58, %v906_v14  ;;  %v935_v18 = vsel %vm1709_vm2, %v1181_v59, %v927_v12  ;;  %1174 = vst [vmem:[%s1496_s10 + $0x40] sm:$0xff] %v872_v13  ;;  %v948_v19 = vsel %vm1528_vm13, %v947_v7, %v1185_v2 }
 0x172   : > { %1177 = vst [vmem:[%s1496_s10 + $0x48] sm:$0xff] %v893_v15  ;;  %1180 = vst [vmem:[%s1496_s10 + $0x50] sm:$0xff] %v914_v16  ;;  %v956_v11 = vsel %vm955_vm4, %v1184_v0, %v948_v19 }
 0x173   : > { %1183 = vst [vmem:[%s1496_s10 + $0x58] sm:$0xff] %v935_v18  ;;  %1186 = vst [vmem:[%s1496_s10 + $0x60] sm:$0xff] %v956_v11 }
 0x174   :  { %v1073_v34 = vld [vmem:[#allocation3] sm:$0x1] (%p138_p0) }
 0x175   :  { %1074 = vst [vmem:[%s1790_s2] sm:$0x1] (%p138_p0), %v1073_v34 }
 0x178   :  { %140 = sbr.rel (!%p138_p0) target bundleno = 9 (0x9), region = 247 }
 0x17a   : > { %v959_v20 = vld [vmem:[%s958_s12] ss:$0 sm:$0xff] }
 0x17b   : > { %v964_v21 = vsel %vm1353_vm11, %v1329_v53, %v959_v20 }
 0x17c   : > { %965 = vst [vmem:[%s958_s12] sm:$0x1] %v964_v21 }
 0x183   :  { %v1026_v23 = vld [vmem:[#allocation1] sm:$0xff]  ;;  %v1028_v26 = vld [vmem:[#allocation1 + $0x8] sm:$0xff]  ;;  %v1030_v53 = vld [vmem:[#allocation1 + $0x10] sm:$0xff] }
 0x184   :  { %1027 = vst [vmem:[%s1789_s1] sm:$0xff] %v1026_v23  ;;  %1029 = vst [vmem:[%s1789_s1 + $0x8] sm:$0xff] %v1028_v26  ;;  %v1032_v8 = vld [vmem:[#allocation1 + $0x18] sm:$0xff]  ;;  %v1034_v56 = vld [vmem:[#allocation1 + $0x20] sm:$0xff] }
 0x185   :  { %1031 = vst [vmem:[%s1789_s1 + $0x10] sm:$0xff] %v1030_v53  ;;  %1033 = vst [vmem:[%s1789_s1 + $0x18] sm:$0xff] %v1032_v8  ;;  %v1036_v24 = vld [vmem:[#allocation1 + $0x28] sm:$0xff]  ;;  %v1038_v27 = vld [vmem:[#allocation1 + $0x30] sm:$0xff] }
 0x186   :  { %1035 = vst [vmem:[%s1789_s1 + $0x20] sm:$0xff] %v1034_v56  ;;  %v1040_v28 = vld [vmem:[#allocation1 + $0x38] sm:$0xff]  ;;  %1037 = vst [vmem:[%s1789_s1 + $0x28] sm:$0xff] %v1036_v24  ;;  %v1042_v29 = vld [vmem:[#allocation1 + $0x40] sm:$0xff] }
 0x187   :  { %1039 = vst [vmem:[%s1789_s1 + $0x30] sm:$0xff] %v1038_v27  ;;  %1041 = vst [vmem:[%s1789_s1 + $0x38] sm:$0xff] %v1040_v28  ;;  %v1044_v30 = vld [vmem:[#allocation1 + $0x48] sm:$0xff]  ;;  %v1046_v31 = vld [vmem:[#allocation1 + $0x50] sm:$0xff] }
 0x188   :  { %1043 = vst [vmem:[%s1789_s1 + $0x40] sm:$0xff] %v1042_v29  ;;  %1045 = vst [vmem:[%s1789_s1 + $0x48] sm:$0xff] %v1044_v30  ;;  %v1048_v32 = vld [vmem:[#allocation1 + $0x58] sm:$0xff]  ;;  %v1050_v33 = vld [vmem:[#allocation1 + $0x60] sm:$0xff] }
 0x189   :  { %1047 = vst [vmem:[%s1789_s1 + $0x50] sm:$0xff] %v1046_v31  ;;  %1049 = vst [vmem:[%s1789_s1 + $0x58] sm:$0xff] %v1048_v32 }
 0x18a   :  { %1051 = vst [vmem:[%s1789_s1 + $0x60] sm:$0xff] %v1050_v33 }

// kernel: custom-call.73
= control target key start
LH: loop header
LB: loop body
LE: loop exit
PB: predicated region body
PF: predicated region fallthrough
CT: control target
= control target key end

     0   :  { %v549_v4 = vmov 0.0   ;;  %s578_s17 = smov 0   ;;  %s737_s0 = inlined_call_operand.vmem [shape: f32[30,15], index: 0, kind: input, shape index: {}]   ;;  %s738_s1 = inlined_call_operand.vmem [shape: f32[30,15], index: 1, kind: output, shape index: {0}]   ;;  %s739_s2 = inlined_call_operand.vmem [shape: f32[15], index: 2, kind: output, shape index: {1}]  }
   0x1   :  { %v38_v0 = vld [vmem:[%s737_s0] sm:$0xff]  ;;  %v40_v1 = vld [vmem:[%s737_s0 + $0x8] sm:$0xff]  ;;  %v42_v2 = vld [vmem:[%s737_s0 + $0x10] sm:$0xff]  ;;  %63 = vst [vmem:[#allocation2] sm:$0x1] %v549_v4 }
   0x2   :  { %v44_v3 = vld [vmem:[%s737_s0 + $0x18] sm:$0xff]  ;;  %50 = vst [vmem:[#allocation1] sm:$0xff] %v38_v0  ;;  %54 = vst [vmem:[#allocation1 + $0x8] sm:$0xff] %v40_v1 }
   0x3   :  { %58 = vst [vmem:[#allocation1 + $0x10] sm:$0xff] %v42_v2  ;;  %62 = vst [vmem:[#allocation1 + $0x18] sm:$0xff] %v44_v3 }
   0x4 LB: > { %v71_v5 = vlaneseq  ;;  %v587_v8 = vstv %s547_s17  ;;  %s128_s0 = scalar_lea.vmem [#allocation1], %s547_s17  ;;  %s164_s18 = smov [#allocation1]  ;;  %s547_s17 = sphi %s578_s17, %s69_s17  }
   0x5   : > { %s240_s19 = scalar_lea.vmem [#allocation4], %s547_s17  ;;  %s655_s20 = smov [#allocation1] }
   0x6   : > { %v584_v7 = vshrl.u32 %v71_v5, 7  ;;  %s257_s21 = smov [#allocation4] }
   0x8   : > { %vm75_vm0 = vcmp.gt.s32.totalorder %v584_v7, %v587_v8  ;;  %v82_v10 = vadd.s32 8, %v584_v7  ;;  %v92_v12 = vadd.s32 16, %v584_v7  ;;  %v102_v13 = vadd.s32 24, %v584_v7 }
   0x9   : > { %v70_v6 = vld [vmem:[#allocation1] sm:$0xff]  ;;  %v79_v9 = vld [vmem:[#allocation1 + $0x8] sm:$0xff]  ;;  %v167_v7 = vmov %v584_v7 }
   0xa   : > { %v89_v11 = vld [vmem:[#allocation1 + $0x10] sm:$0xff]  ;;  %v76_v14 = vsel %vm75_vm0, %v70_v6, 0.0  ;;  %vm84_vm1 = vcmp.gt.s32.totalorder %v82_v10, %v587_v8  ;;  %vm94_vm2 = vcmp.gt.s32.totalorder %v92_v12, %v587_v8  ;;  %v99_v16 = vld [vmem:[#allocation1 + $0x18] sm:$0xff]  ;;  %vm104_vm3 = vcmp.gt.s32.totalorder %v102_v13, %v587_v8  ;;  %v601_v32 = vld [vmem:[%s128_s0] ss:$0 sm:$0xff] }
   0xb   : > { %v77_v15 = vmul.f32 %v76_v14, %v76_v14  ;;  %v85_v17 = vsel %vm84_vm1, %v79_v9, 0.0  ;;  %v95_v18 = vsel %vm94_vm2, %v89_v11, 0.0  ;;  %vm105_vm4 = vcmp.lt.s32.totalorder %v102_v13, 30  ;;  %v504_v1 = vld [vmem:[%s164_s18 + $0x10] sm:$0xff]  ;;  %v168_v2 = vld [vmem:[%s164_s18] sm:$0xff]  ;;  %v505_v3 = vld [vmem:[%s164_s18 + $0x18] sm:$0xff] }
   0xc   : > { %v86_v19 = vmul.f32 %v85_v17, %v85_v17  ;;  %v96_v20 = vmul.f32 %v95_v18, %v95_v18  ;;  %vm106_vm5 = vmand %vm104_vm3, %vm105_vm4  ;;  %v130_v33 = vand.u32 2147483647, %v601_v32  ;;  %vm155_vm11 = vcmp.lt.f32.partialorder %v601_v32, 0.0  ;;  %v503_v4 = vld [vmem:[%s164_s18 + $0x8] sm:$0xff] }
   0xd   : > { %v107_v21 = vsel %vm106_vm5, %v99_v16, 0.0  ;;  %v222_v62 = vadd.s32 24, %v167_v7  ;;  %v204_v63 = vadd.s32 16, %v167_v7  ;;  %v186_v0 = vadd.s32 8, %v167_v7 }
   0xe   : > { %v87_v22 = vadd.f32 %v86_v19, %v77_v15  ;;  %v108_v23 = vmul.f32 %v107_v21, %v107_v21  ;;  %v131_v38 = vmax.f32 %v130_v33, 0.0  ;;  %vm171_vm14 = vcmp.gt.s32.totalorder %v167_v7, %v587_v8 }
   0xf   : > { %vm224_vm12 = vcmp.gt.s32.totalorder %v222_v62, %v587_v8  ;;  %vm225_vm13 = vcmp.lt.s32.totalorder %v222_v62, 30  ;;  %vm206_vm15 = vcmp.gt.s32.totalorder %v204_v63, %v587_v8  ;;  %vm188_vm1 = vcmp.gt.s32.totalorder %v186_v0, %v587_v8 }
  0x10   : > { %v97_v24 = vadd.f32 %v96_v20, %v87_v22  ;;  %vm226_vm0 = vmand %vm224_vm12, %vm225_vm13  ;;  %v625_v6 = vand.u32 127, %v71_v5  ;;  %v172_v9 = vsel %vm171_vm14, %v168_v2, 0.0  ;;  %v207_v10 = vsel %vm206_vm15, %v504_v1, 0.0 }
  0x11   : > { %v227_v11 = vsel %vm226_vm0, %v505_v3, 0.0  ;;  %v189_v12 = vsel %vm188_vm1, %v503_v4, 0.0  ;;  %v260_v7 = vmov %v584_v7 }
  0x12   : > { %v109_v25 = vadd.f32 %v108_v23, %v97_v24  ;;  %vm630_vm2 = vcmp.eq.s32.totalorder %v625_v6, %v587_v8 }
  0x14   : > { %v110_v26 = vrot.slane %v109_v25, 4 }
  0x16   : > { %v111_v27 = vadd.f32 %v110_v26, %v109_v25 }
  0x18   : > { %v112_v28 = vrot.slane %v111_v27, 2 }
  0x1a   : > { %v113_v29 = vadd.f32 %v112_v28, %v111_v27 }
  0x1c   : > { %v114_v30 = vrot.slane %v113_v29, 1 }
  0x1e   : > { %v597_v31 = vadd.f32 %v114_v30, %v113_v29 }
  0x20   : > { %531 = vrsqrt.f32 %v597_v31  ;;  %vm118_vm6 = vcmp.eq.f32.partialorder %v597_v31, inf  ;;  %v121_v35 = vand.u32 2147483648, %v597_v31  ;;  %vm120_vm7 = vcmp.eq.f32.partialorder %v597_v31, 0.0 }
  0x2d   : > { %v532_v34 = vpop.eup %531 }
  0x2e   : > { %v117_v36 = vmul.f32 %v532_v34, %v597_v31 }
  0x30   : > { %v119_v37 = vsel %vm118_vm6, %v597_v31, %v117_v36  ;;  %v550_v36 = vmov 1.0  }
  0x31   : > { %v122_v39 = vsel %vm120_vm7, %v121_v35, %v119_v37  ;;  %v253_v37 = vld [vmem:[#allocation2] ss:$0 sm:$0xff] }
  0x32   : > { %v132_v40 = vand.u32 2147483647, %v122_v39  ;;  %v263_v39 = vld [vmem:[%s655_s20] sm:$0xff] }
  0x34   : > { %v133_v41 = vmax.f32 %v131_v38, %v132_v40 }
  0x36   : > { %533 = vrcp.f32 %v133_v41  ;;  %vm145_vm10 = vcmp.eq.f32.partialorder %v133_v41, 0.0 }
  0x43   : > { %v534_v42 = vpop.eup %533 }
  0x44   : > { %v135_v43 = vmul.f32 %v534_v42, %v130_v33  ;;  %v138_v44 = vmul.f32 0.0, %v534_v42  ;;  %v142_v45 = vmul.f32 %v534_v42, %v132_v40  ;;  %v507_v40 = vld [vmem:[%s655_s20 + $0x8] sm:$0xff]  ;;  %v279_v42 = vadd.s32 24, %v260_v7 }
  0x45   : > { %v298_v7 = vmov %v584_v7 }
  0x46   : > { %v136_v46 = vmul.f32 %v135_v43, %v135_v43  ;;  %v139_v47 = vmul.f32 %v138_v44, %v138_v44  ;;  %v143_v48 = vmul.f32 %v142_v45, %v142_v45  ;;  %v511_v43 = vld [vmem:[%s655_s20 + $0x18] sm:$0xff]  ;;  %vm285_vm3 = vcmp.lt.s32.totalorder %v279_v42, 30 }
  0x47   : > { %v340_v63 = vadd.s32 16, %v298_v7  ;;  %vm315_vm4 = vcmp.ge.s32.totalorder %v298_v7, %v587_v8  ;;  %v361_v0 = vadd.s32 24, %v298_v7 }
  0x48   : > { %v140_v49 = vadd.f32 %v139_v47, %v136_v46  ;;  %vm675_vm6 = vmand %vm630_vm2, %vm315_vm4 }
  0x4a   : > { %v144_v50 = vadd.f32 %v143_v48, %v140_v49 }
  0x4c   : > { %535 = vrsqrt.f32 %v144_v50  ;;  %vm148_vm8 = vcmp.eq.f32.partialorder %v144_v50, inf  ;;  %v151_v52 = vand.u32 2147483648, %v144_v50  ;;  %vm150_vm9 = vcmp.eq.f32.partialorder %v144_v50, 0.0 }
  0x59   : > { %v536_v51 = vpop.eup %535 }
  0x5a   : > { %v147_v53 = vmul.f32 %v536_v51, %v144_v50 }
  0x5c   : > { %v149_v54 = vsel %vm148_vm8, %v144_v50, %v147_v53  ;;  %vm378_vm8 = vcmp.ge.s32.totalorder %v361_v0, %v587_v8 }
  0x5d   : > { %v152_v55 = vsel %vm150_vm9, %v151_v52, %v149_v54  ;;  %vm698_vm12 = vmand %vm630_vm2, %vm378_vm8 }
  0x5e   : > { %v153_v56 = vmul.f32 %v152_v55, %v133_v41  ;;  %v509_v41 = vld [vmem:[%s655_s20 + $0x10] sm:$0xff]  ;;  %s666_s20 = smov %s655_s20 }
  0x5f   : > { %v305_v2 = vld [vmem:[%s666_s20] sm:$0xff]  ;;  %v513_v3 = vld [vmem:[%s666_s20 + $0x8] sm:$0xff]  ;;  %v516_v4 = vld [vmem:[%s666_s20 + $0x10] sm:$0xff]  ;;  %s382_s22 = scalar_lea.vmem %s666_s20, %s547_s17  ;;  %s69_s17 = sadd.s32 1, %s547_s17  }
  0x60   : > { %v154_v57 = vsel %vm145_vm10, 0.0, %v153_v56  ;;  %vm307_vm10 = vcmp.gt.s32.totalorder %v625_v6, %v587_v8  ;;  %p66_p0 = scmp.ge.s32.totalorder %s69_s17, 15  }
  0x61   : > { %v156_v58 = vxor.u32 2147483648, %v154_v57 }
  0x63   : > { %v157_v59 = vsel %vm155_vm11, %v154_v57, %v156_v58 }
  0x64   : > { %v615_v60 = vsel %vm120_vm7, %v601_v32, %v157_v59  ;;  %537 = vrcp.f32 %v157_v59  ;;  %v158_v13 = vsub.f32 %v157_v59, %v601_v32 }
  0x65   : > { %v163_v61 = vsub.f32 %v601_v32, %v615_v60 }
  0x67   : > { %539 = vrcp.f32 %v163_v61  ;;  %v319_v61 = vadd.s32 8, %v298_v7 }
  0x69   : > { %vm336_vm5 = vcmp.ge.s32.totalorder %v319_v61, %v587_v8 }
  0x6a   : > { %vm684_vm9 = vmand %vm630_vm2, %vm336_vm5 }
  0x71   : > { %v538_v14 = vpop.eup %537 }
  0x72   : > { %v160_v5 = vmul.f32 %v538_v14, %v158_v13 }
  0x74   : > { %v540_v15 = vpop.eup %539  ;;  %v162_v29 = vsel %vm120_vm7, 0.0, %v160_v5 }
  0x75   : > { %v209_v17 = vmul.f32 %v540_v15, %v207_v10  ;;  %v174_v18 = vmul.f32 %v540_v15, %v172_v9  ;;  %v229_v19 = vmul.f32 %v540_v15, %v227_v11  ;;  %v191_v20 = vmul.f32 %v540_v15, %v189_v12  ;;  %v519_v11 = vld [vmem:[%s666_s20 + $0x18] sm:$0xff] }
  0x76   : > { %v246_v30 = vsel %vm630_vm2, %v162_v29, 0.0 }
  0x77   : > { %v210_v21 = vsel %vm120_vm7, 0.0, %v209_v17  ;;  %v175_v22 = vsel %vm120_vm7, 0.0, %v174_v18  ;;  %v230_v23 = vsel %vm120_vm7, 0.0, %v229_v19  ;;  %v192_v24 = vsel %vm120_vm7, 0.0, %v191_v20 }
  0x78   : > { %v215_v25 = vsel %vm630_vm2, %v210_v21, 0.0  ;;  %v180_v26 = vsel %vm630_vm2, %v175_v22, 0.0  ;;  %v235_v27 = vsel %vm630_vm2, %v230_v23, 0.0  ;;  %v197_v28 = vsel %vm630_vm2, %v192_v24, 0.0 }
  0x79   : > { %216 = vadd.xlane.f32.xlu1 %v215_v25  ;;  %181 = vadd.xlane.f32.xlu0 %v180_v26  ;;  %vm357_vm7 = vcmp.ge.s32.totalorder %v340_v63, %v587_v8 }
  0x7a   : > { %vm692_vm11 = vmand %vm630_vm2, %vm357_vm7 }
  0x7d   : > { %236 = vadd.xlane.f32.xlu1 %v235_v27  ;;  %198 = vadd.xlane.f32.xlu0 %v197_v28 }
  0x81   : > { %247 = vadd.xlane.f32.xlu0 %v246_v30 }
 0x102   : > { %v217_v32 = vpop.xlane.xlu1 %216  ;;  %v182_v33 = vpop.xlane.xlu0 %181 }
 0x103   : > { %219 = vst [vmem:[#allocation4 + $0x10] sm:$0xff] %v217_v32  ;;  %183 = vst [vmem:[#allocation4] sm:$0xff] %v182_v33 }
 0x106   : > { %v237_v34 = vpop.xlane.xlu1 %236  ;;  %v199_v35 = vpop.xlane.xlu0 %198 }
 0x107   : > { %239 = vst [vmem:[#allocation4 + $0x18] sm:$0xff] %v237_v34  ;;  %201 = vst [vmem:[#allocation4 + $0x8] sm:$0xff] %v199_v35 }
 0x108   : > { %241 = vst [vmem:[%s240_s19] sm:$0x1] %v550_v36 }
 0x10a   : > { %v248_v31 = vpop.xlane.xlu0 %247 }
 0x10b   : > { %v254_v38 = vsel %vm630_vm2, %v248_v31, %v253_v37 }
 0x10c   : > { %255 = vst [vmem:[#allocation2] sm:$0x1] %v254_v38 }
 0x10f   : > { %v262_v44 = vld [vmem:[%s257_s21] sm:$0xff]  ;;  %v506_v45 = vld [vmem:[%s257_s21 + $0x8] sm:$0xff]  ;;  %v508_v46 = vld [vmem:[%s257_s21 + $0x10] sm:$0xff] }
 0x110   : > { %v264_v47 = vmul.f32 %v263_v39, %v262_v44  ;;  %v270_v48 = vmul.f32 %v507_v40, %v506_v45  ;;  %v510_v49 = vld [vmem:[%s257_s21 + $0x18] sm:$0xff]  ;;  %v277_v52 = vmul.f32 %v509_v41, %v508_v46  ;;  %s295_s21 = smov %s257_s21 }
 0x111   : > { %v284_v50 = vmul.f32 %v511_v43, %v510_v49  ;;  %v303_v9 = vld [vmem:[%s295_s21] sm:$0xff]  ;;  %v512_v13 = vld [vmem:[%s295_s21 + $0x8] sm:$0xff]  ;;  %v515_v14 = vld [vmem:[%s295_s21 + $0x10] sm:$0xff] }
 0x112   : > { %v271_v51 = vadd.f32 %v270_v48, %v264_v47  ;;  %v518_v7 = vld [vmem:[%s295_s21 + $0x18] sm:$0xff] }
 0x113   : > { %v286_v54 = vsel %vm285_vm3, %v284_v50, 0.0  ;;  %v394_v35 = vld [vmem:[#allocation2] sm:$0x1] (%p66_p0) }
 0x114   : > { %v278_v53 = vadd.f32 %v277_v52, %v271_v51  ;;  %397 = vst [vmem:[#allocation3] sm:$0x1] (%p66_p0), %v394_v35 }
 0x116   : > { %v287_v55 = vadd.f32 %v286_v54, %v278_v53 }
 0x118   : > { %v288_v56 = vrot.slane %v287_v55, 4 }
 0x11a   : > { %v289_v57 = vadd.f32 %v288_v56, %v287_v55 }
 0x11c   : > { %v290_v58 = vrot.slane %v289_v57, 2 }
 0x11e   : > { %v291_v59 = vadd.f32 %v290_v58, %v289_v57 }
 0x120   : > { %v292_v62 = vrot.slane %v291_v59, 1 }
 0x122   : > { %v293_v1 = vadd.f32 %v292_v62, %v291_v59 }
 0x124   : > { %v299_v12 = vmul.f32 %v293_v1, %v248_v31  ;;  %v461_v31 = vld [vmem:[#allocation3] sm:$0x1] (%p66_p0) }
 0x125   :  { %462 = vst [vmem:[%s739_s2] sm:$0x1] (%p66_p0), %v461_v31 }
 0x126   : > { %v304_v17 = vmul.f32 %v303_v9, %v299_v12  ;;  %v324_v18 = vmul.f32 %v512_v13, %v299_v12  ;;  %v345_v19 = vmul.f32 %v515_v14, %v299_v12  ;;  %v366_v20 = vmul.f32 %v518_v7, %v299_v12 }
 0x128   : > { %v308_v22 = vsub.f32 %v305_v2, %v304_v17  ;;  %v329_v23 = vsub.f32 %v513_v3, %v324_v18  ;;  %v350_v8 = vsub.f32 %v516_v4, %v345_v19  ;;  %v371_v6 = vsub.f32 %v519_v11, %v366_v20 }
 0x12a   : > { %v309_v24 = vsel %vm307_vm10, %v308_v22, %v305_v2  ;;  %v330_v25 = vsel %vm307_vm10, %v329_v23, %v513_v3  ;;  %v351_v26 = vsel %vm307_vm10, %v350_v8, %v516_v4  ;;  %v372_v27 = vsel %vm307_vm10, %v371_v6, %v519_v11 }
 0x12b   : > { %v317_v28 = vsel %vm675_vm6, %v303_v9, %v309_v24  ;;  %v338_v29 = vsel %vm684_vm9, %v512_v13, %v330_v25  ;;  %v359_v30 = vsel %vm692_vm11, %v515_v14, %v351_v26  ;;  %v380_v32 = vsel %vm698_vm12, %v518_v7, %v372_v27 }
 0x12c   : > { %318 = vst [vmem:[%s666_s20] sm:$0xff] %v317_v28  ;;  %514 = vst [vmem:[%s666_s20 + $0x8] sm:$0xff] %v338_v29 }
 0x12d   : > { %517 = vst [vmem:[%s666_s20 + $0x10] sm:$0xff] %v359_v30  ;;  %520 = vst [vmem:[%s666_s20 + $0x18] sm:$0xff] %v380_v32 }
 0x132   :  { %68 = sbr.rel (!%p66_p0) target bundleno = 4 (0x4), region = 166 }
 0x134   : > { %v383_v33 = vld [vmem:[%s382_s22] ss:$0 sm:$0xff] }
 0x135   : > { %v388_v34 = vsel %vm630_vm2, %v615_v60, %v383_v33 }
 0x136   : > { %389 = vst [vmem:[%s382_s22] sm:$0x1] %v388_v34 }
 0x13d   :  { %v432_v36 = vld [vmem:[#allocation1] sm:$0xff]  ;;  %v434_v37 = vld [vmem:[#allocation1 + $0x8] sm:$0xff]  ;;  %v436_v60 = vld [vmem:[#allocation1 + $0x10] sm:$0xff] }
 0x13e   :  { %433 = vst [vmem:[%s738_s1] sm:$0xff] %v432_v36  ;;  %435 = vst [vmem:[%s738_s1 + $0x8] sm:$0xff] %v434_v37  ;;  %v438_v16 = vld [vmem:[#allocation1 + $0x18] sm:$0xff] }
 0x13f   :  { %437 = vst [vmem:[%s738_s1 + $0x10] sm:$0xff] %v436_v60  ;;  %439 = vst [vmem:[%s738_s1 + $0x18] sm:$0xff] %v438_v16 }

// kernel: custom-call.71
= control target key start
LH: loop header
LB: loop body
LE: loop exit
PB: predicated region body
PF: predicated region fallthrough
CT: control target
= control target key end

     0   :  { %v567_v0 = vmov 0.0   ;;  %vm42_vm0 = vcmask 7168   ;;  %vm73_vm1 = vcmask 15368   ;;  %vm90_vm2 = vcmask 1047553   ;;  %s660_s0 = inlined_call_operand.vmem [shape: f32[15,15], index: 0, kind: input, shape index: {}]   ;;  %s661_s1 = inlined_call_operand.vmem [shape: f32[15,15], index: 1, kind: output, shape index: {}]  }
   0x1   :  { %39 = vst [vmem:[#allocation1] sm:$0xff] %v567_v0  ;;  %v581_v4 = vld [vmem:[%s660_s0] sm:$0xff]  ;;  %v589_v16 = vld [vmem:[%s660_s0 + $0x8] sm:$0xff]  ;;  %vm91_vm3 = vmand %vm73_vm1, %vm90_vm2  ;;  %vm108_vm4 = vcmask 23568   ;;  %vm125_vm5 = vcmask 1047554   ;;  %vm143_vm7 = vcmask 31768  }
   0x2   :  { %33 = vst [vmem:[#allocation0] sm:$0xff] %v581_v4  ;;  %35 = vst [vmem:[#allocation0 + $0x8] sm:$0xff] %v589_v16  ;;  %vm160_vm8 = vcmask 1047555   ;;  %vm178_vm10 = vcmask 39968   ;;  %vm195_vm11 = vcmask 1047556   ;;  %vm213_vm13 = vcmask 48168  }
   0x3   :  { %vm126_vm6 = vmand %vm108_vm4, %vm125_vm5  ;;  %vm230_vm14 = vcmask 1047557  }
   0x4   :  { %vm161_vm9 = vmand %vm143_vm7, %vm160_vm8 }
   0x5   :  { %vm196_vm12 = vmand %vm178_vm10, %vm195_vm11 }
   0x6   :  { %vm231_vm15 = vmand %vm213_vm13, %vm230_vm14 }
   0x8   :  { %v43_v1 = vld [vmem:[#allocation1] ss:$0 sm:$0xff] }
   0x9   :  { %v45_v2 = vmul.f32 %v43_v1, %v43_v1  ;;  %v52_v3 = vmul.f32 0.0, %v43_v1  ;;  %v44_v5 = vld [vmem:[#allocation0] ss:$0 sm:$0xff]  ;;  %v77_v17 = vld [vmem:[#allocation0 + $0x1] ss:$0 sm:$0xff] }
   0xa   :  { %v112_v40 = vld [vmem:[#allocation0 + $0x2] ss:$0 sm:$0xff]  ;;  %v147_v58 = vld [vmem:[#allocation0 + $0x3] ss:$0 sm:$0xff] }
   0xb   :  { %46 = vadd.xlane.f32.xlu0 %v45_v2 }
   0xf   :  { %53 = vadd.xlane.f32.xlu0 %v52_v3 }
  0x94   :  { %v47_v6 = vpop.xlane.xlu0 %46 }
  0x95   :  { %v48_v7 = vsub.f32 %v44_v5, %v47_v6 }
  0x97   :  { %537 = vrsqrt.f32 %v48_v7 }
  0x98   :  { %v54_v8 = vpop.xlane.xlu0 %53 }
  0x99   :  { %v55_v9 = vsub.f32 %v581_v4, %v54_v8 }
  0xa4   :  { %v538_v10 = vpop.eup %537 }
  0xa5   :  { %v56_v11 = vmul.f32 %v538_v10, %v55_v9 }
  0xa7   :  { %v57_v12 = vsel %vm42_vm0, %v56_v11, 0.0 }
  0xa8   :  { %59 = vst [vmem:[#allocation1] sm:$0xff] %v57_v12 }
  0xaf   :  { %v75_v13 = vld [vmem:[#allocation1 + $0x1] ss:$0 sm:$0xff] }
  0xb0   :  { %v85_v14 = vmul.f32 %v75_v13, %v57_v12  ;;  %v78_v15 = vmul.f32 %v75_v13, %v75_v13 }
  0xb2   :  { %86 = vadd.xlane.f32.xlu0 %v85_v14  ;;  %79 = vadd.xlane.f32.xlu1 %v78_v15 }
  0xb6   :  { %65 = vadd.xlane.f32.xlu1 %v52_v3 }
 0x13b   :  { %v80_v18 = vpop.xlane.xlu1 %79  ;;  %v87_v24 = vpop.xlane.xlu0 %86 }
 0x13c   :  { %v81_v19 = vsub.f32 %v77_v17, %v80_v18  ;;  %v88_v26 = vsub.f32 %v581_v4, %v87_v24 }
 0x13e   :  { %539 = vrsqrt.f32 %v81_v19 }
 0x13f   :  { %v66_v20 = vpop.xlane.xlu1 %65 }
 0x140   :  { %v67_v21 = vsub.f32 %v589_v16, %v66_v20 }
 0x142   :  { %v68_v22 = vmul.f32 %v538_v10, %v67_v21 }
 0x144   :  { %v69_v23 = vsel %vm42_vm0, %v68_v22, 0.0  ;;  %vm248_vm0 = vcmask 56368  }
 0x145   :  { %v99_v25 = vmul.f32 %v75_v13, %v69_v23  ;;  %v182_v13 = vld [vmem:[#allocation0 + $0x4] ss:$0 sm:$0xff] }
 0x147   :  { %100 = vadd.xlane.f32.xlu1 %v99_v25 }
 0x14b   :  { %v540_v27 = vpop.eup %539 }
 0x14c   :  { %v89_v28 = vmul.f32 %v540_v27, %v88_v26 }
 0x14e   :  { %v92_v29 = vsel %vm91_vm3, %v89_v28, 0.0 }
 0x14f   :  { %v93_v30 = vadd.f32 %v92_v29, %v57_v12 }
 0x151   :  { %94 = vst [vmem:[#allocation1] sm:$0xff] %v93_v30 }
 0x158   :  { %v110_v31 = vld [vmem:[#allocation1 + $0x2] ss:$0 sm:$0xff] }
 0x159   :  { %v113_v32 = vmul.f32 %v110_v31, %v110_v31  ;;  %v120_v33 = vmul.f32 %v110_v31, %v93_v30 }
 0x15b   :  { %114 = vadd.xlane.f32.xlu0 %v113_v32  ;;  %121 = vadd.xlane.f32.xlu1 %v120_v33  ;;  %v217_v32 = vld [vmem:[#allocation0 + $0x5] ss:$0 sm:$0xff] }
 0x1d0   :  { %v101_v34 = vpop.xlane.xlu1 %100 }
 0x1d1   :  { %v102_v35 = vsub.f32 %v589_v16, %v101_v34 }
 0x1d3   :  { %v103_v36 = vmul.f32 %v540_v27, %v102_v35 }
 0x1d5   :  { %v104_v37 = vsel %vm73_vm1, %v103_v36, 0.0  ;;  %vm265_vm1 = vcmask 1047558  }
 0x1d6   :  { %v105_v38 = vadd.f32 %v104_v37, %v69_v23  ;;  %vm266_vm3 = vmand %vm248_vm0, %vm265_vm1 }
 0x1d8   :  { %v134_v39 = vmul.f32 %v110_v31, %v105_v38 }
 0x1da   :  { %135 = vadd.xlane.f32.xlu0 %v134_v39 }
 0x1e4   :  { %v115_v41 = vpop.xlane.xlu0 %114  ;;  %v122_v43 = vpop.xlane.xlu1 %121 }
 0x1e5   :  { %v116_v42 = vsub.f32 %v112_v40, %v115_v41  ;;  %v123_v44 = vsub.f32 %v581_v4, %v122_v43 }
 0x1e7   :  { %541 = vrsqrt.f32 %v116_v42 }
 0x1f4   :  { %v542_v45 = vpop.eup %541 }
 0x1f5   :  { %v124_v46 = vmul.f32 %v542_v45, %v123_v44 }
 0x1f7   :  { %v127_v47 = vsel %vm126_vm6, %v124_v46, 0.0  ;;  %vm318_vm6 = vcmask 72768  }
 0x1f8   :  { %v128_v48 = vadd.f32 %v127_v47, %v93_v30 }
 0x1fa   :  { %129 = vst [vmem:[#allocation1] sm:$0xff] %v128_v48 }
 0x201   :  { %v145_v49 = vld [vmem:[#allocation1 + $0x3] ss:$0 sm:$0xff] }
 0x202   :  { %v155_v50 = vmul.f32 %v145_v49, %v128_v48  ;;  %v148_v51 = vmul.f32 %v145_v49, %v145_v49 }
 0x204   :  { %156 = vadd.xlane.f32.xlu0 %v155_v50  ;;  %149 = vadd.xlane.f32.xlu1 %v148_v51  ;;  %v252_v50 = vld [vmem:[#allocation0 + $0x6] ss:$0 sm:$0xff] }
 0x263   :  { %v136_v52 = vpop.xlane.xlu0 %135 }
 0x264   :  { %v137_v53 = vsub.f32 %v589_v16, %v136_v52 }
 0x266   :  { %v138_v54 = vmul.f32 %v542_v45, %v137_v53 }
 0x268   :  { %v139_v55 = vsel %vm108_vm4, %v138_v54, 0.0  ;;  %vm283_vm4 = vcmask 64568  }
 0x269   :  { %v140_v56 = vadd.f32 %v139_v55, %v105_v38 }
 0x26b   :  { %v169_v57 = vmul.f32 %v145_v49, %v140_v56 }
 0x26d   :  { %170 = vadd.xlane.f32.xlu1 %v169_v57 }
 0x28d   :  { %v150_v59 = vpop.xlane.xlu1 %149  ;;  %v157_v61 = vpop.xlane.xlu0 %156 }
 0x28e   :  { %v151_v60 = vsub.f32 %v147_v58, %v150_v59  ;;  %v158_v62 = vsub.f32 %v581_v4, %v157_v61 }
 0x290   :  { %543 = vrsqrt.f32 %v151_v60 }
 0x29d   :  { %v544_v63 = vpop.eup %543 }
 0x29e   :  { %v159_v0 = vmul.f32 %v544_v63, %v158_v62 }
 0x2a0   :  { %v162_v1 = vsel %vm161_vm9, %v159_v0, 0.0 }
 0x2a1   :  { %v163_v2 = vadd.f32 %v162_v1, %v128_v48 }
 0x2a3   :  { %164 = vst [vmem:[#allocation1] sm:$0xff] %v163_v2 }
 0x2aa   :  { %v180_v3 = vld [vmem:[#allocation1 + $0x4] ss:$0 sm:$0xff] }
 0x2ab   :  { %v190_v5 = vmul.f32 %v180_v3, %v163_v2  ;;  %v183_v6 = vmul.f32 %v180_v3, %v180_v3 }
 0x2ad   :  { %191 = vadd.xlane.f32.xlu1 %v190_v5  ;;  %184 = vadd.xlane.f32.xlu0 %v183_v6 }
 0x2f6   :  { %v171_v7 = vpop.xlane.xlu1 %170 }
 0x2f7   :  { %v172_v8 = vsub.f32 %v589_v16, %v171_v7 }
 0x2f9   :  { %v173_v9 = vmul.f32 %v544_v63, %v172_v8 }
 0x2fb   :  { %v174_v10 = vsel %vm143_vm7, %v173_v9, 0.0  ;;  %vm341_vm7 = vcmask 80968  }
 0x2fc   :  { %v175_v11 = vadd.f32 %v174_v10, %v140_v56  ;;  %vm361_vm9 = vmand %vm341_vm7, %vm90_vm2 }
 0x2fe   :  { %v204_v12 = vmul.f32 %v180_v3, %v175_v11  ;;  %v287_v3 = vld [vmem:[#allocation0 + $0x7] ss:$0 sm:$0xff] }
 0x300   :  { %205 = vadd.xlane.f32.xlu0 %v204_v12 }
 0x336   :  { %v185_v14 = vpop.xlane.xlu0 %184  ;;  %v192_v17 = vpop.xlane.xlu1 %191 }
 0x337   :  { %v186_v15 = vsub.f32 %v182_v13, %v185_v14  ;;  %v193_v18 = vsub.f32 %v581_v4, %v192_v17  ;;  %v322_v17 = vld [vmem:[#allocation0 + $0x8] ss:$0 sm:$0xff] }
 0x339   :  { %545 = vrsqrt.f32 %v186_v15 }
 0x346   :  { %v546_v19 = vpop.eup %545 }
 0x347   :  { %v194_v20 = vmul.f32 %v546_v19, %v193_v18 }
 0x349   :  { %v197_v21 = vsel %vm196_vm12, %v194_v20, 0.0  ;;  %vm391_vm12 = vcmask 97368  }
 0x34a   :  { %v198_v22 = vadd.f32 %v197_v21, %v163_v2 }
 0x34c   :  { %199 = vst [vmem:[#allocation1] sm:$0xff] %v198_v22 }
 0x353   :  { %v215_v23 = vld [vmem:[#allocation1 + $0x5] ss:$0 sm:$0xff] }
 0x354   :  { %v225_v24 = vmul.f32 %v215_v23, %v198_v22  ;;  %v218_v25 = vmul.f32 %v215_v23, %v215_v23 }
 0x356   :  { %226 = vadd.xlane.f32.xlu0 %v225_v24  ;;  %219 = vadd.xlane.f32.xlu1 %v218_v25 }
 0x389   :  { %v206_v26 = vpop.xlane.xlu0 %205 }
 0x38a   :  { %v207_v27 = vsub.f32 %v589_v16, %v206_v26 }
 0x38c   :  { %v208_v28 = vmul.f32 %v546_v19, %v207_v27 }
 0x38e   :  { %v209_v29 = vsel %vm178_vm10, %v208_v28, 0.0  ;;  %vm366_vm10 = vcmask 89168  }
 0x38f   :  { %v210_v30 = vadd.f32 %v209_v29, %v175_v11  ;;  %v345_v29 = vld [vmem:[#allocation0 + $0x9] ss:$0 sm:$0xff]  ;;  %vm386_vm2 = vmand %vm366_vm10, %vm125_vm5 }
 0x390   :  { %vm411_vm5 = vmand %vm391_vm12, %vm160_vm8 }
 0x391   :  { %v239_v31 = vmul.f32 %v215_v23, %v210_v30 }
 0x393   :  { %240 = vadd.xlane.f32.xlu1 %v239_v31 }
 0x3df   :  { %v220_v33 = vpop.xlane.xlu1 %219  ;;  %v227_v35 = vpop.xlane.xlu0 %226 }
 0x3e0   :  { %v221_v34 = vsub.f32 %v217_v32, %v220_v33  ;;  %v228_v36 = vsub.f32 %v581_v4, %v227_v35 }
 0x3e2   :  { %547 = vrsqrt.f32 %v221_v34 }
 0x3ef   :  { %v548_v37 = vpop.eup %547 }
 0x3f0   :  { %v229_v38 = vmul.f32 %v548_v37, %v228_v36 }
 0x3f2   :  { %v232_v39 = vsel %vm231_vm15, %v229_v38, 0.0  ;;  %vm300_vm15 = vcmask 1047559  }
 0x3f3   :  { %v233_v40 = vadd.f32 %v232_v39, %v198_v22 }
 0x3f5   :  { %234 = vst [vmem:[#allocation1] sm:$0xff] %v233_v40 }
 0x3fc   :  { %v250_v41 = vld [vmem:[#allocation1 + $0x6] ss:$0 sm:$0xff] }
 0x3fd   :  { %v260_v42 = vmul.f32 %v250_v41, %v233_v40  ;;  %v253_v43 = vmul.f32 %v250_v41, %v250_v41 }
 0x3ff   :  { %261 = vadd.xlane.f32.xlu1 %v260_v42  ;;  %254 = vadd.xlane.f32.xlu0 %v253_v43 }
 0x41c   :  { %v241_v44 = vpop.xlane.xlu1 %240 }
 0x41d   :  { %v242_v45 = vsub.f32 %v589_v16, %v241_v44 }
 0x41f   :  { %v243_v46 = vmul.f32 %v548_v37, %v242_v45 }
 0x421   :  { %v244_v47 = vsel %vm213_vm13, %v243_v46, 0.0  ;;  %vm416_vm13 = vcmask 105568  }
 0x422   :  { %v245_v48 = vadd.f32 %v244_v47, %v210_v30  ;;  %vm436_vm8 = vmand %vm416_vm13, %vm195_vm11 }
 0x423   :  { %vm301_vm11 = vmand %vm283_vm4, %vm300_vm15 }
 0x424   :  { %v274_v49 = vmul.f32 %v250_v41, %v245_v48  ;;  %v370_v41 = vld [vmem:[#allocation0 + $0xa] ss:$0 sm:$0xff] }
 0x426   :  { %275 = vadd.xlane.f32.xlu0 %v274_v49 }
 0x488   :  { %v255_v51 = vpop.xlane.xlu0 %254  ;;  %v262_v53 = vpop.xlane.xlu1 %261 }
 0x489   :  { %v256_v52 = vsub.f32 %v252_v50, %v255_v51  ;;  %v263_v54 = vsub.f32 %v581_v4, %v262_v53  ;;  %v395_v53 = vld [vmem:[#allocation0 + $0xb] ss:$0 sm:$0xff] }
 0x48b   :  { %549 = vrsqrt.f32 %v256_v52 }
 0x498   :  { %v550_v55 = vpop.eup %549 }
 0x499   :  { %v264_v56 = vmul.f32 %v550_v55, %v263_v54 }
 0x49b   :  { %v267_v57 = vsel %vm266_vm3, %v264_v56, 0.0 }
 0x49c   :  { %v621_v58 = vadd.f32 %v267_v57, %v233_v40 }
 0x49e   :  { %269 = vst [vmem:[#allocation1] sm:$0xff] %v621_v58 }
 0x4a5   :  { %v624_v59 = vld [vmem:[#allocation1 + $0x7] ss:$0 sm:$0xff] }
 0x4a6   :  { %v288_v60 = vmul.f32 %v624_v59, %v624_v59 }
 0x4a8   :  { %289 = vadd.xlane.f32.xlu1 %v288_v60 }
 0x4af   :  { %v276_v61 = vpop.xlane.xlu0 %275 }
 0x4b0   :  { %v277_v62 = vsub.f32 %v589_v16, %v276_v61 }
 0x4b2   :  { %v278_v63 = vmul.f32 %v550_v55, %v277_v62 }
 0x4b4   :  { %v279_v0 = vsel %vm248_vm0, %v278_v63, 0.0  ;;  %vm441_vm0 = vcmask 113768  }
 0x4b5   :  { %v280_v1 = vadd.f32 %v279_v0, %v245_v48  ;;  %vm461_vm3 = vmand %vm441_vm0, %vm230_vm14 }
 0x4b7   :  { %v309_v2 = vmul.f32 %v624_v59, %v280_v1 }
 0x4b9   :  { %310 = vadd.xlane.f32.xlu0 %v309_v2 }
 0x531   :  { %v290_v5 = vpop.xlane.xlu1 %289 }
 0x532   :  { %v291_v6 = vsub.f32 %v287_v3, %v290_v5  ;;  %v420_v3 = vld [vmem:[#allocation0 + $0xc] ss:$0 sm:$0xff] }
 0x534   :  { %551 = vrsqrt.f32 %v291_v6 }
 0x541   :  { %v631_v9 = vpop.eup %551 }
 0x542   :  { %v311_v7 = vpop.xlane.xlu0 %310 }
 0x543   :  { %v312_v8 = vsub.f32 %v589_v16, %v311_v7 }
 0x545   :  { %v313_v10 = vmul.f32 %v631_v9, %v312_v8 }
 0x547   :  { %v314_v11 = vsel %vm283_vm4, %v313_v10, 0.0  ;;  %vm466_vm4 = vcmask 121968  }
 0x548   :  { %v315_v12 = vadd.f32 %v314_v11, %v280_v1  ;;  %vm486_vm14 = vmand %vm466_vm4, %vm265_vm1 }
 0x54a   :  { %317 = vst [vmem:[#allocation1 + $0x8] sm:$0xff] %v315_v12 }
 0x551   :  { %v320_v13 = vld [vmem:[#allocation1 + $0x8] ss:$0 sm:$0xff] }
 0x552   :  { %v332_v14 = vmul.f32 %v320_v13, %v315_v12  ;;  %v323_v15 = vmul.f32 %v320_v13, %v320_v13 }
 0x554   :  { %333 = vadd.xlane.f32.xlu0 %v332_v14  ;;  %324 = vadd.xlane.f32.xlu1 %v323_v15 }
 0x5dd   :  { %v325_v18 = vpop.xlane.xlu1 %324  ;;  %v334_v20 = vpop.xlane.xlu0 %333 }
 0x5de   :  { %v326_v19 = vsub.f32 %v322_v17, %v325_v18  ;;  %v335_v21 = vsub.f32 %v589_v16, %v334_v20  ;;  %v295_v18 = vmul.f32 %v624_v59, %v621_v58 }
 0x5e0   :  { %553 = vrsqrt.f32 %v326_v19  ;;  %v445_v19 = vld [vmem:[#allocation0 + $0xd] ss:$0 sm:$0xff] }
 0x5ed   :  { %v554_v22 = vpop.eup %553 }
 0x5ee   :  { %v336_v23 = vmul.f32 %v554_v22, %v335_v21 }
 0x5f0   :  { %v337_v24 = vsel %vm318_vm6, %v336_v23, 0.0 }
 0x5f1   :  { %v338_v25 = vadd.f32 %v337_v24, %v315_v12 }
 0x5f3   :  { %340 = vst [vmem:[#allocation1 + $0x8] sm:$0xff] %v338_v25 }
 0x5fa   :  { %v343_v26 = vld [vmem:[#allocation1 + $0x9] ss:$0 sm:$0xff] }
 0x5fb   :  { %v355_v27 = vmul.f32 %v343_v26, %v338_v25  ;;  %v346_v28 = vmul.f32 %v343_v26, %v343_v26 }
 0x5fd   :  { %356 = vadd.xlane.f32.xlu0 %v355_v27  ;;  %347 = vadd.xlane.f32.xlu1 %v346_v28 }
 0x686   :  { %v348_v30 = vpop.xlane.xlu1 %347  ;;  %v357_v32 = vpop.xlane.xlu0 %356 }
 0x687   :  { %v349_v31 = vsub.f32 %v345_v29, %v348_v30  ;;  %v358_v33 = vsub.f32 %v589_v16, %v357_v32 }
 0x689   :  { %555 = vrsqrt.f32 %v349_v31 }
 0x696   :  { %v556_v34 = vpop.eup %555 }
 0x697   :  { %v359_v35 = vmul.f32 %v556_v34, %v358_v33 }
 0x699   :  { %v362_v36 = vsel %vm361_vm9, %v359_v35, 0.0 }
 0x69a   :  { %v363_v37 = vadd.f32 %v362_v36, %v338_v25 }
 0x69c   :  { %365 = vst [vmem:[#allocation1 + $0x8] sm:$0xff] %v363_v37 }
 0x6a3   :  { %v368_v38 = vld [vmem:[#allocation1 + $0xa] ss:$0 sm:$0xff] }
 0x6a4   :  { %v380_v39 = vmul.f32 %v368_v38, %v363_v37  ;;  %v371_v40 = vmul.f32 %v368_v38, %v368_v38 }
 0x6a6   :  { %381 = vadd.xlane.f32.xlu0 %v380_v39  ;;  %372 = vadd.xlane.f32.xlu1 %v371_v40 }
 0x72f   :  { %v373_v42 = vpop.xlane.xlu1 %372  ;;  %v382_v44 = vpop.xlane.xlu0 %381 }
 0x730   :  { %v374_v43 = vsub.f32 %v370_v41, %v373_v42  ;;  %v383_v45 = vsub.f32 %v589_v16, %v382_v44 }
 0x732   :  { %557 = vrsqrt.f32 %v374_v43 }
 0x73f   :  { %v558_v46 = vpop.eup %557 }
 0x740   :  { %v384_v47 = vmul.f32 %v558_v46, %v383_v45 }
 0x742   :  { %v387_v48 = vsel %vm386_vm2, %v384_v47, 0.0 }
 0x743   :  { %v388_v49 = vadd.f32 %v387_v48, %v363_v37 }
 0x745   :  { %390 = vst [vmem:[#allocation1 + $0x8] sm:$0xff] %v388_v49 }
 0x74c   :  { %v393_v50 = vld [vmem:[#allocation1 + $0xb] ss:$0 sm:$0xff] }
 0x74d   :  { %v405_v51 = vmul.f32 %v393_v50, %v388_v49  ;;  %v396_v52 = vmul.f32 %v393_v50, %v393_v50 }
 0x74f   :  { %406 = vadd.xlane.f32.xlu0 %v405_v51  ;;  %397 = vadd.xlane.f32.xlu1 %v396_v52 }
 0x7d8   :  { %v398_v54 = vpop.xlane.xlu1 %397  ;;  %v407_v56 = vpop.xlane.xlu0 %406 }
 0x7d9   :  { %v399_v55 = vsub.f32 %v395_v53, %v398_v54  ;;  %v408_v57 = vsub.f32 %v589_v16, %v407_v56 }
 0x7db   :  { %559 = vrsqrt.f32 %v399_v55 }
 0x7e8   :  { %v560_v60 = vpop.eup %559 }
 0x7e9   :  { %v409_v61 = vmul.f32 %v560_v60, %v408_v57 }
 0x7eb   :  { %v412_v62 = vsel %vm411_vm5, %v409_v61, 0.0 }
 0x7ec   :  { %v413_v63 = vadd.f32 %v412_v62, %v388_v49 }
 0x7ee   :  { %415 = vst [vmem:[#allocation1 + $0x8] sm:$0xff] %v413_v63 }
 0x7f5   :  { %v418_v0 = vld [vmem:[#allocation1 + $0xc] ss:$0 sm:$0xff] }
 0x7f6   :  { %v430_v1 = vmul.f32 %v418_v0, %v413_v63  ;;  %v421_v2 = vmul.f32 %v418_v0, %v418_v0 }
 0x7f8   :  { %431 = vadd.xlane.f32.xlu0 %v430_v1  ;;  %422 = vadd.xlane.f32.xlu1 %v421_v2 }
 0x881   :  { %v423_v5 = vpop.xlane.xlu1 %422  ;;  %v432_v7 = vpop.xlane.xlu0 %431 }
 0x882   :  { %v424_v6 = vsub.f32 %v420_v3, %v423_v5  ;;  %v433_v8 = vsub.f32 %v589_v16, %v432_v7 }
 0x884   :  { %561 = vrsqrt.f32 %v424_v6 }
 0x891   :  { %v562_v10 = vpop.eup %561 }
 0x892   :  { %v434_v11 = vmul.f32 %v562_v10, %v433_v8 }
 0x894   :  { %v437_v12 = vsel %vm436_vm8, %v434_v11, 0.0 }
 0x895   :  { %v438_v13 = vadd.f32 %v437_v12, %v413_v63 }
 0x897   :  { %440 = vst [vmem:[#allocation1 + $0x8] sm:$0xff] %v438_v13 }
 0x89e   :  { %v443_v14 = vld [vmem:[#allocation1 + $0xd] ss:$0 sm:$0xff] }
 0x89f   :  { %v455_v15 = vmul.f32 %v443_v14, %v438_v13  ;;  %v446_v17 = vmul.f32 %v443_v14, %v443_v14 }
 0x8a1   :  { %456 = vadd.xlane.f32.xlu0 %v455_v15  ;;  %447 = vadd.xlane.f32.xlu1 %v446_v17 }
 0x8a5   :  { %296 = vadd.xlane.f32.xlu0 %v295_v18 }
 0x92a   :  { %v457_v20 = vpop.xlane.xlu0 %456  ;;  %v448_v21 = vpop.xlane.xlu1 %447 }
 0x92b   :  { %v449_v22 = vsub.f32 %v445_v19, %v448_v21  ;;  %v458_v59 = vsub.f32 %v589_v16, %v457_v20 }
 0x92d   :  { %563 = vrsqrt.f32 %v449_v22 }
 0x92e   :  { %v297_v23 = vpop.xlane.xlu0 %296 }
 0x92f   :  { %v298_v24 = vsub.f32 %v581_v4, %v297_v23 }
 0x931   :  { %v299_v25 = vmul.f32 %v631_v9, %v298_v24 }
 0x933   :  { %v302_v26 = vsel %vm301_vm11, %v299_v25, 0.0 }
 0x934   :  { %v303_v27 = vadd.f32 %v302_v26, %v621_v58  ;;  %v470_v58 = vld [vmem:[#allocation0 + $0xe] ss:$0 sm:$0xff] }
 0x936   :  { %304 = vst [vmem:[#allocation1] sm:$0xff] %v303_v27  ;;  %522 = vst [vmem:[%s661_s1] sm:$0xff] %v303_v27 }
 0x93a   :  { %v564_v28 = vpop.eup %563 }
 0x93b   :  { %v459_v29 = vmul.f32 %v564_v28, %v458_v59 }
 0x93d   :  { %v462_v4 = vsel %vm461_vm3, %v459_v29, 0.0 }
 0x93e   :  { %v463_v30 = vadd.f32 %v462_v4, %v438_v13 }
 0x940   :  { %465 = vst [vmem:[#allocation1 + $0x8] sm:$0xff] %v463_v30 }
 0x947   :  { %v468_v31 = vld [vmem:[#allocation1 + $0xe] ss:$0 sm:$0xff] }
 0x948   :  { %v471_v9 = vmul.f32 %v468_v31, %v468_v31  ;;  %v480_v32 = vmul.f32 %v468_v31, %v463_v30 }
 0x94a   :  { %472 = vadd.xlane.f32.xlu1 %v471_v9 }
 0x94e   :  { %481 = vadd.xlane.f32.xlu1 %v480_v32 }
 0x9d3   :  { %v473_v33 = vpop.xlane.xlu1 %472 }
 0x9d4   :  { %v474_v34 = vsub.f32 %v470_v58, %v473_v33 }
 0x9d6   :  { %565 = vrsqrt.f32 %v474_v34 }
 0x9d7   :  { %v482_v35 = vpop.xlane.xlu1 %481 }
 0x9d8   :  { %v483_v36 = vsub.f32 %v589_v16, %v482_v35 }
 0x9e3   :  { %v566_v37 = vpop.eup %565 }
 0x9e4   :  { %v484_v38 = vmul.f32 %v566_v37, %v483_v36 }
 0x9e6   :  { %v487_v39 = vsel %vm486_vm14, %v484_v38, 0.0 }
 0x9e7   :  { %v488_v40 = vadd.f32 %v487_v39, %v463_v30 }
 0x9e9   :  { %490 = vst [vmem:[#allocation1 + $0x8] sm:$0xff] %v488_v40  ;;  %524 = vst [vmem:[%s661_s1 + $0x8] sm:$0xff] %v488_v40 }

// kernel: custom-call.72
= control target key start
LH: loop header
LB: loop body
LE: loop exit
PB: predicated region body
PF: predicated region fallthrough
CT: control target
= control target key end

     0   :  { %v39_v0 = vlaneseq  ;;  %v320_v9 = vmov -1.0   ;;  %v321_v53 = vmov 0.0   ;;  %s388_s0 = inlined_call_operand.vmem [shape: f32[1,15,15], index: 0, kind: input, shape index: {}]   ;;  %s389_s1 = inlined_call_operand.vmem [shape: f32[1,15,15], index: 1, kind: output, shape index: {}]  }
   0x1   :  { %v32_v1 = vld [vmem:[%s388_s0] sm:$0xff]  ;;  %v34_v36 = vld [vmem:[%s388_s0 + $0x8] sm:$0xff] }
   0x2   :  { %v335_v2 = vand.u32 127, %v39_v0  ;;  %v43_v3 = vshrl.u32 %v39_v0, 7 }
   0x4   :  { %vm45_vm0 = vcmp.eq.s32.totalorder %v43_v3, %v335_v2  ;;  %vm41_vm1 = vcmp.lt.s32.totalorder %v335_v2, 15  ;;  %vm50_vm2 = vcmp.ge.s32.totalorder %v43_v3, %v335_v2  ;;  %vm80_vm4 = vcmp.eq.s32.totalorder %v335_v2, 0 }
   0x5   :  { %v47_v4 = vsel %vm45_vm0, %v32_v1, 0.0  ;;  %vm51_vm3 = vmand %vm50_vm2, %vm41_vm1  ;;  %vm77_vm5 = vcmp.eq.s32.totalorder %v335_v2, %v43_v3  ;;  %v81_v10 = vsel %vm80_vm4, 1.0, %v320_v9  ;;  %vm95_vm6 = vcmp.eq.s32.totalorder %v335_v2, 1 }
   0x6   :  { %48 = vadd.xlane.f32.xlu0 %v47_v4  ;;  %v52_v6 = vsel %vm51_vm3, %v32_v1, 0.0  ;;  %v82_v11 = vsel %vm77_vm5, %v81_v10, 0.0  ;;  %vm105_vm7 = vcmp.eq.s32.totalorder %v335_v2, 2  ;;  %vm115_vm8 = vcmp.eq.s32.totalorder %v335_v2, 3 }
   0x7   :  { %vm125_vm9 = vcmp.eq.s32.totalorder %v335_v2, 4  ;;  %v60_v31 = vadd.s32 8, %v43_v3  ;;  %vm135_vm11 = vcmp.eq.s32.totalorder %v335_v2, 5  ;;  %vm145_vm14 = vcmp.eq.s32.totalorder %v335_v2, 6 }
   0x8   :  { %vm155_vm0 = vcmp.eq.s32.totalorder %v335_v2, 7  ;;  %vm179_vm2 = vcmp.eq.s32.totalorder %v335_v2, 9  ;;  %vm193_vm3 = vcmp.eq.s32.totalorder %v335_v2, 10  ;;  %vm207_vm4 = vcmp.eq.s32.totalorder %v335_v2, 11 }
   0x9   :  { %vm61_vm10 = vcmp.eq.s32.totalorder %v60_v31, %v335_v2  ;;  %vm66_vm12 = vcmp.ge.s32.totalorder %v60_v31, %v335_v2  ;;  %vm88_vm15 = vcmp.eq.s32.totalorder %v335_v2, %v60_v31  ;;  %vm221_vm5 = vcmp.eq.s32.totalorder %v335_v2, 12 }
   0xa   :  { %v63_v37 = vsel %vm61_vm10, %v34_v36, 0.0  ;;  %vm67_vm13 = vmand %vm66_vm12, %vm41_vm1  ;;  %v89_v54 = vsel %vm88_vm15, -1.0, %v321_v53  ;;  %vm165_vm1 = vcmp.eq.s32.totalorder %v335_v2, 8 }
   0xb   :  { %v68_v44 = vsel %vm67_vm13, %v34_v36, 0.0 }
  0x8f   :  { %v338_v5 = vpop.xlane.xlu0 %48 }
  0x90   :  { %316 = vrcp.f32 %v338_v5 }
  0x9d   :  { %v345_v7 = vpop.eup %316 }
  0x9e   :  { %v54_v8 = vmul.f32 %v345_v7, %v52_v6 }
  0xa0   :  { %55 = vst [vmem:[#allocation2] sm:$0xff] %v54_v8 }
  0xa7   :  { %v91_v12 = vld [vmem:[#allocation2 + $0x1] ss:$0 sm:$0xff]  ;;  %v101_v15 = vld [vmem:[#allocation2 + $0x2] ss:$0 sm:$0xff]  ;;  %v111_v20 = vld [vmem:[#allocation2 + $0x3] ss:$0 sm:$0xff] }
  0xa8   :  { %v92_v13 = vxor.u32 2147483648, %v91_v12  ;;  %v102_v17 = vxor.u32 2147483648, %v101_v15  ;;  %v112_v22 = vxor.u32 2147483648, %v111_v20  ;;  %v121_v25 = vld [vmem:[#allocation2 + $0x4] ss:$0 sm:$0xff] }
  0xa9   :  { %v122_v27 = vxor.u32 2147483648, %v121_v25  ;;  %v131_v30 = vld [vmem:[#allocation2 + $0x5] ss:$0 sm:$0xff]  ;;  %v141_v38 = vld [vmem:[#allocation2 + $0x6] ss:$0 sm:$0xff] }
  0xaa   :  { %v96_v14 = vmul.f32 %v92_v13, %v82_v11  ;;  %v132_v33 = vxor.u32 2147483648, %v131_v30  ;;  %v142_v40 = vxor.u32 2147483648, %v141_v38  ;;  %v151_v47 = vld [vmem:[#allocation2 + $0x7] ss:$0 sm:$0xff] }
  0xab   :  { %v152_v50 = vxor.u32 2147483648, %v151_v47 }
  0xac   :  { %97 = vadd.xlane.f32.xlu0 %v96_v14 }
 0x135   :  { %v98_v16 = vpop.xlane.xlu0 %97 }
 0x136   :  { %v99_v18 = vsel %vm95_vm6, %v98_v16, %v82_v11  ;;  %vm235_vm6 = vcmp.eq.s32.totalorder %v335_v2, 13 }
 0x137   :  { %v106_v19 = vmul.f32 %v102_v17, %v99_v18 }
 0x139   :  { %107 = vadd.xlane.f32.xlu1 %v106_v19 }
 0x1c2   :  { %v108_v21 = vpop.xlane.xlu1 %107 }
 0x1c3   :  { %v109_v23 = vsel %vm105_vm7, %v108_v21, %v99_v18  ;;  %vm249_vm7 = vcmp.eq.s32.totalorder %v335_v2, 14 }
 0x1c4   :  { %v116_v24 = vmul.f32 %v112_v22, %v109_v23 }
 0x1c6   :  { %117 = vadd.xlane.f32.xlu1 %v116_v24 }
 0x24f   :  { %v118_v26 = vpop.xlane.xlu1 %117 }
 0x250   :  { %v119_v28 = vsel %vm115_vm8, %v118_v26, %v109_v23 }
 0x251   :  { %v126_v29 = vmul.f32 %v122_v27, %v119_v28 }
 0x253   :  { %127 = vadd.xlane.f32.xlu0 %v126_v29 }
 0x2dc   :  { %v128_v32 = vpop.xlane.xlu0 %127 }
 0x2dd   :  { %v129_v34 = vsel %vm125_vm9, %v128_v32, %v119_v28  ;;  %vm260_vm9 = vweird.f32 %v338_v5 }
 0x2de   :  { %v136_v35 = vmul.f32 %v132_v33, %v129_v34 }
 0x2e0   :  { %137 = vadd.xlane.f32.xlu1 %v136_v35 }
 0x2e4   :  { %64 = vadd.xlane.f32.xlu1 %v63_v37 }
 0x369   :  { %v138_v39 = vpop.xlane.xlu1 %137 }
 0x36a   :  { %v139_v41 = vsel %vm135_vm11, %v138_v39, %v129_v34 }
 0x36b   :  { %v146_v42 = vmul.f32 %v142_v40, %v139_v41 }
 0x36d   :  { %147 = vadd.xlane.f32.xlu0 %v146_v42  ;;  %v359_v43 = vpop.xlane.xlu1 %64 }
 0x36e   :  { %318 = vrcp.f32 %v359_v43  ;;  %vm265_vm8 = vweird.f32 %v359_v43 }
 0x37b   :  { %v365_v45 = vpop.eup %318 }
 0x37c   :  { %v70_v46 = vmul.f32 %v365_v45, %v68_v44 }
 0x37e   :  { %71 = vst [vmem:[#allocation2 + $0x8] sm:$0xff] %v70_v46 }
 0x385   :  { %v161_v48 = vld [vmem:[#allocation2 + $0x8] ss:$0 sm:$0xff]  ;;  %v175_v59 = vld [vmem:[#allocation2 + $0x9] ss:$0 sm:$0xff]  ;;  %v189_v4 = vld [vmem:[#allocation2 + $0xa] ss:$0 sm:$0xff] }
 0x386   :  { %v162_v51 = vxor.u32 2147483648, %v161_v48  ;;  %v176_v62 = vxor.u32 2147483648, %v175_v59  ;;  %v190_v9 = vxor.u32 2147483648, %v189_v4  ;;  %v203_v14 = vld [vmem:[#allocation2 + $0xb] ss:$0 sm:$0xff] }
 0x387   :  { %v204_v17 = vxor.u32 2147483648, %v203_v14  ;;  %v217_v22 = vld [vmem:[#allocation2 + $0xc] ss:$0 sm:$0xff]  ;;  %v231_v30 = vld [vmem:[#allocation2 + $0xd] ss:$0 sm:$0xff] }
 0x388   :  { %v170_v56 = vmul.f32 %v162_v51, %v89_v54  ;;  %v218_v25 = vxor.u32 2147483648, %v217_v22  ;;  %v232_v33 = vxor.u32 2147483648, %v231_v30  ;;  %v245_v38 = vld [vmem:[#allocation2 + $0xe] ss:$0 sm:$0xff] }
 0x3f6   :  { %v148_v49 = vpop.xlane.xlu0 %147 }
 0x3f7   :  { %v149_v52 = vsel %vm145_vm14, %v148_v49, %v139_v41  ;;  %v246_v41 = vxor.u32 2147483648, %v245_v38 }
 0x3f8   :  { %v156_v55 = vmul.f32 %v152_v50, %v149_v52 }
 0x3fa   :  { %157 = vadd.xlane.f32.xlu0 %v156_v55 }
 0x3fe   :  { %171 = vadd.xlane.f32.xlu0 %v170_v56 }
 0x483   :  { %v158_v57 = vpop.xlane.xlu0 %157 }
 0x484   :  { %v159_v58 = vsel %vm155_vm0, %v158_v57, %v149_v52 }
 0x485   :  { %v166_v60 = vmul.f32 %v162_v51, %v159_v58 }
 0x487   :  { %v172_v61 = vpop.xlane.xlu0 %171  ;;  %167 = vadd.xlane.f32.xlu1 %v166_v60 }
 0x488   :  { %v173_v63 = vsel %vm165_vm1, %v172_v61, %v89_v54 }
 0x489   :  { %v184_v0 = vmul.f32 %v176_v62, %v173_v63 }
 0x48b   :  { %185 = vadd.xlane.f32.xlu0 %v184_v0 }
 0x510   :  { %v168_v1 = vpop.xlane.xlu1 %167 }
 0x511   :  { %v169_v3 = vsel %vm165_vm1, %v168_v1, %v159_v58 }
 0x512   :  { %v180_v6 = vmul.f32 %v176_v62, %v169_v3 }
 0x514   :  { %v186_v8 = vpop.xlane.xlu0 %185  ;;  %181 = vadd.xlane.f32.xlu1 %v180_v6 }
 0x515   :  { %v187_v10 = vsel %vm179_vm2, %v186_v8, %v173_v63 }
 0x516   :  { %v198_v11 = vmul.f32 %v190_v9, %v187_v10 }
 0x518   :  { %199 = vadd.xlane.f32.xlu0 %v198_v11 }
 0x59d   :  { %v182_v12 = vpop.xlane.xlu1 %181 }
 0x59e   :  { %v183_v13 = vsel %vm179_vm2, %v182_v12, %v169_v3 }
 0x59f   :  { %v194_v15 = vmul.f32 %v190_v9, %v183_v13 }
 0x5a1   :  { %v200_v16 = vpop.xlane.xlu0 %199  ;;  %195 = vadd.xlane.f32.xlu1 %v194_v15 }
 0x5a2   :  { %v201_v18 = vsel %vm193_vm3, %v200_v16, %v187_v10 }
 0x5a3   :  { %v212_v19 = vmul.f32 %v204_v17, %v201_v18 }
 0x5a5   :  { %213 = vadd.xlane.f32.xlu0 %v212_v19 }
 0x62a   :  { %v196_v20 = vpop.xlane.xlu1 %195 }
 0x62b   :  { %v197_v21 = vsel %vm193_vm3, %v196_v20, %v183_v13 }
 0x62c   :  { %v208_v23 = vmul.f32 %v204_v17, %v197_v21 }
 0x62e   :  { %v214_v24 = vpop.xlane.xlu0 %213  ;;  %209 = vadd.xlane.f32.xlu1 %v208_v23 }
 0x62f   :  { %v215_v26 = vsel %vm207_vm4, %v214_v24, %v201_v18 }
 0x630   :  { %v226_v27 = vmul.f32 %v218_v25, %v215_v26 }
 0x632   :  { %227 = vadd.xlane.f32.xlu0 %v226_v27 }
 0x6b7   :  { %v210_v28 = vpop.xlane.xlu1 %209 }
 0x6b8   :  { %v211_v29 = vsel %vm207_vm4, %v210_v28, %v197_v21 }
 0x6b9   :  { %v222_v31 = vmul.f32 %v218_v25, %v211_v29 }
 0x6bb   :  { %v228_v32 = vpop.xlane.xlu0 %227  ;;  %223 = vadd.xlane.f32.xlu1 %v222_v31 }
 0x6bc   :  { %v229_v34 = vsel %vm221_vm5, %v228_v32, %v215_v26 }
 0x6bd   :  { %v240_v35 = vmul.f32 %v232_v33, %v229_v34 }
 0x6bf   :  { %241 = vadd.xlane.f32.xlu0 %v240_v35 }
 0x744   :  { %v224_v36 = vpop.xlane.xlu1 %223 }
 0x745   :  { %v225_v37 = vsel %vm221_vm5, %v224_v36, %v211_v29 }
 0x746   :  { %v236_v39 = vmul.f32 %v232_v33, %v225_v37 }
 0x748   :  { %v242_v40 = vpop.xlane.xlu0 %241  ;;  %237 = vadd.xlane.f32.xlu1 %v236_v39 }
 0x749   :  { %v243_v42 = vsel %vm235_vm6, %v242_v40, %v229_v34 }
 0x74a   :  { %v254_v44 = vmul.f32 %v246_v41, %v243_v42 }
 0x74c   :  { %255 = vadd.xlane.f32.xlu0 %v254_v44 }
 0x7d1   :  { %v238_v46 = vpop.xlane.xlu1 %237 }
 0x7d2   :  { %v239_v47 = vsel %vm235_vm6, %v238_v46, %v225_v37 }
 0x7d3   :  { %v250_v48 = vmul.f32 %v246_v41, %v239_v47 }
 0x7d5   :  { %v256_v49 = vpop.xlane.xlu0 %255  ;;  %251 = vadd.xlane.f32.xlu1 %v250_v48 }
 0x7d6   :  { %v257_v50 = vsel %vm249_vm7, %v256_v49, %v243_v42 }
 0x7d7   :  { %v264_v51 = vmul.f32 %v365_v45, %v257_v50 }
 0x7d9   :  { %v266_v52 = vsel %vm265_vm8, %v257_v50, %v264_v51 }
 0x7da   :  { %302 = vst [vmem:[%s389_s1 + $0x8] sm:$0xff] %v266_v52 }
 0x85e   :  { %v252_v53 = vpop.xlane.xlu1 %251 }
 0x85f   :  { %v253_v54 = vsel %vm249_vm7, %v252_v53, %v239_v47 }
 0x860   :  { %v259_v55 = vmul.f32 %v345_v7, %v253_v54 }
 0x862   :  { %v261_v2 = vsel %vm260_vm9, %v253_v54, %v259_v55 }
 0x863   :  { %300 = vst [vmem:[%s389_s1] sm:$0xff] %v261_v2 }

// kernel: custom-call.31
= control target key start
LH: loop header
LB: loop body
LE: loop exit
PB: predicated region body
PF: predicated region fallthrough
CT: control target
= control target key end

     0   :  { %s2389_s30 = smov [#allocation0]   ;;  %s2738_s0 = inlined_call_operand.vmem [shape: f32[8,8], index: 0, kind: input, shape index: {}]   ;;  %s2739_s1 = inlined_call_operand.vmem [shape: f32[8,8], index: 1, kind: input, shape index: {}]   ;;  %s2740_s2 = inlined_call_operand.vmem [shape: f32[8,8], index: 2, kind: input, shape index: {}]   ;;  %s2741_s3 = inlined_call_operand.vmem [shape: f32[8,8], index: 3, kind: input, shape index: {}]   ;;  %s2742_s4 = inlined_call_operand.vmem [shape: f32[8], index: 4, kind: output, shape index: {0}]   ;;  %s2743_s5 = inlined_call_operand.vmem [shape: f32[8], index: 5, kind: output, shape index: {1}]   ;;  %s2744_s6 = inlined_call_operand.vmem [shape: f32[8,8], index: 6, kind: output, shape index: {2}]   ;;  %s2745_s7 = inlined_call_operand.vmem [shape: f32[8,8], index: 7, kind: output, shape index: {3}]   ;;  %s2746_s8 = inlined_call_operand.vmem [shape: f32[8,8], index: 8, kind: output, shape index: {4}]   ;;  %s2747_s9 = inlined_call_operand.vmem [shape: f32[8,8], index: 9, kind: output, shape index: {5}]  }
   0x1   :  { %s2393_s12 = smov %s2738_s0  }
   0x2 LB: > { %v58_v0 = vld [vmem:[%s2395_s12] sm:$0xff]  ;;  %s60_s12 = scalar_lea.vmem %s2395_s12, 8   ;;  %s2395_s12 = sphi %s2393_s12, %s60_s12   ;;  %s2391_s30 = sphi %s2389_s30, %s61_s30  }
   0x3   : > { %59 = vst [vmem:[%s2391_s30] sm:$0xff] %v58_v0  ;;  %s61_s30 = scalar_lea.vmem %s2391_s30, 8   ;;  %p55_p0 = scmp.gt.s32.totalorder %s60_s12, %s2738_s0 }
   0x4   :  { %s2397_s15 = smov (%p55_p0), [#allocation1]   ;;  %s2401_s18 = smov (%p55_p0), %s2739_s1  }
   0x5   :  { %57 = sbr.rel (!%p55_p0) target bundleno = 2 (0x2), region = 358 }
   0xa LB: > { %v121_v1 = vld [vmem:[%s2403_s18] sm:$0xff]  ;;  %s123_s18 = scalar_lea.vmem %s2403_s18, 8   ;;  %s2403_s18 = sphi %s2401_s18, %s123_s18   ;;  %s2399_s15 = sphi %s2397_s15, %s124_s15  }
   0xb   : > { %122 = vst [vmem:[%s2399_s15] sm:$0xff] %v121_v1  ;;  %s124_s15 = scalar_lea.vmem %s2399_s15, 8   ;;  %p118_p1 = scmp.gt.s32.totalorder %s123_s18, %s2739_s1 }
   0xc   :  { %s2405_s0 = smov (%p118_p1), [#allocation2]   ;;  %s2409_s23 = smov (%p118_p1), %s2740_s2  }
   0xd   :  { %120 = sbr.rel (!%p118_p1) target bundleno = 10 (0xa), region = 380 }
  0x12 LB: > { %v184_v2 = vld [vmem:[%s2411_s23] sm:$0xff]  ;;  %s186_s23 = scalar_lea.vmem %s2411_s23, 8   ;;  %s2411_s23 = sphi %s2409_s23, %s186_s23   ;;  %s2407_s0 = sphi %s2405_s0, %s187_s0  }
  0x13   : > { %185 = vst [vmem:[%s2407_s0] sm:$0xff] %v184_v2  ;;  %s187_s0 = scalar_lea.vmem %s2407_s0, 8   ;;  %p181_p2 = scmp.gt.s32.totalorder %s186_s23, %s2740_s2 }
  0x14   :  { %s2413_s1 = smov (%p181_p2), [#allocation3]   ;;  %s2417_s28 = smov (%p181_p2), %s2741_s3  }
  0x15   :  { %183 = sbr.rel (!%p181_p2) target bundleno = 18 (0x12), region = 402 }
  0x1a LB: > { %v247_v3 = vld [vmem:[%s2419_s28] sm:$0xff]  ;;  %s249_s28 = scalar_lea.vmem %s2419_s28, 8   ;;  %s2419_s28 = sphi %s2417_s28, %s249_s28   ;;  %s2415_s1 = sphi %s2413_s1, %s250_s1  }
  0x1b   : > { %248 = vst [vmem:[%s2415_s1] sm:$0xff] %v247_v3  ;;  %s250_s1 = scalar_lea.vmem %s2415_s1, 8   ;;  %p244_p3 = scmp.gt.s32.totalorder %s249_s28, %s2741_s3 }
  0x1c   :  { %s263_s2 = smov (%p244_p3), [#allocation12]  ;;  %v264_v4 = vld [vmem:[#allocation0] sm:$0xff] (%p244_p3)  ;;  %s266_s10 = smov (%p244_p3), [#allocation13]  ;;  %v267_v5 = vld [vmem:[#allocation1] sm:$0xff] (%p244_p3)  ;;  %v270_v6 = vld [vmem:[#allocation2] sm:$0xff] (%p244_p3)  ;;  %v280_v7 = vlaneseq (%p244_p3)  ;;  %v2461_v9 = vmov (%p244_p3), 0.0  }
  0x1d   :  { %246 = sbr.rel (!%p244_p3) target bundleno = 26 (0x1a), region = 424  ;;  %265 = vst [vmem:[%s263_s2] sm:$0xff] (%p244_p3), %v264_v4  ;;  %268 = vst [vmem:[%s266_s10] sm:$0xff] (%p244_p3), %v267_v5  ;;  %s269_s11 = smov (%p244_p3), [#allocation14] }
  0x1e   :  { %s272_s12 = smov (%p244_p3), [#allocation15]  ;;  %275 = vst [vmem:[#allocation8] sm:$0xff] (%p244_p3), %v2461_v9  ;;  %276 = vst [vmem:[#allocation9] sm:$0xff] (%p244_p3), %v2461_v9  ;;  %v2538_v10 = vand.u32 (%p244_p3), 127, %v280_v7  ;;  %v2540_v11 = vshrl.u32 (%p244_p3), %v280_v7, 7  ;;  %s279_s3 = smov (%p244_p3), [#allocation8] }
  0x1f   :  { %277 = vst [vmem:[#allocation10] sm:$0xff] (%p244_p3), %v2461_v9  ;;  %278 = vst [vmem:[#allocation11] sm:$0xff] (%p244_p3), %v2461_v9  ;;  %s292_s13 = smov (%p244_p3), [#allocation11]  ;;  %s1415_s14 = smov (%p244_p3), [#allocation12] }
  0x20   :  { %271 = vst [vmem:[%s269_s11] sm:$0xff] (%p244_p3), %v270_v6  ;;  %v282_v10 = vmov (%p244_p3), %v2538_v10  ;;  %v285_v11 = vmov (%p244_p3), %v2540_v11  ;;  %vm1419_vm2 = vcmp.lt.s32.totalorder (%p244_p3), %v2538_v10, 8  ;;  %s1432_s15 = smov (%p244_p3), [#allocation13]  ;;  %s1449_s16 = smov (%p244_p3), [#allocation14] }
  0x21   :  { %v295_v10 = vmov (%p244_p3), %v2538_v10  ;;  %v298_v11 = vmov (%p244_p3), %v2540_v11  ;;  %vm289_vm0 = vcmp.eq.s32.totalorder (%p244_p3), %v285_v11, %v282_v10  ;;  %s1466_s17 = smov (%p244_p3), [#allocation15] }
  0x22   :  { %v273_v8 = vld [vmem:[#allocation3] sm:$0xff]  ;;  %vm302_vm1 = vcmp.eq.s32.totalorder %v298_v11, %v295_v10  ;;  %v1411_v10 = vmov %v2538_v10  ;;  %v1414_v11 = vmov %v2540_v11 }
  0x23   :  { %274 = vst [vmem:[%s272_s12] sm:$0xff] %v273_v8  ;;  %vm1424_vm3 = vcmp.eq.s32.totalorder %v1414_v11, %v1411_v10  ;;  %v1462_v10 = vmov %v2538_v10  ;;  %v1431_v11 = vmov %v2540_v11 }
  0x24   :  { %v1421_v16 = vld [vmem:[%s1415_s14] sm:$0xff]  ;;  %v1428_v10 = vmov %v2538_v10  ;;  %v1465_v11 = vmov %v2540_v11 }
  0x25   :  { %v286_v12 = vld [vmem:[%s279_s3] sm:$0xff]  ;;  %v1422_v18 = vsel %vm1419_vm2, %v1421_v16, 0.0  ;;  %v1445_v10 = vmov %v2538_v10  ;;  %v1448_v11 = vmov %v2540_v11  ;;  %vm1475_vm4 = vcmp.eq.s32.totalorder %v1465_v11, %v1462_v10 }
  0x26   :  { %v299_v13 = vld [vmem:[%s292_s13] sm:$0xff]  ;;  %v290_v14 = vsel %vm289_vm0, 1.0, %v286_v12  ;;  %v1423_v22 = vmul.f32 %v1422_v18, %v1422_v18 }
  0x27   :  { %v303_v15 = vsel %vm302_vm1, 1.0, %v299_v13  ;;  %291 = vst [vmem:[%s279_s3] sm:$0xff] %v290_v14  ;;  %v1438_v17 = vld [vmem:[%s1432_s15] sm:$0xff] }
  0x28   :  { %304 = vst [vmem:[%s292_s13] sm:$0xff] %v303_v15  ;;  %v1439_v19 = vsel %vm1419_vm2, %v1438_v17, 0.0  ;;  %v1455_v20 = vld [vmem:[%s1449_s16] sm:$0xff]  ;;  %v1425_v29 = vsel %vm1424_vm3, 0.0, %v1423_v22 }
  0x29   :  { %v1440_v23 = vmul.f32 %v1439_v19, %v1439_v19  ;;  %v1456_v24 = vsel %vm1419_vm2, %v1455_v20, 0.0 }
  0x2a   :  { %v1472_v21 = vld [vmem:[%s1466_s17] sm:$0xff]  ;;  %v1457_v26 = vmul.f32 %v1456_v24, %v1456_v24 }
  0x2b   :  { %v1473_v25 = vsel %vm1419_vm2, %v1472_v21, 0.0  ;;  %v1442_v27 = vadd.f32 %v1440_v23, %v1423_v22  ;;  %v1441_v30 = vadd.f32 %v1440_v23, %v1425_v29 }
  0x2c   :  { %v1474_v28 = vmul.f32 %v1473_v25, %v1473_v25 }
  0x2d   :  { %v1459_v31 = vadd.f32 %v1457_v26, %v1442_v27  ;;  %v1458_v32 = vadd.f32 %v1457_v26, %v1441_v30 }
  0x2e   :  { %v1476_v33 = vsel %vm1475_vm4, 0.0, %v1474_v28 }
  0x2f   :  { %v1478_v34 = vadd.f32 %v1474_v28, %v1459_v31  ;;  %v1477_v35 = vadd.f32 %v1476_v33, %v1458_v32 }
  0x31   :  { %1479 = vadd.xlane.f32.xlu0 %v1478_v34 }
  0x35   :  { %1487 = vadd.xlane.f32.xlu0 %v1477_v35 }
  0xba   :  { %v1480_v36 = vpop.xlane.xlu0 %1479 }
  0xbb   :  { %v1481_v37 = vrot.slane %v1480_v36, 4 }
  0xbd   :  { %v1482_v38 = vadd.f32 %v1481_v37, %v1480_v36 }
  0xbe   :  { %v1488_v39 = vpop.xlane.xlu0 %1487 }
  0xbf   :  { %v1483_v40 = vrot.slane %v1482_v38, 2  ;;  %v1489_v41 = vrot.slane %v1488_v39, 4 }
  0xc1   :  { %v1490_v42 = vadd.f32 %v1489_v41, %v1488_v39  ;;  %v1484_v43 = vadd.f32 %v1483_v40, %v1482_v38 }
  0xc3   :  { %v1491_v44 = vrot.slane %v1490_v42, 2  ;;  %v1485_v46 = vrot.slane %v1484_v43, 1 }
  0xc5   :  { %v1492_v45 = vadd.f32 %v1491_v44, %v1490_v42  ;;  %v1486_v49 = vadd.f32 %v1485_v46, %v1484_v43 }
  0xc7   :  { %v1493_v47 = vrot.slane %v1492_v45, 1 }
  0xc9   :  { %v1494_v48 = vadd.f32 %v1493_v47, %v1492_v45 }
  0xcb   :  { %1670 = vpush %v1494_v48 }
  0xcc   :  { %1672 = vpush %v1486_v49 }
  0xfc   :  { %s1671_s18 = spop %1670 }
  0xfd   :  { %s1673_s19 = spop %1672 }
  0xfe   :  { %s1497_s20 = smul.f32 1e-10, %s1673_s19 }
 0x100   :  { %p1498_p4 = scmp.le.f32.partialorder %s1671_s18, %s1497_s20 }
 0x101   :  { %s2564_s0 = smov (!%p1498_p4), 0  }
 0x102   :  { %1501 = sbr.rel (%p1498_p4) target bundleno = 940 (0x3ac), region = 440 }
 0x107 LB: > { %s2569_s21 = smov 0   ;;  %s2423_s0 = sphi %s2564_s0, %s2748_s0  }
 0x108 LB: >> { %s409_s22 = smov [#allocation12]  ;;  %v413_v10 = vmov %v2538_v10  ;;  %v416_v11 = vmov %v2540_v11  ;;  %s429_s23 = smov [#allocation13]  ;;  %vm732_vm14 = vcmp.eq.s32.totalorder %v2540_v11, 0  ;;  %vm744_vm15 = vcmp.eq.s32.totalorder %v2540_v11, 7  ;;  %s2427_s21 = sphi %s2569_s21, %s408_s21  }
 0x109   : >> { %v433_v10 = vmov %v2538_v10  ;;  %v436_v11 = vmov %v2540_v11  ;;  %v417_v50 = vld [vmem:[%s409_s22] sm:$0xff]  ;;  %vm420_vm5 = vcmp.eq.s32.totalorder %v416_v11, %v413_v10  ;;  %s449_s24 = smov [#allocation15]  ;;  %s410_s25 = smov [#allocation16] }
 0x10a   : >> { %vm440_vm6 = vcmp.eq.s32.totalorder %v436_v11, %v433_v10  ;;  %v453_v10 = vmov %v2538_v10  ;;  %v456_v11 = vmov %v2540_v11  ;;  %v421_v51 = vsel %vm420_vm5, %v417_v50, 0.0  ;;  %v437_v52 = vld [vmem:[%s429_s23] sm:$0xff]  ;;  %s430_s1 = smov [#allocation17]  ;;  %s450_s26 = smov [#allocation18] }
 0x10b   : >> { %vm460_vm7 = vcmp.eq.s32.totalorder %v456_v11, %v453_v10  ;;  %v422_v53 = vrot.slane %v421_v51, 4  ;;  %v441_v54 = vsel %vm440_vm6, %v437_v52, 0.0  ;;  %v457_v55 = vld [vmem:[%s449_s24] sm:$0xff]  ;;  %s473_s27 = smov [#allocation17]  ;;  %s471_s28 = smov [#allocation16]  ;;  %v522_v10 = vmov %v2538_v10 }
 0x10c   : >> { %v442_v56 = vrot.slane %v441_v54, 4  ;;  %v461_v57 = vsel %vm460_vm7, %v457_v55, 0.0  ;;  %s475_s29 = smov [#allocation18]  ;;  %s510_s30 = smov [#allocation19]  ;;  %v525_v11 = vmov %v2540_v11  ;;  %v537_v10 = vmov %v2538_v10 }
 0x10d   : >> { %v423_v58 = vadd.f32 %v422_v53, %v421_v51  ;;  %v462_v59 = vrot.slane %v461_v57, 4  ;;  %s512_s2 = smov [#allocation20]  ;;  %s469_s10 = smov [#allocation21]  ;;  %v540_v11 = vmov %v2540_v11  ;;  %vm527_vm12 = vcmp.eq.s32.totalorder %v525_v11, %v522_v10 }
 0x10e   : >> { %v443_v60 = vadd.f32 %v442_v56, %v441_v54  ;;  %s470_s11 = smov [#allocation22]  ;;  %s514_s10 = smov %s469_s10  ;;  %vm542_vm13 = vcmp.eq.s32.totalorder %v540_v11, %v537_v10  ;;  %v635_v10 = vmov %v2538_v10  ;;  %v638_v11 = vmov %v2540_v11 }
 0x10f   : >> { %v424_v61 = vrot.slane %v423_v58, 2  ;;  %v463_v62 = vadd.f32 %v462_v59, %v461_v57  ;;  %s516_s11 = smov %s470_s11  ;;  %s518_s12 = smov [#allocation21]  ;;  %v608_v10 = vmov %v2538_v10  ;;  %v611_v11 = vmov %v2540_v11 }
 0x110   : >> { %v444_v63 = vrot.slane %v443_v60, 2  ;;  %s533_s3 = smov [#allocation22]  ;;  %s531_s13 = smov [#allocation23]  ;;  %v649_v10 = vmov %v2538_v10  ;;  %v652_v11 = vmov %v2540_v11  ;;  %vm642_vm0 = vcmp.eq.s32.totalorder %v638_v11, %v635_v10 }
 0x111   : >> { %v425_v0 = vadd.f32 %v424_v61, %v423_v58  ;;  %v464_v1 = vrot.slane %v463_v62, 2  ;;  %s548_s14 = smov [#allocation23]  ;;  %s2584_s15 = smov [#allocation12]  ;;  %v622_v10 = vmov %v2538_v10  ;;  %v625_v11 = vmov %v2540_v11 }
 0x112   : >> { %v445_v2 = vadd.f32 %v444_v63, %v443_v60  ;;  %s546_s16 = smov [#allocation24]  ;;  %s2586_s17 = smov [#allocation13]  ;;  %v556_v49 = vld [vmem:[%s2584_s15] sm:$0xff]  ;;  %vm616_vm1 = vcmp.eq.s32.totalorder %v611_v11, %v608_v10  ;;  %vm657_vm3 = vcmp.eq.s32.totalorder %v652_v11, %v649_v10  ;;  %vm629_vm4 = vcmp.eq.s32.totalorder %v625_v11, %v622_v10 }
 0x113   : >> { %v426_v3 = vrot.slane %v425_v0, 1  ;;  %v465_v4 = vadd.f32 %v464_v1, %v463_v62  ;;  %s2588_s18 = smov [#allocation15]  ;;  %s772_s19 = smov [#allocation23]  ;;  %v557_v50 = vld [vmem:[%s2586_s17] sm:$0xff]  ;;  %vm671_vm5 = vcmp.eq.s32.totalorder %v2538_v10, 0  ;;  %vm675_vm6 = vcmp.eq.s32.totalorder %v2538_v10, 1 }
 0x114   : >> { %v446_v5 = vrot.slane %v445_v2, 1  ;;  %s2590_s20 = smov [#allocation8]  ;;  %s2592_s22 = smov [#allocation9]  ;;  %v559_v51 = vld [vmem:[%s2588_s18] sm:$0xff]  ;;  %vm688_vm7 = vcmp.eq.s32.totalorder %v2538_v10, 7 }
 0x115   : >> { %v427_v6 = vadd.f32 %v426_v3, %v425_v0  ;;  %v466_v7 = vrot.slane %v465_v4, 1  ;;  %s2594_s23 = smov [#allocation10]  ;;  %s2597_s24 = smov [#allocation11]  ;;  %v780_v52 = vld [vmem:[%s2590_s20] sm:$0xff] }
 0x116   : >> { %v447_v8 = vadd.f32 %v446_v5, %v445_v2  ;;  %v781_v53 = vld [vmem:[%s2592_s22] sm:$0xff]  ;;  %s408_s21 = sadd.s32 1, %s2427_s21  }
 0x117   : >> { %428 = vst [vmem:[%s410_s25] sm:$0x1] %v427_v6  ;;  %v467_v9 = vadd.f32 %v466_v7, %v465_v4  ;;  %s2599_s25 = smov [#allocation14]  ;;  %v782_v56 = vld [vmem:[%s2594_s23] sm:$0xff]  ;;  %p405_p5 = scmp.ge.s32.totalorder %s408_s21, 15  }
 0x118   : >> { %448 = vst [vmem:[%s430_s1] sm:$0x1] %v447_v8  ;;  %v783_v57 = vld [vmem:[%s2597_s24] sm:$0xff]  ;;  %s550_s1 = smov [#allocation24]  ;;  %v309_v10 = vmov (%p405_p5), %v2538_v10  ;;  %v312_v11 = vmov (%p405_p5), %v2540_v11 }
 0x119   : >> { %468 = vst [vmem:[%s450_s26] sm:$0x1] %v467_v9  ;;  %s774_s26 = smov [#allocation24]  ;;  %v558_v58 = vld [vmem:[%s2599_s25] sm:$0xff]  ;;  %v362_v10 = vmov (%p405_p5), %v2538_v10 }
 0x11e   : >> { %v472_v14 = vld [vmem:[%s471_s28] sm:$0xff]  ;;  %s801_s28 = smov [#allocation10] }
 0x11f   : >> { %v474_v12 = vld [vmem:[%s473_s27] sm:$0xff]  ;;  %v495_v29 = vand.u32 2147483647, %v472_v14  ;;  %s800_s27 = smov [#allocation8] }
 0x120   : >> { %v478_v13 = vmul.f32 2.0, %v474_v12  ;;  %v476_v15 = vld [vmem:[%s475_s29] sm:$0xff]  ;;  %v496_v32 = vand.u32 2147483647, %v474_v12  ;;  %s576_s29 = smov [#allocation21] }
 0x121   : >> { %v477_v16 = vsub.f32 %v476_v15, %v472_v14  ;;  %v497_v30 = vand.u32 2147483647, %v476_v15 }
 0x122   : >> { %2149 = vrcp.f32 %v478_v13 }
 0x123   : >> { %v498_v31 = vmin.f32 %v495_v29, %v497_v30 }
 0x125   : >> { %v499_v33 = vmul.f32 1.1920929e-08, %v498_v31 }
 0x127   : >> { %vm500_vm11 = vcmp.le.f32.partialorder %v496_v32, %v499_v33 }
 0x12f   : >> { %v2150_v17 = vpop.eup %2149 }
 0x130   : >> { %v480_v18 = vmul.f32 %v2150_v17, %v477_v16 }
 0x132   : >> { %v482_v19 = vmul.f32 %v480_v18, %v480_v18  ;;  %vm481_vm10 = vcmp.ge.f32.partialorder %v480_v18, 0.0 }
 0x134   : >> { %v483_v20 = vadd.f32 1.0, %v482_v19 }
 0x136   : >> { %2151 = vrsqrt.f32 %v483_v20  ;;  %vm486_vm8 = vcmp.eq.f32.partialorder %v483_v20, inf  ;;  %v489_v22 = vand.u32 2147483648, %v483_v20  ;;  %vm488_vm9 = vcmp.eq.f32.partialorder %v483_v20, 0.0 }
 0x143   : >> { %v2152_v21 = vpop.eup %2151 }
 0x144   : >> { %v485_v23 = vmul.f32 %v2152_v21, %v483_v20 }
 0x146   : >> { %v487_v24 = vsel %vm486_vm8, %v483_v20, %v485_v23  ;;  %vm324_vm8 = vcmp.eq.s32.totalorder (%p405_p5), %v312_v11, %v309_v10  ;;  %v365_v11 = vmov (%p405_p5), %v2540_v11  ;;  %v328_v10 = vmov (%p405_p5), %v2538_v10 }
 0x147   : >> { %v490_v25 = vsel %vm488_vm9, %v489_v22, %v487_v24  ;;  %v331_v11 = vmov (%p405_p5), %v2540_v11  ;;  %v345_v10 = vmov (%p405_p5), %v2538_v10  ;;  %vm377_vm9 = vcmp.eq.s32.totalorder (%p405_p5), %v365_v11, %v362_v10 }
 0x148   : >> { %v491_v26 = vxor.u32 2147483648, %v490_v25  ;;  %v348_v11 = vmov (%p405_p5), %v2540_v11 }
 0x14a   : >> { %v492_v27 = vsel %vm481_vm10, %v490_v25, %v491_v26 }
 0x14b   : >> { %v493_v28 = vadd.f32 %v492_v27, %v480_v18 }
 0x14d   : >> { %2153 = vrcp.f32 %v493_v28 }
 0x15a   : >> { %v2154_v34 = vpop.eup %2153 }
 0x15b   : >> { %v501_v35 = vsel %vm500_vm11, 0.0, %v2154_v34 }
 0x15c   : >> { %v502_v36 = vmul.f32 %v501_v35, %v501_v35  ;;  %v506_v37 = vmul.f32 %v501_v35, %v474_v12 }
 0x15e   : >> { %v503_v38 = vadd.f32 1.0, %v502_v36  ;;  %v507_v39 = vsub.f32 %v472_v14, %v506_v37  ;;  %v509_v40 = vadd.f32 %v506_v37, %v476_v15 }
 0x160   : >> { %2155 = vrsqrt.f32 %v503_v38  ;;  %511 = vst [vmem:[%s510_s30] sm:$0xff] %v507_v39  ;;  %513 = vst [vmem:[%s512_s2] sm:$0xff] %v509_v40  ;;  %s578_s30 = smov [#allocation22]  ;;  %s2616_s2 = smov [#allocation9] }
 0x16d   : >> { %v2156_v41 = vpop.eup %2155 }
 0x16e   : >> { %515 = vst [vmem:[%s514_s10] sm:$0xff] %v2156_v41  ;;  %v505_v42 = vmul.f32 %v2156_v41, %v501_v35  ;;  %s2618_s10 = smov [#allocation11] }
 0x170   : >> { %517 = vst [vmem:[%s516_s11] sm:$0xff] %v505_v42  ;;  %s2622_s11 = smov [#allocation14] }
 0x175   : >> { %v519_v43 = vld [vmem:[%s518_s12] ss:$0 sm:$0xff]  ;;  %s2624_s12 = smov [#allocation15] }
 0x176   : >> { %v528_v44 = vsel %vm527_vm12, %v519_v43, 0.0  ;;  %v577_v23 = vld [vmem:[%s576_s29] ss:$0 sm:$0xff]  ;;  %s749_s29 = smov [#allocation15] }
 0x177   : >> { %529 = vadd.xlane.f32.xlu0 %v528_v44  ;;  %v534_v45 = vld [vmem:[%s533_s3] ss:$0 sm:$0xff]  ;;  %s2626_s3 = smov [#allocation12] }
 0x178   : >> { %v543_v46 = vsel %vm542_vm13, %v534_v45, 0.0  ;;  %v579_v24 = vld [vmem:[%s578_s30] ss:$0 sm:$0xff]  ;;  %s848_s30 = sadd.s32 (%p405_p5), 1, %s2423_s0  }
 0x179   : > { %p401_p6 = scmp.ge.s32.totalorder (%p405_p5), %s848_s30, 15  ;;  %s2748_s0 = smov (%p405_p5), %s848_s30 }
 0x17b   : >> { %544 = vadd.xlane.f32.xlu0 %v543_v46 }
 0x200   : >> { %v530_v47 = vpop.xlane.xlu0 %529 }
 0x201   : >> { %532 = vst [vmem:[%s531_s13] sm:$0xff] %v530_v47  ;;  %s2628_s13 = smov [#allocation13] }
 0x204   : >> { %v545_v48 = vpop.xlane.xlu0 %544 }
 0x205   : >> { %547 = vst [vmem:[%s546_s16] sm:$0xff] %v545_v48  ;;  %s632_s16 = smov [#allocation14] }
 0x208   : >> { %v549_v54 = vld [vmem:[%s548_s14] sm:$0xff]  ;;  %s605_s14 = smov [#allocation19] }
 0x209   : >> { %v773_v55 = vld [vmem:[%s772_s19] sm:$0xff]  ;;  %v560_v59 = vmul.f32 %v556_v49, %v549_v54  ;;  %v563_v60 = vmul.f32 %v557_v50, %v549_v54  ;;  %v570_v61 = vmul.f32 %v559_v51, %v549_v54  ;;  %v567_v4 = vmul.f32 %v558_v58, %v549_v54  ;;  %s619_s19 = smov [#allocation13] }
 0x20a   : >> { %v784_v62 = vmul.f32 %v780_v52, %v773_v55  ;;  %v787_v63 = vmul.f32 %v781_v53, %v773_v55  ;;  %v791_v0 = vmul.f32 %v782_v56, %v773_v55  ;;  %v794_v1 = vmul.f32 %v783_v57, %v773_v55  ;;  %v612_v55 = vld [vmem:[%s605_s14] ss:$0 sm:$0xff] }
 0x20c   : >> { %v551_v2 = vld [vmem:[%s550_s1] sm:$0xff]  ;;  %s2665_s1 = smov [#allocation15] }
 0x20d   : >> { %v775_v3 = vld [vmem:[%s774_s26] sm:$0xff]  ;;  %v564_v5 = vmul.f32 %v559_v51, %v551_v2  ;;  %v566_v6 = vmul.f32 %v556_v49, %v551_v2  ;;  %v569_v7 = vmul.f32 %v557_v50, %v551_v2  ;;  %v561_v14 = vmul.f32 %v558_v58, %v551_v2  ;;  %s724_s26 = smov [#allocation12] }
 0x20e   : >> { %v785_v8 = vmul.f32 %v782_v56, %v775_v3  ;;  %v788_v9 = vmul.f32 %v783_v57, %v775_v3  ;;  %v790_v12 = vmul.f32 %v780_v52, %v775_v3  ;;  %v793_v13 = vmul.f32 %v781_v53, %v775_v3 }
 0x20f   : >> { %v565_v15 = vsub.f32 %v563_v60, %v564_v5  ;;  %v571_v16 = vadd.f32 %v570_v61, %v569_v7  ;;  %v568_v18 = vadd.f32 %v567_v4, %v566_v6  ;;  %v562_v22 = vsub.f32 %v560_v59, %v561_v14 }
 0x210   : >> { %v786_v17 = vsub.f32 %v784_v62, %v785_v8  ;;  %v789_v19 = vsub.f32 %v787_v63, %v788_v9  ;;  %v792_v20 = vadd.f32 %v791_v0, %v790_v12  ;;  %v795_v21 = vadd.f32 %v794_v1, %v793_v13 }
 0x211   : >> { %573 = vst [vmem:[%s2586_s17] sm:$0xff] %v565_v15  ;;  %575 = vst [vmem:[%s2588_s18] sm:$0xff] %v571_v16  ;;  %s604_s17 = smov [#allocation12]  ;;  %s645_s18 = smov [#allocation15] }
 0x212   : >> { %796 = vst [vmem:[%s2590_s20] sm:$0xff] %v786_v17  ;;  %574 = vst [vmem:[%s2599_s25] sm:$0xff] %v568_v18  ;;  %s2662_s20 = smov [#allocation14]  ;;  %s2463_s25 = smov 127  }
 0x213   : >> { %797 = vst [vmem:[%s2592_s22] sm:$0xff] %v789_v19  ;;  %798 = vst [vmem:[%s2594_s23] sm:$0xff] %v792_v20  ;;  %s660_s22 = smov [#allocation12]  ;;  %s2462_s23 = smov 1  }
 0x214   : >> { %799 = vst [vmem:[%s2597_s24] sm:$0xff] %v795_v21  ;;  %572 = vst [vmem:[%s2584_s15] sm:$0xff] %v562_v22  ;;  %s646_s15 = smov [#allocation20]  ;;  %s661_s24 = smov [#allocation13] }
 0x215   : >> { %v653_v56 = vld [vmem:[%s646_s15] ss:$0 sm:$0xff] }
 0x218   : >> { %v587_v39 = vld [vmem:[%s2624_s12] sm:$0xff] }
 0x219   : >> { %v802_v25 = vld [vmem:[%s800_s27] ss:$0 sm:$0xff]  ;;  %v1641_v27 = vld [vmem:[%s800_s27 + $0x7] ss:$0 sm:$0xff]  ;;  %v595_v42 = vmul.f32 %v587_v39, %v579_v24  ;;  %v598_v46 = vmul.f32 %v587_v39, %v577_v23 }
 0x21a   : >> { %v1640_v26 = vld [vmem:[%s800_s27 - $0x1] sm:$0xfe]  ;;  %v1645_v34 = vld [vmem:[%s2616_s2 + $0x7] ss:$0 sm:$0xff] }
 0x21b   : >> { %v809_v28 = vsel %vm732_vm14, %v802_v25, %v1640_v26  ;;  %v813_v29 = vld [vmem:[%s801_s28] ss:$0 sm:$0xff]  ;;  %v1643_v30 = vld [vmem:[%s801_s28 + $0x1] sm:$0x7f] }
 0x21c   : >> { %v826_v31 = vld [vmem:[%s2616_s2] ss:$0 sm:$0xff]  ;;  %812 = vst [vmem:[%s800_s27] sm:$0xff] %v809_v28  ;;  %v821_v32 = vsel %vm744_vm15, %v1641_v27, %v1643_v30  ;;  %v1647_v37 = vld [vmem:[%s2618_s10 + $0x1] sm:$0x7f] }
 0x21d   : >> { %v1644_v33 = vld [vmem:[%s2616_s2 - $0x1] sm:$0xfe]  ;;  %1642 = vst [vmem:[%s800_s27 + $0x1] sm:$0x1] %v813_v29  ;;  %823 = vst [vmem:[%s801_s28] sm:$0xff] %v821_v32  ;;  %v845_v40 = vsel %vm744_vm15, %v1645_v34, %v1647_v37  ;;  %s748_s27 = smov [#allocation13]  ;;  %s725_s28 = smov [#allocation14] }
 0x21e   : >> { %v837_v35 = vld [vmem:[%s2618_s10] ss:$0 sm:$0xff]  ;;  %v833_v36 = vsel %vm732_vm14, %v826_v31, %v1644_v33 }
 0x21f   : >> { %v586_v38 = vld [vmem:[%s2622_s11] sm:$0xff]  ;;  %836 = vst [vmem:[%s2616_s2] sm:$0xff] %v833_v36  ;;  %847 = vst [vmem:[%s2618_s10] sm:$0xff] %v845_v40  ;;  %s332_s10 = smov (%p405_p5), [#allocation13] }
 0x220   : >> { %v594_v41 = vmul.f32 %v586_v38, %v577_v23  ;;  %v597_v43 = vmul.f32 %v586_v38, %v579_v24  ;;  %v584_v44 = vld [vmem:[%s2626_s3] sm:$0xff]  ;;  %1646 = vst [vmem:[%s2616_s2 + $0x1] sm:$0x1] %v837_v35  ;;  %s313_s2 = smov (%p405_p5), [#allocation12] }
 0x221   : >> { %v585_v45 = vld [vmem:[%s2628_s13] sm:$0xff]  ;;  %v588_v47 = vmul.f32 %v584_v44, %v577_v23  ;;  %v591_v49 = vmul.f32 %v584_v44, %v579_v24 }
 0x222   : >> { %v589_v48 = vmul.f32 %v585_v45, %v579_v24  ;;  %v596_v50 = vsub.f32 %v594_v41, %v595_v42  ;;  %v592_v51 = vmul.f32 %v585_v45, %v577_v23  ;;  %v599_v52 = vadd.f32 %v598_v46, %v597_v43 }
 0x224   : >> { %v590_v53 = vsub.f32 %v588_v47, %v589_v48  ;;  %602 = vst [vmem:[%s2622_s11] sm:$0xff] %v596_v50  ;;  %v593_v54 = vadd.f32 %v592_v51, %v591_v49  ;;  %603 = vst [vmem:[%s2624_s12] sm:$0xff] %v599_v52  ;;  %s349_s11 = smov (%p405_p5), [#allocation14]  ;;  %s366_s12 = smov (%p405_p5), [#allocation15] }
 0x226   : >> { %600 = vst [vmem:[%s2626_s3] sm:$0xff] %v590_v53  ;;  %601 = vst [vmem:[%s2628_s13] sm:$0xff] %v593_v54 }
 0x22b   : >> { %v639_v57 = vld [vmem:[%s632_s16] sm:$0xff] }
 0x22c   : >> { %v643_v58 = vsel %vm642_vm0, 0.0, %v639_v57  ;;  %v654_v60 = vld [vmem:[%s645_s18] sm:$0xff] }
 0x22d   : >> { %v613_v59 = vld [vmem:[%s604_s17] sm:$0xff]  ;;  %644 = vst [vmem:[%s632_s16] sm:$0xff] %v643_v58  ;;  %v658_v63 = vsel %vm657_vm3, %v653_v56, %v654_v60 }
 0x22e   : >> { %v617_v61 = vsel %vm616_vm1, %v612_v55, %v613_v59  ;;  %v626_v62 = vld [vmem:[%s619_s19] sm:$0xff]  ;;  %659 = vst [vmem:[%s645_s18] sm:$0xff] %v658_v63 }
 0x22f   : >> { %618 = vst [vmem:[%s604_s17] sm:$0xff] %v617_v61  ;;  %v630_v0 = vsel %vm629_vm4, 0.0, %v626_v62 }
 0x230   : >> { %631 = vst [vmem:[%s619_s19] sm:$0xff] %v630_v0 }
 0x234   : >> { %v698_v1 = vld [vmem:[%s2662_s20] sm:$0xff] }
 0x235   : >> { %699 = vrot.lane.b32.xlu0 %v698_v1, %s2462_s23  ;;  %v694_v4 = vld [vmem:[%s2665_s1] sm:$0xff] }
 0x236   : >> { %v666_v2 = vld [vmem:[%s660_s22] sm:$0xff] }
 0x237   : >> { %667 = vrot.lane.b32.xlu1 %v666_v2, %s2462_s23  ;;  %v662_v3 = vld [vmem:[%s661_s24] sm:$0xff] }
 0x23b   : >> { %663 = vrot.lane.b32.xlu1 %v662_v3, %s2462_s23 }
 0x23f   : >> { %684 = vrot.lane.b32.xlu1 %v662_v3, %s2463_s25 }
 0x243   : >> { %695 = vrot.lane.b32.xlu1 %v694_v4, %s2462_s23 }
 0x247   : >> { %716 = vrot.lane.b32.xlu1 %v694_v4, %s2463_s25 }
 0x2a7   : >> { %v700_v13 = vpop.permute.xlu0 %699 }
 0x2a8   : >> { %v704_v15 = vsel %vm671_vm5, %v698_v1, %v700_v13 }
 0x2a9   : >> { %v668_v5 = vpop.permute.xlu1 %667 }
 0x2aa   : >> { %v672_v6 = vsel %vm671_vm5, %v666_v2, %v668_v5 }
 0x2ad   : >> { %v664_v7 = vpop.permute.xlu1 %663 }
 0x2ae   : >> { %v676_v8 = vsel %vm675_vm6, %v664_v7, %v672_v6 }
 0x2af   : >> { %v682_v9 = vsel %vm1419_vm2, %v676_v8, 0.0 }
 0x2b0   : >> { %690 = vst [vmem:[%s660_s22] sm:$0xff] %v682_v9 }
 0x2b1   : >> { %v685_v12 = vpop.permute.xlu1 %684 }
 0x2b2   : >> { %v689_v14 = vsel %vm688_vm7, %v666_v2, %v685_v12 }
 0x2b3   : >> { %691 = vst [vmem:[%s661_s24] sm:$0xff] %v689_v14 }
 0x2b5   : >> { %v696_v16 = vpop.permute.xlu1 %695 }
 0x2b6   : >> { %v708_v17 = vsel %vm675_vm6, %v696_v16, %v704_v15 }
 0x2b7   : >> { %v726_v18 = vld [vmem:[%s724_s26] ss:$0 sm:$0xff]  ;;  %v1633_v20 = vld [vmem:[%s724_s26 + $0x7] ss:$0 sm:$0xff]  ;;  %v714_v22 = vsel %vm1419_vm2, %v708_v17, 0.0 }
 0x2b8   : >> { %v1632_v19 = vld [vmem:[%s724_s26 - $0x1] sm:$0xfe]  ;;  %722 = vst [vmem:[%s2662_s20] sm:$0xff] %v714_v22 }
 0x2b9   : >> { %v733_v21 = vsel %vm732_vm14, %v726_v18, %v1632_v19  ;;  %v717_v23 = vpop.permute.xlu1 %716 }
 0x2ba   : >> { %736 = vst [vmem:[%s724_s26] sm:$0xff] %v733_v21  ;;  %v750_v24 = vld [vmem:[%s748_s27] ss:$0 sm:$0xff]  ;;  %v1637_v26 = vld [vmem:[%s748_s27 + $0x7] ss:$0 sm:$0xff]  ;;  %v721_v27 = vsel %vm688_vm7, %v698_v1, %v717_v23 }
 0x2bb   : >> { %v1636_v25 = vld [vmem:[%s748_s27 - $0x1] sm:$0xfe]  ;;  %723 = vst [vmem:[%s2665_s1] sm:$0xff] %v721_v27 }
 0x2bc   : >> { %v757_v28 = vsel %vm732_vm14, %v750_v24, %v1636_v25 }
 0x2bd   : >> { %760 = vst [vmem:[%s748_s27] sm:$0xff] %v757_v28 }
 0x2bf   : >> { %v737_v29 = vld [vmem:[%s725_s28] ss:$0 sm:$0xff]  ;;  %v1635_v30 = vld [vmem:[%s725_s28 + $0x1] sm:$0x7f] }
 0x2c0   : >> { %1634 = vst [vmem:[%s724_s26 + $0x1] sm:$0x1] %v737_v29  ;;  %v745_v31 = vsel %vm744_vm15, %v1633_v20, %v1635_v30 }
 0x2c1   : >> { %747 = vst [vmem:[%s725_s28] sm:$0xff] %v745_v31 }
 0x2c2   : >> { %v761_v32 = vld [vmem:[%s749_s29] ss:$0 sm:$0xff]  ;;  %v1639_v33 = vld [vmem:[%s749_s29 + $0x1] sm:$0x7f] }
 0x2c3   : >> { %1638 = vst [vmem:[%s748_s27 + $0x1] sm:$0x1] %v761_v32  ;;  %v769_v34 = vsel %vm744_vm15, %v1637_v26, %v1639_v33 }
 0x2c4   : >> { %771 = vst [vmem:[%s749_s29] sm:$0xff] %v769_v34  ;;  %407 = sbr.rel (!%p405_p5) target bundleno = 264 (0x108), region = 435 }
 0x2c7   : > { %v319_v35 = vld [vmem:[%s313_s2] sm:$0xff] (%p405_p5) }
 0x2c8   : > { %v320_v37 = vsel (%p405_p5), %vm1419_vm2, %v319_v35, 0.0  ;;  %v355_v39 = vld [vmem:[%s349_s11] sm:$0xff] (%p405_p5) }
 0x2c9   : > { %v321_v41 = vmul.f32 %v320_v37, %v320_v37  ;;  %v356_v43 = vsel %vm1419_vm2, %v355_v39, 0.0 }
 0x2ca   : > { %v338_v36 = vld [vmem:[%s332_s10] sm:$0xff]  ;;  %v357_v45 = vmul.f32 %v356_v43, %v356_v43 }
 0x2cb   : > { %v339_v38 = vsel %vm1419_vm2, %v338_v36, 0.0  ;;  %v372_v40 = vld [vmem:[%s366_s12] sm:$0xff]  ;;  %v325_v48 = vsel %vm324_vm8, 0.0, %v321_v41 }
 0x2cc   : > { %v340_v42 = vmul.f32 %v339_v38, %v339_v38  ;;  %v373_v44 = vsel %vm1419_vm2, %v372_v40, 0.0 }
 0x2cd   : > { %v374_v47 = vmul.f32 %v373_v44, %v373_v44 }
 0x2ce   : > { %v342_v46 = vadd.f32 %v340_v42, %v321_v41  ;;  %v341_v49 = vadd.f32 %v340_v42, %v325_v48 }
 0x2cf   : > { %v378_v52 = vsel %vm377_vm9, 0.0, %v374_v47 }
 0x2d0   : > { %v359_v50 = vadd.f32 %v357_v45, %v342_v46  ;;  %v358_v51 = vadd.f32 %v357_v45, %v341_v49 }
 0x2d2   : > { %v380_v53 = vadd.f32 %v374_v47, %v359_v50  ;;  %v379_v54 = vadd.f32 %v378_v52, %v358_v51 }
 0x2d4   : > { %381 = vadd.xlane.f32.xlu0 %v380_v53 }
 0x2d8   : > { %389 = vadd.xlane.f32.xlu0 %v379_v54 }
 0x35d   : > { %v382_v55 = vpop.xlane.xlu0 %381 }
 0x35e   : > { %v383_v56 = vrot.slane %v382_v55, 4 }
 0x360   : > { %v384_v57 = vadd.f32 %v383_v56, %v382_v55 }
 0x361   : > { %v390_v58 = vpop.xlane.xlu0 %389 }
 0x362   : > { %v385_v59 = vrot.slane %v384_v57, 2  ;;  %v391_v60 = vrot.slane %v390_v58, 4 }
 0x364   : > { %v392_v61 = vadd.f32 %v391_v60, %v390_v58  ;;  %v386_v62 = vadd.f32 %v385_v59, %v384_v57 }
 0x366   : > { %v393_v63 = vrot.slane %v392_v61, 2  ;;  %v387_v1 = vrot.slane %v386_v62, 1 }
 0x368   : > { %v394_v0 = vadd.f32 %v393_v63, %v392_v61  ;;  %v388_v4 = vadd.f32 %v387_v1, %v386_v62 }
 0x36a   : > { %v395_v2 = vrot.slane %v394_v0, 1 }
 0x36c   : > { %v396_v3 = vadd.f32 %v395_v2, %v394_v0 }
 0x36e   : > { %1674 = vpush %v396_v3 }
 0x36f   : > { %1676 = vpush %v388_v4 }
 0x39f   : > { %s1675_s21 = spop %1674 }
 0x3a0   : > { %s1677_s3 = spop %1676 }
 0x3a1   : > { %s399_s13 = smul.f32 1e-10, %s1677_s3 }
 0x3a3   : > { %p400_p7 = scmp.le.f32.partialorder %s1675_s21, %s399_s13 }
 0x3a5   : > { %p402_p8 = por %p401_p6, %p400_p7 }
 0x3a7   :  { %850 = sbr.rel (!%p402_p8) target bundleno = 263 (0x107), region = 446 }
 0x3ac PF:  { %s851_s14 = smov [#allocation12]  ;;  %v855_v10 = vmov %v2538_v10  ;;  %v858_v11 = vmov %v2540_v11  ;;  %s871_s15 = smov [#allocation15] }
 0x3ad   :  { %v875_v10 = vmov %v2538_v10  ;;  %v878_v11 = vmov %v2540_v11  ;;  %v859_v5 = vld [vmem:[%s851_s14] sm:$0xff]  ;;  %vm862_vm10 = vcmp.eq.s32.totalorder %v858_v11, %v855_v10  ;;  %s852_s0 = smov [#allocation4]  ;;  %s872_s16 = smov [#allocation6] }
 0x3ae   :  { %vm882_vm11 = vcmp.eq.s32.totalorder %v878_v11, %v875_v10  ;;  %v863_v6 = vsel %vm862_vm10, %v859_v5, 0.0  ;;  %v879_v7 = vld [vmem:[%s871_s15] sm:$0xff]  ;;  %s2429_s24 = smov %s2744_s6   ;;  %s2433_s25 = smov [#allocation8]  }
 0x3af   :  { %v864_v8 = vrot.slane %v863_v6, 4  ;;  %v883_v9 = vsel %vm882_vm11, %v879_v7, 0.0 }
 0x3b0   :  { %v884_v12 = vrot.slane %v883_v9, 4 }
 0x3b1   :  { %v865_v13 = vadd.f32 %v864_v8, %v863_v6 }
 0x3b2   :  { %v885_v14 = vadd.f32 %v884_v12, %v883_v9 }
 0x3b3   :  { %v866_v15 = vrot.slane %v865_v13, 2 }
 0x3b4   :  { %v886_v16 = vrot.slane %v885_v14, 2 }
 0x3b5   :  { %v867_v17 = vadd.f32 %v866_v15, %v865_v13 }
 0x3b6   :  { %v887_v18 = vadd.f32 %v886_v16, %v885_v14 }
 0x3b7   :  { %v868_v19 = vrot.slane %v867_v17, 1 }
 0x3b8   :  { %v888_v20 = vrot.slane %v887_v18, 1 }
 0x3b9   :  { %v869_v21 = vadd.f32 %v868_v19, %v867_v17 }
 0x3ba   :  { %v889_v22 = vadd.f32 %v888_v20, %v887_v18 }
 0x3bb   :  { %870 = vst [vmem:[%s852_s0] sm:$0x1] %v869_v21 }
 0x3bc   :  { %890 = vst [vmem:[%s872_s16] sm:$0x1] %v889_v22 }
 0x3c2   :  { %v895_v10 = vld [vmem:[#allocation4] sm:$0x1] }
 0x3c3   :  { %898 = vst [vmem:[#allocation5] sm:$0x1] %v895_v10  ;;  %v903_v11 = vld [vmem:[#allocation6] sm:$0x1] }
 0x3c4   :  { %906 = vst [vmem:[#allocation7] sm:$0x1] %v903_v11 }
 0x3ca   :  { %v970_v23 = vld [vmem:[#allocation5] sm:$0x1] }
 0x3cb   :  { %971 = vst [vmem:[%s2742_s4] sm:$0x1] %v970_v23  ;;  %v1035_v24 = vld [vmem:[#allocation7] sm:$0x1] }
 0x3cc   :  { %1036 = vst [vmem:[%s2743_s5] sm:$0x1] %v1035_v24 }
 0x3cd LB: > { %v1084_v25 = vld [vmem:[%s2435_s25] sm:$0xff]  ;;  %s1086_s25 = scalar_lea.vmem %s2435_s25, 8   ;;  %s2435_s25 = sphi %s2433_s25, %s1086_s25   ;;  %s2431_s24 = sphi %s2429_s24, %s1087_s24  }
 0x3ce   : > { %1085 = vst [vmem:[%s2431_s24] sm:$0xff] %v1084_v25  ;;  %s1087_s24 = scalar_lea.vmem %s2431_s24, 8   ;;  %p1081_p9 = scmp.gt.s32.totalorder %s1086_s25, [#allocation8] }
 0x3cf   :  { %s2437_s5 = smov (%p1081_p9), %s2745_s7   ;;  %s2441_s26 = smov (%p1081_p9), [#allocation9]  }
 0x3d0   :  { %1083 = sbr.rel (!%p1081_p9) target bundleno = 973 (0x3cd), region = 512 }
 0x3d5 LB: > { %v1147_v26 = vld [vmem:[%s2443_s26] sm:$0xff]  ;;  %s1149_s26 = scalar_lea.vmem %s2443_s26, 8   ;;  %s2443_s26 = sphi %s2441_s26, %s1149_s26   ;;  %s2439_s5 = sphi %s2437_s5, %s1150_s5  }
 0x3d6   : > { %1148 = vst [vmem:[%s2439_s5] sm:$0xff] %v1147_v26  ;;  %s1150_s5 = scalar_lea.vmem %s2439_s5, 8   ;;  %p1144_p10 = scmp.gt.s32.totalorder %s1149_s26, [#allocation9] }
 0x3d7   :  { %s2445_s28 = smov (%p1144_p10), %s2746_s8   ;;  %s2449_s29 = smov (%p1144_p10), [#allocation10]  }
 0x3d8   :  { %1146 = sbr.rel (!%p1144_p10) target bundleno = 981 (0x3d5), region = 534 }
 0x3dd LB: > { %v1210_v27 = vld [vmem:[%s2451_s29] sm:$0xff]  ;;  %s1212_s29 = scalar_lea.vmem %s2451_s29, 8   ;;  %s2451_s29 = sphi %s2449_s29, %s1212_s29   ;;  %s2447_s28 = sphi %s2445_s28, %s1213_s28  }
 0x3de   : > { %1211 = vst [vmem:[%s2447_s28] sm:$0xff] %v1210_v27  ;;  %s1213_s28 = scalar_lea.vmem %s2447_s28, 8   ;;  %p1207_p11 = scmp.gt.s32.totalorder %s1212_s29, [#allocation10] }
 0x3df   :  { %s2453_s2 = smov (%p1207_p11), %s2747_s9   ;;  %s2457_s10 = smov (%p1207_p11), [#allocation11]  }
 0x3e0   :  { %1209 = sbr.rel (!%p1207_p11) target bundleno = 989 (0x3dd), region = 556 }
 0x3e5 LB: > { %v1273_v28 = vld [vmem:[%s2459_s10] sm:$0xff]  ;;  %s1275_s10 = scalar_lea.vmem %s2459_s10, 8   ;;  %s2459_s10 = sphi %s2457_s10, %s1275_s10   ;;  %s2455_s2 = sphi %s2453_s2, %s1276_s2  }
 0x3e6   : > { %1274 = vst [vmem:[%s2455_s2] sm:$0xff] %v1273_v28  ;;  %s1276_s2 = scalar_lea.vmem %s2455_s2, 8   ;;  %p1270_p12 = scmp.gt.s32.totalorder %s1275_s10, [#allocation11] }
 0x3e8   :  { %1272 = sbr.rel (!%p1270_p12) target bundleno = 997 (0x3e5), region = 578 }

// kernel: reverse
= control target key start
LH: loop header
LB: loop body
LE: loop exit
PB: predicated region body
PF: predicated region fallthrough
CT: control target
= control target key end

     0   :  { %v2_v0 = vlaneseq  ;;  %s130_s0 = inlined_call_operand.vmem [shape: f32[15], index: 0, kind: input, shape index: {}]   ;;  %s131_s1 = inlined_call_operand.vmem [shape: f32[15], index: 1, kind: output, shape index: {}]  }
   0x2   :  { %v3_v1 = vsub.s32 14, %v2_v0 }
   0x4   :  { %4 = vset.pattern.permute.xlu0 %v3_v1 }
   0x5   :  { %v46_v2 = vld [vmem:[#allocation1] sm:$0x1]  ;;  %v22_v3 = vld [vmem:[%s130_s0] sm:$0x1]  ;;  %v61_v10 = vshrl.u32 %v2_v0, 7 }
   0x6   :  { %47 = vst [vmem:[#allocation0] sm:$0x1] %v46_v2  ;;  %23 = vst [vmem:[#allocation1 + $0x1] sm:$0x1] %v22_v3 }
   0x7   :  { %vm62_vm0 = vcmp.lt.s32.totalorder %v61_v10, 1 }
   0xd   :  { %v49_v4 = vld [vmem:[#allocation0 + $0x7] ss:$-1 sm:$0xff]  ;;  %v43_v5 = vld [vmem:[#allocation1 + $0x1] sm:$0x1] }
   0xe   :  { %v50_v6 = vrot.slane %v49_v4, 7  ;;  %45 = vst [vmem:[#allocation0 + $0x8] sm:$0x1] %v43_v5 }
  0x10   :  { %51 = vperm.xlu0 %4, %v50_v6  }
  0x15   :  { %v56_v7 = vld [vmem:[#allocation0 + $0xf] ss:$-1 sm:$0xff] }
  0x16   :  { %v57_v8 = vrot.slane %v56_v7, 7 }
  0x18   :  { %58 = vperm.xlu0 %4, %v57_v8  }
  0x8b   :  { %v52_v9 = vpop.permute.xlu0 %51 }
  0x8c   :  { %53 = vst [vmem:[#allocation2] sm:$0xff] %v52_v9 }
  0x93   :  { %v59_v11 = vpop.permute.xlu0 %58 }
  0x94   :  { %63 = vst.msk [vmem:[#allocation2] sm:$0xff] %vm62_vm0, %v59_v11 }
  0x9b   :  { %v68_v12 = vld [vmem:[#allocation2] sm:$0x1] }
  0x9c   :  { %71 = vst [vmem:[#allocation3] sm:$0x1] %v68_v12 }
  0xa3   :  { %v88_v13 = vld [vmem:[#allocation3] sm:$0x1] }
  0xa4   :  { %89 = vst [vmem:[%s131_s1] sm:$0x1] %v88_v13 }

// kernel: custom-call.25
= control target key start
LH: loop header
LB: loop body
LE: loop exit
PB: predicated region body
PF: predicated region fallthrough
CT: control target
= control target key end

     0   :  { %v401_v2 = vmov 0.0   ;;  %s424_s13 = smov 0   ;;  %s508_s0 = inlined_call_operand.vmem [shape: f32[15,15], index: 0, kind: input, shape index: {}]   ;;  %s509_s1 = inlined_call_operand.vmem [shape: f32[15,15], index: 1, kind: output, shape index: {0}]   ;;  %s510_s2 = inlined_call_operand.vmem [shape: f32[15], index: 2, kind: output, shape index: {1}]  }
   0x1   :  { %v34_v0 = vld [vmem:[%s508_s0] sm:$0xff]  ;;  %v36_v1 = vld [vmem:[%s508_s0 + $0x8] sm:$0xff]  ;;  %47 = vst [vmem:[#allocation2] sm:$0x1] %v401_v2 }
   0x2   :  { %42 = vst [vmem:[#allocation1] sm:$0xff] %v34_v0  ;;  %46 = vst [vmem:[#allocation1 + $0x8] sm:$0xff] %v36_v1 }
   0x3 LB: > { %v55_v3 = vlaneseq  ;;  %v433_v6 = vstv %s399_s13  ;;  %s92_s0 = scalar_lea.vmem [#allocation1], %s399_s13  ;;  %s128_s14 = smov [#allocation1]  ;;  %s399_s13 = sphi %s424_s13, %s53_s13  }
   0x4   : > { %s168_s15 = scalar_lea.vmem [#allocation4], %s399_s13  ;;  %s184_s16 = smov [#allocation1] }
   0x5   : > { %v430_v5 = vshrl.u32 %v55_v3, 7  ;;  %v459_v54 = vand.u32 127, %v55_v3  ;;  %s185_s17 = smov [#allocation4] }
   0x7   : > { %vm59_vm0 = vcmp.gt.s32.totalorder %v430_v5, %v433_v6  ;;  %v66_v7 = vadd.s32 8, %v430_v5  ;;  %v131_v5 = vmov %v430_v5  ;;  %vm463_vm14 = vcmp.eq.s32.totalorder %v459_v54, %v433_v6 }
   0x8   : > { %v150_v50 = vadd.s32 8, %v131_v5  ;;  %vm135_vm12 = vcmp.gt.s32.totalorder %v131_v5, %v433_v6  ;;  %v188_v5 = vmov %v430_v5 }
   0x9   : > { %v54_v4 = vld [vmem:[#allocation1] sm:$0xff]  ;;  %v63_v9 = vld [vmem:[#allocation1 + $0x8] sm:$0xff]  ;;  %vm68_vm1 = vcmp.gt.s32.totalorder %v66_v7, %v433_v6  ;;  %vm69_vm2 = vcmp.lt.s32.totalorder %v66_v7, 15  ;;  %v181_v7 = vld [vmem:[#allocation2] ss:$0 sm:$0xff] }
   0xa   : > { %v60_v8 = vsel %vm59_vm0, %v54_v4, 0.0  ;;  %vm70_vm3 = vmand %vm68_vm1, %vm69_vm2  ;;  %v93_v20 = vld [vmem:[%s92_s0] ss:$0 sm:$0xff]  ;;  %vm152_vm10 = vcmp.gt.s32.totalorder %v150_v50, %v433_v6  ;;  %vm153_vm11 = vcmp.lt.s32.totalorder %v150_v50, 15  ;;  %v367_v53 = vld [vmem:[%s128_s14 + $0x8] sm:$0xff]  ;;  %vm221_vm2 = vcmp.gt.s32.totalorder %v459_v54, %v433_v6 }
   0xb   : > { %v61_v10 = vmul.f32 %v60_v8, %v60_v8  ;;  %v71_v11 = vsel %vm70_vm3, %v63_v9, 0.0  ;;  %v94_v21 = vand.u32 2147483647, %v93_v20  ;;  %vm119_vm9 = vcmp.lt.f32.partialorder %v93_v20, 0.0  ;;  %v132_v52 = vld [vmem:[%s128_s14] sm:$0xff]  ;;  %vm154_vm13 = vmand %vm152_vm10, %vm153_vm11 }
   0xc   : > { %v72_v12 = vmul.f32 %v71_v11, %v71_v11  ;;  %v136_v56 = vsel %vm135_vm12, %v132_v52, 0.0  ;;  %v155_v57 = vsel %vm154_vm13, %v367_v53, 0.0 }
   0xd   : > { %v95_v26 = vmax.f32 %v94_v21, 0.0 }
   0xe   : > { %v73_v13 = vadd.f32 %v72_v12, %v61_v10  ;;  %v402_v12 = vmov 1.0  }
  0x10   : > { %v74_v14 = vrot.slane %v73_v13, 4 }
  0x12   : > { %v75_v15 = vadd.f32 %v74_v14, %v73_v13  ;;  %v193_v13 = vadd.s32 8, %v188_v5  ;;  %v191_v14 = vld [vmem:[%s184_s16] sm:$0xff]  ;;  %v212_v5 = vmov %v430_v5 }
  0x13   : > { %vm229_vm0 = vcmp.ge.s32.totalorder %v212_v5, %v433_v6 }
  0x14   : > { %v76_v16 = vrot.slane %v75_v15, 2  ;;  %vm199_vm15 = vcmp.lt.s32.totalorder %v193_v13, 15  ;;  %vm230_vm3 = vmand %vm463_vm14, %vm229_vm0 }
  0x16   : > { %v77_v17 = vadd.f32 %v76_v16, %v75_v15  ;;  %v369_v15 = vld [vmem:[%s184_s16 + $0x8] sm:$0xff]  ;;  %s208_s16 = smov %s184_s16 }
  0x17   : > { %s254_s18 = scalar_lea.vmem %s208_s16, %s399_s13  ;;  %s53_s13 = sadd.s32 1, %s399_s13  }
  0x18   : > { %v78_v18 = vrot.slane %v77_v17, 1  ;;  %p50_p0 = scmp.ge.s32.totalorder %s53_s13, 15  }
  0x1a   : > { %v439_v19 = vadd.f32 %v78_v18, %v77_v17 }
  0x1c   : > { %383 = vrsqrt.f32 %v439_v19  ;;  %vm82_vm4 = vcmp.eq.f32.partialorder %v439_v19, inf  ;;  %v85_v23 = vand.u32 2147483648, %v439_v19  ;;  %vm84_vm5 = vcmp.eq.f32.partialorder %v439_v19, 0.0 }
  0x29   : > { %v384_v22 = vpop.eup %383 }
  0x2a   : > { %v81_v24 = vmul.f32 %v384_v22, %v439_v19 }
  0x2c   : > { %v83_v25 = vsel %vm82_vm4, %v439_v19, %v81_v24 }
  0x2d   : > { %v86_v27 = vsel %vm84_vm5, %v85_v23, %v83_v25 }
  0x2e   : > { %v96_v28 = vand.u32 2147483647, %v86_v27  ;;  %v233_v27 = vadd.s32 8, %v212_v5 }
  0x30   : > { %v97_v29 = vmax.f32 %v95_v26, %v96_v28  ;;  %vm250_vm1 = vcmp.ge.s32.totalorder %v233_v27, %v433_v6 }
  0x31   : > { %vm251_vm4 = vmand %vm463_vm14, %vm250_vm1 }
  0x32   : > { %385 = vrcp.f32 %v97_v29  ;;  %vm109_vm8 = vcmp.eq.f32.partialorder %v97_v29, 0.0 }
  0x3f   : > { %v386_v30 = vpop.eup %385 }
  0x40   : > { %v99_v31 = vmul.f32 %v386_v30, %v94_v21  ;;  %v102_v32 = vmul.f32 0.0, %v386_v30  ;;  %v106_v33 = vmul.f32 %v386_v30, %v96_v28 }
  0x42   : > { %v100_v34 = vmul.f32 %v99_v31, %v99_v31  ;;  %v103_v35 = vmul.f32 %v102_v32, %v102_v32  ;;  %v107_v36 = vmul.f32 %v106_v33, %v106_v33  ;;  %v371_v33 = vld [vmem:[%s208_s16 + $0x8] sm:$0xff] }
  0x44   : > { %v104_v37 = vadd.f32 %v103_v35, %v100_v34 }
  0x46   : > { %v108_v38 = vadd.f32 %v107_v36, %v104_v37 }
  0x48   : > { %387 = vrsqrt.f32 %v108_v38  ;;  %vm112_vm6 = vcmp.eq.f32.partialorder %v108_v38, inf  ;;  %v115_v40 = vand.u32 2147483648, %v108_v38  ;;  %vm114_vm7 = vcmp.eq.f32.partialorder %v108_v38, 0.0 }
  0x55   : > { %v388_v39 = vpop.eup %387 }
  0x56   : > { %v111_v41 = vmul.f32 %v388_v39, %v108_v38 }
  0x58   : > { %v113_v42 = vsel %vm112_vm6, %v108_v38, %v111_v41 }
  0x59   : > { %v116_v43 = vsel %vm114_vm7, %v115_v40, %v113_v42 }
  0x5a   : > { %v117_v44 = vmul.f32 %v116_v43, %v97_v29  ;;  %v219_v29 = vld [vmem:[%s208_s16] sm:$0xff] }
  0x5c   : > { %v118_v45 = vsel %vm109_vm8, 0.0, %v117_v44 }
  0x5d   : > { %v120_v46 = vxor.u32 2147483648, %v118_v45 }
  0x5f   : > { %v121_v47 = vsel %vm119_vm9, %v118_v45, %v120_v46 }
  0x60   : > { %v452_v48 = vsel %vm84_vm5, %v93_v20, %v121_v47  ;;  %389 = vrcp.f32 %v121_v47  ;;  %v122_v51 = vsub.f32 %v121_v47, %v93_v20 }
  0x61   : > { %v127_v49 = vsub.f32 %v93_v20, %v452_v48 }
  0x63   : > { %391 = vrcp.f32 %v127_v49 }
  0x6d   : > { %v390_v55 = vpop.eup %389 }
  0x6e   : > { %v124_v58 = vmul.f32 %v390_v55, %v122_v51 }
  0x70   : > { %v392_v59 = vpop.eup %391  ;;  %v126_v61 = vsel %vm84_vm5, 0.0, %v124_v58 }
  0x71   : > { %v138_v62 = vmul.f32 %v392_v59, %v136_v56  ;;  %v157_v63 = vmul.f32 %v392_v59, %v155_v57  ;;  %v174_v0 = vsel %vm463_vm14, %v126_v61, 0.0 }
  0x72   : > { %175 = vadd.xlane.f32.xlu1 %v174_v0 }
  0x73   : > { %v139_v1 = vsel %vm84_vm5, 0.0, %v138_v62  ;;  %v158_v2 = vsel %vm84_vm5, 0.0, %v157_v63 }
  0x74   : > { %v144_v3 = vsel %vm463_vm14, %v139_v1, 0.0  ;;  %v163_v4 = vsel %vm463_vm14, %v158_v2, 0.0 }
  0x75   : > { %145 = vadd.xlane.f32.xlu0 %v144_v3 }
  0x79   : > { %164 = vadd.xlane.f32.xlu0 %v163_v4 }
  0xfb   : > { %v176_v8 = vpop.xlane.xlu1 %175 }
  0xfc   : > { %v182_v9 = vsel %vm463_vm14, %v176_v8, %v181_v7 }
  0xfd   : > { %183 = vst [vmem:[#allocation2] sm:$0x1] %v182_v9 }
  0xfe   : > { %v146_v10 = vpop.xlane.xlu0 %145 }
  0xff   : > { %147 = vst [vmem:[#allocation4] sm:$0xff] %v146_v10 }
 0x102   : > { %v165_v11 = vpop.xlane.xlu0 %164 }
 0x103   : > { %167 = vst [vmem:[#allocation4 + $0x8] sm:$0xff] %v165_v11 }
 0x104   : > { %169 = vst [vmem:[%s168_s15] sm:$0x1] %v402_v12  ;;  %v266_v42 = vld [vmem:[#allocation2] sm:$0x1] (%p50_p0) }
 0x105   :  { %269 = vst [vmem:[#allocation3] sm:$0x1] (%p50_p0), %v266_v42 }
 0x10b   : > { %v190_v16 = vld [vmem:[%s185_s17] sm:$0xff]  ;;  %v368_v17 = vld [vmem:[%s185_s17 + $0x8] sm:$0xff]  ;;  %s209_s17 = smov %s185_s17 }
 0x10c   : > { %v192_v18 = vmul.f32 %v191_v14, %v190_v16  ;;  %v198_v19 = vmul.f32 %v369_v15, %v368_v17  ;;  %v217_v31 = vld [vmem:[%s209_s17] sm:$0xff]  ;;  %v370_v32 = vld [vmem:[%s209_s17 + $0x8] sm:$0xff]  ;;  %v325_v45 = vld [vmem:[#allocation3] sm:$0x1] (%p50_p0) }
 0x10d   :  { %326 = vst [vmem:[%s510_s2] sm:$0x1] (%p50_p0), %v325_v45 }
 0x10e   : > { %v200_v20 = vsel %vm199_vm15, %v198_v19, 0.0 }
 0x10f   : > { %v201_v21 = vadd.f32 %v200_v20, %v192_v18 }
 0x111   : > { %v202_v22 = vrot.slane %v201_v21, 4 }
 0x113   : > { %v203_v23 = vadd.f32 %v202_v22, %v201_v21 }
 0x115   : > { %v204_v24 = vrot.slane %v203_v23, 2 }
 0x117   : > { %v205_v25 = vadd.f32 %v204_v24, %v203_v23 }
 0x119   : > { %v206_v26 = vrot.slane %v205_v25, 1 }
 0x11b   : > { %v207_v28 = vadd.f32 %v206_v26, %v205_v25 }
 0x11d   : > { %v213_v30 = vmul.f32 %v207_v28, %v176_v8 }
 0x11f   : > { %v218_v34 = vmul.f32 %v217_v31, %v213_v30  ;;  %v238_v35 = vmul.f32 %v370_v32, %v213_v30 }
 0x121   : > { %v222_v36 = vsub.f32 %v219_v29, %v218_v34  ;;  %v243_v5 = vsub.f32 %v371_v33, %v238_v35 }
 0x123   : > { %v223_v37 = vsel %vm221_vm2, %v222_v36, %v219_v29  ;;  %v244_v38 = vsel %vm221_vm2, %v243_v5, %v371_v33 }
 0x124   : > { %v231_v39 = vsel %vm230_vm3, %v217_v31, %v223_v37  ;;  %v252_v40 = vsel %vm251_vm4, %v370_v32, %v244_v38 }
 0x125   : > { %232 = vst [vmem:[%s208_s16] sm:$0xff] %v231_v39  ;;  %372 = vst [vmem:[%s208_s16 + $0x8] sm:$0xff] %v252_v40 }
 0x12a   :  { %52 = sbr.rel (!%p50_p0) target bundleno = 3 (0x3), region = 148 }
 0x12c   : > { %v255_v41 = vld [vmem:[%s254_s18] ss:$0 sm:$0xff] }
 0x12d   : > { %v260_v6 = vsel %vm463_vm14, %v452_v48, %v255_v41 }
 0x12e   : > { %261 = vst [vmem:[%s254_s18] sm:$0x1] %v260_v6 }
 0x135   :  { %v300_v43 = vld [vmem:[#allocation1] sm:$0xff]  ;;  %v302_v44 = vld [vmem:[#allocation1 + $0x8] sm:$0xff] }
 0x136   :  { %301 = vst [vmem:[%s509_s1] sm:$0xff] %v300_v43  ;;  %303 = vst [vmem:[%s509_s1 + $0x8] sm:$0xff] %v302_v44 }

// kernel: svd_learner_forward.1
= control target key start
LH: loop header
LB: loop body
LE: loop exit
PB: predicated region body
PF: predicated region fallthrough
CT: control target
= control target key end

     0   :  { %vm250_vm0 = vcmask 1046528   ;;  %vm75_vm1 = vcmask 121856   ;;  %s8215_s0 = inlined_call_operand.vmem [shape: f32[462,15], index: 0, kind: input, shape index: {}]   ;;  %s8216_s1 = inlined_call_operand.vmem [shape: f32[15,102], index: 1, kind: input, shape index: {}]   ;;  %s8217_s2 = inlined_call_operand.vmem [shape: f32[462,102], index: 2, kind: input, shape index: {}]   ;;  %s8218_s3 = inlined_call_operand.hbm [shape: f32[564,564], index: 3, kind: output, shape index: {}]  }
   0x1   :  { %v74_v0 = vld [vmem:[%s8216_s1 + $0x8] sm:$0x7f]  ;;  %v73_v1 = vld [vmem:[%s8216_s1] sm:$0xff]  ;;  %v17_v4 = vld [vmem:[%s8215_s0 + $0x10] sm:$0xff] }
   0x2   :  { %v15_v2 = vld [vmem:[%s8215_s0] sm:$0xff]  ;;  %5293 = vmatprep.subr.msk.mxu0 %vm250_vm0, %v74_v0  ;;  %v16_v3 = vld [vmem:[%s8215_s0 + $0x8] sm:$0xff]  ;;  %v18_v5 = vld [vmem:[%s8215_s0 + $0x18] sm:$0xff] }
   0x3   :  { %5297 = vmatprep.mubr.msk.f32.mxu0 %vm75_vm1, %v15_v2  ;;  %5294 = vmatpush3.msk.msra.mxu0 %vm250_vm0, %v74_v0  ;;  %v19_v6 = vld [vmem:[%s8215_s0 + $0x20] sm:$0xff]  ;;  %v20_v7 = vld [vmem:[%s8215_s0 + $0x28] sm:$0xff]  ;;  %v21_v8 = vld [vmem:[%s8215_s0 + $0x30] sm:$0xff] }
   0x4   :  { %5295 = vmatprep.subr.mxu0 %v73_v1  ;;  %v22_v9 = vld [vmem:[%s8215_s0 + $0x38] sm:$0xff]  ;;  %v23_v10 = vld [vmem:[%s8215_s0 + $0x40] sm:$0xff]  ;;  %v24_v11 = vld [vmem:[%s8215_s0 + $0x48] sm:$0xff] }
   0x5   :  { %5296 = vmatpush3.msra.mxu0 %v73_v1  ;;  %v25_v12 = vld [vmem:[%s8215_s0 + $0x50] sm:$0xff] }
   0x6   :  { %5298 = vmatmul.mubr.msk.f32.vlgmr.msra.gmra.mxu0 %vm75_vm1, %v16_v3 }
   0x7   :  { %5300 = vmatprep.mubr.msk.f32.mxu0 %vm75_vm1, %v17_v4 }
   0xa   :  { %5301 = vmatmul.mubr.msk.f32.gmra.mxu0 %vm75_vm1, %v18_v5 }
   0xb   :  { %5303 = vmatprep.mubr.msk.f32.mxu0 %vm75_vm1, %v19_v6 }
   0xe   :  { %5304 = vmatmul.mubr.msk.f32.gmra.mxu0 %vm75_vm1, %v20_v7 }
   0xf   :  { %5306 = vmatprep.mubr.msk.f32.mxu0 %vm75_vm1, %v21_v8 }
  0x12   :  { %5307 = vmatmul.mubr.msk.f32.gmra.mxu0 %vm75_vm1, %v22_v9 }
  0x13   :  { %5309 = vmatprep.mubr.msk.f32.mxu0 %vm75_vm1, %v23_v10 }
  0x14   :  { %8 = vsyncpa [#allocation4], 0  ;;  %v26_v13 = vld [vmem:[%s8215_s0 + $0x58] sm:$0xff]  ;;  %v27_v14 = vld [vmem:[%s8215_s0 + $0x60] sm:$0xff]  ;;  %v5778_v39 = vmov 0.0   ;;  %vm789_vm2 = vcmask 834560   ;;  %v1041_v6 = vlaneseq }
  0x15   :  { %v28_v15 = vld [vmem:[%s8215_s0 + $0x68] sm:$0xff]  ;;  %v29_v16 = vld [vmem:[%s8215_s0 + $0x70] sm:$0xff]  ;;  %v30_v17 = vld [vmem:[%s8215_s0 + $0x78] sm:$0xff]  ;;  %726 = vst [vmem:[#allocation2 + $0x8] sm:$0xff] %v5778_v39  ;;  %2289 = vmatprep.subr.mxu0 %v5778_v39 }
  0x16   :  { %5310 = vmatmul.mubr.msk.f32.gmra.mxu0 %vm75_vm1, %v24_v11  ;;  %v31_v18 = vld [vmem:[%s8215_s0 + $0x80] sm:$0xff]  ;;  %v32_v19 = vld [vmem:[%s8215_s0 + $0x88] sm:$0xff]  ;;  %v33_v20 = vld [vmem:[%s8215_s0 + $0x90] sm:$0xff]  ;;  %725 = vst [vmem:[#allocation2] sm:$0xff] %v5778_v39  ;;  %v6135_v10 = vand.u32 127, %v1041_v6 }
  0x17   :  { %5312 = vmatprep.mubr.msk.f32.mxu0 %vm75_vm1, %v25_v12  ;;  %v34_v21 = vld [vmem:[%s8215_s0 + $0x98] sm:$0xff]  ;;  %v35_v22 = vld [vmem:[%s8215_s0 + $0xa0] sm:$0xff]  ;;  %v36_v23 = vld [vmem:[%s8215_s0 + $0xa8] sm:$0xff]  ;;  %727 = vst [vmem:[#allocation2 + $0x10] sm:$0xff] %v5778_v39  ;;  %2290 = vmatpush1.msra.mxu0 %v5778_v39 }
  0x18   :  { %v37_v24 = vld [vmem:[%s8215_s0 + $0xb0] sm:$0xff]  ;;  %v38_v25 = vld [vmem:[%s8215_s0 + $0xb8] sm:$0xff]  ;;  %v39_v26 = vld [vmem:[%s8215_s0 + $0xc0] sm:$0xff]  ;;  %728 = vst [vmem:[#allocation2 + $0x18] sm:$0xff] %v5778_v39  ;;  %2291 = vmatprep.subr.mxu0 %v5778_v39 }
  0x19   :  { %v40_v27 = vld [vmem:[%s8215_s0 + $0xc8] sm:$0xff]  ;;  %v41_v28 = vld [vmem:[%s8215_s0 + $0xd0] sm:$0xff]  ;;  %v42_v29 = vld [vmem:[%s8215_s0 + $0xd8] sm:$0xff]  ;;  %729 = vst [vmem:[#allocation2 + $0x20] sm:$0xff] %v5778_v39 }
  0x1a   :  { %5313 = vmatmul.mubr.msk.f32.gmra.mxu0 %vm75_vm1, %v26_v13  ;;  %v43_v30 = vld [vmem:[%s8215_s0 + $0xe0] sm:$0xff]  ;;  %v44_v31 = vld [vmem:[%s8215_s0 + $0xe8] sm:$0xff]  ;;  %v45_v32 = vld [vmem:[%s8215_s0 + $0xf0] sm:$0xff]  ;;  %730 = vst [vmem:[#allocation2 + $0x28] sm:$0xff] %v5778_v39 }
  0x1b   :  { %5315 = vmatprep.mubr.msk.f32.mxu0 %vm75_vm1, %v27_v14  ;;  %v46_v33 = vld [vmem:[%s8215_s0 + $0xf8] sm:$0xff]  ;;  %v47_v34 = vld [vmem:[%s8215_s0 + $0x100] sm:$0xff]  ;;  %v48_v35 = vld [vmem:[%s8215_s0 + $0x108] sm:$0xff]  ;;  %731 = vst [vmem:[#allocation2 + $0x30] sm:$0xff] %v5778_v39  ;;  %v6144_v14 = vshrl.u32 %v1041_v6, 7 }
  0x1c   :  { %v49_v36 = vld [vmem:[%s8215_s0 + $0x110] sm:$0xff]  ;;  %v5953_v37 = vld [vmem:[%s8215_s0 + $0x118] sm:$0xff]  ;;  %v5958_v38 = vld [vmem:[%s8215_s0 + $0x120] sm:$0xff]  ;;  %732 = vst [vmem:[#allocation2 + $0x38] sm:$0xff] %v5778_v39 }
  0x1d   :  { %733 = vst [vmem:[#allocation2 + $0x40] sm:$0xff] %v5778_v39  ;;  %734 = vst [vmem:[#allocation2 + $0x48] sm:$0xff] %v5778_v39  ;;  %v52_v40 = vld [vmem:[%s8215_s0 + $0x128] sm:$0xff]  ;;  %v53_v41 = vld [vmem:[%s8215_s0 + $0x130] sm:$0xff]  ;;  %v1048_v6 = vadd.s32 48, %v6144_v14 }
  0x1e   :  { %5316 = vmatmul.mubr.msk.f32.gmra.mxu0 %vm75_vm1, %v28_v15  ;;  %735 = vst [vmem:[#allocation2 + $0x50] sm:$0xff] %v5778_v39  ;;  %736 = vst [vmem:[#allocation2 + $0x58] sm:$0xff] %v5778_v39  ;;  %v54_v42 = vld [vmem:[%s8215_s0 + $0x138] sm:$0xff]  ;;  %v55_v43 = vld [vmem:[%s8215_s0 + $0x140] sm:$0xff]  ;;  %v1102_v15 = vadd.s32 128, %v6135_v10 }
  0x1f   :  { %5318 = vmatprep.mubr.msk.f32.mxu0 %vm75_vm1, %v29_v16  ;;  %737 = vst [vmem:[#allocation2 + $0x60] sm:$0xff] %v5778_v39  ;;  %738 = vst [vmem:[#allocation2 + $0x68] sm:$0xff] %v5778_v39  ;;  %v56_v44 = vld [vmem:[%s8215_s0 + $0x148] sm:$0xff]  ;;  %v57_v45 = vld [vmem:[%s8215_s0 + $0x150] sm:$0xff] }
  0x20   :  { %739 = vst [vmem:[#allocation2 + $0x70] sm:$0xff] %v5778_v39  ;;  %740 = vst [vmem:[#allocation2 + $0x78] sm:$0xff] %v5778_v39  ;;  %v58_v46 = vld [vmem:[%s8215_s0 + $0x158] sm:$0xff]  ;;  %v59_v47 = vld [vmem:[%s8215_s0 + $0x160] sm:$0xff] }
  0x21   :  { %741 = vst [vmem:[#allocation2 + $0x80] sm:$0xff] %v5778_v39  ;;  %742 = vst [vmem:[#allocation2 + $0x88] sm:$0xff] %v5778_v39  ;;  %v60_v48 = vld [vmem:[%s8215_s0 + $0x168] sm:$0xff]  ;;  %v61_v49 = vld [vmem:[%s8215_s0 + $0x170] sm:$0xff] }
  0x22   :  { %5319 = vmatmul.mubr.msk.f32.gmra.mxu0 %vm75_vm1, %v30_v17  ;;  %743 = vst [vmem:[#allocation2 + $0x90] sm:$0xff] %v5778_v39  ;;  %744 = vst [vmem:[#allocation2 + $0x98] sm:$0xff] %v5778_v39  ;;  %v62_v50 = vld [vmem:[%s8215_s0 + $0x178] sm:$0xff]  ;;  %v63_v51 = vld [vmem:[%s8215_s0 + $0x180] sm:$0xff] }
  0x23   :  { %5321 = vmatprep.mubr.msk.f32.mxu0 %vm75_vm1, %v31_v18  ;;  %745 = vst [vmem:[#allocation2 + $0xa0] sm:$0xff] %v5778_v39  ;;  %746 = vst [vmem:[#allocation2 + $0xa8] sm:$0xff] %v5778_v39  ;;  %v64_v52 = vld [vmem:[%s8215_s0 + $0x188] sm:$0xff]  ;;  %v65_v53 = vld [vmem:[%s8215_s0 + $0x190] sm:$0xff] }
  0x24   :  { %747 = vst [vmem:[#allocation2 + $0xb0] sm:$0xff] %v5778_v39  ;;  %748 = vst [vmem:[#allocation2 + $0xb8] sm:$0xff] %v5778_v39  ;;  %v66_v54 = vld [vmem:[%s8215_s0 + $0x198] sm:$0xff]  ;;  %v67_v55 = vld [vmem:[%s8215_s0 + $0x1a0] sm:$0xff] }
  0x25   :  { %749 = vst [vmem:[#allocation2 + $0xc0] sm:$0xff] %v5778_v39  ;;  %750 = vst [vmem:[#allocation2 + $0xc8] sm:$0xff] %v5778_v39  ;;  %v68_v56 = vld [vmem:[%s8215_s0 + $0x1a8] sm:$0xff]  ;;  %v69_v57 = vld [vmem:[%s8215_s0 + $0x1b0] sm:$0xff] }
  0x26   :  { %5322 = vmatmul.mubr.msk.f32.gmra.mxu0 %vm75_vm1, %v32_v19  ;;  %751 = vst [vmem:[#allocation2 + $0xd0] sm:$0xff] %v5778_v39  ;;  %752 = vst [vmem:[#allocation2 + $0xd8] sm:$0xff] %v5778_v39  ;;  %v70_v58 = vld [vmem:[%s8215_s0 + $0x1b8] sm:$0xff]  ;;  %v71_v59 = vld [vmem:[%s8215_s0 + $0x1c0] sm:$0xff]  ;;  %v1057_v19 = vadd.s32 120, %v6144_v14 }
  0x27   :  { %5324 = vmatprep.mubr.msk.f32.mxu0 %vm75_vm1, %v33_v20  ;;  %753 = vst [vmem:[#allocation2 + $0xe0] sm:$0xff] %v5778_v39  ;;  %754 = vst [vmem:[#allocation2 + $0xe8] sm:$0xff] %v5778_v39  ;;  %v72_v60 = vld [vmem:[%s8215_s0 + $0x1c8] sm:$0x3f]  ;;  %v609_v63 = vld [vmem:[%s8217_s2] sm:$0xff]  ;;  %v6155_v20 = vadd.s32 4294967194, %v1102_v15 }
  0x28   :  { %755 = vst [vmem:[#allocation2 + $0xf0] sm:$0xff] %v5778_v39  ;;  %756 = vst [vmem:[#allocation2 + $0xf8] sm:$0xff] %v5778_v39  ;;  %v610_v61 = vld [vmem:[%s8217_s2 + $0x8] sm:$0xff]  ;;  %v612_v2 = vld [vmem:[%s8217_s2 + $0x18] sm:$0xff]  ;;  %v1047_v15 = vadd.s32 40, %v6144_v14 }
  0x29   :  { %757 = vst [vmem:[#allocation2 + $0x100] sm:$0xff] %v5778_v39  ;;  %758 = vst [vmem:[#allocation2 + $0x108] sm:$0xff] %v5778_v39  ;;  %v611_v5 = vld [vmem:[%s8217_s2 + $0x10] sm:$0xff]  ;;  %v614_v9 = vld [vmem:[%s8217_s2 + $0x28] sm:$0xff]  ;;  %vm1187_vm3 = vcmp.eq.s32.totalorder %v6155_v20, %v1057_v19 }
  0x2a   :  { %5325 = vmatmul.mubr.msk.f32.gmra.mxu0 %vm75_vm1, %v34_v21  ;;  %759 = vst [vmem:[#allocation2 + $0x110] sm:$0xff] %v5778_v39  ;;  %760 = vst [vmem:[#allocation2 + $0x118] sm:$0xff] %v5778_v39  ;;  %v613_v13 = vld [vmem:[%s8217_s2 + $0x20] sm:$0xff]  ;;  %v616_v18 = vld [vmem:[%s8217_s2 + $0x38] sm:$0xff] }
  0x2b   :  { %5327 = vmatprep.mubr.msk.f32.mxu0 %vm75_vm1, %v35_v22  ;;  %761 = vst [vmem:[#allocation2 + $0x120] sm:$0xff] %v5778_v39  ;;  %762 = vst [vmem:[#allocation2 + $0x128] sm:$0xff] %v5778_v39  ;;  %v1103_v22 = vadd.s32 256, %v6135_v10 }
  0x2c   :  { %763 = vst [vmem:[#allocation2 + $0x130] sm:$0xff] %v5778_v39  ;;  %764 = vst [vmem:[#allocation2 + $0x138] sm:$0xff] %v5778_v39 }
  0x2d   :  { %765 = vst [vmem:[#allocation2 + $0x140] sm:$0xff] %v5778_v39  ;;  %766 = vst [vmem:[#allocation2 + $0x148] sm:$0xff] %v5778_v39 }
  0x2e   :  { %5328 = vmatmul.mubr.msk.f32.gmra.mxu0 %vm75_vm1, %v36_v23  ;;  %767 = vst [vmem:[#allocation2 + $0x150] sm:$0xff] %v5778_v39  ;;  %768 = vst [vmem:[#allocation2 + $0x158] sm:$0xff] %v5778_v39 }
  0x2f   :  { %5330 = vmatprep.mubr.msk.f32.mxu0 %vm75_vm1, %v37_v24  ;;  %769 = vst [vmem:[#allocation2 + $0x160] sm:$0xff] %v5778_v39  ;;  %770 = vst [vmem:[#allocation2 + $0x168] sm:$0xff] %v5778_v39  ;;  %v615_v24 = vld [vmem:[%s8217_s2 + $0x30] sm:$0xff] }
  0x30   :  { %771 = vst [vmem:[#allocation2 + $0x170] sm:$0xff] %v5778_v39  ;;  %772 = vst [vmem:[#allocation2 + $0x178] sm:$0xff] %v5778_v39 }
  0x31   :  { %773 = vst [vmem:[#allocation2 + $0x180] sm:$0xff] %v5778_v39  ;;  %774 = vst [vmem:[#allocation2 + $0x188] sm:$0xff] %v5778_v39 }
  0x32   :  { %5331 = vmatmul.mubr.msk.f32.gmra.mxu0 %vm75_vm1, %v38_v25  ;;  %775 = vst [vmem:[#allocation2 + $0x190] sm:$0xff] %v5778_v39  ;;  %776 = vst [vmem:[#allocation2 + $0x198] sm:$0xff] %v5778_v39  ;;  %v1056_v25 = vadd.s32 112, %v6144_v14 }
  0x33   :  { %5333 = vmatprep.mubr.msk.f32.mxu0 %vm75_vm1, %v39_v26  ;;  %777 = vst [vmem:[#allocation2 + $0x1a0] sm:$0xff] %v5778_v39  ;;  %778 = vst [vmem:[#allocation2 + $0x1a8] sm:$0xff] %v5778_v39 }
  0x34   :  { %779 = vst [vmem:[#allocation2 + $0x1b0] sm:$0xff] %v5778_v39  ;;  %780 = vst [vmem:[#allocation2 + $0x1b8] sm:$0xff] %v5778_v39  ;;  %vm1182_vm4 = vcmp.eq.s32.totalorder %v6155_v20, %v1056_v25  ;;  %v1063_v25 = vadd.s32 168, %v6144_v14 }
  0x35   :  { %781 = vst [vmem:[#allocation2 + $0x1c0] sm:$0xff] %v5778_v39  ;;  %782 = vst [vmem:[#allocation2 + $0x1c8] sm:$0xff] %v5778_v39 }
  0x36   :  { %5334 = vmatmul.mubr.msk.f32.gmra.mxu0 %vm75_vm1, %v40_v27  ;;  %783 = vst [vmem:[#allocation2 + $0x1d0] sm:$0xff] %v5778_v39  ;;  %8287 = vst [vmem:[#allocation9_spill] sm:$0xff] %v6135_v10  ;;  %v8219_v27 = vmov 1.0  }
  0x37   :  { %5336 = vmatprep.mubr.msk.f32.mxu0 %vm75_vm1, %v41_v28  ;;  %8289 = vst [vmem:[#allocation11_spill] sm:$0xff] %v6144_v14  ;;  %5001 = vmatprep.subr.msk.mxu1 %vm1187_vm3, %v8219_v27  ;;  %v1073_v28 = vadd.s32 248, %v6144_v14 }
  0x38   :  { %1974 = vmatpush1.msra.mxu1 %v5778_v39 }
  0x39   :  { %5002 = vmatprep.subr.msk.mxu1 %vm1182_vm4, %v8219_v27 }
  0x3a   :  { %5337 = vmatmul.mubr.msk.f32.gmra.mxu0 %vm75_vm1, %v42_v29  ;;  %v6173_v29 = vadd.s32 4294967194, %v1103_v22  ;;  %1976 = vmatpush1.msra.mxu1 %v5778_v39  ;;  %v625_v22 = vld [vmem:[%s8217_s2 + $0x80] sm:$0xff] }
  0x3b   :  { %5339 = vmatprep.mubr.msk.f32.mxu0 %vm75_vm1, %v43_v30 }
  0x3c   :  { %vm1268_vm5 = vcmp.eq.s32.totalorder %v6173_v29, %v1073_v28 }
  0x3d   :  { %5035 = vmatpush2.msk.msra.mxu0 %vm1268_vm5, %v8219_v27  ;;  %vm1142_vm5 = vcmp.eq.s32.totalorder %v6155_v20, %v1048_v6  ;;  %v1059_v6 = vadd.s32 136, %v6144_v14 }
  0x3e   :  { %5340 = vmatmul.mubr.msk.f32.gmra.mxu0 %vm75_vm1, %v44_v31  ;;  %v618_v31 = vld [vmem:[%s8217_s2 + $0x48] sm:$0xff]  ;;  %2293 = vmatprep.subr.mxu0 %v5778_v39 }
  0x3f   :  { %5342 = vmatprep.mubr.msk.f32.mxu0 %vm75_vm1, %v45_v32  ;;  %v1055_v32 = vadd.s32 104, %v6144_v14 }
  0x41   :  { %vm1177_vm6 = vcmp.eq.s32.totalorder %v6155_v20, %v1055_v32 }
  0x42   :  { %5343 = vmatmul.mubr.msk.f32.gmra.mxu0 %vm75_vm1, %v46_v33  ;;  %5003 = vmatprep.subr.msk.mxu1 %vm1177_vm6, %v8219_v27 }
  0x43   :  { %5345 = vmatprep.mubr.msk.f32.mxu0 %vm75_vm1, %v47_v34  ;;  %v1072_v34 = vadd.s32 240, %v6144_v14  ;;  %1978 = vmatpush1.msra.mxu1 %v5778_v39 }
  0x45   :  { %vm1263_vm7 = vcmp.eq.s32.totalorder %v6173_v29, %v1072_v34  ;;  %v4925_v34 = vadd.s32 4294967194, %v6135_v10 }
  0x46   :  { %5346 = vmatmul.mubr.msk.f32.gmra.mxu0 %vm75_vm1, %v48_v35 }
  0x47   :  { %5348 = vmatprep.mubr.msk.f32.mxu0 %vm75_vm1, %v49_v36  ;;  %v617_v36 = vld [vmem:[%s8217_s2 + $0x40] sm:$0xff]  ;;  %5036 = vmatpush2.msk.msra.mxu0 %vm1263_vm7, %v8219_v27  ;;  %vm1137_vm7 = vcmp.eq.s32.totalorder %v6155_v20, %v1047_v15 }
  0x48   :  { %2295 = vmatprep.subr.mxu0 %v5778_v39 }
  0x4a   :  { %5349 = vmatmul.mubr.msk.f32.gmra.mxu0 %vm75_vm1, %v5953_v37  ;;  %v1054_v37 = vadd.s32 96, %v6144_v14 }
  0x4b   :  { %5351 = vmatprep.mubr.msk.f32.mxu0 %vm75_vm1, %v5958_v38 }
  0x4c   :  { %vm1172_vm8 = vcmp.eq.s32.totalorder %v6155_v20, %v1054_v37  ;;  %v627_v37 = vld [vmem:[%s8217_s2 + $0x90] sm:$0xff] }
  0x4d   :  { %5004 = vmatprep.subr.msk.mxu1 %vm1172_vm8, %v8219_v27 }
  0x4e   :  { %5352 = vmatmul.mubr.msk.f32.gmra.mxu0 %vm75_vm1, %v52_v40  ;;  %v1071_v40 = vadd.s32 232, %v6144_v14  ;;  %1980 = vmatpush1.msra.mxu1 %v5778_v39 }
  0x4f   :  { %5354 = vmatprep.mubr.msk.f32.mxu0 %vm75_vm1, %v53_v41 }
  0x50   :  { %vm1258_vm9 = vcmp.eq.s32.totalorder %v6173_v29, %v1071_v40 }
  0x51   :  { %5037 = vmatpush2.msk.msra.mxu0 %vm1258_vm9, %v8219_v27 }
  0x52   :  { %5355 = vmatmul.mubr.msk.f32.gmra.mxu0 %vm75_vm1, %v54_v42  ;;  %v620_v42 = vld [vmem:[%s8217_s2 + $0x58] sm:$0xff]  ;;  %2297 = vmatprep.subr.mxu0 %v5778_v39 }
  0x53   :  { %5357 = vmatprep.mubr.msk.f32.mxu0 %vm75_vm1, %v55_v43  ;;  %v1053_v43 = vadd.s32 88, %v6144_v14 }
  0x55   :  { %vm1167_vm10 = vcmp.eq.s32.totalorder %v6155_v20, %v1053_v43  ;;  %v630_v43 = vld [vmem:[%s8217_s2 + $0xa8] sm:$0xff] }
  0x56   :  { %5358 = vmatmul.mubr.msk.f32.gmra.mxu0 %vm75_vm1, %v56_v44  ;;  %5005 = vmatprep.subr.msk.mxu1 %vm1167_vm10, %v8219_v27  ;;  %vm1218_vm10 = vcmp.eq.s32.totalorder %v6173_v29, %v1063_v25  ;;  %v636_v25 = vld [vmem:[%s8217_s2 + $0xd8] sm:$0xff] }
  0x57   :  { %5360 = vmatprep.mubr.msk.f32.mxu0 %vm75_vm1, %v57_v45  ;;  %v1070_v45 = vadd.s32 224, %v6144_v14  ;;  %1982 = vmatpush1.msra.mxu1 %v5778_v39 }
  0x59   :  { %vm1253_vm11 = vcmp.eq.s32.totalorder %v6173_v29, %v1070_v45  ;;  %v1061_v45 = vadd.s32 152, %v6144_v14 }
  0x5a   :  { %5361 = vmatmul.mubr.msk.f32.gmra.mxu0 %vm75_vm1, %v58_v46 }
  0x5b   :  { %5363 = vmatprep.mubr.msk.f32.mxu0 %vm75_vm1, %v59_v47  ;;  %v619_v47 = vld [vmem:[%s8217_s2 + $0x50] sm:$0xff]  ;;  %5038 = vmatpush2.msk.msra.mxu0 %vm1253_vm11, %v8219_v27 }
  0x5c   :  { %2299 = vmatprep.subr.mxu0 %v5778_v39 }
  0x5e   :  { %5364 = vmatmul.mubr.msk.f32.gmra.mxu0 %vm75_vm1, %v60_v48  ;;  %v1052_v48 = vadd.s32 80, %v6144_v14 }
  0x5f   :  { %5366 = vmatprep.mubr.msk.f32.mxu0 %vm75_vm1, %v61_v49 }
  0x60   :  { %vm1162_vm12 = vcmp.eq.s32.totalorder %v6155_v20, %v1052_v48 }
  0x61   :  { %5006 = vmatprep.subr.msk.mxu1 %vm1162_vm12, %v8219_v27 }
  0x62   :  { %5367 = vmatmul.mubr.msk.f32.gmra.mxu0 %vm75_vm1, %v62_v50  ;;  %v1069_v50 = vadd.s32 216, %v6144_v14  ;;  %1984 = vmatpush1.msra.mxu1 %v5778_v39 }
  0x63   :  { %5369 = vmatprep.mubr.msk.f32.mxu0 %vm75_vm1, %v63_v51 }
  0x64   :  { %vm1248_vm13 = vcmp.eq.s32.totalorder %v6173_v29, %v1069_v50  ;;  %v629_v50 = vld [vmem:[%s8217_s2 + $0xa0] sm:$0xff] }
  0x65   :  { %5039 = vmatpush2.msk.msra.mxu0 %vm1248_vm13, %v8219_v27 }
  0x66   :  { %5370 = vmatmul.mubr.msk.f32.gmra.mxu0 %vm75_vm1, %v64_v52  ;;  %v622_v52 = vld [vmem:[%s8217_s2 + $0x68] sm:$0xff]  ;;  %2301 = vmatprep.subr.mxu0 %v5778_v39 }
  0x67   :  { %5372 = vmatprep.mubr.msk.f32.mxu0 %vm75_vm1, %v65_v53  ;;  %v1051_v53 = vadd.s32 72, %v6144_v14 }
  0x69   :  { %vm1157_vm14 = vcmp.eq.s32.totalorder %v6155_v20, %v1051_v53  ;;  %v632_v53 = vld [vmem:[%s8217_s2 + $0xb8] sm:$0xff] }
  0x6a   :  { %5373 = vmatmul.mubr.msk.f32.gmra.mxu0 %vm75_vm1, %v66_v54  ;;  %5007 = vmatprep.subr.msk.mxu1 %vm1157_vm14, %v8219_v27 }
  0x6b   :  { %5375 = vmatprep.mubr.msk.f32.mxu0 %vm75_vm1, %v67_v55  ;;  %v1068_v55 = vadd.s32 208, %v6144_v14  ;;  %1986 = vmatpush1.msra.mxu1 %v5778_v39 }
  0x6d   :  { %vm1243_vm15 = vcmp.eq.s32.totalorder %v6173_v29, %v1068_v55 }
  0x6e   :  { %5376 = vmatmul.mubr.msk.f32.gmra.mxu0 %vm75_vm1, %v68_v56 }
  0x6f   :  { %5378 = vmatprep.mubr.msk.f32.mxu0 %vm75_vm1, %v69_v57  ;;  %v621_v57 = vld [vmem:[%s8217_s2 + $0x60] sm:$0xff]  ;;  %5040 = vmatpush2.msk.msra.mxu0 %vm1243_vm15, %v8219_v27  ;;  %vm1208_vm15 = vcmp.eq.s32.totalorder %v6173_v29, %v1061_v45 }
  0x70   :  { %2303 = vmatprep.subr.mxu0 %v5778_v39 }
  0x72   :  { %5379 = vmatmul.mubr.msk.f32.gmra.mxu0 %vm75_vm1, %v70_v58  ;;  %v1050_v58 = vadd.s32 64, %v6144_v14 }
  0x73   :  { %5381 = vmatprep.mubr.msk.f32.mxu0 %vm75_vm1, %v71_v59 }
  0x74   :  { %vm1152_vm0 = vcmp.eq.s32.totalorder %v6155_v20, %v1050_v58 }
  0x75   :  { %5008 = vmatprep.subr.msk.mxu1 %vm1152_vm0, %v8219_v27 }
  0x76   :  { %5382 = vmatmul.mubr.msk.f32.gmra.mxu0 %vm75_vm1, %v72_v60  ;;  %v1067_v60 = vadd.s32 200, %v6144_v14  ;;  %1988 = vmatpush1.msra.mxu1 %v5778_v39 }
  0x78   :  { %vm1238_vm1 = vcmp.eq.s32.totalorder %v6173_v29, %v1067_v60 }
  0x79   :  { %5041 = vmatpush2.msk.msra.mxu0 %vm1238_vm1, %v8219_v27  ;;  %vm1111_vm1 = vcmp.eq.s32.totalorder %v4925_v34, %v6144_v14 }
  0x7a   :  { %2305 = vmatprep.subr.mxu0 %v5778_v39 }
  0xc6   :  { %v5299_v62 = vpop.f32.mrf.mxu0 }
  0xc7   :  { %v6116_v0 = vmul.f32 %v5299_v62, %v610_v61  ;;  %v624_v62 = vld [vmem:[%s8217_s2 + $0x78] sm:$0xff] }
  0xc8   :  { %v320_v1 = vpop.f32.mrf.mxu0 }
  0xc9   :  { %8284 = vst [vmem:[#allocation6_spill] sm:$0xff] %v6116_v0  ;;  %791 = vst.msk [vmem:[#allocation2 + $0x8] sm:$0xff] %vm789_vm2, %v6116_v0  ;;  %v6123_v3 = vmul.f32 %v609_v63, %v320_v1  ;;  %v1049_v63 = vadd.s32 56, %v6144_v14 }
  0xca   :  { %v5302_v4 = vpop.f32.mrf.mxu0 }
  0xcb   :  { %8285 = vst [vmem:[#allocation7_spill] sm:$0xff] %v6123_v3  ;;  %790 = vst.msk [vmem:[#allocation2] sm:$0xff] %vm789_vm2, %v6123_v3  ;;  %v6130_v7 = vmul.f32 %v5302_v4, %v612_v2  ;;  %v1066_v2 = vadd.s32 192, %v6144_v14  ;;  %vm1147_vm3 = vcmp.eq.s32.totalorder %v6155_v20, %v1049_v63 }
  0xcc   :  { %v330_v8 = vpop.f32.mrf.mxu0  ;;  %5009 = vmatprep.subr.msk.mxu1 %vm1147_vm3, %v8219_v27  ;;  %vm1207_vm3 = vcmp.eq.s32.totalorder %v6155_v20, %v1061_v45 }
  0xcd   :  { %8286 = vst [vmem:[#allocation8_spill] sm:$0xff] %v6130_v7  ;;  %793 = vst.msk [vmem:[#allocation2 + $0x18] sm:$0xff] %vm789_vm2, %v6130_v7  ;;  %v6139_v11 = vmul.f32 %v611_v5, %v330_v8  ;;  %v623_v5 = vld [vmem:[%s8217_s2 + $0x70] sm:$0xff]  ;;  %vm1233_vm4 = vcmp.eq.s32.totalorder %v6173_v29, %v1066_v2  ;;  %1990 = vmatpush1.msra.mxu1 %v5778_v39 }
  0xce   :  { %v5305_v12 = vpop.f32.mrf.mxu0  ;;  %5042 = vmatpush2.msk.msra.mxu0 %vm1233_vm4, %v8219_v27  ;;  %5010 = vmatprep.subr.msk.mxu1 %vm1142_vm5, %v8219_v27  ;;  %vm1197_vm5 = vcmp.eq.s32.totalorder %v6155_v20, %v1059_v6 }
  0xcf   :  { %8288 = vst [vmem:[#allocation10_spill] sm:$0xff] %v6139_v11  ;;  %792 = vst.msk [vmem:[#allocation2 + $0x10] sm:$0xff] %vm789_vm2, %v6139_v11  ;;  %v6149_v16 = vmul.f32 %v5305_v12, %v614_v9  ;;  %v1065_v9 = vadd.s32 184, %v6144_v14  ;;  %2307 = vmatprep.subr.mxu0 %v5778_v39  ;;  %1992 = vmatpush1.msra.mxu1 %v5778_v39 }
  0xd0   :  { %v340_v17 = vpop.f32.mrf.mxu0  ;;  %5011 = vmatprep.subr.msk.mxu1 %vm1137_vm7, %v8219_v27  ;;  %v850_v15 = vld [vmem:[#allocation2 + $0x8] sm:$0xff]  ;;  %vm847_vm7 = vcmask 832512  }
  0xd1   :  { %8290 = vst [vmem:[#allocation12_spill] sm:$0xff] %v6149_v16  ;;  %795 = vst.msk [vmem:[#allocation2 + $0x28] sm:$0xff] %vm789_vm2, %v6149_v16  ;;  %v6159_v21 = vmul.f32 %v613_v13, %v340_v17  ;;  %v626_v13 = vld [vmem:[%s8217_s2 + $0x88] sm:$0xff]  ;;  %vm1228_vm6 = vcmp.eq.s32.totalorder %v6173_v29, %v1065_v9  ;;  %1994 = vmatpush1.msra.mxu1 %v5778_v39 }
  0xd2   :  { %v5308_v23 = vpop.f32.mrf.mxu0  ;;  %5043 = vmatpush2.msk.msra.mxu0 %vm1228_vm6, %v8219_v27  ;;  %v849_v58 = vld [vmem:[#allocation2] sm:$0xff] }
  0xd3   :  { %8291 = vst [vmem:[#allocation13_spill] sm:$0xff] %v6159_v21  ;;  %794 = vst.msk [vmem:[#allocation2 + $0x20] sm:$0xff] %vm789_vm2, %v6159_v21  ;;  %v6169_v26 = vmul.f32 %v5308_v23, %v616_v18  ;;  %v1064_v18 = vadd.s32 176, %v6144_v14  ;;  %v1046_v23 = vadd.s32 32, %v6144_v14  ;;  %2309 = vmatprep.subr.mxu0 %v5778_v39 }
  0xd4   :  { %v350_v30 = vpop.f32.mrf.mxu0 }
  0xd5   :  { %8292 = vst [vmem:[#allocation14_spill] sm:$0xff] %v6169_v26  ;;  %797 = vst.msk [vmem:[#allocation2 + $0x38] sm:$0xff] %vm789_vm2, %v6169_v26  ;;  %v6183_v33 = vmul.f32 %v615_v24, %v350_v30  ;;  %vm1223_vm8 = vcmp.eq.s32.totalorder %v6173_v29, %v1064_v18  ;;  %v628_v30 = vld [vmem:[%s8217_s2 + $0x98] sm:$0xff]  ;;  %vm1132_vm9 = vcmp.eq.s32.totalorder %v6155_v20, %v1046_v23  ;;  %v1058_v18 = vadd.s32 128, %v6144_v14 }
  0xd6   :  { %v5311_v35 = vpop.f32.mrf.mxu0  ;;  %5044 = vmatpush2.msk.msra.mxu0 %vm1223_vm8, %v8219_v27  ;;  %5012 = vmatprep.subr.msk.mxu1 %vm1132_vm9, %v8219_v27  ;;  %vm1917_vm9 = vcmask 637952  }
  0xd7   :  { %8293 = vst [vmem:[#allocation15_spill] sm:$0xff] %v6183_v33  ;;  %796 = vst.msk [vmem:[#allocation2 + $0x30] sm:$0xff] %vm789_vm2, %v6183_v33  ;;  %v6197_v38 = vmul.f32 %v5311_v35, %v618_v31  ;;  %v1045_v31 = vadd.s32 24, %v6144_v14  ;;  %2311 = vmatprep.subr.mxu0 %v5778_v39  ;;  %v1062_v35 = vadd.s32 160, %v6144_v14  ;;  %1996 = vmatpush1.msra.mxu1 %v5778_v39 }
  0xd8   :  { %v360_v41 = vpop.f32.mrf.mxu0  ;;  %5045 = vmatpush2.msk.msra.mxu0 %vm1218_vm10, %v8219_v27  ;;  %vm1192_vm6 = vcmp.eq.s32.totalorder %v6155_v20, %v1058_v18  ;;  %v854_v18 = vld [vmem:[#allocation2 + $0x28] sm:$0xff] }
  0xd9   :  { %8294 = vst [vmem:[#allocation16_spill] sm:$0xff] %v6197_v38  ;;  %799 = vst.msk [vmem:[#allocation2 + $0x48] sm:$0xff] %vm789_vm2, %v6197_v38  ;;  %v6212_v44 = vmul.f32 %v617_v36, %v360_v41  ;;  %vm1127_vm11 = vcmp.eq.s32.totalorder %v6155_v20, %v1045_v31  ;;  %2313 = vmatprep.subr.mxu0 %v5778_v39  ;;  %vm1126_vm12 = vcmp.eq.s32.totalorder %v4925_v34, %v1045_v31 }
  0xda   :  { %v5314_v46 = vpop.f32.mrf.mxu0  ;;  %5013 = vmatprep.subr.msk.mxu1 %vm1127_vm11, %v8219_v27  ;;  %vm1213_vm13 = vcmp.eq.s32.totalorder %v6173_v29, %v1062_v35  ;;  %v1044_v41 = vadd.s32 16, %v6144_v14  ;;  %v851_v35 = vld [vmem:[#allocation2 + $0x10] sm:$0xff] }
  0xdb   :  { %8295 = vst [vmem:[#allocation17_spill] sm:$0xff] %v6212_v44  ;;  %798 = vst.msk [vmem:[#allocation2 + $0x40] sm:$0xff] %vm789_vm2, %v6212_v44  ;;  %v6227_v49 = vmul.f32 %v5314_v46, %v620_v42  ;;  %5014 = vmatpush1.msk.msra.mxu1 %vm1126_vm12, %v8219_v27  ;;  %5046 = vmatpush2.msk.msra.mxu0 %vm1213_vm13, %v8219_v27 }
  0xdc   :  { %v370_v51 = vpop.f32.mrf.mxu0  ;;  %1999 = vmatprep.subr.mxu1 %v5778_v39  ;;  %2315 = vmatprep.subr.mxu0 %v5778_v39  ;;  %vm1121_vm14 = vcmp.eq.s32.totalorder %v4925_v34, %v1044_v41  ;;  %v638_v41 = vld [vmem:[%s8217_s2 + $0xe8] sm:$0xff] }
  0xdd   :  { %8296 = vst [vmem:[#allocation18_spill] sm:$0xff] %v6227_v49  ;;  %801 = vst.msk [vmem:[#allocation2 + $0x58] sm:$0xff] %vm789_vm2, %v6227_v49  ;;  %v6242_v54 = vmul.f32 %v619_v47, %v370_v51  ;;  %v1043_v47 = vadd.s32 8, %v6144_v14  ;;  %5015 = vmatpush1.msk.msra.mxu1 %vm1121_vm14, %v8219_v27  ;;  %5047 = vmatpush2.msk.msra.mxu0 %vm1208_vm15, %v8219_v27 }
  0xde   :  { %v5317_v56 = vpop.f32.mrf.mxu0  ;;  %2001 = vmatprep.subr.mxu1 %v5778_v39  ;;  %2317 = vmatprep.subr.mxu0 %v5778_v39 }
  0xdf   :  { %8297 = vst [vmem:[#allocation19_spill] sm:$0xff] %v6242_v54  ;;  %800 = vst.msk [vmem:[#allocation2 + $0x50] sm:$0xff] %vm789_vm2, %v6242_v54  ;;  %v6257_v59 = vmul.f32 %v5317_v56, %v622_v52  ;;  %vm1116_vm0 = vcmp.eq.s32.totalorder %v4925_v34, %v1043_v47  ;;  %2318 = vmatpush2.msra.mxu0 %v5778_v39  ;;  %v635_v34 = vld [vmem:[%s8217_s2 + $0xd0] sm:$0xff]  ;;  %v637_v47 = vld [vmem:[%s8217_s2 + $0xe0] sm:$0xff] }
  0xe0   :  { %v380_v61 = vpop.f32.mrf.mxu0  ;;  %5016 = vmatpush1.msk.msra.mxu1 %vm1116_vm0, %v8219_v27  ;;  %2319 = vmatprep.subr.mxu0 %v5778_v39 }
  0xe1   :  { %8298 = vst [vmem:[#allocation20_spill] sm:$0xff] %v6257_v59  ;;  %803 = vst.msk [vmem:[#allocation2 + $0x68] sm:$0xff] %vm789_vm2, %v6257_v59  ;;  %v6272_v1 = vmul.f32 %v621_v57, %v380_v61  ;;  %2003 = vmatprep.subr.mxu1 %v5778_v39  ;;  %v631_v57 = vld [vmem:[%s8217_s2 + $0xb0] sm:$0xff]  ;;  %v1060_v61 = vadd.s32 144, %v6144_v14  ;;  %2320 = vmatpush2.msra.mxu0 %v5778_v39  ;;  %v1095_v59 = vadd.s32 424, %v6144_v14 }
  0xe2   :  { %v5320_v4 = vpop.f32.mrf.mxu0  ;;  %5017 = vmatpush1.msk.msra.mxu1 %vm1111_vm1, %v8219_v27  ;;  %2321 = vmatprep.subr.mxu0 %v5778_v39 }
  0xe3   :  { %8299 = vst [vmem:[#allocation21_spill] sm:$0xff] %v6272_v1  ;;  %802 = vst.msk [vmem:[#allocation2 + $0x60] sm:$0xff] %vm789_vm2, %v6272_v1  ;;  %v6287_v8 = vmul.f32 %v5320_v4, %v624_v62  ;;  %5018 = vmatprep.subr.msk.mxu1 %vm1207_vm3, %v8219_v27  ;;  %v634_v4 = vld [vmem:[%s8217_s2 + $0xc8] sm:$0xff]  ;;  %vm1202_vm4 = vcmp.eq.s32.totalorder %v6155_v20, %v1060_v61  ;;  %2322 = vmatpush2.msra.mxu0 %v5778_v39  ;;  %v853_v61 = vld [vmem:[#allocation2 + $0x20] sm:$0xff] }
  0xe4   :  { %v390_v12 = vpop.f32.mrf.mxu0  ;;  %2030 = vmatpush2.msra.mxu1 %v5778_v39  ;;  %2575 = vmatprep.subr.mxu0 %v5778_v39 }
  0xe5   :  { %8300 = vst [vmem:[#allocation22_spill] sm:$0xff] %v6287_v8  ;;  %805 = vst.msk [vmem:[#allocation2 + $0x78] sm:$0xff] %vm789_vm2, %v6287_v8  ;;  %v6302_v17 = vmul.f32 %v623_v5, %v390_v12  ;;  %5019 = vmatprep.subr.msk.mxu1 %vm1202_vm4, %v8219_v27 }
  0xe6   :  { %v5323_v19 = vpop.f32.mrf.mxu0  ;;  %2032 = vmatpush2.msra.mxu1 %v5778_v39 }
  0xe7   :  { %8301 = vst [vmem:[#allocation23_spill] sm:$0xff] %v6302_v17  ;;  %804 = vst.msk [vmem:[#allocation2 + $0x70] sm:$0xff] %vm789_vm2, %v6302_v17  ;;  %v6317_v24 = vmul.f32 %v5323_v19, %v626_v13  ;;  %v633_v13 = vld [vmem:[%s8217_s2 + $0xc0] sm:$0xff]  ;;  %5020 = vmatprep.subr.msk.mxu1 %vm1197_vm5, %v8219_v27 }
  0xe8   :  { %v400_v28 = vpop.f32.mrf.mxu0  ;;  %2034 = vmatpush2.msra.mxu1 %v5778_v39 }
  0xe9   :  { %8302 = vst [vmem:[#allocation24_spill] sm:$0xff] %v6317_v24  ;;  %807 = vst.msk [vmem:[#allocation2 + $0x88] sm:$0xff] %vm789_vm2, %v6317_v24  ;;  %v6332_v32 = vmul.f32 %v625_v22, %v400_v28  ;;  %5021 = vmatprep.subr.msk.mxu1 %vm1192_vm6, %v8219_v27 }
  0xea   :  { %v5326_v36 = vpop.f32.mrf.mxu0  ;;  %2036 = vmatpush2.msra.mxu1 %v5778_v39 }
  0xeb   :  { %8303 = vst [vmem:[#allocation25_spill] sm:$0xff] %v6332_v32  ;;  %806 = vst.msk [vmem:[#allocation2 + $0x80] sm:$0xff] %vm789_vm2, %v6332_v32  ;;  %v6347_v40 = vmul.f32 %v5326_v36, %v628_v30  ;;  %2146 = vmatprep.subr.mxu1 %v5778_v39  ;;  %v640_v39 = vld [vmem:[%s8217_s2 + $0xf8] sm:$0xff] }
  0xec   :  { %v410_v42 = vpop.f32.mrf.mxu0 }
  0xed   :  { %8304 = vst [vmem:[#allocation26_spill] sm:$0xff] %v6347_v40  ;;  %809 = vst.msk [vmem:[#allocation2 + $0x98] sm:$0xff] %vm789_vm2, %v6347_v40  ;;  %v6361_v46 = vmul.f32 %v627_v37, %v410_v42 }
  0xee   :  { %v5329_v48 = vpop.f32.mrf.mxu0 }
  0xef   :  { %8305 = vst [vmem:[#allocation27_spill] sm:$0xff] %v6361_v46  ;;  %808 = vst.msk [vmem:[#allocation2 + $0x90] sm:$0xff] %vm789_vm2, %v6361_v46  ;;  %v6373_v51 = vmul.f32 %v5329_v48, %v630_v43  ;;  %v852_v48 = vld [vmem:[#allocation2 + $0x18] sm:$0xff] }
  0xf0   :  { %v420_v52 = vpop.f32.mrf.mxu0  ;;  %v866_v5 = vld [vmem:[#allocation2 + $0x88] sm:$0xff] }
  0xf1   :  { %8306 = vst [vmem:[#allocation28_spill] sm:$0xff] %v6373_v51  ;;  %811 = vst.msk [vmem:[#allocation2 + $0xa8] sm:$0xff] %vm789_vm2, %v6373_v51  ;;  %v6384_v55 = vmul.f32 %v629_v50, %v420_v52  ;;  %v5657_v22 = vpack.i.bf16 %v850_v15, %v866_v5  ;;  %v642_v5 = vld [vmem:[%s8217_s2 + $0x108] sm:$0xff]  ;;  %v641_v15 = vld [vmem:[%s8217_s2 + $0x100] sm:$0xff] }
  0xf2   :  { %v5332_v56 = vpop.f32.mrf.mxu0  ;;  %v865_v60 = vld [vmem:[#allocation2 + $0x80] sm:$0xff] }
  0xf3   :  { %8307 = vst [vmem:[#allocation29_spill] sm:$0xff] %v6384_v55  ;;  %810 = vst.msk [vmem:[#allocation2 + $0xa0] sm:$0xff] %vm789_vm2, %v6384_v55  ;;  %v6398_v62 = vmul.f32 %v5332_v56, %v632_v53  ;;  %v5655_v63 = vpack.i.bf16 %v849_v58, %v865_v60  ;;  %v639_v60 = vld [vmem:[%s8217_s2 + $0xf0] sm:$0xff] }
  0xf4   :  { %v430_v2 = vpop.f32.mrf.mxu0  ;;  %v868_v42 = vld [vmem:[#allocation2 + $0x98] sm:$0xff] }
  0xf5   :  { %8308 = vst [vmem:[#allocation30_spill] sm:$0xff] %v6398_v62  ;;  %813 = vst.msk [vmem:[#allocation2 + $0xb8] sm:$0xff] %vm789_vm2, %v6398_v62  ;;  %v6411_v9 = vmul.f32 %v631_v57, %v430_v2  ;;  %5656 = vxpose.xlu0.b32.start [1/16] (narrow) %v5655_v63, 104  ;;  %v5661_v52 = vpack.i.bf16 %v852_v48, %v868_v42 }
  0xf6   :  { %v5335_v12 = vpop.f32.mrf.mxu0  ;;  %v867_v28 = vld [vmem:[#allocation2 + $0x90] sm:$0xff] }
  0xf7   :  { %8309 = vst [vmem:[#allocation31_spill] sm:$0xff] %v6411_v9  ;;  %812 = vst.msk [vmem:[#allocation2 + $0xb0] sm:$0xff] %vm789_vm2, %v6411_v9  ;;  %v6423_v19 = vmul.f32 %v5335_v12, %v634_v4  ;;  %v5659_v36 = vpack.i.bf16 %v851_v35, %v867_v28  ;;  %v644_v28 = vld [vmem:[%s8217_s2 + $0x118] sm:$0xff] }
  0xf8   :  { %v440_v23 = vpop.f32.mrf.mxu0  ;;  %v870_v6 = vld [vmem:[#allocation2 + $0xa8] sm:$0xff] }
  0xf9   :  { %8310 = vst [vmem:[#allocation32_spill] sm:$0xff] %v6423_v19  ;;  %815 = vst.msk [vmem:[#allocation2 + $0xc8] sm:$0xff] %vm789_vm2, %v6423_v19  ;;  %v6433_v30 = vmul.f32 %v633_v13, %v440_v23  ;;  %5658 = vxpose.xlu0.b32.cont [2/16] (narrow) %v5657_v22, 104  ;;  %v5665_v23 = vpack.i.bf16 %v854_v18, %v870_v6 }
  0xfa   :  { %v5338_v31 = vpop.f32.mrf.mxu0  ;;  %v869_v56 = vld [vmem:[#allocation2 + $0xa0] sm:$0xff] }
  0xfb   :  { %8311 = vst [vmem:[#allocation33_spill] sm:$0xff] %v6433_v30  ;;  %814 = vst.msk [vmem:[#allocation2 + $0xc0] sm:$0xff] %vm789_vm2, %v6433_v30  ;;  %v6442_v20 = vmul.f32 %v5338_v31, %v636_v25  ;;  %v5663_v2 = vpack.i.bf16 %v853_v61, %v869_v56  ;;  %v856_v56 = vld [vmem:[#allocation2 + $0x38] sm:$0xff] }
  0xfc   :  { %v450_v37 = vpop.f32.mrf.mxu0  ;;  %v872_v48 = vld [vmem:[#allocation2 + $0xb8] sm:$0xff] }
  0xfd   :  { %8312 = vst [vmem:[#allocation34_spill] sm:$0xff] %v6442_v20  ;;  %817 = vst.msk [vmem:[#allocation2 + $0xd8] sm:$0xff] %vm789_vm2, %v6442_v20  ;;  %v6451_v43 = vmul.f32 %v635_v34, %v450_v37  ;;  %5660 = vxpose.xlu0.b32.cont [3/16] (narrow) %v5659_v36, 104  ;;  %v643_v36 = vld [vmem:[%s8217_s2 + $0x110] sm:$0xff] }
  0xfe   :  { %v5341_v45 = vpop.f32.mrf.mxu0  ;;  %v871_v31 = vld [vmem:[#allocation2 + $0xb0] sm:$0xff] }
  0xff   :  { %8313 = vst [vmem:[#allocation35_spill] sm:$0xff] %v6451_v43  ;;  %816 = vst.msk [vmem:[#allocation2 + $0xd0] sm:$0xff] %vm789_vm2, %v6451_v43  ;;  %v6458_v50 = vmul.f32 %v5341_v45, %v638_v41  ;;  %v855_v37 = vld [vmem:[#allocation2 + $0x30] sm:$0xff] }
 0x100   :  { %v460_v53 = vpop.f32.mrf.mxu0  ;;  %v5667_v42 = vpack.i.bf16 %v855_v37, %v871_v31  ;;  %v874_v31 = vld [vmem:[#allocation2 + $0xc8] sm:$0xff]  ;;  %v649_v37 = vld [vmem:[%s8217_s2 + $0x140] sm:$0xff] }
 0x101   :  { %8314 = vst [vmem:[#allocation36_spill] sm:$0xff] %v6458_v50  ;;  %819 = vst.msk [vmem:[#allocation2 + $0xe8] sm:$0xff] %vm789_vm2, %v6458_v50  ;;  %v6465_v57 = vmul.f32 %v637_v47, %v460_v53  ;;  %5662 = vxpose.xlu0.b32.cont [4/16] (narrow) %v5661_v52, 104  ;;  %v646_v47 = vld [vmem:[%s8217_s2 + $0x128] sm:$0xff] }
 0x102   :  { %v5344_v58 = vpop.f32.mrf.mxu0 }
 0x103   :  { %8315 = vst [vmem:[#allocation37_spill] sm:$0xff] %v6465_v57  ;;  %818 = vst.msk [vmem:[#allocation2 + $0xe0] sm:$0xff] %vm789_vm2, %v6465_v57  ;;  %v6472_v63 = vmul.f32 %v5344_v58, %v640_v39  ;;  %v645_v39 = vld [vmem:[%s8217_s2 + $0x120] sm:$0xff] }
 0x104   :  { %v470_v4 = vpop.f32.mrf.mxu0 }
 0x105   :  { %8316 = vst [vmem:[#allocation38_spill] sm:$0xff] %v6472_v63  ;;  %821 = vst.msk [vmem:[#allocation2 + $0xf8] sm:$0xff] %vm789_vm2, %v6472_v63  ;;  %v6479_v12 = vmul.f32 %v639_v60, %v470_v4  ;;  %5664 = vxpose.xlu0.b32.cont [5/16] (narrow) %v5663_v2, 104  ;;  %v5669_v60 = vpack.i.bf16 %v856_v56, %v872_v48  ;;  %v648_v2 = vld [vmem:[%s8217_s2 + $0x138] sm:$0xff]  ;;  %v873_v4 = vld [vmem:[#allocation2 + $0xc0] sm:$0xff] }
 0x106   :  { %v5347_v13 = vpop.f32.mrf.mxu0 }
 0x107   :  { %8317 = vst [vmem:[#allocation39_spill] sm:$0xff] %v6479_v12  ;;  %820 = vst.msk [vmem:[#allocation2 + $0xf0] sm:$0xff] %vm789_vm2, %v6479_v12  ;;  %v6486_v22 = vmul.f32 %v5347_v13, %v642_v5  ;;  %v647_v13 = vld [vmem:[%s8217_s2 + $0x130] sm:$0xff] }
 0x108   :  { %v480_v25 = vpop.f32.mrf.mxu0 }
 0x109   :  { %8318 = vst [vmem:[#allocation40_spill] sm:$0xff] %v6486_v22  ;;  %823 = vst.msk [vmem:[#allocation2 + $0x108] sm:$0xff] %vm789_vm2, %v6486_v22  ;;  %v6493_v34 = vmul.f32 %v641_v15, %v480_v25  ;;  %5666 = vxpose.xlu0.b32.cont [6/16] (narrow) %v5665_v23, 104  ;;  %v857_v15 = vld [vmem:[#allocation2 + $0x40] sm:$0xff] }
 0x10a   :  { %v5350_v35 = vpop.f32.mrf.mxu0  ;;  %v5671_v23 = vpack.i.bf16 %v857_v15, %v873_v4  ;;  %v654_v15 = vld [vmem:[%s8217_s2 + $0x168] sm:$0xff] }
 0x10b   :  { %8319 = vst [vmem:[#allocation41_spill] sm:$0xff] %v6493_v34  ;;  %822 = vst.msk [vmem:[#allocation2 + $0x100] sm:$0xff] %vm789_vm2, %v6493_v34  ;;  %v6500_v41 = vmul.f32 %v5350_v35, %v644_v28  ;;  %v650_v28 = vld [vmem:[%s8217_s2 + $0x148] sm:$0xff] }
 0x10c   :  { %v490_v45 = vpop.f32.mrf.mxu0 }
 0x10d   :  { %8320 = vst [vmem:[#allocation42_spill] sm:$0xff] %v6500_v41  ;;  %825 = vst.msk [vmem:[#allocation2 + $0x118] sm:$0xff] %vm789_vm2, %v6500_v41  ;;  %v6507_v52 = vmul.f32 %v643_v36, %v490_v45  ;;  %5668 = vxpose.xlu0.b32.cont [7/16] (narrow) %v5667_v42, 104  ;;  %v858_v42 = vld [vmem:[#allocation2 + $0x48] sm:$0xff]  ;;  %v663_v41 = vld [vmem:[%s8217_s2 + $0x1b0] sm:$0xff] }
 0x10e   :  { %v5353_v53 = vpop.f32.mrf.mxu0 }
 0x10f   :  { %8321 = vst [vmem:[#allocation43_spill] sm:$0xff] %v6507_v52  ;;  %824 = vst.msk [vmem:[#allocation2 + $0x110] sm:$0xff] %vm789_vm2, %v6507_v52  ;;  %v6514_v58 = vmul.f32 %v5353_v53, %v646_v47  ;;  %v5673_v47 = vpack.i.bf16 %v858_v42, %v874_v31  ;;  %v652_v53 = vld [vmem:[%s8217_s2 + $0x158] sm:$0xff]  ;;  %v653_v31 = vld [vmem:[%s8217_s2 + $0x160] sm:$0xff] }
 0x110   :  { %v500_v61 = vpop.f32.mrf.mxu0 }
 0x111   :  { %8322 = vst [vmem:[#allocation44_spill] sm:$0xff] %v6514_v58  ;;  %827 = vst.msk [vmem:[#allocation2 + $0x128] sm:$0xff] %vm789_vm2, %v6514_v58  ;;  %v6521_v5 = vmul.f32 %v645_v39, %v500_v61  ;;  %5670 = vxpose.xlu0.b32.cont [8/16] (narrow) %v5669_v60, 104  ;;  %v875_v39 = vld [vmem:[#allocation2 + $0xd0] sm:$0xff] }
 0x112   :  { %v5356_v6 = vpop.f32.mrf.mxu0  ;;  %v651_v61 = vld [vmem:[%s8217_s2 + $0x150] sm:$0xff] }
 0x113   :  { %8323 = vst [vmem:[#allocation45_spill] sm:$0xff] %v6521_v5  ;;  %826 = vst.msk [vmem:[#allocation2 + $0x120] sm:$0xff] %vm789_vm2, %v6521_v5  ;;  %v6528_v18 = vmul.f32 %v5356_v6, %v648_v2  ;;  %v859_v2 = vld [vmem:[#allocation2 + $0x50] sm:$0xff] }
 0x114   :  { %v510_v25 = vpop.f32.mrf.mxu0  ;;  %v5675_v6 = vpack.i.bf16 %v859_v2, %v875_v39  ;;  %v861_v2 = vld [vmem:[#allocation2 + $0x60] sm:$0xff]  ;;  %v884_v22 = vld [vmem:[#allocation2 + $0x118] sm:$0xff] }
 0x115   :  { %8324 = vst [vmem:[#allocation46_spill] sm:$0xff] %v6528_v18  ;;  %829 = vst.msk [vmem:[#allocation2 + $0x138] sm:$0xff] %vm789_vm2, %v6528_v18  ;;  %v6535_v35 = vmul.f32 %v647_v13, %v510_v25  ;;  %5672 = vxpose.xlu0.b32.cont [9/16] (narrow) %v5671_v23, 104  ;;  %v876_v23 = vld [vmem:[#allocation2 + $0xd8] sm:$0xff] }
 0x116   :  { %v5359_v36 = vpop.f32.mrf.mxu0 }
 0x117   :  { %8325 = vst [vmem:[#allocation47_spill] sm:$0xff] %v6535_v35  ;;  %828 = vst.msk [vmem:[#allocation2 + $0x130] sm:$0xff] %vm789_vm2, %v6535_v35  ;;  %v6542_v45 = vmul.f32 %v5359_v36, %v650_v28  ;;  %v860_v36 = vld [vmem:[#allocation2 + $0x58] sm:$0xff] }
 0x118   :  { %v520_v48 = vpop.f32.mrf.mxu0  ;;  %v5677_v42 = vpack.i.bf16 %v860_v36, %v876_v23  ;;  %v658_v23 = vld [vmem:[%s8217_s2 + $0x188] sm:$0xff]  ;;  %v880_v35 = vld [vmem:[#allocation2 + $0xf8] sm:$0xff] }
 0x119   :  { %8326 = vst [vmem:[#allocation48_spill] sm:$0xff] %v6542_v45  ;;  %831 = vst.msk [vmem:[#allocation2 + $0x148] sm:$0xff] %vm789_vm2, %v6542_v45  ;;  %v6549_v56 = vmul.f32 %v649_v37, %v520_v48  ;;  %5674 = vxpose.xlu0.b32.cont [10/16] (narrow) %v5673_v47, 104  ;;  %v656_v48 = vld [vmem:[%s8217_s2 + $0x178] sm:$0xff]  ;;  %v886_v34 = vld [vmem:[#allocation2 + $0x128] sm:$0xff] }
 0x11a   :  { %v5362_v60 = vpop.f32.mrf.mxu0 }
 0x11b   :  { %8327 = vst [vmem:[#allocation49_spill] sm:$0xff] %v6549_v56  ;;  %830 = vst.msk [vmem:[#allocation2 + $0x140] sm:$0xff] %vm789_vm2, %v6549_v56  ;;  %v6556_v4 = vmul.f32 %v5362_v60, %v652_v53  ;;  %v877_v53 = vld [vmem:[#allocation2 + $0xe0] sm:$0xff] }
 0x11c   :  { %v530_v13 = vpop.f32.mrf.mxu0 }
 0x11d   :  { %8328 = vst [vmem:[#allocation50_spill] sm:$0xff] %v6556_v4  ;;  %833 = vst.msk [vmem:[#allocation2 + $0x158] sm:$0xff] %vm789_vm2, %v6556_v4  ;;  %v6563_v25 = vmul.f32 %v651_v61, %v530_v13  ;;  %5676 = vxpose.xlu0.b32.cont [11/16] (narrow) %v5675_v6, 104  ;;  %v655_v61 = vld [vmem:[%s8217_s2 + $0x170] sm:$0xff]  ;;  %v5679_v13 = vpack.i.bf16 %v861_v2, %v877_v53 }
 0x11e   :  { %v5365_v28 = vpop.f32.mrf.mxu0  ;;  %v879_v2 = vld [vmem:[#allocation2 + $0xf0] sm:$0xff] }
 0x11f   :  { %8329 = vst [vmem:[#allocation51_spill] sm:$0xff] %v6563_v25  ;;  %832 = vst.msk [vmem:[#allocation2 + $0x150] sm:$0xff] %vm789_vm2, %v6563_v25  ;;  %v6570_v37 = vmul.f32 %v5365_v28, %v654_v15  ;;  %v878_v28 = vld [vmem:[#allocation2 + $0xe8] sm:$0xff] }
 0x120   :  { %v540_v47 = vpop.f32.mrf.mxu0 }
 0x121   :  { %8330 = vst [vmem:[#allocation52_spill] sm:$0xff] %v6570_v37  ;;  %835 = vst.msk [vmem:[#allocation2 + $0x168] sm:$0xff] %vm789_vm2, %v6570_v37  ;;  %v6577_v39 = vmul.f32 %v653_v31, %v540_v47  ;;  %5678 = vxpose.xlu0.b32.cont [12/16] (narrow) %v5677_v42, 104  ;;  %v657_v42 = vld [vmem:[%s8217_s2 + $0x180] sm:$0xff]  ;;  %v862_v47 = vld [vmem:[#allocation2 + $0x68] sm:$0xff] }
 0x122   :  { %v5368_v60 = vpop.f32.mrf.mxu0  ;;  %v5681_v53 = vpack.i.bf16 %v862_v47, %v878_v28 }
 0x123   :  { %8331 = vst [vmem:[#allocation53_spill] sm:$0xff] %v6577_v39  ;;  %834 = vst.msk [vmem:[#allocation2 + $0x160] sm:$0xff] %vm789_vm2, %v6577_v39  ;;  %v6584_v6 = vmul.f32 %v5368_v60, %v656_v48 }
 0x124   :  { %v550_v15 = vpop.f32.mrf.mxu0 }
 0x125   :  { %8332 = vst [vmem:[#allocation54_spill] sm:$0xff] %v6584_v6  ;;  %837 = vst.msk [vmem:[#allocation2 + $0x178] sm:$0xff] %vm789_vm2, %v6584_v6  ;;  %v6591_v31 = vmul.f32 %v655_v61, %v550_v15  ;;  %5680 = vxpose.xlu0.b32.cont [13/16] (narrow) %v5679_v13, 104  ;;  %v660_v61 = vld [vmem:[%s8217_s2 + $0x198] sm:$0xff]  ;;  %v863_v15 = vld [vmem:[#allocation2 + $0x70] sm:$0xff] }
 0x126   :  { %v5371_v36 = vpop.f32.mrf.mxu0  ;;  %v5683_v28 = vpack.i.bf16 %v863_v15, %v879_v2  ;;  %v661_v2 = vld [vmem:[%s8217_s2 + $0x1a0] sm:$0xff] }
 0x127   :  { %8333 = vst [vmem:[#allocation55_spill] sm:$0xff] %v6591_v31  ;;  %836 = vst.msk [vmem:[#allocation2 + $0x170] sm:$0xff] %vm789_vm2, %v6591_v31  ;;  %v6598_v48 = vmul.f32 %v5371_v36, %v658_v23  ;;  %v659_v23 = vld [vmem:[%s8217_s2 + $0x190] sm:$0xff] }
 0x128   :  { %v560_v60 = vpop.f32.mrf.mxu0 }
 0x129   :  { %8334 = vst [vmem:[#allocation56_spill] sm:$0xff] %v6598_v48  ;;  %839 = vst.msk [vmem:[#allocation2 + $0x188] sm:$0xff] %vm789_vm2, %v6598_v48  ;;  %v6605_v13 = vmul.f32 %v657_v42, %v560_v60  ;;  %5682 = vxpose.xlu0.b32.cont [14/16] (narrow) %v5681_v53, 104  ;;  %v662_v42 = vld [vmem:[%s8217_s2 + $0x1a8] sm:$0xff]  ;;  %v864_v60 = vld [vmem:[#allocation2 + $0x78] sm:$0xff] }
 0x12a   :  { %v5374_v27 = vpop.f32.mrf.mxu0 }
 0x12b   :  { %8335 = vst [vmem:[#allocation57_spill] sm:$0xff] %v6605_v13  ;;  %838 = vst.msk [vmem:[#allocation2 + $0x180] sm:$0xff] %vm789_vm2, %v6605_v13  ;;  %v6612_v36 = vmul.f32 %v5374_v27, %v660_v61  ;;  %v5685_v27 = vpack.i.bf16 %v864_v60, %v880_v35  ;;  %v881_v35 = vld [vmem:[#allocation2 + $0x100] sm:$0xff]  ;;  %v666_v60 = vld [vmem:[%s8217_s2 + $0x1c8] sm:$0x3f] }
 0x12c   :  { %v570_v47 = vpop.f32.mrf.mxu0 }
 0x12d   :  { %8336 = vst [vmem:[#allocation58_spill] sm:$0xff] %v6612_v36  ;;  %5684 = vxpose.xlu0.b32.cont [15/16] (narrow) %v5683_v28, 104  ;;  %841 = vst.msk [vmem:[#allocation2 + $0x198] sm:$0xff] %vm789_vm2, %v6612_v36  ;;  %v6619_v53 = vmul.f32 %v659_v23, %v570_v47  ;;  %v664_v28 = vld [vmem:[%s8217_s2 + $0x1b8] sm:$0xff] }
 0x12e   :  { %v5377_v58 = vpop.f32.mrf.mxu0 }
 0x12f   :  { %8337 = vst [vmem:[#allocation59_spill] sm:$0xff] %v6619_v53  ;;  %840 = vst.msk [vmem:[#allocation2 + $0x190] sm:$0xff] %vm789_vm2, %v6619_v53  ;;  %v6626_v61 = vmul.f32 %v5377_v58, %v662_v42 }
 0x130   :  { %v580_v15 = vpop.f32.mrf.mxu0 }
 0x131   :  { %8338 = vst [vmem:[#allocation60_spill] sm:$0xff] %v6626_v61  ;;  %5686 = vxpose.xlu0.b32.end [16/16] (narrow) %v5685_v27, 104  ;;  %843 = vst.msk [vmem:[#allocation2 + $0x1a8] sm:$0xff] %vm789_vm2, %v6626_v61  ;;  %v6633_v23 = vmul.f32 %v661_v2, %v580_v15  ;;  %v898_v27 = vld [vmem:[#allocation2 + $0x188] sm:$0xff]  ;;  %v1087_v61 = vadd.s32 360, %v6144_v14 }
 0x132   :  { %v897_v47 = vld [vmem:[#allocation2 + $0x180] sm:$0xff]  ;;  %v5380_v5 = vpop.f32.mrf.mxu0 }
 0x133   :  { %8339 = vst [vmem:[#allocation61_spill] sm:$0xff] %v6633_v23  ;;  %1009 = vxpose.xlu1.b32.start [1/16] (narrow) %v897_v47, 104  ;;  %842 = vst.msk [vmem:[#allocation2 + $0x1a0] sm:$0xff] %vm789_vm2, %v6633_v23  ;;  %v6640_v58 = vmul.f32 %v5380_v5, %v664_v28  ;;  %v665_v5 = vld [vmem:[%s8217_s2 + $0x1c0] sm:$0xff]  ;;  %v882_v47 = vld [vmem:[#allocation2 + $0x108] sm:$0xff]  ;;  %v1096_v23 = vadd.s32 432, %v6144_v14 }
 0x134   :  { %v590_v42 = vpop.f32.mrf.mxu0  ;;  %s5781_s2 = smov [#allocation3]  }
 0x135   :  { %8340 = vst [vmem:[#allocation62_spill] sm:$0xff] %v6640_v58  ;;  %977 = vxpose.xlu0.b32.start [1/16] (narrow) %v881_v35, 104  ;;  %845 = vst.msk [vmem:[#allocation2 + $0x1b8] sm:$0xff] %vm789_vm2, %v6640_v58  ;;  %v6647_v2 = vmul.f32 %v663_v41, %v590_v42  ;;  %v883_v42 = vld [vmem:[#allocation2 + $0x110] sm:$0xff]  ;;  %s4855_s20 = sshll.u32 %s5781_s2, 4  ;;  %s4856_s20 = int_to_ptr.vmem [resolvable:$true] %s4855_s20 }
 0x136   :  { %v5383_v15 = vpop.f32.mrf.mxu0  ;;  %v899_v35 = vld [vmem:[#allocation2 + $0x190] sm:$0xff]  ;;  %s5756_s21 = scalar_lea.vmem %s4856_s20, 45440  ;;  %p5761_p1 = scmp.lt.s32.totalorder %s4856_s20, %s4856_s20 }
 0x137   :  { %8341 = vst [vmem:[#allocation63_spill] sm:$0xff] %v6647_v2  ;;  %1010 = vxpose.xlu1.b32.cont [2/16] (narrow) %v898_v27, 104  ;;  %844 = vst.msk [vmem:[#allocation2 + $0x1b0] sm:$0xff] %vm789_vm2, %v6647_v2  ;;  %v6654_v28 = vmul.f32 %v5383_v15, %v666_v60  ;;  %v900_v27 = vld [vmem:[#allocation2 + $0x198] sm:$0xff]  ;;  %v885_v15 = vld [vmem:[#allocation2 + $0x120] sm:$0xff]  ;;  %p5757_p0 = scmp.ne.s32.totalorder %s4856_s20, %s5756_s21  ;;  %p5762_p2 = scmp.lt.s32.totalorder %s5756_s21, %s5756_s21 }
 0x138   :  { %v600_v52 = vpop.f32.mrf.mxu0 }
 0x139   :  { %8342 = vst [vmem:[#allocation64_spill] sm:$0xff] %v6654_v28  ;;  %978 = vxpose.xlu0.b32.cont [2/16] (narrow) %v882_v47, 104  ;;  %848 = vst.msk [vmem:[#allocation2 + $0x1c8] sm:$0x3f] %vm847_vm7, %v6654_v28  ;;  %v6658_v41 = vmul.f32 %v665_v5, %v600_v52  ;;  %v902_v47 = vld [vmem:[#allocation2 + $0x1a8] sm:$0xff]  ;;  %v887_v52 = vld [vmem:[#allocation2 + $0x130] sm:$0xff]  ;;  %p5763_p3 = por %p5762_p2, %p5761_p1 }
 0x13a   :  { %v901_v60 = vld [vmem:[#allocation2 + $0x1a0] sm:$0xff] }
 0x13b   :  { %8343 = vst [vmem:[#allocation65_spill] sm:$0xff] %v6658_v41  ;;  %1011 = vxpose.xlu1.b32.cont [3/16] (narrow) %v899_v35, 104  ;;  %846 = vst.msk [vmem:[#allocation2 + $0x1c0] sm:$0xff] %vm789_vm2, %v6658_v41  ;;  %v888_v35 = vld [vmem:[#allocation2 + $0x138] sm:$0xff]  ;;  %p5764_p4 = pnand %p5763_p3, %p5757_p0 }
 0x13c   :  { %v904_v5 = vld [vmem:[#allocation2 + $0x1b8] sm:$0xff] }
 0x13d   :  { %979 = vxpose.xlu0.b32.cont [3/16] (narrow) %v883_v42, 104 }
 0x13e   :  { %v903_v63 = vld [vmem:[#allocation2 + $0x1b0] sm:$0xff] }
 0x13f   :  { %1012 = vxpose.xlu1.b32.cont [4/16] (narrow) %v900_v27, 104  ;;  %v889_v27 = vld [vmem:[#allocation2 + $0x140] sm:$0xff] }
 0x141   :  { %980 = vxpose.xlu0.b32.cont [4/16] (narrow) %v884_v22, 104  ;;  %v906_v22 = vld [vmem:[#allocation2 + $0x1c8] sm:$0xff] }
 0x142   :  { %v905_v42 = vld [vmem:[#allocation2 + $0x1c0] sm:$0xff] }
 0x143   :  { %1013 = vxpose.xlu1.b32.cont [5/16] (narrow) %v901_v60, 104  ;;  %v890_v60 = vld [vmem:[#allocation2 + $0x148] sm:$0xff] }
 0x145   :  { %981 = vxpose.xlu0.b32.cont [5/16] (narrow) %v885_v15, 104  ;;  %v6662_v15 = vld [vmem:[#allocation2 + $0x1d0] sm:$0xff] }
 0x147   :  { %1014 = vxpose.xlu1.b32.cont [6/16] (narrow) %v902_v47, 104  ;;  %v893_v47 = vld [vmem:[#allocation2 + $0x160] sm:$0xff] }
 0x149   :  { %982 = vxpose.xlu0.b32.cont [6/16] (narrow) %v886_v34, 104  ;;  %v891_v34 = vld [vmem:[#allocation2 + $0x150] sm:$0xff] }
 0x14b   :  { %1015 = vxpose.xlu1.b32.cont [7/16] (narrow) %v903_v63, 104  ;;  %v892_v63 = vld [vmem:[#allocation2 + $0x158] sm:$0xff] }
 0x14d   :  { %983 = vxpose.xlu0.b32.cont [7/16] (narrow) %v887_v52, 104  ;;  %v894_v52 = vld [vmem:[#allocation2 + $0x168] sm:$0xff] }
 0x14f   :  { %1016 = vxpose.xlu1.b32.cont [8/16] (narrow) %v904_v5, 104  ;;  %v895_v5 = vld [vmem:[#allocation2 + $0x170] sm:$0xff] }
 0x151   :  { %984 = vxpose.xlu0.b32.cont [8/16] (narrow) %v888_v35, 104  ;;  %v1104_v35 = vadd.s32 384, %v6135_v10 }
 0x153   :  { %1017 = vxpose.xlu1.b32.cont [9/16] (narrow) %v905_v42, 104  ;;  %v896_v42 = vld [vmem:[#allocation2 + $0x178] sm:$0xff] }
 0x155   :  { %985 = vxpose.xlu0.b32.cont [9/16] (narrow) %v889_v27, 104  ;;  %v1089_v27 = vadd.s32 376, %v6144_v14 }
 0x157   :  { %1018 = vxpose.xlu1.b32.cont [10/16] (narrow) %v906_v22, 104  ;;  %v6672_v22 = vadd.s32 4294967194, %v1104_v35  ;;  %v8344_v35 = vmov 1.0  }
 0x159   :  { %986 = vxpose.xlu0.b32.cont [10/16] (narrow) %v890_v60, 104  ;;  %vm1349_vm8 = vcmp.eq.s32.totalorder %v6672_v22, %v1089_v27  ;;  %vm1339_vm11 = vcmp.eq.s32.totalorder %v6672_v22, %v1087_v61 }
 0x15b   :  { %1019 = vxpose.xlu1.b32.cont [11/16] (narrow) %v6662_v15, 104 }
 0x15d   :  { %987 = vxpose.xlu0.b32.cont [11/16] (narrow) %v891_v34, 104 }
 0x15f   :  { %1020 = vxpose.xlu1.b32.cont [12/16] (narrow) %v6662_v15, 104 }
 0x161   :  { %988 = vxpose.xlu0.b32.cont [12/16] (narrow) %v892_v63, 104 }
 0x163   :  { %1021 = vxpose.xlu1.b32.cont [13/16] (narrow) %v6662_v15, 104 }
 0x165   :  { %989 = vxpose.xlu0.b32.cont [13/16] (narrow) %v893_v47, 104 }
 0x167   :  { %1022 = vxpose.xlu1.b32.cont [14/16] (narrow) %v6662_v15, 104 }
 0x169   :  { %990 = vxpose.xlu0.b32.cont [14/16] (narrow) %v894_v52, 104 }
 0x16b   :  { %1023 = vxpose.xlu1.b32.cont [15/16] (narrow) %v6662_v15, 104 }
 0x16d   :  { %991 = vxpose.xlu0.b32.cont [15/16] (narrow) %v895_v5, 104 }
 0x16f   :  { %1024 = vxpose.xlu1.b32.end [16/16] (narrow) %v6662_v15, 104 }
 0x171   :  { %v5687_v60 = vpop.trf.xlu0  ;;  %992 = vxpose.xlu0.b32.end [16/16] (narrow) %v896_v42, 104 }
 0x172   :  { %v6674_v34 = vunpack.i.h.bf16 %v5687_v60  ;;  %v6676_v63 = vunpack.i.l.bf16 %v5687_v60 }
 0x174   :  { %2323 = vmatprep.mubr.f32.mxu0 %v6676_v63  ;;  %2037 = vmatprep.mubr.f32.mxu1 %v6676_v63 }
 0x175   :  { %v5692_v47 = vpop.trf.xlu0  ;;  %2324 = vmatmul.mubr.f32.vlgmr.msra.gmra.mxu0 %v6674_v34  ;;  %2038 = vmatmul.mubr.f32.vlgmr.msra.gmra.mxu1 %v6674_v34 }
 0x176   :  { %v6683_v52 = vunpack.i.l.bf16 %v5692_v47  ;;  %v6685_v5 = vunpack.i.h.bf16 %v5692_v47  ;;  %2576 = vmatpush1.msra.mxu0 %v6662_v15  ;;  %2147 = vmatpush1.msra.mxu1 %v6662_v15 }
 0x177   :  { %5048 = vmatprep.subr.msk.mxu1 %vm1349_vm8, %v8344_v35 }
 0x178   :  { %2329 = vmatprep.mubr.f32.mxu0 %v6683_v52  ;;  %2043 = vmatprep.mubr.f32.mxu1 %v6683_v52 }
 0x179   :  { %v5697_v42 = vpop.trf.xlu0  ;;  %2330 = vmatmul.mubr.f32.gmra.mxu0 %v6685_v5  ;;  %2044 = vmatmul.mubr.f32.gmra.mxu1 %v6685_v5 }
 0x17a   :  { %v6694_v27 = vunpack.i.l.bf16 %v5697_v42  ;;  %v6696_v60 = vunpack.i.h.bf16 %v5697_v42 }
 0x17c   :  { %2335 = vmatprep.mubr.f32.mxu0 %v6694_v27  ;;  %2049 = vmatprep.mubr.f32.mxu1 %v6694_v27 }
 0x17d   :  { %v5702_v47 = vpop.trf.xlu0  ;;  %2336 = vmatmul.mubr.f32.gmra.mxu0 %v6696_v60  ;;  %2050 = vmatmul.mubr.f32.gmra.mxu1 %v6696_v60 }
 0x17e   :  { %v6702_v12 = vunpack.i.l.bf16 %v5702_v47  ;;  %v6704_v50 = vunpack.i.h.bf16 %v5702_v47 }
 0x180   :  { %2341 = vmatprep.mubr.f32.mxu0 %v6702_v12  ;;  %2055 = vmatprep.mubr.f32.mxu1 %v6702_v12 }
 0x181   :  { %v5707_v57 = vpop.trf.xlu0  ;;  %2342 = vmatmul.mubr.f32.gmra.mxu0 %v6704_v50  ;;  %2056 = vmatmul.mubr.f32.gmra.mxu1 %v6704_v50 }
 0x182   :  { %v6710_v42 = vunpack.i.l.bf16 %v5707_v57  ;;  %v6712_v20 = vunpack.i.h.bf16 %v5707_v57 }
 0x184   :  { %2347 = vmatprep.mubr.f32.mxu0 %v6710_v42  ;;  %2061 = vmatprep.mubr.f32.mxu1 %v6710_v42 }
 0x185   :  { %v5712_v43 = vpop.trf.xlu0  ;;  %2348 = vmatmul.mubr.f32.gmra.mxu0 %v6712_v20  ;;  %2062 = vmatmul.mubr.f32.gmra.mxu1 %v6712_v20 }
 0x186   :  { %v6718_v47 = vunpack.i.l.bf16 %v5712_v43  ;;  %v6720_v19 = vunpack.i.h.bf16 %v5712_v43 }
 0x188   :  { %2353 = vmatprep.mubr.f32.mxu0 %v6718_v47  ;;  %2067 = vmatprep.mubr.f32.mxu1 %v6718_v47 }
 0x189   :  { %v5717_v30 = vpop.trf.xlu0  ;;  %2354 = vmatmul.mubr.f32.gmra.mxu0 %v6720_v19  ;;  %2068 = vmatmul.mubr.f32.gmra.mxu1 %v6720_v19 }
 0x18a   :  { %v6726_v57 = vunpack.i.l.bf16 %v5717_v30  ;;  %v6728_v62 = vunpack.i.h.bf16 %v5717_v30 }
 0x18c   :  { %2359 = vmatprep.mubr.f32.mxu0 %v6726_v57  ;;  %2073 = vmatprep.mubr.f32.mxu1 %v6726_v57 }
 0x18d   :  { %v5722_v9 = vpop.trf.xlu0  ;;  %2360 = vmatmul.mubr.f32.gmra.mxu0 %v6728_v62  ;;  %2074 = vmatmul.mubr.f32.gmra.mxu1 %v6728_v62 }
 0x18e   :  { %v6734_v43 = vunpack.i.l.bf16 %v5722_v9  ;;  %v6736_v51 = vunpack.i.h.bf16 %v5722_v9 }
 0x190   :  { %2365 = vmatprep.mubr.f32.mxu0 %v6734_v43  ;;  %2079 = vmatprep.mubr.f32.mxu1 %v6734_v43 }
 0x191   :  { %v5727_v55 = vpop.trf.xlu0  ;;  %2366 = vmatmul.mubr.f32.gmra.mxu0 %v6736_v51  ;;  %2080 = vmatmul.mubr.f32.gmra.mxu1 %v6736_v51 }
 0x192   :  { %v6742_v30 = vunpack.i.l.bf16 %v5727_v55  ;;  %v6744_v40 = vunpack.i.h.bf16 %v5727_v55 }
 0x194   :  { %2371 = vmatprep.mubr.f32.mxu0 %v6742_v30  ;;  %2085 = vmatprep.mubr.f32.mxu1 %v6742_v30 }
 0x195   :  { %v5732_v28 = vpop.trf.xlu0  ;;  %2372 = vmatmul.mubr.f32.gmra.mxu0 %v6744_v40  ;;  %2086 = vmatmul.mubr.f32.gmra.mxu1 %v6744_v40 }
 0x196   :  { %v6750_v9 = vunpack.i.l.bf16 %v5732_v28  ;;  %v6752_v46 = vunpack.i.h.bf16 %v5732_v28 }
 0x198   :  { %2377 = vmatprep.mubr.f32.mxu0 %v6750_v9  ;;  %2091 = vmatprep.mubr.f32.mxu1 %v6750_v9 }
 0x199   :  { %v5737_v41 = vpop.trf.xlu0  ;;  %2378 = vmatmul.mubr.f32.gmra.mxu0 %v6752_v46  ;;  %2092 = vmatmul.mubr.f32.gmra.mxu1 %v6752_v46 }
 0x19a   :  { %v6758_v55 = vunpack.i.l.bf16 %v5737_v41  ;;  %v6760_v24 = vunpack.i.h.bf16 %v5737_v41 }
 0x19c   :  { %2383 = vmatprep.mubr.f32.mxu0 %v6758_v55  ;;  %2097 = vmatprep.mubr.f32.mxu1 %v6758_v55 }
 0x19d   :  { %v5742_v58 = vpop.trf.xlu0  ;;  %2384 = vmatmul.mubr.f32.gmra.mxu0 %v6760_v24  ;;  %2098 = vmatmul.mubr.f32.gmra.mxu1 %v6760_v24 }
 0x19e   :  { %v6766_v28 = vunpack.i.l.bf16 %v5742_v58  ;;  %v6768_v32 = vunpack.i.h.bf16 %v5742_v58  ;;  %v1088_v58 = vadd.s32 368, %v6144_v14 }
 0x1a0   :  { %2389 = vmatprep.mubr.f32.mxu0 %v6766_v28  ;;  %2103 = vmatprep.mubr.f32.mxu1 %v6766_v28  ;;  %vm1344_vm10 = vcmp.eq.s32.totalorder %v6672_v22, %v1088_v58 }
 0x1a1   :  { %v5747_v2 = vpop.trf.xlu0  ;;  %2390 = vmatmul.mubr.f32.gmra.mxu0 %v6768_v32  ;;  %2104 = vmatmul.mubr.f32.gmra.mxu1 %v6768_v32 }
 0x1a2   :  { %v6774_v41 = vunpack.i.l.bf16 %v5747_v2  ;;  %v6776_v8 = vunpack.i.h.bf16 %v5747_v2 }
 0x1a4   :  { %2395 = vmatprep.mubr.f32.mxu0 %v6774_v41  ;;  %2109 = vmatprep.mubr.f32.mxu1 %v6774_v41 }
 0x1a5   :  { %2396 = vmatmul.mubr.f32.gmra.mxu0 %v6776_v8  ;;  %2110 = vmatmul.mubr.f32.gmra.mxu1 %v6776_v8 }
 0x1a6   :  { %2609 = vmatprep.mubr.f32.mxu0 %v6676_v63 }
 0x1a9   :  { %2610 = vmatmul.mubr.f32.vlgmr.msra.gmra.mxu0 %v6674_v34  ;;  %v1086_v34 = vadd.s32 352, %v6144_v14 }
 0x1aa   :  { %2614 = vmatprep.mubr.f32.mxu0 %v6683_v52 }
 0x1ab   :  { %vm1334_vm12 = vcmp.eq.s32.totalorder %v6672_v22, %v1086_v34 }
 0x1ad   :  { %2615 = vmatmul.mubr.f32.gmra.mxu0 %v6685_v5 }
 0x1ae   :  { %2619 = vmatprep.mubr.f32.mxu0 %v6694_v27 }
 0x1af   :  { %v6788_v2 = vpop.trf.xlu1 }
 0x1b0   :  { %5022 = vmatprep.mubr.msk.f32.mxu1 %vm1917_vm9, %v6788_v2 }
 0x1b1   :  { %2620 = vmatmul.mubr.f32.gmra.mxu0 %v6696_v60  ;;  %v6794_v63 = vpop.trf.xlu0  ;;  %v1083_v60 = vadd.s32 328, %v6144_v14 }
 0x1b2   :  { %2181 = vmatmul.mubr.f32.vlgmr.msra.gmra.mxu1 %v6794_v63  ;;  %2624 = vmatprep.mubr.f32.mxu0 %v6702_v12  ;;  %v1085_v12 = vadd.s32 344, %v6144_v14 }
 0x1b3   :  { %v6800_v52 = vpop.trf.xlu1  ;;  %2403 = vmatpush1.msra.mxu1 %v6662_v15  ;;  %vm1319_vm15 = vcmp.eq.s32.totalorder %v6672_v22, %v1083_v60 }
 0x1b4   :  { %5023 = vmatprep.mubr.msk.f32.mxu1 %vm1917_vm9, %v6800_v52  ;;  %5049 = vmatprep.subr.msk.mxu1 %vm1344_vm10, %v8344_v35  ;;  %vm1329_vm13 = vcmp.eq.s32.totalorder %v6672_v22, %v1085_v12 }
 0x1b5   :  { %2625 = vmatmul.mubr.f32.gmra.mxu0 %v6704_v50  ;;  %v6808_v5 = vpop.trf.xlu0  ;;  %2405 = vmatpush1.msra.mxu1 %v6662_v15  ;;  %v1084_v50 = vadd.s32 336, %v6144_v14 }
 0x1b6   :  { %2187 = vmatmul.mubr.f32.gmra.mxu1 %v6808_v5  ;;  %2629 = vmatprep.mubr.f32.mxu0 %v6710_v42 }
 0x1b7   :  { %v6815_v27 = vpop.trf.xlu1  ;;  %5050 = vmatprep.subr.msk.mxu1 %vm1339_vm11, %v8344_v35  ;;  %vm1324_vm14 = vcmp.eq.s32.totalorder %v6672_v22, %v1084_v50 }
 0x1b8   :  { %5024 = vmatprep.mubr.msk.f32.mxu1 %vm1917_vm9, %v6815_v27  ;;  %2407 = vmatpush1.msra.mxu1 %v6662_v15 }
 0x1b9   :  { %2630 = vmatmul.mubr.f32.gmra.mxu0 %v6712_v20  ;;  %v6823_v61 = vpop.trf.xlu0  ;;  %5051 = vmatprep.subr.msk.mxu1 %vm1334_vm12, %v8344_v35 }
 0x1ba   :  { %2193 = vmatmul.mubr.f32.gmra.mxu1 %v6823_v61  ;;  %2634 = vmatprep.mubr.f32.mxu0 %v6718_v47  ;;  %v1082_v47 = vadd.s32 320, %v6144_v14 }
 0x1bb   :  { %v6830_v42 = vpop.trf.xlu1  ;;  %2409 = vmatpush1.msra.mxu1 %v6662_v15 }
 0x1bc   :  { %5025 = vmatprep.mubr.msk.f32.mxu1 %vm1917_vm9, %v6830_v42  ;;  %5052 = vmatprep.subr.msk.mxu1 %vm1329_vm13, %v8344_v35  ;;  %vm1314_vm0 = vcmp.eq.s32.totalorder %v6672_v22, %v1082_v47 }
 0x1bd   :  { %2635 = vmatmul.mubr.f32.gmra.mxu0 %v6720_v19  ;;  %v6838_v20 = vpop.trf.xlu0  ;;  %2411 = vmatpush1.msra.mxu1 %v6662_v15  ;;  %v1081_v19 = vadd.s32 312, %v6144_v14 }
 0x1be   :  { %2199 = vmatmul.mubr.f32.gmra.mxu1 %v6838_v20  ;;  %2639 = vmatprep.mubr.f32.mxu0 %v6726_v57  ;;  %v1080_v57 = vadd.s32 304, %v6144_v14 }
 0x1bf   :  { %v6845_v58 = vpop.trf.xlu1  ;;  %5053 = vmatprep.subr.msk.mxu1 %vm1324_vm14, %v8344_v35  ;;  %vm1309_vm1 = vcmp.eq.s32.totalorder %v6672_v22, %v1081_v19 }
 0x1c0   :  { %5026 = vmatprep.mubr.msk.f32.mxu1 %vm1917_vm9, %v6845_v58  ;;  %2413 = vmatpush1.msra.mxu1 %v6662_v15  ;;  %vm1304_vm3 = vcmp.eq.s32.totalorder %v6672_v22, %v1080_v57 }
 0x1c1   :  { %2640 = vmatmul.mubr.f32.gmra.mxu0 %v6728_v62  ;;  %v6853_v34 = vpop.trf.xlu0  ;;  %5054 = vmatprep.subr.msk.mxu1 %vm1319_vm15, %v8344_v35 }
 0x1c2   :  { %2205 = vmatmul.mubr.f32.gmra.mxu1 %v6853_v34  ;;  %2644 = vmatprep.mubr.f32.mxu0 %v6734_v43  ;;  %v1079_v43 = vadd.s32 296, %v6144_v14 }
 0x1c3   :  { %v6860_v12 = vpop.trf.xlu1  ;;  %2415 = vmatpush1.msra.mxu1 %v6662_v15 }
 0x1c4   :  { %5027 = vmatprep.mubr.msk.f32.mxu1 %vm1917_vm9, %v6860_v12  ;;  %5055 = vmatprep.subr.msk.mxu1 %vm1314_vm0, %v8344_v35  ;;  %vm1299_vm4 = vcmp.eq.s32.totalorder %v6672_v22, %v1079_v43 }
 0x1c5   :  { %2645 = vmatmul.mubr.f32.gmra.mxu0 %v6736_v51  ;;  %v6868_v62 = vpop.trf.xlu0  ;;  %2417 = vmatpush1.msra.mxu1 %v6662_v15  ;;  %v1078_v51 = vadd.s32 288, %v6144_v14 }
 0x1c6   :  { %2211 = vmatmul.mubr.f32.gmra.mxu1 %v6868_v62  ;;  %2649 = vmatprep.mubr.f32.mxu0 %v6742_v30  ;;  %v1077_v30 = vadd.s32 280, %v6144_v14 }
 0x1c7   :  { %v6875_v50 = vpop.trf.xlu1  ;;  %5056 = vmatprep.subr.msk.mxu1 %vm1309_vm1, %v8344_v35  ;;  %vm1294_vm5 = vcmp.eq.s32.totalorder %v6672_v22, %v1078_v51 }
 0x1c8   :  { %5028 = vmatprep.mubr.msk.f32.mxu1 %vm1917_vm9, %v6875_v50  ;;  %2419 = vmatpush1.msra.mxu1 %v6662_v15  ;;  %vm1289_vm6 = vcmp.eq.s32.totalorder %v6672_v22, %v1077_v30  ;;  %vm1288_vm8 = vcmp.eq.s32.totalorder %v6173_v29, %v1077_v30  ;;  %v1092_v30 = vadd.s32 400, %v6144_v14 }
 0x1c9   :  { %2650 = vmatmul.mubr.f32.gmra.mxu0 %v6744_v40  ;;  %v6883_v60 = vpop.trf.xlu0  ;;  %5057 = vmatprep.subr.msk.mxu1 %vm1304_vm3, %v8344_v35  ;;  %vm1957_vm3 = vcmask 1045504  }
 0x1ca   :  { %2217 = vmatmul.mubr.f32.gmra.mxu1 %v6883_v60  ;;  %2654 = vmatprep.mubr.f32.mxu0 %v6750_v9  ;;  %v1076_v9 = vadd.s32 272, %v6144_v14  ;;  %vm1364_vm14 = vcmp.eq.s32.totalorder %v6672_v22, %v1092_v30  ;;  %v6974_v30 = vadd.s32 456, %v6144_v14 }
 0x1cb   :  { %v6890_v47 = vpop.trf.xlu1  ;;  %2421 = vmatpush1.msra.mxu1 %v6662_v15 }
 0x1cc   :  { %5029 = vmatprep.mubr.msk.f32.mxu1 %vm1917_vm9, %v6890_v47  ;;  %5058 = vmatprep.subr.msk.mxu1 %vm1299_vm4, %v8344_v35  ;;  %vm1283_vm10 = vcmp.eq.s32.totalorder %v6173_v29, %v1076_v9  ;;  %8345 = vst [vmem:[#allocation66_spill] sm:$0xff] %v6974_v30 }
 0x1cd   :  { %2655 = vmatmul.mubr.f32.gmra.mxu0 %v6752_v46  ;;  %v6898_v40 = vpop.trf.xlu0  ;;  %2423 = vmatpush1.msra.mxu1 %v6662_v15 }
 0x1ce   :  { %2223 = vmatmul.mubr.f32.gmra.mxu1 %v6898_v40  ;;  %2659 = vmatprep.mubr.f32.mxu0 %v6758_v55  ;;  %v1075_v55 = vadd.s32 264, %v6144_v14 }
 0x1cf   :  { %v6905_v19 = vpop.trf.xlu1  ;;  %5059 = vmatprep.subr.msk.mxu1 %vm1294_vm5, %v8344_v35 }
 0x1d0   :  { %5030 = vmatprep.mubr.msk.f32.mxu1 %vm1917_vm9, %v6905_v19  ;;  %2425 = vmatpush1.msra.mxu1 %v6662_v15  ;;  %vm1278_vm11 = vcmp.eq.s32.totalorder %v6173_v29, %v1075_v55 }
 0x1d1   :  { %2660 = vmatmul.mubr.f32.gmra.mxu0 %v6760_v24  ;;  %v6913_v46 = vpop.trf.xlu0  ;;  %5060 = vmatprep.subr.msk.mxu1 %vm1289_vm6, %v8344_v35  ;;  %v1074_v24 = vadd.s32 256, %v6144_v14 }
 0x1d2   :  { %2229 = vmatmul.mubr.f32.gmra.mxu1 %v6913_v46  ;;  %2664 = vmatprep.mubr.f32.mxu0 %v6766_v28  ;;  %v6933_v28 = vadd.s32 408, %v6144_v14 }
 0x1d3   :  { %v6920_v57 = vpop.trf.xlu1  ;;  %5061 = vmatpush1.msk.msra.mxu1 %vm1288_vm8, %v8344_v35  ;;  %vm1273_vm12 = vcmp.eq.s32.totalorder %v6173_v29, %v1074_v24  ;;  %v1090_v29 = vadd.s32 384, %v6144_v14 }
 0x1d4   :  { %5031 = vmatprep.mubr.msk.f32.mxu1 %vm1917_vm9, %v6920_v57  ;;  %2428 = vmatprep.subr.mxu1 %v6662_v15  ;;  %vm1369_vm13 = vcmp.eq.s32.totalorder %v6672_v22, %v6933_v28 }
 0x1d5   :  { %2665 = vmatmul.mubr.f32.gmra.mxu0 %v6768_v32  ;;  %v6928_v43 = vpop.trf.xlu0  ;;  %5062 = vmatpush1.msk.msra.mxu1 %vm1283_vm10, %v8344_v35  ;;  %vm1354_vm0 = vcmp.eq.s32.totalorder %v6672_v22, %v1090_v29 }
 0x1d6   :  { %2235 = vmatmul.mubr.f32.gmra.mxu1 %v6928_v43  ;;  %2669 = vmatprep.mubr.f32.mxu0 %v6774_v41  ;;  %v1091_v41 = vadd.s32 392, %v6144_v14 }
 0x1d7   :  { %v6937_v51 = vpop.trf.xlu1  ;;  %2430 = vmatprep.subr.mxu1 %v6662_v15 }
 0x1d8   :  { %5032 = vmatprep.mubr.msk.f32.mxu1 %vm1917_vm9, %v6937_v51  ;;  %5063 = vmatpush1.msk.msra.mxu1 %vm1278_vm11, %v8344_v35  ;;  %vm1359_vm15 = vcmp.eq.s32.totalorder %v6672_v22, %v1091_v41  ;;  %v1098_v22 = vadd.s32 448, %v6144_v14 }
 0x1d9   :  { %2670 = vmatmul.mubr.f32.gmra.mxu0 %v6776_v8  ;;  %v6946_v32 = vpop.trf.xlu0  ;;  %2432 = vmatprep.subr.mxu1 %v6662_v15  ;;  %v1105_v8 = vadd.s32 512, %v6135_v10 }
 0x1da   :  { %2241 = vmatmul.mubr.f32.gmra.mxu1 %v6946_v32  ;;  %3097 = vmatprep.mubr.f32.mxu0 %v6662_v15 }
 0x1db   :  { %v6954_v9 = vpop.trf.xlu1  ;;  %5064 = vmatpush1.msk.msra.mxu1 %vm1273_vm12, %v8344_v35  ;;  %v4929_v17 = vadd.s32 4294967194, %v1105_v8  ;;  %v1097_v8 = vadd.s32 440, %v6144_v14 }
 0x1dc   :  { %5033 = vmatprep.mubr.msk.f32.mxu1 %vm1917_vm9, %v6954_v9  ;;  %5065 = vmatprep.subr.msk.mxu1 %vm1369_vm13, %v8344_v35 }
 0x1dd   :  { %v6963_v55 = vpop.trf.xlu0  ;;  %2459 = vmatpush2.msra.mxu1 %v6662_v15  ;;  %vm1400_vm1 = vcmp.eq.s32.totalorder %v4929_v17, %v6974_v30  ;;  %vm1395_vm4 = vcmp.eq.s32.totalorder %v4929_v17, %v1098_v22  ;;  %vm1390_vm5 = vcmp.eq.s32.totalorder %v4929_v17, %v1097_v8  ;;  %vm1385_vm6 = vcmp.eq.s32.totalorder %v4929_v17, %v1096_v23 }
 0x1de   :  { %2247 = vmatmul.mubr.f32.gmra.mxu1 %v6963_v55  ;;  %5066 = vmatprep.subr.msk.mxu1 %vm1364_vm14, %v8344_v35  ;;  %v1690_v29 = vsel %vm1400_vm1, 1.0, %v6662_v15  ;;  %v1094_v22 = vadd.s32 416, %v6144_v14  ;;  %vm1380_vm8 = vcmp.eq.s32.totalorder %v4929_v17, %v1095_v59  ;;  %vm1370_vm11 = vcmp.eq.s32.totalorder %v4929_v17, %v6933_v28 }
 0x1df   :  { %v6969_v24 = vpop.trf.xlu1  ;;  %2461 = vmatpush2.msra.mxu1 %v6662_v15 }
 0x1e0   :  { %5034 = vmatprep.mubr.msk.f32.mxu1 %vm1917_vm9, %v6969_v24  ;;  %5067 = vmatprep.subr.msk.mxu1 %vm1359_vm15, %v8344_v35  ;;  %vm1375_vm10 = vcmp.eq.s32.totalorder %v4929_v17, %v1094_v22 }
 0x1e1   :  { %v6979_v41 = vpop.trf.xlu0  ;;  %2463 = vmatpush2.msra.mxu1 %v6662_v15 }
 0x1e2   :  { %2253 = vmatmul.mubr.f32.gmra.mxu1 %v6979_v41  ;;  %5068 = vmatprep.subr.msk.mxu1 %vm1354_vm0, %v8344_v35 }
 0x1e3   :  { %5069 = vmatprep.mubr.msk.f32.mxu1 %vm1917_vm9, %v6788_v2  ;;  %2465 = vmatpush2.msra.mxu1 %v6662_v15 }
 0x1e4   :  { %2705 = vmatprep.subr.mxu1 %v6662_v15 }
 0x1e6   :  { %2467 = vmatmul.mubr.f32.vlgmr.msra.gmra.mxu1 %v6794_v63 }
 0x1e7   :  { %5070 = vmatprep.mubr.msk.f32.mxu1 %vm1917_vm9, %v6800_v52  ;;  %2706 = vmatpush1.msra.mxu1 %v6662_v15 }
 0x1e8   :  { %2719 = vmatprep.subr.mxu1 %v6662_v15 }
 0x1e9   :  { %5082 = vmatpush2.msk.msra.mxu1 %vm1957_vm3, %v1690_v29 }
 0x1ea   :  { %2473 = vmatmul.mubr.f32.gmra.mxu1 %v6808_v5  ;;  %2721 = vmatprep.subr.mxu1 %v6662_v15 }
 0x1eb   :  { %5071 = vmatprep.mubr.msk.f32.mxu1 %vm1917_vm9, %v6815_v27  ;;  %5083 = vmatpush2.msk.msra.mxu1 %vm1395_vm4, %v8344_v35 }
 0x1ec   :  { %2723 = vmatprep.subr.mxu1 %v6662_v15 }
 0x1ed   :  { %5084 = vmatpush2.msk.msra.mxu1 %vm1390_vm5, %v8344_v35 }
 0x1ee   :  { %2479 = vmatmul.mubr.f32.gmra.mxu1 %v6823_v61  ;;  %2725 = vmatprep.subr.mxu1 %v6662_v15 }
 0x1ef   :  { %5072 = vmatprep.mubr.msk.f32.mxu1 %vm1917_vm9, %v6830_v42  ;;  %5085 = vmatpush2.msk.msra.mxu1 %vm1385_vm6, %v8344_v35 }
 0x1f0   :  { %2727 = vmatprep.subr.mxu1 %v6662_v15 }
 0x1f1   :  { %5086 = vmatpush2.msk.msra.mxu1 %vm1380_vm8, %v8344_v35 }
 0x1f2   :  { %2485 = vmatmul.mubr.f32.gmra.mxu1 %v6838_v20  ;;  %2729 = vmatprep.subr.mxu1 %v6662_v15 }
 0x1f3   :  { %5073 = vmatprep.mubr.msk.f32.mxu1 %vm1917_vm9, %v6845_v58  ;;  %5087 = vmatpush2.msk.msra.mxu1 %vm1375_vm10, %v8344_v35 }
 0x1f4   :  { %2731 = vmatprep.subr.mxu1 %v6662_v15 }
 0x1f5   :  { %5088 = vmatpush2.msk.msra.mxu1 %vm1370_vm11, %v8344_v35 }
 0x1f6   :  { %2491 = vmatmul.mubr.f32.gmra.mxu1 %v6853_v34  ;;  %2733 = vmatprep.subr.mxu1 %v6662_v15 }
 0x1f7   :  { %5074 = vmatprep.mubr.msk.f32.mxu1 %vm1917_vm9, %v6860_v12  ;;  %2734 = vmatpush2.msra.mxu1 %v6662_v15 }
 0x1f8   :  { %2735 = vmatprep.subr.mxu1 %v6662_v15 }
 0x1f9   :  { %2736 = vmatpush2.msra.mxu1 %v6662_v15 }
 0x1fa   :  { %2497 = vmatmul.mubr.f32.gmra.mxu1 %v6868_v62  ;;  %2737 = vmatprep.subr.mxu1 %v6662_v15 }
 0x1fb   :  { %5075 = vmatprep.mubr.msk.f32.mxu1 %vm1917_vm9, %v6875_v50  ;;  %2738 = vmatpush2.msra.mxu1 %v6662_v15 }
 0x1fe   :  { %2503 = vmatmul.mubr.f32.gmra.mxu1 %v6883_v60 }
 0x1ff   :  { %5076 = vmatprep.mubr.msk.f32.mxu1 %vm1917_vm9, %v6890_v47 }
 0x202   :  { %2509 = vmatmul.mubr.f32.gmra.mxu1 %v6898_v40 }
 0x203   :  { %5077 = vmatprep.mubr.msk.f32.mxu1 %vm1917_vm9, %v6905_v19 }
 0x206   :  { %2515 = vmatmul.mubr.f32.gmra.mxu1 %v6913_v46 }
 0x207   :  { %5078 = vmatprep.mubr.msk.f32.mxu1 %vm1917_vm9, %v6920_v57 }
 0x20a   :  { %2521 = vmatmul.mubr.f32.gmra.mxu1 %v6928_v43 }
 0x20b   :  { %5079 = vmatprep.mubr.msk.f32.mxu1 %vm1917_vm9, %v6937_v51 }
 0x20e   :  { %2527 = vmatmul.mubr.f32.gmra.mxu1 %v6946_v32 }
 0x20f   :  { %5080 = vmatprep.mubr.msk.f32.mxu1 %vm1917_vm9, %v6954_v9 }
 0x212   :  { %2533 = vmatmul.mubr.f32.gmra.mxu1 %v6963_v55 }
 0x213   :  { %5081 = vmatprep.mubr.msk.f32.mxu1 %vm1917_vm9, %v6969_v24 }
 0x216   :  { %2539 = vmatmul.mubr.f32.gmra.mxu1 %v6979_v41 }
 0x217   :  { %5089 = vmatprep.mubr.msk.f32.mxu1 %vm1917_vm9, %v6788_v2 }
 0x21a   :  { %2740 = vmatmul.mubr.f32.vlgmr.msra.gmra.mxu1 %v6794_v63 }
 0x21b   :  { %5090 = vmatprep.mubr.msk.f32.mxu1 %vm1917_vm9, %v6800_v52 }
 0x21e   :  { %2745 = vmatmul.mubr.f32.gmra.mxu1 %v6808_v5 }
 0x21f   :  { %5091 = vmatprep.mubr.msk.f32.mxu1 %vm1917_vm9, %v6815_v27 }
 0x222   :  { %2750 = vmatmul.mubr.f32.gmra.mxu1 %v6823_v61 }
 0x223   :  { %5092 = vmatprep.mubr.msk.f32.mxu1 %vm1917_vm9, %v6830_v42 }
 0x226   :  { %2755 = vmatmul.mubr.f32.gmra.mxu1 %v6838_v20 }
 0x227   :  { %5093 = vmatprep.mubr.msk.f32.mxu1 %vm1917_vm9, %v6845_v58 }
 0x22a   :  { %2760 = vmatmul.mubr.f32.gmra.mxu1 %v6853_v34 }
 0x22b   :  { %5094 = vmatprep.mubr.msk.f32.mxu1 %vm1917_vm9, %v6860_v12 }
 0x22e   :  { %2765 = vmatmul.mubr.f32.gmra.mxu1 %v6868_v62 }
 0x22f   :  { %5095 = vmatprep.mubr.msk.f32.mxu1 %vm1917_vm9, %v6875_v50 }
 0x232   :  { %2770 = vmatmul.mubr.f32.gmra.mxu1 %v6883_v60 }
 0x233   :  { %5096 = vmatprep.mubr.msk.f32.mxu1 %vm1917_vm9, %v6890_v47 }
 0x235   :  { %v7077_v59 = vpop.f32.mrf.mxu0  ;;  %v7079_v17 = vpop.f32.mrf.mxu1 }
 0x236   :  { %8346 = vst [vmem:[#allocation67_spill] sm:$0xff] %v7077_v59  ;;  %2775 = vmatmul.mubr.f32.gmra.mxu1 %v6898_v40 }
 0x237   :  { %v7082_v23 = vpop.f32.mrf.mxu0  ;;  %5097 = vmatprep.mubr.msk.f32.mxu1 %vm1917_vm9, %v6905_v19  ;;  %v7086_v35 = vpop.f32.mrf.mxu1 }
 0x238   :  { %8347 = vst [vmem:[#allocation68_spill] sm:$0xff] %v7082_v23 }
 0x239   :  { %v7088_v2 = vpop.f32.mrf.mxu0  ;;  %v7090_v63 = vpop.f32.mrf.mxu1 }
 0x23a   :  { %8348 = vst [vmem:[#allocation69_spill] sm:$0xff] %v7088_v2  ;;  %2780 = vmatmul.mubr.f32.gmra.mxu1 %v6913_v46 }
 0x23b   :  { %v7093_v52 = vpop.f32.mrf.mxu0  ;;  %5098 = vmatprep.mubr.msk.f32.mxu1 %vm1917_vm9, %v6920_v57  ;;  %v7097_v5 = vpop.f32.mrf.mxu1 }
 0x23c   :  { %8349 = vst [vmem:[#allocation70_spill] sm:$0xff] %v7093_v52 }
 0x23d   :  { %v7099_v27 = vpop.f32.mrf.mxu0  ;;  %v7101_v61 = vpop.f32.mrf.mxu1 }
 0x23e   :  { %8350 = vst [vmem:[#allocation71_spill] sm:$0xff] %v7099_v27  ;;  %2785 = vmatmul.mubr.f32.gmra.mxu1 %v6928_v43 }
 0x23f   :  { %v7104_v42 = vpop.f32.mrf.mxu0  ;;  %5099 = vmatprep.mubr.msk.f32.mxu1 %vm1917_vm9, %v6937_v51  ;;  %v7108_v20 = vpop.f32.mrf.mxu1 }
 0x240   :  { %8351 = vst [vmem:[#allocation72_spill] sm:$0xff] %v7104_v42 }
 0x241   :  { %v7110_v58 = vpop.f32.mrf.mxu0  ;;  %v7112_v34 = vpop.f32.mrf.mxu1 }
 0x242   :  { %8352 = vst [vmem:[#allocation73_spill] sm:$0xff] %v7110_v58  ;;  %2790 = vmatmul.mubr.f32.gmra.mxu1 %v6946_v32 }
 0x243   :  { %v7115_v12 = vpop.f32.mrf.mxu0  ;;  %5100 = vmatprep.mubr.msk.f32.mxu1 %vm1917_vm9, %v6954_v9  ;;  %v7119_v62 = vpop.f32.mrf.mxu1 }
 0x244   :  { %8353 = vst [vmem:[#allocation74_spill] sm:$0xff] %v7115_v12 }
 0x245   :  { %v7121_v50 = vpop.f32.mrf.mxu0  ;;  %v7123_v60 = vpop.f32.mrf.mxu1 }
 0x246   :  { %8354 = vst [vmem:[#allocation75_spill] sm:$0xff] %v7121_v50  ;;  %2795 = vmatmul.mubr.f32.gmra.mxu1 %v6963_v55 }
 0x247   :  { %v7126_v47 = vpop.f32.mrf.mxu0  ;;  %5101 = vmatprep.mubr.msk.f32.mxu1 %vm1917_vm9, %v6969_v24  ;;  %v7130_v40 = vpop.f32.mrf.mxu1 }
 0x248   :  { %8355 = vst [vmem:[#allocation76_spill] sm:$0xff] %v7126_v47 }
 0x249   :  { %v7132_v19 = vpop.f32.mrf.mxu0  ;;  %v7134_v46 = vpop.f32.mrf.mxu1 }
 0x24a   :  { %8356 = vst [vmem:[#allocation77_spill] sm:$0xff] %v7132_v19  ;;  %2800 = vmatmul.mubr.f32.gmra.mxu1 %v6979_v41 }
 0x24b   :  { %v7137_v57 = vpop.f32.mrf.mxu0  ;;  %v7139_v43 = vpop.f32.mrf.mxu1  ;;  %3331 = vmatprep.mubr.f32.mxu1 %v6662_v15 }
 0x24c   :  { %8357 = vst [vmem:[#allocation78_spill] sm:$0xff] %v7137_v57 }
 0x24d   :  { %v7142_v28 = vpop.f32.mrf.mxu0  ;;  %v7144_v51 = vpop.f32.mrf.mxu1 }
 0x24e   :  { %8358 = vst [vmem:[#allocation79_spill] sm:$0xff] %v7142_v28 }
 0x24f   :  { %v7146_v32 = vpop.f32.mrf.mxu0  ;;  %v7148_v9 = vpop.f32.mrf.mxu1 }
 0x250   :  { %8359 = vst [vmem:[#allocation80_spill] sm:$0xff] %v7146_v32 }
 0x251   :  { %v7150_v55 = vpop.f32.mrf.mxu0  ;;  %v7152_v24 = vpop.f32.mrf.mxu1 }
 0x252   :  { %8360 = vst [vmem:[#allocation81_spill] sm:$0xff] %v7150_v55 }
 0x253   :  { %v7154_v29 = vpop.f32.mrf.mxu0  ;;  %v7156_v41 = vpop.f32.mrf.mxu1 }
 0x254   :  { %8361 = vst [vmem:[#allocation82_spill] sm:$0xff] %v7154_v29 }
 0x255   :  { %v7158_v8 = vpop.f32.mrf.mxu0  ;;  %v7160_v22 = vpop.f32.mrf.mxu1 }
 0x256   :  { %8362 = vst [vmem:[#allocation83_spill] sm:$0xff] %v7158_v8 }
 0x257   :  { %v7162_v15 = vpop.f32.mrf.mxu0  ;;  %v7164_v36 = vpop.f32.mrf.mxu1 }
 0x258   :  { %8363 = vst [vmem:[#allocation84_spill] sm:$0xff] %v7162_v15 }
 0x259   :  { %v7166_v1 = vpop.f32.mrf.mxu0  ;;  %v7168_v53 = vpop.f32.mrf.mxu1 }
 0x25a   :  { %8364 = vst [vmem:[#allocation85_spill] sm:$0xff] %v7166_v1 }
 0x25b   :  { %v7170_v49 = vpop.f32.mrf.mxu0  ;;  %v7172_v48 = vpop.f32.mrf.mxu1 }
 0x25c   :  { %8365 = vst [vmem:[#allocation86_spill] sm:$0xff] %v7170_v49 }
 0x25d   :  { %v7174_v54 = vpop.f32.mrf.mxu0  ;;  %v7176_v13 = vpop.f32.mrf.mxu1 }
 0x25f   :  { %v7178_v38 = vpop.f32.mrf.mxu0  ;;  %v7180_v6 = vpop.f32.mrf.mxu1 }
 0x261   :  { %v7182_v44 = vpop.f32.mrf.mxu0  ;;  %v7186_v26 = vpop.f32.mrf.mxu1 }
 0x263   :  { %v7184_v31 = vpop.f32.mrf.mxu0  ;;  %v2107_v39 = vpop.f32.mrf.mxu1 }
 0x265   :  { %v7188_v37 = vpop.f32.mrf.mxu0  ;;  %v2111_v21 = vpop.f32.mrf.mxu1 }
 0x267   :  { %v7190_v33 = vpop.f32.mrf.mxu0  ;;  %v2113_v45 = vpop.f32.mrf.mxu1 }
 0x269   :  { %v7192_v16 = vpop.f32.mrf.mxu0 }
 0x26a   :  { %8366 = vst [vmem:[#allocation87_spill] sm:$0xff] %v7192_v16 }
 0x26b   :  { %v2613_v4 = vpop.f32.mrf.mxu0 }
 0x26d   :  { %v7194_v25 = vpop.f32.mrf.mxu0 }
 0x26e   :  { %8367 = vst [vmem:[#allocation88_spill] sm:$0xff] %v7194_v25 }
 0x26f   :  { %v2618_v7 = vpop.f32.mrf.mxu0 }
 0x271   :  { %v7196_v11 = vpop.f32.mrf.mxu0 }
 0x272   :  { %8368 = vst [vmem:[#allocation89_spill] sm:$0xff] %v7196_v11  ;;  %v2182_v56 = vpop.f32.mrf.mxu1 }
 0x273   :  { %v7199_v0 = vadd.f32 %v2182_v56, %v7079_v17  ;;  %v2623_v18 = vpop.f32.mrf.mxu0 }
 0x274   :  { %v7201_v3 = vpop.f32.mrf.mxu1 }
 0x275   :  { %v7203_v10 = vpop.f32.mrf.mxu0 }
 0x276   :  { %8369 = vst [vmem:[#allocation90_spill] sm:$0xff] %v7203_v10  ;;  %v2188_v14 = vpop.f32.mrf.mxu1 }
 0x277   :  { %v7206_v16 = vadd.f32 %v2188_v14, %v7090_v63  ;;  %v2628_v4 = vpop.f32.mrf.mxu0 }
 0x278   :  { %v7208_v30 = vpop.f32.mrf.mxu1 }
 0x279   :  { %v7210_v7 = vpop.f32.mrf.mxu0 }
 0x27a   :  { %8370 = vst [vmem:[#allocation91_spill] sm:$0xff] %v7210_v7  ;;  %v7212_v25 = vpop.f32.mrf.mxu1 }
 0x27b   :  { %v2633_v11 = vpop.f32.mrf.mxu0 }
 0x27c   :  { %v7214_v59 = vpop.f32.mrf.mxu1 }
 0x27d   :  { %v7216_v56 = vpop.f32.mrf.mxu0 }
 0x27e   :  { %8371 = vst [vmem:[#allocation92_spill] sm:$0xff] %v7216_v56  ;;  %v7218_v18 = vpop.f32.mrf.mxu1 }
 0x27f   :  { %v2638_v17 = vpop.f32.mrf.mxu0 }
 0x280   :  { %v7220_v10 = vpop.f32.mrf.mxu1 }
 0x281   :  { %v7222_v23 = vpop.f32.mrf.mxu0 }
 0x282   :  { %8372 = vst [vmem:[#allocation93_spill] sm:$0xff] %v7222_v23  ;;  %v7224_v14 = vpop.f32.mrf.mxu1 }
 0x283   :  { %v2643_v63 = vpop.f32.mrf.mxu0 }
 0x284   :  { %v7226_v4 = vpop.f32.mrf.mxu1 }
 0x285   :  { %v7228_v7 = vpop.f32.mrf.mxu0 }
 0x286   :  { %8373 = vst [vmem:[#allocation94_spill] sm:$0xff] %v7228_v7  ;;  %v7230_v2 = vpop.f32.mrf.mxu1 }
 0x287   :  { %v2648_v11 = vpop.f32.mrf.mxu0 }
 0x288   :  { %v7232_v52 = vpop.f32.mrf.mxu1 }
 0x289   :  { %v7234_v56 = vpop.f32.mrf.mxu0 }
 0x28a   :  { %8374 = vst [vmem:[#allocation95_spill] sm:$0xff] %v7234_v56  ;;  %v7236_v27 = vpop.f32.mrf.mxu1 }
 0x28b   :  { %v2653_v17 = vpop.f32.mrf.mxu0 }
 0x28c   :  { %v2220_v42 = vpop.f32.mrf.mxu1 }
 0x28d   :  { %v7238_v58 = vpop.f32.mrf.mxu0 }
 0x28e   :  { %8375 = vst [vmem:[#allocation96_spill] sm:$0xff] %v7238_v58  ;;  %v2224_v23 = vpop.f32.mrf.mxu1 }
 0x28f   :  { %v2658_v12 = vpop.f32.mrf.mxu0 }
 0x290   :  { %v2226_v63 = vpop.f32.mrf.mxu1 }
 0x291   :  { %v7240_v50 = vpop.f32.mrf.mxu0 }
 0x292   :  { %8376 = vst [vmem:[#allocation97_spill] sm:$0xff] %v7240_v50  ;;  %v2230_v47 = vpop.f32.mrf.mxu1 }
 0x293   :  { %v2663_v7 = vpop.f32.mrf.mxu0 }
 0x294   :  { %v2232_v19 = vpop.f32.mrf.mxu1 }
 0x295   :  { %v7242_v57 = vpop.f32.mrf.mxu0 }
 0x296   :  { %8377 = vst [vmem:[#allocation98_spill] sm:$0xff] %v7242_v57  ;;  %v2236_v11 = vpop.f32.mrf.mxu1 }
 0x297   :  { %v2668_v28 = vpop.f32.mrf.mxu0 }
 0x298   :  { %v2238_v32 = vpop.f32.mrf.mxu1 }
 0x299   :  { %v7244_v56 = vpop.f32.mrf.mxu0 }
 0x29a   :  { %v2242_v55 = vpop.f32.mrf.mxu1 }
 0x29b   :  { %v2673_v17 = vpop.f32.mrf.mxu0 }
 0x29c   :  { %v2244_v29 = vpop.f32.mrf.mxu1 }
 0x29d   :  { %v2245_v17 = vadd.f32 %v2244_v29, %v7180_v6  ;;  %v2231_v6 = vadd.f32 %v2230_v47, %v7160_v22  ;;  %v2219_v47 = vadd.f32 %v7236_v27, %v7144_v51  ;;  %v2207_v27 = vadd.f32 %v7224_v14, %v7123_v60 }
 0x29e   :  { %v2248_v8 = vpop.f32.mrf.mxu1  ;;  %v2195_v60 = vadd.f32 %v7212_v25, %v7101_v61 }
 0x29f   :  { %v2249_v28 = vadd.f32 %v2248_v8, %v7186_v26  ;;  %v2237_v26 = vadd.f32 %v2236_v11, %v7168_v53  ;;  %v2225_v53 = vadd.f32 %v2224_v23, %v7152_v24  ;;  %v2213_v23 = vadd.f32 %v7230_v2, %v7134_v46 }
 0x2a0   :  { %v2250_v58 = vpop.f32.mrf.mxu1  ;;  %v2201_v2 = vadd.f32 %v7218_v18, %v7112_v34 }
 0x2a1   :  { %v2251_v7 = vadd.f32 %v2250_v58, %v2107_v39 }
 0x2a2   :  { %v2254_v15 = vpop.f32.mrf.mxu1 }
 0x2a3   :  { %v2255_v49 = vadd.f32 %v2254_v15, %v2111_v21  ;;  %v2243_v21 = vadd.f32 %v2242_v55, %v7176_v13 }
 0x2a4   :  { %v2256_v12 = vpop.f32.mrf.mxu1 }
 0x2a5   :  { %v2257_v1 = vadd.f32 %v2256_v12, %v2113_v45 }
 0x2a6   :  { %v7246_v50 = vpop.f32.mrf.mxu1 }
 0x2a7   :  { %5102 = vmatprep.subr.msk.mxu0 %vm1957_vm3, %v2257_v1  ;;  %5623 = vmatprep.subr.msk.mxu1 %vm1957_vm3, %v2257_v1  ;;  %v2239_v1 = vadd.f32 %v2238_v32, %v7172_v48  ;;  %v2227_v48 = vadd.f32 %v2226_v63, %v7156_v41  ;;  %v2215_v32 = vadd.f32 %v7232_v52, %v7139_v43 }
 0x2a8   :  { %v7251_v57 = vpop.f32.mrf.mxu1  ;;  %5103 = vmatpush1.msk.msra.mxu0 %vm1957_vm3, %v2255_v49  ;;  %5636 = vmatpush1.msk.msra.mxu1 %vm1957_vm3, %v2255_v49  ;;  %v2233_v49 = vadd.f32 %v2232_v19, %v7164_v36  ;;  %v2221_v36 = vadd.f32 %v2220_v42, %v7148_v9  ;;  %v2209_v42 = vadd.f32 %v7226_v4, %v7130_v40 }
 0x2a9   :  { %3041 = vmatprep.subr.mxu0 %v2251_v7  ;;  %5624 = vmatprep.subr.mxu1 %v2251_v7  ;;  %v2203_v52 = vadd.f32 %v7220_v10, %v7119_v62  ;;  %v2197_v40 = vadd.f32 %v7214_v59, %v7108_v20  ;;  %v2191_v10 = vadd.f32 %v7208_v30, %v7097_v5  ;;  %v7314_v30 = vld [vmem:[#allocation2 + $0x1d0] sm:$0xff] }
 0x2aa   :  { %v7257_v45 = vpop.f32.mrf.mxu1  ;;  %3042 = vmatpush1.msra.mxu0 %v2249_v28  ;;  %5637 = vmatpush1.msra.mxu1 %v2249_v28  ;;  %v2185_v59 = vadd.f32 %v7201_v3, %v7086_v35  ;;  %v8379_v7 = vld [vmem:[#allocation85_spill] sm:$0xff] }
 0x2ab   :  { %3043 = vmatprep.subr.mxu0 %v2245_v17  ;;  %5625 = vmatprep.subr.mxu1 %v2245_v17 }
 0x2ac   :  { %v7261_v39 = vpop.f32.mrf.mxu1  ;;  %3044 = vmatpush1.msra.mxu0 %v2243_v21  ;;  %5638 = vmatpush1.msra.mxu1 %v2243_v21 }
 0x2ad   :  { %3045 = vmatprep.subr.mxu0 %v2239_v1  ;;  %5626 = vmatprep.subr.mxu1 %v2239_v1 }
 0x2ae   :  { %v7265_v13 = vpop.f32.mrf.mxu1  ;;  %3046 = vmatpush1.msra.mxu0 %v2237_v26  ;;  %5639 = vmatpush1.msra.mxu1 %v2237_v26  ;;  %v8382_v26 = vld [vmem:[#allocation82_spill] sm:$0xff] }
 0x2af   :  { %3047 = vmatprep.subr.mxu0 %v2233_v49  ;;  %5627 = vmatprep.subr.mxu1 %v2233_v49 }
 0x2b0   :  { %v7269_v58 = vpop.f32.mrf.mxu1  ;;  %3048 = vmatpush1.msra.mxu0 %v2231_v6  ;;  %5640 = vmatpush1.msra.mxu1 %v2231_v6 }
 0x2b1   :  { %3049 = vmatprep.subr.mxu0 %v2227_v48  ;;  %5628 = vmatprep.subr.mxu1 %v2227_v48  ;;  %v8383_v48 = vld [vmem:[#allocation81_spill] sm:$0xff] }
 0x2b2   :  { %v7274_v19 = vpop.f32.mrf.mxu1  ;;  %3050 = vmatpush1.msra.mxu0 %v2225_v53  ;;  %5641 = vmatpush1.msra.mxu1 %v2225_v53 }
 0x2b3   :  { %3051 = vmatprep.subr.mxu0 %v2221_v36  ;;  %5629 = vmatprep.subr.mxu1 %v2221_v36  ;;  %v8384_v36 = vld [vmem:[#allocation80_spill] sm:$0xff] }
 0x2b4   :  { %v7280_v55 = vpop.f32.mrf.mxu1  ;;  %3052 = vmatpush1.msra.mxu0 %v2219_v47  ;;  %5642 = vmatpush1.msra.mxu1 %v2219_v47 }
 0x2b5   :  { %3053 = vmatprep.subr.mxu0 %v2215_v32  ;;  %5630 = vmatprep.subr.mxu1 %v2215_v32 }
 0x2b6   :  { %v7286_v51 = vpop.f32.mrf.mxu1  ;;  %3054 = vmatpush1.msra.mxu0 %v2213_v23  ;;  %5643 = vmatpush1.msra.mxu1 %v2213_v23  ;;  %v8385_v23 = vld [vmem:[#allocation79_spill] sm:$0xff] }
 0x2b7   :  { %3055 = vmatprep.subr.mxu0 %v2209_v42  ;;  %5631 = vmatprep.subr.mxu1 %v2209_v42 }
 0x2b8   :  { %v7292_v46 = vpop.f32.mrf.mxu1  ;;  %3056 = vmatpush1.msra.mxu0 %v2207_v27  ;;  %5644 = vmatpush1.msra.mxu1 %v2207_v27  ;;  %v8386_v27 = vld [vmem:[#allocation78_spill] sm:$0xff] }
 0x2b9   :  { %3057 = vmatprep.subr.mxu0 %v2203_v52  ;;  %5632 = vmatprep.subr.mxu1 %v2203_v52 }
 0x2ba   :  { %v7298_v43 = vpop.f32.mrf.mxu1  ;;  %3058 = vmatpush1.msra.mxu0 %v2201_v2  ;;  %5645 = vmatpush1.msra.mxu1 %v2201_v2 }
 0x2bb   :  { %3059 = vmatprep.subr.mxu0 %v2197_v40  ;;  %5633 = vmatprep.subr.mxu1 %v2197_v40  ;;  %v8387_v40 = vld [vmem:[#allocation77_spill] sm:$0xff] }
 0x2bc   :  { %v7302_v34 = vpop.f32.mrf.mxu1  ;;  %3060 = vmatpush1.msra.mxu0 %v2195_v60  ;;  %5646 = vmatpush1.msra.mxu1 %v2195_v60  ;;  %v2499_v60 = vadd.f32 %v7298_v43, %v8387_v40 }
 0x2bd   :  { %3061 = vmatprep.subr.mxu0 %v2191_v10  ;;  %5634 = vmatprep.subr.mxu1 %v2191_v10  ;;  %v2501_v52 = vadd.f32 %v7302_v34, %v8386_v27  ;;  %v8388_v10 = vld [vmem:[#allocation76_spill] sm:$0xff] }
 0x2be   :  { %v7306_v20 = vpop.f32.mrf.mxu1  ;;  %3062 = vmatpush1.msra.mxu0 %v7206_v16  ;;  %5647 = vmatpush1.msra.mxu1 %v7206_v16 }
 0x2bf   :  { %3063 = vmatprep.subr.mxu0 %v2185_v59  ;;  %5635 = vmatprep.subr.mxu1 %v2185_v59  ;;  %v2505_v42 = vadd.f32 %v7306_v20, %v8385_v23  ;;  %v2495_v59 = vadd.f32 %v7292_v46, %v8388_v10  ;;  %v8403_v10 = vld [vmem:[#allocation96_spill] sm:$0xff] }
 0x2c0   :  { %v7310_v25 = vpop.f32.mrf.mxu1  ;;  %3064 = vmatpush1.msra.mxu0 %v7199_v0  ;;  %5648 = vmatpush1.msra.mxu1 %v7199_v0 }
 0x2c1   :  { %3098 = vmatmul.mubr.f32.vlgmr.msra.gmra.mxu0 %v7314_v30  ;;  %3332 = vmatmul.mubr.f32.vlgmr.msra.gmra.mxu1 %v7314_v30  ;;  %v2507_v47 = vadd.f32 %v7310_v25, %v8384_v36  ;;  %v8389_v25 = vld [vmem:[#allocation75_spill] sm:$0xff] }
 0x2c2   :  { %v7318_v3 = vpop.f32.mrf.mxu1  ;;  %3103 = vmatprep.mubr.f32.mxu0 %v7314_v30  ;;  %3337 = vmatprep.mubr.f32.mxu1 %v7314_v30  ;;  %v2493_v34 = vadd.f32 %v7286_v51, %v8389_v25  ;;  %v8404_v25 = vld [vmem:[#allocation95_spill] sm:$0xff] }
 0x2c3   :  { %5384 = vmatprep.subr.mxu0 %v7314_v30  ;;  %v2511_v53 = vadd.f32 %v7318_v3, %v8383_v48  ;;  %v8390_v3 = vld [vmem:[#allocation74_spill] sm:$0xff] }
 0x2c4   :  { %v7323_v16 = vpop.f32.mrf.mxu1  ;;  %v2489_v43 = vadd.f32 %v7280_v55, %v8390_v3 }
 0x2c5   :  { %3104 = vmatmul.mubr.f32.gmra.mxu0 %v7314_v30  ;;  %3338 = vmatmul.mubr.f32.gmra.mxu1 %v7314_v30  ;;  %v2513_v49 = vadd.f32 %v7323_v16, %v8382_v26 }
 0x2c6   :  { %v2516_v0 = vpop.f32.mrf.mxu1  ;;  %3109 = vmatprep.mubr.f32.mxu0 %v7314_v30  ;;  %3343 = vmatprep.mubr.f32.mxu1 %v7314_v30 }
 0x2c8   :  { %v2518_v35 = vpop.f32.mrf.mxu1 }
 0x2c9   :  { %3110 = vmatmul.mubr.f32.gmra.mxu0 %v7314_v30  ;;  %3344 = vmatmul.mubr.f32.gmra.mxu1 %v7314_v30 }
 0x2ca   :  { %v2522_v5 = vpop.f32.mrf.mxu1  ;;  %3115 = vmatprep.mubr.f32.mxu0 %v7314_v30  ;;  %3349 = vmatprep.mubr.f32.mxu1 %v7314_v30 }
 0x2cb   :  { %v2523_v28 = vadd.f32 %v2522_v5, %v8379_v7  ;;  %v8400_v7 = vld [vmem:[#allocation9_spill] sm:$0xff] }
 0x2cc   :  { %v2524_v61 = vpop.f32.mrf.mxu1 }
 0x2cd   :  { %3116 = vmatmul.mubr.f32.gmra.mxu0 %v7314_v30  ;;  %3350 = vmatmul.mubr.f32.gmra.mxu1 %v7314_v30 }
 0x2ce   :  { %v2528_v62 = vpop.f32.mrf.mxu1  ;;  %3121 = vmatprep.mubr.f32.mxu0 %v7314_v30  ;;  %3355 = vmatprep.mubr.f32.mxu1 %v7314_v30 }
 0x2cf   :  { %v2529_v11 = vadd.f32 %v2528_v62, %v7174_v54  ;;  %v8381_v54 = vld [vmem:[#allocation83_spill] sm:$0xff]  ;;  %v8394_v62 = vld [vmem:[#allocation70_spill] sm:$0xff] }
 0x2d0   :  { %v2530_v9 = vpop.f32.mrf.mxu1  ;;  %v2517_v1 = vadd.f32 %v2516_v0, %v8381_v54  ;;  %v8391_v0 = vld [vmem:[#allocation73_spill] sm:$0xff] }
 0x2d1   :  { %3122 = vmatmul.mubr.f32.gmra.mxu0 %v7314_v30  ;;  %3356 = vmatmul.mubr.f32.gmra.mxu1 %v7314_v30  ;;  %v2487_v46 = vadd.f32 %v7274_v19, %v8391_v0  ;;  %v2477_v19 = vadd.f32 %v7261_v39, %v8394_v62  ;;  %v8405_v0 = vld [vmem:[#allocation94_spill] sm:$0xff] }
 0x2d2   :  { %v2534_v24 = vpop.f32.mrf.mxu1  ;;  %3127 = vmatprep.mubr.f32.mxu0 %v7314_v30  ;;  %3361 = vmatprep.mubr.f32.mxu1 %v7314_v30 }
 0x2d4   :  { %v2536_v29 = vpop.f32.mrf.mxu1 }
 0x2d5   :  { %3128 = vmatmul.mubr.f32.gmra.mxu0 %v7314_v30  ;;  %3362 = vmatmul.mubr.f32.gmra.mxu1 %v7314_v30  ;;  %v2537_v14 = vadd.f32 %v2536_v29, %v7184_v31  ;;  %v8378_v31 = vld [vmem:[#allocation86_spill] sm:$0xff]  ;;  %v8396_v29 = vld [vmem:[#allocation68_spill] sm:$0xff] }
 0x2d6   :  { %v2540_v41 = vpop.f32.mrf.mxu1  ;;  %3133 = vmatprep.mubr.f32.mxu0 %v7314_v30  ;;  %3367 = vmatprep.mubr.f32.mxu1 %v7314_v30  ;;  %v2525_v12 = vadd.f32 %v2524_v61, %v8378_v31  ;;  %v8393_v61 = vld [vmem:[#allocation71_spill] sm:$0xff] }
 0x2d7   :  { %v2541_v15 = vadd.f32 %v2540_v41, %v7188_v37  ;;  %v2531_v37 = vadd.f32 %v2530_v9, %v7178_v38  ;;  %v8380_v38 = vld [vmem:[#allocation84_spill] sm:$0xff]  ;;  %v2481_v55 = vadd.f32 %v7265_v13, %v8393_v61  ;;  %v2471_v41 = vadd.f32 %v7251_v57, %v8396_v29 }
 0x2d8   :  { %v2542_v8 = vpop.f32.mrf.mxu1  ;;  %v2519_v17 = vadd.f32 %v2518_v35, %v8380_v38  ;;  %v8392_v35 = vld [vmem:[#allocation72_spill] sm:$0xff] }
 0x2d9   :  { %v2543_v22 = vadd.f32 %v2542_v8, %v7190_v33  ;;  %3134 = vmatmul.mubr.f32.gmra.mxu0 %v7314_v30  ;;  %3368 = vmatmul.mubr.f32.gmra.mxu1 %v7314_v30  ;;  %v2535_v33 = vadd.f32 %v2534_v24, %v7182_v44  ;;  %v2483_v5 = vadd.f32 %v7269_v58, %v8392_v35  ;;  %v8395_v24 = vld [vmem:[#allocation69_spill] sm:$0xff]  ;;  %v8397_v8 = vld [vmem:[#allocation67_spill] sm:$0xff] }
 0x2da   :  { %v7349_v18 = vpop.f32.mrf.mxu1  ;;  %3139 = vmatprep.mubr.f32.mxu0 %v7314_v30  ;;  %3373 = vmatprep.mubr.f32.mxu1 %v7314_v30  ;;  %v2475_v58 = vadd.f32 %v7257_v45, %v8395_v24  ;;  %v2469_v39 = vadd.f32 %v7246_v50, %v8397_v8  ;;  %v8406_v35 = vld [vmem:[#allocation93_spill] sm:$0xff]  ;;  %v8408_v24 = vld [vmem:[#allocation91_spill] sm:$0xff] }
 0x2db   :  { %5118 = vmatprep.subr.msk.mxu1 %vm1957_vm3, %v2543_v22 }
 0x2dc   :  { %v2743_v4 = vpop.f32.mrf.mxu1  ;;  %5119 = vmatpush1.msk.msra.mxu1 %vm1957_vm3, %v2541_v15 }
 0x2dd   :  { %3140 = vmatmul.mubr.f32.gmra.mxu0 %v7314_v30  ;;  %3374 = vmatmul.mubr.f32.gmra.mxu1 %v7314_v30 }
 0x2de   :  { %3532 = vmatprep.subr.mxu1 %v2537_v14  ;;  %v7360_v63 = vpop.f32.mrf.mxu1  ;;  %3145 = vmatprep.mubr.f32.mxu0 %v7314_v30 }
 0x2df   :  { %3533 = vmatpush1.msra.mxu1 %v2535_v33  ;;  %3379 = vmatprep.mubr.f32.mxu1 %v7314_v30  ;;  %v8398_v33 = vld [vmem:[#allocation66_spill] sm:$0xff] }
 0x2e0   :  { %3534 = vmatprep.subr.mxu1 %v2531_v37  ;;  %v2748_v44 = vpop.f32.mrf.mxu1  ;;  %v4987_v37 = vadd.s32 4294966834, %v8398_v33 }
 0x2e1   :  { %3535 = vmatpush1.msra.mxu1 %v2529_v11  ;;  %3146 = vmatmul.mubr.f32.gmra.mxu0 %v7314_v30  ;;  %v8399_v11 = vld [vmem:[#allocation11_spill] sm:$0xff] }
 0x2e2   :  { %3380 = vmatmul.mubr.f32.gmra.mxu1 %v7314_v30  ;;  %3536 = vmatprep.subr.mxu1 %v2525_v12  ;;  %v7370_v21 = vpop.f32.mrf.mxu1  ;;  %v1691_v31 = vadd.s32 464, %v8399_v11  ;;  %vm1832_vm9 = vcmp.eq.s32.totalorder %v4987_v37, %v8400_v7  ;;  %v1692_v38 = vadd.s32 472, %v8399_v11  ;;  %v1694_v23 = vadd.s32 488, %v8399_v11 }
 0x2e3   :  { %3537 = vmatpush1.msra.mxu1 %v2523_v28  ;;  %3151 = vmatprep.mubr.f32.mxu0 %v7314_v30  ;;  %v7458_v54 = vsel %vm1832_vm9, 1.0, %v7314_v30  ;;  %v1697_v62 = vadd.s32 512, %v8399_v11  ;;  %v1701_v37 = vadd.s32 544, %v8399_v11  ;;  %vm5780_vm9 = vmmov 0  }
 0x2e4   :  { %3538 = vmatprep.subr.mxu1 %v2519_v17  ;;  %v2753_v6 = vpop.f32.mrf.mxu1  ;;  %3385 = vmatprep.mubr.f32.mxu1 %v7314_v30  ;;  %v4988_v28 = vadd.s32 4294966834, %v1691_v31  ;;  %v4989_v26 = vadd.s32 4294966834, %v1692_v38  ;;  %v4991_v40 = vadd.s32 4294966834, %v1694_v23 }
 0x2e5   :  { %3539 = vmatpush1.msra.mxu1 %v2517_v1  ;;  %3152 = vmatmul.mubr.f32.gmra.mxu0 %v7314_v30 }
 0x2e6   :  { %3386 = vmatmul.mubr.f32.gmra.mxu1 %v7314_v30  ;;  %3540 = vmatprep.subr.mxu1 %v2513_v49  ;;  %v7383_v32 = vpop.f32.mrf.mxu1  ;;  %vm1833_vm12 = vcmp.eq.s32.totalorder %v4988_v28, %v8400_v7  ;;  %v1693_v49 = vadd.s32 480, %v8399_v11  ;;  %vm1834_vm13 = vcmp.eq.s32.totalorder %v4989_v26, %v8400_v7  ;;  %vm1836_vm15 = vcmp.eq.s32.totalorder %v4991_v40, %v8400_v7 }
 0x2e7   :  { %3541 = vmatpush1.msra.mxu1 %v2511_v53  ;;  %3157 = vmatprep.mubr.f32.mxu0 %v7314_v30  ;;  %v7469_v36 = vsel %vm1833_vm12, 1.0, %v7314_v30  ;;  %v7513_v61 = vsel %vm1836_vm15, 1.0, %v7314_v30 }
 0x2e8   :  { %3542 = vmatprep.subr.mxu1 %v2507_v47  ;;  %v2758_v2 = vpop.f32.mrf.mxu1  ;;  %3391 = vmatprep.mubr.f32.mxu1 %v7314_v30  ;;  %v4990_v47 = vadd.s32 4294966834, %v1693_v49 }
 0x2e9   :  { %3543 = vmatpush1.msra.mxu1 %v2505_v42  ;;  %3158 = vmatmul.mubr.f32.gmra.mxu0 %v7314_v30  ;;  %v8401_v42 = vld [vmem:[#allocation98_spill] sm:$0xff]  ;;  %v7483_v2 = vsel %vm1834_vm13, 1.0, %v7314_v30 }
 0x2ea   :  { %3392 = vmatmul.mubr.f32.gmra.mxu1 %v7314_v30  ;;  %3544 = vmatprep.subr.mxu1 %v2501_v52  ;;  %v7397_v20 = vpop.f32.mrf.mxu1  ;;  %vm1835_vm14 = vcmp.eq.s32.totalorder %v4990_v47, %v8400_v7 }
 0x2eb   :  { %3545 = vmatpush1.msra.mxu1 %v2499_v60  ;;  %3163 = vmatprep.mubr.f32.mxu0 %v7314_v30  ;;  %v1695_v60 = vadd.s32 496, %v8399_v11  ;;  %v7497_v3 = vsel %vm1835_vm14, 1.0, %v7314_v30 }
 0x2ec   :  { %3546 = vmatprep.subr.mxu1 %v2495_v59  ;;  %v2763_v16 = vpop.f32.mrf.mxu1  ;;  %3397 = vmatprep.mubr.f32.mxu1 %v7314_v30 }
 0x2ed   :  { %3547 = vmatpush1.msra.mxu1 %v2493_v34  ;;  %3164 = vmatmul.mubr.f32.gmra.mxu0 %v7314_v30  ;;  %v1696_v16 = vadd.s32 504, %v8399_v11 }
 0x2ee   :  { %3398 = vmatmul.mubr.f32.gmra.mxu1 %v7314_v30  ;;  %3548 = vmatprep.subr.mxu1 %v2489_v43  ;;  %v7411_v51 = vpop.f32.mrf.mxu1  ;;  %v4992_v43 = vadd.s32 4294966834, %v1695_v60 }
 0x2ef   :  { %3549 = vmatpush1.msra.mxu1 %v2487_v46  ;;  %3169 = vmatprep.mubr.f32.mxu0 %v7314_v30 }
 0x2f0   :  { %3550 = vmatprep.subr.mxu1 %v2483_v5  ;;  %v2768_v9 = vpop.f32.mrf.mxu1  ;;  %3403 = vmatprep.mubr.f32.mxu1 %v7314_v30  ;;  %vm1837_vm0 = vcmp.eq.s32.totalorder %v4992_v43, %v8400_v7 }
 0x2f1   :  { %3551 = vmatpush1.msra.mxu1 %v2481_v55  ;;  %3170 = vmatmul.mubr.f32.gmra.mxu0 %v7314_v30  ;;  %v4993_v55 = vadd.s32 4294966834, %v1696_v16  ;;  %v7529_v29 = vsel %vm1837_vm0, 1.0, %v7314_v30 }
 0x2f2   :  { %3404 = vmatmul.mubr.f32.gmra.mxu1 %v7314_v30  ;;  %3552 = vmatprep.subr.mxu1 %v2477_v19  ;;  %v7425_v13 = vpop.f32.mrf.mxu1  ;;  %v8407_v19 = vld [vmem:[#allocation92_spill] sm:$0xff] }
 0x2f3   :  { %3553 = vmatpush1.msra.mxu1 %v2475_v58  ;;  %3175 = vmatprep.mubr.f32.mxu0 %v7314_v30  ;;  %v2772_v5 = vadd.f32 %v7425_v13, %v8406_v35  ;;  %v2767_v9 = vadd.f32 %v7411_v51, %v8407_v19  ;;  %v2762_v58 = vadd.f32 %v7397_v20, %v8408_v24  ;;  %v4994_v51 = vadd.s32 4294966834, %v1697_v62  ;;  %v8409_v13 = vld [vmem:[#allocation90_spill] sm:$0xff]  ;;  %v8410_v20 = vld [vmem:[#allocation89_spill] sm:$0xff]  ;;  %v8419_v35 = vld [vmem:[#allocation8_spill] sm:$0xff] }
 0x2f4   :  { %3554 = vmatprep.subr.mxu1 %v2471_v41  ;;  %v2773_v22 = vpop.f32.mrf.mxu1  ;;  %3409 = vmatprep.mubr.f32.mxu1 %v7314_v30  ;;  %vm1838_vm1 = vcmp.eq.s32.totalorder %v4993_v55, %v8400_v7  ;;  %v1698_v41 = vadd.s32 520, %v8399_v11  ;;  %v2757_v8 = vadd.f32 %v7383_v32, %v8409_v13  ;;  %v8421_v24 = vld [vmem:[#allocation13_spill] sm:$0xff] }
 0x2f5   :  { %3555 = vmatpush1.msra.mxu1 %v2469_v39  ;;  %3176 = vmatmul.mubr.f32.gmra.mxu0 %v7314_v30  ;;  %v2752_v39 = vadd.f32 %v7370_v21, %v8410_v20  ;;  %v7545_v22 = vsel %vm1838_vm1, 1.0, %v7314_v30  ;;  %v8412_v21 = vld [vmem:[#allocation87_spill] sm:$0xff]  ;;  %v8423_v20 = vld [vmem:[#allocation12_spill] sm:$0xff] }
 0x2f6   :  { %3410 = vmatmul.mubr.f32.gmra.mxu1 %v7314_v30  ;;  %v7433_v57 = vpop.f32.mrf.mxu1  ;;  %3181 = vmatprep.mubr.f32.mxu0 %v7314_v30  ;;  %v4995_v32 = vadd.s32 4294966834, %v1698_v41 }
 0x2f7   :  { %3415 = vmatprep.mubr.f32.mxu1 %v7314_v30  ;;  %v2777_v46 = vadd.f32 %v7433_v57, %v8405_v0  ;;  %v1699_v57 = vadd.s32 528, %v8399_v11 }
 0x2f8   :  { %v2778_v45 = vpop.f32.mrf.mxu1  ;;  %vm1840_vm4 = vcmp.eq.s32.totalorder %v4995_v32, %v8400_v7 }
 0x2f9   :  { %3182 = vmatmul.mubr.f32.gmra.mxu0 %v7314_v30  ;;  %v8411_v45 = vld [vmem:[#allocation88_spill] sm:$0xff] }
 0x2fa   :  { %3416 = vmatmul.mubr.f32.gmra.mxu1 %v7314_v30  ;;  %v2781_v50 = vpop.f32.mrf.mxu1  ;;  %3187 = vmatprep.mubr.f32.mxu0 %v7314_v30 }
 0x2fb   :  { %3421 = vmatprep.mubr.f32.mxu1 %v7314_v30  ;;  %v2782_v34 = vadd.f32 %v2781_v50, %v8404_v25  ;;  %v2747_v50 = vadd.f32 %v7360_v63, %v8411_v45  ;;  %v4996_v63 = vadd.s32 4294966834, %v1699_v57  ;;  %v8417_v25 = vld [vmem:[#allocation10_spill] sm:$0xff] }
 0x2fc   :  { %v2783_v15 = vpop.f32.mrf.mxu1 }
 0x2fd   :  { %3188 = vmatmul.mubr.f32.gmra.mxu0 %v7314_v30  ;;  %v2742_v15 = vadd.f32 %v7349_v18, %v8412_v21  ;;  %v7572_v18 = vsel %vm1840_vm4, 1.0, %v7314_v30  ;;  %vm1841_vm5 = vcmp.eq.s32.totalorder %v4996_v63, %v8400_v7  ;;  %v8425_v21 = vld [vmem:[#allocation15_spill] sm:$0xff] }
 0x2fe   :  { %3422 = vmatmul.mubr.f32.gmra.mxu1 %v7314_v30  ;;  %v2786_v14 = vpop.f32.mrf.mxu1  ;;  %3193 = vmatprep.mubr.f32.mxu0 %v7314_v30  ;;  %v7582_v31 = vsel %vm1841_vm5, 1.0, %v7314_v30 }
 0x2ff   :  { %3427 = vmatprep.mubr.f32.mxu1 %v7314_v30  ;;  %v2787_v59 = vadd.f32 %v2786_v14, %v8403_v10 }
 0x300   :  { %v2788_v4 = vpop.f32.mrf.mxu1 }
 0x301   :  { %3194 = vmatmul.mubr.f32.gmra.mxu0 %v7314_v30  ;;  %v1700_v4 = vadd.s32 536, %v8399_v11 }
 0x302   :  { %3428 = vmatmul.mubr.f32.gmra.mxu1 %v7314_v30  ;;  %v2791_v12 = vpop.f32.mrf.mxu1  ;;  %3199 = vmatprep.mubr.f32.mxu0 %v7314_v30 }
 0x303   :  { %3433 = vmatprep.mubr.f32.mxu1 %v7314_v30  ;;  %v4997_v33 = vadd.s32 4294966834, %v1700_v4 }
 0x304   :  { %v2793_v44 = vpop.f32.mrf.mxu1 }
 0x305   :  { %3200 = vmatmul.mubr.f32.gmra.mxu0 %v7314_v30  ;;  %vm1842_vm6 = vcmp.eq.s32.totalorder %v4997_v33, %v8400_v7  ;;  %v1702_v44 = vadd.s32 552, %v8399_v11 }
 0x306   :  { %3434 = vmatmul.mubr.f32.gmra.mxu1 %v7314_v30  ;;  %v2796_v17 = vpop.f32.mrf.mxu1  ;;  %3205 = vmatprep.mubr.f32.mxu0 %v7314_v30  ;;  %v7592_v28 = vsel %vm1842_vm6, 1.0, %v7314_v30 }
 0x307   :  { %3439 = vmatprep.mubr.f32.mxu1 %v7314_v30  ;;  %v2797_v27 = vadd.f32 %v2796_v17, %v8401_v42  ;;  %v4999_v38 = vadd.s32 4294966834, %v1702_v44  ;;  %v1703_v17 = vadd.s32 560, %v8399_v11  ;;  %v8428_v44 = vld [vmem:[#allocation55_spill] sm:$0xff] }
 0x308   :  { %v2798_v1 = vpop.f32.mrf.mxu1 }
 0x309   :  { %3206 = vmatmul.mubr.f32.gmra.mxu0 %v7314_v30  ;;  %vm1844_vm10 = vcmp.eq.s32.totalorder %v4999_v38, %v8400_v7  ;;  %v5000_v26 = vadd.s32 4294966834, %v1703_v17 }
 0x30a   :  { %5104 = vmatmul.mubr.msk.f32.gmra.mxu1 %vm789_vm2, %v7458_v54  ;;  %v2801_v6 = vpop.f32.mrf.mxu1  ;;  %3211 = vmatprep.mubr.f32.mxu0 %v7314_v30  ;;  %v7611_v11 = vsel %vm1844_vm10, 1.0, %v7314_v30 }
 0x30b   :  { %v2802_v48 = vadd.f32 %v2801_v6, %v7244_v56  ;;  %3445 = vmatprep.mubr.f32.mxu1 %v7314_v30  ;;  %v8402_v56 = vld [vmem:[#allocation97_spill] sm:$0xff]  ;;  %vm1845_vm11 = vcmp.eq.s32.totalorder %v5000_v26, %v8400_v7 }
 0x30c   :  { %v2803_v53 = vpop.f32.mrf.mxu1  ;;  %v2792_v52 = vadd.f32 %v2791_v12, %v8402_v56  ;;  %v4998_v12 = vadd.s32 4294966834, %v1701_v37  ;;  %v7620_v49 = vsel %vm1845_vm11, 1.0, %v7314_v30  ;;  %v8415_v56 = vld [vmem:[#allocation6_spill] sm:$0xff] }
 0x30d   :  { %3212 = vmatmul.mubr.f32.gmra.mxu0 %v7314_v30  ;;  %v8414_v53 = vld [vmem:[#allocation46_spill] sm:$0xff] }
 0x30e   :  { %5385 = vmatpush3.msk.msra.mxu0 %vm1957_vm3, %v2802_v48  ;;  %3217 = vmatprep.mubr.f32.mxu0 %v7314_v30  ;;  %vm1839_vm3 = vcmp.eq.s32.totalorder %v4994_v51, %v8400_v7  ;;  %vm1843_vm8 = vcmp.eq.s32.totalorder %v4998_v12, %v8400_v7  ;;  %v8413_v48 = vld [vmem:[#allocation7_spill] sm:$0xff]  ;;  %v8427_v12 = vld [vmem:[#allocation14_spill] sm:$0xff] }
 0x30f   :  { %5386 = vmatprep.subr.mxu0 %v7314_v30  ;;  %5105 = vmatmul.mubr.msk.f32.gmra.mxu1 %vm789_vm2, %v7469_v36  ;;  %v7561_v14 = vsel %vm1839_vm3, 1.0, %v7314_v30  ;;  %v7602_v1 = vsel %vm1843_vm8, 1.0, %v7314_v30 }
 0x310   :  { %5387 = vmatpush3.msra.mxu0 %v2797_v27  ;;  %3451 = vmatprep.mubr.f32.mxu1 %v7314_v30 }
 0x311   :  { %5388 = vmatprep.subr.mxu0 %v7314_v30  ;;  %3218 = vmatmul.mubr.f32.gmra.mxu0 %v7314_v30 }
 0x312   :  { %5389 = vmatpush3.msra.mxu0 %v2792_v52  ;;  %3223 = vmatprep.mubr.f32.mxu0 %v7314_v30  ;;  %v8416_v52 = vld [vmem:[#allocation49_spill] sm:$0xff] }
 0x313   :  { %5390 = vmatprep.subr.mxu0 %v7314_v30  ;;  %5106 = vmatmul.mubr.msk.f32.gmra.mxu1 %vm789_vm2, %v7483_v2 }
 0x314   :  { %5391 = vmatpush3.msra.mxu0 %v2787_v59  ;;  %3457 = vmatprep.mubr.f32.mxu1 %v7314_v30 }
 0x315   :  { %5392 = vmatprep.subr.mxu0 %v7314_v30  ;;  %3224 = vmatmul.mubr.f32.gmra.mxu0 %v7314_v30 }
 0x316   :  { %5393 = vmatpush3.msra.mxu0 %v2782_v34  ;;  %3229 = vmatprep.mubr.f32.mxu0 %v7314_v30  ;;  %v8418_v34 = vld [vmem:[#allocation48_spill] sm:$0xff] }
 0x317   :  { %5394 = vmatprep.subr.mxu0 %v7314_v30  ;;  %5107 = vmatmul.mubr.msk.f32.gmra.mxu1 %vm789_vm2, %v7497_v3 }
 0x318   :  { %5395 = vmatpush3.msra.mxu0 %v2777_v46  ;;  %3463 = vmatprep.mubr.f32.mxu1 %v7314_v30 }
 0x319   :  { %5396 = vmatprep.subr.mxu0 %v7314_v30  ;;  %3230 = vmatmul.mubr.f32.gmra.mxu0 %v7314_v30 }
 0x31a   :  { %5397 = vmatpush3.msra.mxu0 %v2772_v5  ;;  %3235 = vmatprep.mubr.f32.mxu0 %v7314_v30  ;;  %v8420_v5 = vld [vmem:[#allocation51_spill] sm:$0xff] }
 0x31b   :  { %5398 = vmatprep.subr.mxu0 %v7314_v30  ;;  %5108 = vmatmul.mubr.msk.f32.gmra.mxu1 %vm789_vm2, %v7513_v61 }
 0x31c   :  { %5399 = vmatpush3.msra.mxu0 %v2767_v9  ;;  %3469 = vmatprep.mubr.f32.mxu1 %v7314_v30 }
 0x31d   :  { %5400 = vmatprep.subr.mxu0 %v7314_v30  ;;  %3236 = vmatmul.mubr.f32.gmra.mxu0 %v7314_v30 }
 0x31e   :  { %5401 = vmatpush3.msra.mxu0 %v2762_v58  ;;  %3241 = vmatprep.mubr.f32.mxu0 %v7314_v30  ;;  %v8422_v58 = vld [vmem:[#allocation50_spill] sm:$0xff] }
 0x31f   :  { %5402 = vmatprep.subr.mxu0 %v7314_v30  ;;  %5109 = vmatmul.mubr.msk.f32.gmra.mxu1 %vm789_vm2, %v7529_v29 }
 0x320   :  { %5403 = vmatpush3.msra.mxu0 %v2757_v8  ;;  %3475 = vmatprep.mubr.f32.mxu1 %v7314_v30 }
 0x321   :  { %5404 = vmatprep.subr.mxu0 %v7314_v30  ;;  %3242 = vmatmul.mubr.f32.gmra.mxu0 %v7314_v30 }
 0x322   :  { %5405 = vmatpush3.msra.mxu0 %v2752_v39  ;;  %3247 = vmatprep.mubr.f32.mxu0 %v7314_v30  ;;  %v8424_v39 = vld [vmem:[#allocation53_spill] sm:$0xff] }
 0x323   :  { %5406 = vmatprep.subr.mxu0 %v7314_v30  ;;  %5110 = vmatmul.mubr.msk.f32.gmra.mxu1 %vm789_vm2, %v7545_v22 }
 0x324   :  { %5407 = vmatpush3.msra.mxu0 %v2747_v50  ;;  %3481 = vmatprep.mubr.f32.mxu1 %v7314_v30 }
 0x325   :  { %5408 = vmatprep.subr.mxu0 %v7314_v30  ;;  %3248 = vmatmul.mubr.f32.gmra.mxu0 %v7314_v30 }
 0x326   :  { %5409 = vmatpush3.msra.mxu0 %v2742_v15  ;;  %3253 = vmatprep.mubr.f32.mxu0 %v7314_v30  ;;  %v8426_v15 = vld [vmem:[#allocation52_spill] sm:$0xff] }
 0x327   :  { %5111 = vmatmul.mubr.msk.f32.gmra.mxu1 %vm789_vm2, %v7561_v14 }
 0x328   :  { %3487 = vmatprep.mubr.f32.mxu1 %v7314_v30 }
 0x329   :  { %3254 = vmatmul.mubr.f32.gmra.mxu0 %v7314_v30 }
 0x32a   :  { %3259 = vmatprep.mubr.f32.mxu0 %v7314_v30 }
 0x32b   :  { %5112 = vmatmul.mubr.msk.f32.gmra.mxu1 %vm789_vm2, %v7572_v18 }
 0x32c   :  { %3493 = vmatprep.mubr.f32.mxu1 %v7314_v30 }
 0x32d   :  { %3260 = vmatmul.mubr.f32.gmra.mxu0 %v7314_v30 }
 0x32e   :  { %3265 = vmatprep.mubr.f32.mxu0 %v7314_v30 }
 0x32f   :  { %5113 = vmatmul.mubr.msk.f32.gmra.mxu1 %vm789_vm2, %v7582_v31 }
 0x330   :  { %3499 = vmatprep.mubr.f32.mxu1 %v7314_v30 }
 0x331   :  { %3266 = vmatmul.mubr.f32.gmra.mxu0 %v7314_v30 }
 0x332   :  { %3271 = vmatprep.mubr.f32.mxu0 %v7314_v30 }
 0x333   :  { %5114 = vmatmul.mubr.msk.f32.gmra.mxu1 %vm789_vm2, %v7592_v28 }
 0x334   :  { %3505 = vmatprep.mubr.f32.mxu1 %v7314_v30 }
 0x335   :  { %3272 = vmatmul.mubr.f32.gmra.mxu0 %v7314_v30 }
 0x336   :  { %3277 = vmatprep.mubr.f32.mxu0 %v7314_v30 }
 0x337   :  { %5115 = vmatmul.mubr.msk.f32.gmra.mxu1 %vm789_vm2, %v7602_v1 }
 0x338   :  { %3511 = vmatprep.mubr.f32.mxu1 %v7314_v30 }
 0x339   :  { %3278 = vmatmul.mubr.f32.gmra.mxu0 %v7314_v30 }
 0x33a   :  { %3283 = vmatprep.mubr.f32.mxu0 %v7314_v30 }
 0x33b   :  { %5116 = vmatmul.mubr.msk.f32.gmra.mxu1 %vm789_vm2, %v7611_v11 }
 0x33c   :  { %3517 = vmatprep.mubr.f32.mxu1 %v7314_v30 }
 0x33d   :  { %3284 = vmatmul.mubr.f32.gmra.mxu0 %v7314_v30 }
 0x33e   :  { %3289 = vmatprep.mubr.f32.mxu0 %v7314_v30 }
 0x33f   :  { %5117 = vmatmul.mubr.msk.f32.gmra.mxu1 %vm789_vm2, %v7620_v49 }
 0x340   :  { %3588 = vmatprep.mubr.f32.mxu1 %v7314_v30 }
 0x341   :  { %3290 = vmatmul.mubr.f32.gmra.mxu0 %v7314_v30 }
 0x342   :  { %3295 = vmatprep.mubr.f32.mxu0 %v7314_v30 }
 0x343   :  { %3589 = vmatmul.mubr.f32.vlgmr.msra.gmra.mxu1 %v7314_v30 }
 0x344   :  { %3594 = vmatprep.mubr.f32.mxu1 %v7314_v30 }
 0x345   :  { %3296 = vmatmul.mubr.f32.gmra.mxu0 %v7314_v30 }
 0x346   :  { %3301 = vmatprep.mubr.f32.mxu0 %v7314_v30 }
 0x347   :  { %3595 = vmatmul.mubr.f32.gmra.mxu1 %v7314_v30 }
 0x348   :  { %3600 = vmatprep.mubr.f32.mxu1 %v7314_v30 }
 0x349   :  { %3302 = vmatmul.mubr.f32.gmra.mxu0 %v7314_v30 }
 0x34a   :  { %3307 = vmatprep.mubr.f32.mxu0 %v7314_v30 }
 0x34b   :  { %3601 = vmatmul.mubr.f32.gmra.mxu1 %v7314_v30 }
 0x34c   :  { %3606 = vmatprep.mubr.f32.mxu1 %v7314_v30 }
 0x34d   :  { %3308 = vmatmul.mubr.f32.gmra.mxu0 %v7314_v30 }
 0x34e   :  { %3313 = vmatprep.mubr.f32.mxu0 %v7314_v30 }
 0x34f   :  { %3607 = vmatmul.mubr.f32.gmra.mxu1 %v7314_v30 }
 0x350   :  { %3612 = vmatprep.mubr.f32.mxu1 %v7314_v30 }
 0x351   :  { %3314 = vmatmul.mubr.f32.gmra.mxu0 %v7314_v30 }
 0x352   :  { %3319 = vmatprep.mubr.f32.mxu0 %v7314_v30 }
 0x353   :  { %3613 = vmatmul.mubr.f32.gmra.mxu1 %v7314_v30 }
 0x354   :  { %3618 = vmatprep.mubr.f32.mxu1 %v7314_v30 }
 0x355   :  { %3320 = vmatmul.mubr.f32.gmra.mxu0 %v7314_v30 }
 0x356   :  { %3325 = vmatprep.mubr.f32.mxu0 %v7314_v30 }
 0x357   :  { %3619 = vmatmul.mubr.f32.gmra.mxu1 %v7314_v30 }
 0x358   :  { %3624 = vmatprep.mubr.f32.mxu1 %v7314_v30 }
 0x359   :  { %3326 = vmatmul.mubr.f32.gmra.mxu0 %v7314_v30 }
 0x35a   :  { %5410 = vmatprep.mubr.msk.f32.mxu0 %vm5780_vm9, %v7314_v30 }
 0x35b   :  { %3625 = vmatmul.mubr.f32.gmra.mxu1 %v7314_v30 }
 0x35c   :  { %3630 = vmatprep.mubr.f32.mxu1 %v7314_v30 }
 0x35d   :  { %5411 = vmatmul.mubr.f32.vlgmr.msra.gmra.mxu0 %v7314_v30 }
 0x35e   :  { %5413 = vmatprep.mubr.msk.f32.mxu0 %vm5780_vm9, %v7314_v30 }
 0x35f   :  { %3631 = vmatmul.mubr.f32.gmra.mxu1 %v7314_v30 }
 0x360   :  { %3636 = vmatprep.mubr.f32.mxu1 %v7314_v30 }
 0x361   :  { %5414 = vmatmul.mubr.f32.gmra.mxu0 %v7314_v30 }
 0x362   :  { %5416 = vmatprep.mubr.msk.f32.mxu0 %vm5780_vm9, %v7314_v30 }
 0x363   :  { %3637 = vmatmul.mubr.f32.gmra.mxu1 %v7314_v30 }
 0x364   :  { %3642 = vmatprep.mubr.f32.mxu1 %v7314_v30 }
 0x365   :  { %5417 = vmatmul.mubr.f32.gmra.mxu0 %v7314_v30 }
 0x366   :  { %5419 = vmatprep.mubr.msk.f32.mxu0 %vm5780_vm9, %v7314_v30 }
 0x367   :  { %3643 = vmatmul.mubr.f32.gmra.mxu1 %v7314_v30 }
 0x368   :  { %3648 = vmatprep.mubr.f32.mxu1 %v7314_v30 }
 0x369   :  { %5420 = vmatmul.mubr.f32.gmra.mxu0 %v7314_v30 }
 0x36a   :  { %5422 = vmatprep.mubr.msk.f32.mxu0 %vm5780_vm9, %v7314_v30 }
 0x36b   :  { %3649 = vmatmul.mubr.f32.gmra.mxu1 %v7314_v30 }
 0x36c   :  { %3654 = vmatprep.mubr.f32.mxu1 %v7314_v30 }
 0x36d   :  { %5423 = vmatmul.mubr.f32.gmra.mxu0 %v7314_v30 }
 0x36e   :  { %5425 = vmatprep.mubr.msk.f32.mxu0 %vm5780_vm9, %v7314_v30 }
 0x36f   :  { %3655 = vmatmul.mubr.f32.gmra.mxu1 %v7314_v30 }
 0x370   :  { %3660 = vmatprep.mubr.f32.mxu1 %v7314_v30 }
 0x371   :  { %5426 = vmatmul.mubr.f32.gmra.mxu0 %v7314_v30 }
 0x372   :  { %5428 = vmatprep.mubr.msk.f32.mxu0 %vm5780_vm9, %v7314_v30 }
 0x373   :  { %3661 = vmatmul.mubr.f32.gmra.mxu1 %v7314_v30 }
 0x374   :  { %3666 = vmatprep.mubr.f32.mxu1 %v7314_v30 }
 0x375   :  { %5429 = vmatmul.mubr.f32.gmra.mxu0 %v7314_v30 }
 0x376   :  { %5431 = vmatprep.mubr.msk.f32.mxu0 %vm5780_vm9, %v7314_v30 }
 0x377   :  { %3667 = vmatmul.mubr.f32.gmra.mxu1 %v7314_v30 }
 0x378   :  { %3672 = vmatprep.mubr.f32.mxu1 %v7314_v30 }
 0x379   :  { %5432 = vmatmul.mubr.f32.gmra.mxu0 %v7314_v30 }
 0x37a   :  { %5434 = vmatprep.mubr.msk.f32.mxu0 %vm5780_vm9, %v7314_v30 }
 0x37b   :  { %3673 = vmatmul.mubr.f32.gmra.mxu1 %v7314_v30 }
 0x37c   :  { %3678 = vmatprep.mubr.f32.mxu1 %v7314_v30 }
 0x37d   :  { %5435 = vmatmul.mubr.f32.gmra.mxu0 %v7314_v30 }
 0x37e   :  { %5437 = vmatprep.mubr.msk.f32.mxu0 %vm5780_vm9, %v7314_v30 }
 0x37f   :  { %3679 = vmatmul.mubr.f32.gmra.mxu1 %v7314_v30 }
 0x380   :  { %3684 = vmatprep.mubr.f32.mxu1 %v7314_v30 }
 0x381   :  { %v3099_v7 = vpop.f32.mrf.mxu0  ;;  %v3333_v6 = vpop.f32.mrf.mxu1  ;;  %5438 = vmatmul.mubr.f32.gmra.mxu0 %v7314_v30 }
 0x382   :  { %4435 = vst [vmem:[#allocation3] sm:$0xff] %v3099_v7  ;;  %4631 = vst [vmem:[#allocation3 + $0x618] sm:$0xff] %v3333_v6  ;;  %5440 = vmatprep.mubr.msk.f32.mxu0 %vm5780_vm9, %v7314_v30  ;;  %v8429_v6 = vld [vmem:[#allocation17_spill] sm:$0xff] }
 0x383   :  { %4792 = vst.msk [vmem:[#allocation3] sm:$0xff] %vm789_vm2, %v8413_v48  ;;  %4831 = vst.msk [vmem:[#allocation3 + $0x618] sm:$0xff] %vm789_vm2, %v8414_v53  ;;  %v3101_v47 = vpop.f32.mrf.mxu0  ;;  %v3335_v23 = vpop.f32.mrf.mxu1  ;;  %3685 = vmatmul.mubr.f32.gmra.mxu1 %v7314_v30  ;;  %v8430_v53 = vld [vmem:[#allocation54_spill] sm:$0xff] }
 0x384   :  { %4436 = vst [vmem:[#allocation3 + $0x8] sm:$0xff] %v3101_v47  ;;  %4632 = vst [vmem:[#allocation3 + $0x620] sm:$0xff] %v3335_v23  ;;  %3690 = vmatprep.mubr.f32.mxu1 %v7314_v30 }
 0x385   :  { %v3105_v42 = vpop.f32.mrf.mxu0  ;;  %v3339_v27 = vpop.f32.mrf.mxu1  ;;  %5441 = vmatmul.mubr.f32.gmra.mxu0 %v7314_v30 }
 0x386   :  { %4441 = vst [vmem:[#allocation3 + $0x28] sm:$0xff] %v3105_v42  ;;  %4636 = vst [vmem:[#allocation3 + $0x640] sm:$0xff] %v3339_v27  ;;  %5443 = vmatprep.mubr.msk.f32.mxu0 %vm5780_vm9, %v7314_v30  ;;  %v8431_v27 = vld [vmem:[#allocation16_spill] sm:$0xff] }
 0x387   :  { %4793 = vst.msk [vmem:[#allocation3 + $0x28] sm:$0xff] %vm789_vm2, %v8415_v56  ;;  %4832 = vst.msk [vmem:[#allocation3 + $0x640] sm:$0xff] %vm789_vm2, %v8416_v52  ;;  %v3107_v40 = vpop.f32.mrf.mxu0  ;;  %v3341_v60 = vpop.f32.mrf.mxu1  ;;  %3691 = vmatmul.mubr.f32.gmra.mxu1 %v7314_v30  ;;  %v8432_v52 = vld [vmem:[#allocation57_spill] sm:$0xff] }
 0x388   :  { %4442 = vst [vmem:[#allocation3 + $0x30] sm:$0xff] %v3107_v40  ;;  %4637 = vst [vmem:[#allocation3 + $0x648] sm:$0xff] %v3341_v60  ;;  %3696 = vmatprep.mubr.f32.mxu1 %v7314_v30  ;;  %v7790_v60 = vld [vmem:[#allocation2 + $0x1d0] sm:$0xff] }
 0x389   :  { %v3111_v10 = vpop.f32.mrf.mxu0  ;;  %v3345_v59 = vpop.f32.mrf.mxu1  ;;  %5444 = vmatmul.mubr.f32.gmra.mxu0 %v7314_v30 }
 0x38a   :  { %4446 = vst [vmem:[#allocation3 + $0x50] sm:$0xff] %v3111_v10  ;;  %4641 = vst [vmem:[#allocation3 + $0x668] sm:$0xff] %v3345_v59  ;;  %5446 = vmatprep.mubr.msk.f32.mxu0 %vm5780_vm9, %v7314_v30 }
 0x38b   :  { %4794 = vst.msk [vmem:[#allocation3 + $0x50] sm:$0xff] %vm789_vm2, %v8417_v25  ;;  %4833 = vst.msk [vmem:[#allocation3 + $0x668] sm:$0xff] %vm789_vm2, %v8418_v34  ;;  %v3113_v43 = vpop.f32.mrf.mxu0  ;;  %v3347_v16 = vpop.f32.mrf.mxu1  ;;  %3697 = vmatmul.mubr.f32.gmra.mxu1 %v7314_v30  ;;  %v8433_v25 = vld [vmem:[#allocation19_spill] sm:$0xff]  ;;  %v8434_v34 = vld [vmem:[#allocation56_spill] sm:$0xff] }
 0x38c   :  { %4447 = vst [vmem:[#allocation3 + $0x58] sm:$0xff] %v3113_v43  ;;  %4642 = vst [vmem:[#allocation3 + $0x670] sm:$0xff] %v3347_v16  ;;  %3702 = vmatprep.mubr.f32.mxu1 %v7314_v30 }
 0x38d   :  { %v3117_v0 = vpop.f32.mrf.mxu0  ;;  %v3351_v46 = vpop.f32.mrf.mxu1  ;;  %5447 = vmatmul.mubr.f32.gmra.mxu0 %v7314_v30 }
 0x38e   :  { %4451 = vst [vmem:[#allocation3 + $0x78] sm:$0xff] %v3117_v0  ;;  %4646 = vst [vmem:[#allocation3 + $0x690] sm:$0xff] %v3351_v46  ;;  %5449 = vmatprep.mubr.msk.f32.mxu0 %vm5780_vm9, %v7314_v30  ;;  %v8435_v46 = vld [vmem:[#allocation18_spill] sm:$0xff] }
 0x38f   :  { %4795 = vst.msk [vmem:[#allocation3 + $0x78] sm:$0xff] %vm789_vm2, %v8419_v35  ;;  %4834 = vst.msk [vmem:[#allocation3 + $0x690] sm:$0xff] %vm789_vm2, %v8420_v5  ;;  %v3119_v55 = vpop.f32.mrf.mxu0  ;;  %v3353_v62 = vpop.f32.mrf.mxu1  ;;  %3703 = vmatmul.mubr.f32.gmra.mxu1 %v7314_v30  ;;  %v8436_v5 = vld [vmem:[#allocation59_spill] sm:$0xff] }
 0x390   :  { %4452 = vst [vmem:[#allocation3 + $0x80] sm:$0xff] %v3119_v55  ;;  %4647 = vst [vmem:[#allocation3 + $0x698] sm:$0xff] %v3353_v62  ;;  %3708 = vmatprep.mubr.f32.mxu1 %v7314_v30 }
 0x391   :  { %v3123_v19 = vpop.f32.mrf.mxu0  ;;  %v3357_v9 = vpop.f32.mrf.mxu1  ;;  %5450 = vmatmul.mubr.f32.gmra.mxu0 %v7314_v30 }
 0x392   :  { %4456 = vst [vmem:[#allocation3 + $0xa0] sm:$0xff] %v3123_v19  ;;  %4651 = vst [vmem:[#allocation3 + $0x6b8] sm:$0xff] %v3357_v9  ;;  %5452 = vmatprep.mubr.msk.f32.mxu0 %vm5780_vm9, %v7314_v30  ;;  %v8437_v9 = vld [vmem:[#allocation21_spill] sm:$0xff] }
 0x393   :  { %4796 = vst.msk [vmem:[#allocation3 + $0xa0] sm:$0xff] %vm789_vm2, %v8421_v24  ;;  %4835 = vst.msk [vmem:[#allocation3 + $0x6b8] sm:$0xff] %vm789_vm2, %v8422_v58  ;;  %v3125_v51 = vpop.f32.mrf.mxu0  ;;  %v3359_v41 = vpop.f32.mrf.mxu1  ;;  %3709 = vmatmul.mubr.f32.gmra.mxu1 %v7314_v30  ;;  %v8438_v58 = vld [vmem:[#allocation58_spill] sm:$0xff] }
 0x394   :  { %4457 = vst [vmem:[#allocation3 + $0xa8] sm:$0xff] %v3125_v51  ;;  %4652 = vst [vmem:[#allocation3 + $0x6c0] sm:$0xff] %v3359_v41  ;;  %3714 = vmatprep.mubr.f32.mxu1 %v7314_v30 }
 0x395   :  { %v3129_v13 = vpop.f32.mrf.mxu0  ;;  %v3363_v8 = vpop.f32.mrf.mxu1  ;;  %5453 = vmatmul.mubr.f32.gmra.mxu0 %v7314_v30 }
 0x396   :  { %4461 = vst [vmem:[#allocation3 + $0xc8] sm:$0xff] %v3129_v13  ;;  %4656 = vst [vmem:[#allocation3 + $0x6e0] sm:$0xff] %v3363_v8  ;;  %5455 = vmatprep.mubr.msk.f32.mxu0 %vm5780_vm9, %v7314_v30  ;;  %v8439_v8 = vld [vmem:[#allocation20_spill] sm:$0xff] }
 0x397   :  { %4797 = vst.msk [vmem:[#allocation3 + $0xc8] sm:$0xff] %vm789_vm2, %v8423_v20  ;;  %4836 = vst.msk [vmem:[#allocation3 + $0x6e0] sm:$0xff] %vm789_vm2, %v8424_v39  ;;  %v3131_v32 = vpop.f32.mrf.mxu0  ;;  %v3365_v57 = vpop.f32.mrf.mxu1  ;;  %3715 = vmatmul.mubr.f32.gmra.mxu1 %v7314_v30  ;;  %v8440_v39 = vld [vmem:[#allocation61_spill] sm:$0xff] }
 0x398   :  { %4462 = vst [vmem:[#allocation3 + $0xd0] sm:$0xff] %v3131_v32  ;;  %4657 = vst [vmem:[#allocation3 + $0x6e8] sm:$0xff] %v3365_v57  ;;  %3720 = vmatprep.mubr.f32.mxu1 %v7314_v30 }
 0x399   :  { %v3135_v45 = vpop.f32.mrf.mxu0  ;;  %v3369_v50 = vpop.f32.mrf.mxu1  ;;  %5456 = vmatmul.mubr.f32.gmra.mxu0 %v7314_v30 }
 0x39a   :  { %4466 = vst [vmem:[#allocation3 + $0xf0] sm:$0xff] %v3135_v45  ;;  %4661 = vst [vmem:[#allocation3 + $0x708] sm:$0xff] %v3369_v50  ;;  %5458 = vmatprep.mubr.msk.f32.mxu0 %vm5780_vm9, %v7314_v30  ;;  %v8441_v50 = vld [vmem:[#allocation23_spill] sm:$0xff] }
 0x39b   :  { %4798 = vst.msk [vmem:[#allocation3 + $0xf0] sm:$0xff] %vm789_vm2, %v8425_v21  ;;  %4837 = vst.msk [vmem:[#allocation3 + $0x708] sm:$0xff] %vm789_vm2, %v8426_v15  ;;  %v3137_v63 = vpop.f32.mrf.mxu0  ;;  %v3371_v4 = vpop.f32.mrf.mxu1  ;;  %3721 = vmatmul.mubr.f32.gmra.mxu1 %v7314_v30  ;;  %v8442_v15 = vld [vmem:[#allocation60_spill] sm:$0xff] }
 0x39c   :  { %4467 = vst [vmem:[#allocation3 + $0xf8] sm:$0xff] %v3137_v63  ;;  %4662 = vst [vmem:[#allocation3 + $0x710] sm:$0xff] %v3371_v4  ;;  %3726 = vmatprep.mubr.f32.mxu1 %v7314_v30 }
 0x39d   :  { %v3141_v33 = vpop.f32.mrf.mxu0  ;;  %v3375_v37 = vpop.f32.mrf.mxu1  ;;  %5459 = vmatmul.mubr.f32.gmra.mxu0 %v7314_v30 }
 0x39e   :  { %4471 = vst [vmem:[#allocation3 + $0x118] sm:$0xff] %v3141_v33  ;;  %4666 = vst [vmem:[#allocation3 + $0x730] sm:$0xff] %v3375_v37  ;;  %5461 = vmatprep.mubr.msk.f32.mxu0 %vm5780_vm9, %v7314_v30  ;;  %v8443_v37 = vld [vmem:[#allocation22_spill] sm:$0xff] }
 0x39f   :  { %4799 = vst.msk [vmem:[#allocation3 + $0x118] sm:$0xff] %vm789_vm2, %v8427_v12  ;;  %4838 = vst.msk [vmem:[#allocation3 + $0x730] sm:$0xff] %vm789_vm2, %v8428_v44  ;;  %v3143_v38 = vpop.f32.mrf.mxu0  ;;  %v3377_v17 = vpop.f32.mrf.mxu1  ;;  %3727 = vmatmul.mubr.f32.gmra.mxu1 %v7314_v30  ;;  %v8444_v44 = vld [vmem:[#allocation63_spill] sm:$0xff] }
 0x3a0   :  { %4472 = vst [vmem:[#allocation3 + $0x120] sm:$0xff] %v3143_v38  ;;  %4667 = vst [vmem:[#allocation3 + $0x738] sm:$0xff] %v3377_v17  ;;  %3732 = vmatprep.mubr.f32.mxu1 %v7314_v30 }
 0x3a1   :  { %v3147_v26 = vpop.f32.mrf.mxu0  ;;  %5462 = vmatmul.mubr.f32.gmra.mxu0 %v7314_v30 }
 0x3a2   :  { %4476 = vst [vmem:[#allocation3 + $0x140] sm:$0xff] %v3147_v26  ;;  %v3381_v7 = vpop.f32.mrf.mxu1  ;;  %5464 = vmatprep.mubr.msk.f32.mxu0 %vm5780_vm9, %v7314_v30 }
 0x3a3   :  { %4800 = vst.msk [vmem:[#allocation3 + $0x140] sm:$0xff] %vm789_vm2, %v8429_v6  ;;  %4671 = vst [vmem:[#allocation3 + $0x758] sm:$0xff] %v3381_v7  ;;  %v3149_v48 = vpop.f32.mrf.mxu0  ;;  %3733 = vmatmul.mubr.f32.gmra.mxu1 %v7314_v30  ;;  %v8445_v7 = vld [vmem:[#allocation25_spill] sm:$0xff] }
 0x3a4   :  { %4839 = vst.msk [vmem:[#allocation3 + $0x758] sm:$0xff] %vm789_vm2, %v8430_v53  ;;  %4477 = vst [vmem:[#allocation3 + $0x148] sm:$0xff] %v3149_v48  ;;  %v3383_v47 = vpop.f32.mrf.mxu1  ;;  %3738 = vmatprep.mubr.f32.mxu1 %v7314_v30  ;;  %v8446_v48 = vld [vmem:[#allocation62_spill] sm:$0xff] }
 0x3a5   :  { %4672 = vst [vmem:[#allocation3 + $0x760] sm:$0xff] %v3383_v47  ;;  %v3153_v23 = vpop.f32.mrf.mxu0  ;;  %5465 = vmatmul.mubr.f32.gmra.mxu0 %v7314_v30 }
 0x3a6   :  { %4481 = vst [vmem:[#allocation3 + $0x168] sm:$0xff] %v3153_v23  ;;  %v3387_v42 = vpop.f32.mrf.mxu1  ;;  %5467 = vmatprep.mubr.msk.f32.mxu0 %vm5780_vm9, %v7314_v30 }
 0x3a7   :  { %4801 = vst.msk [vmem:[#allocation3 + $0x168] sm:$0xff] %vm789_vm2, %v8431_v27  ;;  %4676 = vst [vmem:[#allocation3 + $0x780] sm:$0xff] %v3387_v42  ;;  %v3155_v56 = vpop.f32.mrf.mxu0  ;;  %3739 = vmatmul.mubr.f32.gmra.mxu1 %v7314_v30  ;;  %v8447_v42 = vld [vmem:[#allocation24_spill] sm:$0xff] }
 0x3a8   :  { %4840 = vst.msk [vmem:[#allocation3 + $0x780] sm:$0xff] %vm789_vm2, %v8432_v52  ;;  %4482 = vst [vmem:[#allocation3 + $0x170] sm:$0xff] %v3155_v56  ;;  %v3389_v40 = vpop.f32.mrf.mxu1  ;;  %3744 = vmatprep.mubr.f32.mxu1 %v7790_v60  ;;  %v8448_v56 = vld [vmem:[#allocation65_spill] sm:$0xff] }
 0x3a9   :  { %4677 = vst [vmem:[#allocation3 + $0x788] sm:$0xff] %v3389_v40  ;;  %v3159_v10 = vpop.f32.mrf.mxu0  ;;  %5468 = vmatmul.mubr.f32.gmra.mxu0 %v7790_v60 }
 0x3aa   :  { %4486 = vst [vmem:[#allocation3 + $0x190] sm:$0xff] %v3159_v10  ;;  %v3393_v59 = vpop.f32.mrf.mxu1  ;;  %5470 = vmatprep.mubr.msk.f32.mxu0 %vm5780_vm9, %v7790_v60 }
 0x3ab   :  { %4802 = vst.msk [vmem:[#allocation3 + $0x190] sm:$0xff] %vm789_vm2, %v8433_v25  ;;  %4681 = vst [vmem:[#allocation3 + $0x7a8] sm:$0xff] %v3393_v59  ;;  %v3161_v30 = vpop.f32.mrf.mxu0  ;;  %3745 = vmatmul.mubr.f32.gmra.mxu1 %v7790_v60  ;;  %v8449_v59 = vld [vmem:[#allocation27_spill] sm:$0xff] }
 0x3ac   :  { %4841 = vst.msk [vmem:[#allocation3 + $0x7a8] sm:$0xff] %vm789_vm2, %v8434_v34  ;;  %4487 = vst [vmem:[#allocation3 + $0x198] sm:$0xff] %v3161_v30  ;;  %v3395_v43 = vpop.f32.mrf.mxu1  ;;  %3750 = vmatprep.mubr.f32.mxu1 %v7790_v60  ;;  %v8450_v30 = vld [vmem:[#allocation64_spill] sm:$0xff] }
 0x3ad   :  { %4682 = vst [vmem:[#allocation3 + $0x7b0] sm:$0xff] %v3395_v43  ;;  %v3165_v16 = vpop.f32.mrf.mxu0  ;;  %5471 = vmatmul.mubr.f32.gmra.mxu0 %v7790_v60 }
 0x3ae   :  { %4491 = vst [vmem:[#allocation3 + $0x1b8] sm:$0xff] %v3165_v16  ;;  %v3399_v0 = vpop.f32.mrf.mxu1  ;;  %5473 = vmatprep.mubr.msk.f32.mxu0 %vm5780_vm9, %v7790_v60  ;;  %v8451_v16 = vld [vmem:[#allocation26_spill] sm:$0xff] }
 0x3af   :  { %4803 = vst.msk [vmem:[#allocation3 + $0x1b8] sm:$0xff] %vm789_vm2, %v8435_v46  ;;  %4686 = vst [vmem:[#allocation3 + $0x7d0] sm:$0xff] %v3399_v0  ;;  %v3167_v35 = vpop.f32.mrf.mxu0  ;;  %3751 = vmatmul.mubr.f32.gmra.mxu1 %v7790_v60 }
 0x3b0   :  { %4842 = vst.msk [vmem:[#allocation3 + $0x7d0] sm:$0xff] %vm789_vm2, %v8436_v5  ;;  %4492 = vst [vmem:[#allocation3 + $0x1c0] sm:$0xff] %v3167_v35  ;;  %v3401_v55 = vpop.f32.mrf.mxu1  ;;  %3756 = vmatprep.mubr.f32.mxu1 %v7790_v60 }
 0x3b1   :  { %4687 = vst [vmem:[#allocation3 + $0x7d8] sm:$0xff] %v3401_v55  ;;  %v3171_v62 = vpop.f32.mrf.mxu0  ;;  %5474 = vmatmul.mubr.f32.gmra.mxu0 %v7790_v60  ;;  %v8452_v55 = vld [vmem:[#allocation29_spill] sm:$0xff] }
 0x3b2   :  { %4496 = vst [vmem:[#allocation3 + $0x1e0] sm:$0xff] %v3171_v62  ;;  %v3405_v19 = vpop.f32.mrf.mxu1  ;;  %5476 = vmatprep.mubr.msk.f32.mxu0 %vm5780_vm9, %v7790_v60 }
 0x3b3   :  { %4804 = vst.msk [vmem:[#allocation3 + $0x1e0] sm:$0xff] %vm789_vm2, %v8437_v9  ;;  %4691 = vst [vmem:[#allocation3 + $0x7f8] sm:$0xff] %v3405_v19  ;;  %v3173_v24 = vpop.f32.mrf.mxu0  ;;  %3757 = vmatmul.mubr.f32.gmra.mxu1 %v7790_v60 }
 0x3b4   :  { %4843 = vst.msk [vmem:[#allocation3 + $0x7f8] sm:$0xff] %vm789_vm2, %v8438_v58  ;;  %4497 = vst [vmem:[#allocation3 + $0x1e8] sm:$0xff] %v3173_v24  ;;  %v3407_v51 = vpop.f32.mrf.mxu1  ;;  %3762 = vmatprep.mubr.f32.mxu1 %v7790_v60  ;;  %v8453_v58 = vld [vmem:[#allocation28_spill] sm:$0xff] }
 0x3b5   :  { %4692 = vst [vmem:[#allocation3 + $0x800] sm:$0xff] %v3407_v51  ;;  %v3177_v41 = vpop.f32.mrf.mxu0  ;;  %5477 = vmatmul.mubr.f32.gmra.mxu0 %v7790_v60 }
 0x3b6   :  { %4501 = vst [vmem:[#allocation3 + $0x208] sm:$0xff] %v3177_v41  ;;  %v3411_v13 = vpop.f32.mrf.mxu1  ;;  %5479 = vmatprep.mubr.msk.f32.mxu0 %vm5780_vm9, %v7790_v60 }
 0x3b7   :  { %4805 = vst.msk [vmem:[#allocation3 + $0x208] sm:$0xff] %vm789_vm2, %v8439_v8  ;;  %4696 = vst [vmem:[#allocation3 + $0x820] sm:$0xff] %v3411_v13  ;;  %v3179_v20 = vpop.f32.mrf.mxu0  ;;  %3763 = vmatmul.mubr.f32.gmra.mxu1 %v7790_v60 }
 0x3b8   :  { %4844 = vst.msk [vmem:[#allocation3 + $0x820] sm:$0xff] %vm789_vm2, %v8440_v39  ;;  %4502 = vst [vmem:[#allocation3 + $0x210] sm:$0xff] %v3179_v20  ;;  %v3413_v32 = vpop.f32.mrf.mxu1  ;;  %3768 = vmatprep.mubr.f32.mxu1 %v7790_v60  ;;  %v8454_v20 = vld [vmem:[#allocation31_spill] sm:$0xff] }
 0x3b9   :  { %4697 = vst [vmem:[#allocation3 + $0x828] sm:$0xff] %v3413_v32  ;;  %v3183_v57 = vpop.f32.mrf.mxu0  ;;  %5480 = vmatmul.mubr.f32.gmra.mxu0 %v7790_v60 }
 0x3ba   :  { %4506 = vst [vmem:[#allocation3 + $0x230] sm:$0xff] %v3183_v57  ;;  %v3417_v45 = vpop.f32.mrf.mxu1  ;;  %5482 = vmatprep.mubr.msk.f32.mxu0 %vm5780_vm9, %v7790_v60 }
 0x3bb   :  { %4806 = vst.msk [vmem:[#allocation3 + $0x230] sm:$0xff] %vm789_vm2, %v8441_v50  ;;  %4701 = vst [vmem:[#allocation3 + $0x848] sm:$0xff] %v3417_v45  ;;  %v3185_v21 = vpop.f32.mrf.mxu0  ;;  %3769 = vmatmul.mubr.f32.gmra.mxu1 %v7790_v60  ;;  %v8455_v50 = vld [vmem:[#allocation30_spill] sm:$0xff] }
 0x3bc   :  { %4845 = vst.msk [vmem:[#allocation3 + $0x848] sm:$0xff] %vm789_vm2, %v8442_v15  ;;  %4507 = vst [vmem:[#allocation3 + $0x238] sm:$0xff] %v3185_v21  ;;  %v3419_v63 = vpop.f32.mrf.mxu1  ;;  %3774 = vmatprep.mubr.f32.mxu1 %v7790_v60 }
 0x3bd   :  { %4702 = vst [vmem:[#allocation3 + $0x850] sm:$0xff] %v3419_v63  ;;  %v3189_v4 = vpop.f32.mrf.mxu0  ;;  %5483 = vmatmul.mubr.f32.gmra.mxu0 %v7790_v60 }
 0x3be   :  { %4511 = vst [vmem:[#allocation3 + $0x258] sm:$0xff] %v3189_v4  ;;  %v3423_v33 = vpop.f32.mrf.mxu1  ;;  %5485 = vmatprep.mubr.msk.f32.mxu0 %vm5780_vm9, %v7790_v60 }
 0x3bf   :  { %4807 = vst.msk [vmem:[#allocation3 + $0x258] sm:$0xff] %vm789_vm2, %v8443_v37  ;;  %4706 = vst [vmem:[#allocation3 + $0x870] sm:$0xff] %v3423_v33  ;;  %v3191_v12 = vpop.f32.mrf.mxu0  ;;  %3775 = vmatmul.mubr.f32.gmra.mxu1 %v7790_v60  ;;  %v8456_v33 = vld [vmem:[#allocation33_spill] sm:$0xff] }
 0x3c0   :  { %4846 = vst.msk [vmem:[#allocation3 + $0x870] sm:$0xff] %vm789_vm2, %v8444_v44  ;;  %4512 = vst [vmem:[#allocation3 + $0x260] sm:$0xff] %v3191_v12  ;;  %v3425_v38 = vpop.f32.mrf.mxu1  ;;  %3780 = vmatprep.mubr.f32.mxu1 %v7790_v60 }
 0x3c1   :  { %4707 = vst [vmem:[#allocation3 + $0x878] sm:$0xff] %v3425_v38  ;;  %v3195_v17 = vpop.f32.mrf.mxu0  ;;  %5486 = vmatmul.mubr.f32.gmra.mxu0 %v7790_v60 }
 0x3c2   :  { %4516 = vst [vmem:[#allocation3 + $0x280] sm:$0xff] %v3195_v17  ;;  %v3429_v26 = vpop.f32.mrf.mxu1  ;;  %5488 = vmatprep.mubr.msk.f32.mxu0 %vm5780_vm9, %v7790_v60  ;;  %v8457_v17 = vld [vmem:[#allocation32_spill] sm:$0xff] }
 0x3c3   :  { %4808 = vst.msk [vmem:[#allocation3 + $0x280] sm:$0xff] %vm789_vm2, %v8445_v7  ;;  %4711 = vst [vmem:[#allocation3 + $0x898] sm:$0xff] %v3429_v26  ;;  %v3197_v6 = vpop.f32.mrf.mxu0  ;;  %3781 = vmatmul.mubr.f32.gmra.mxu1 %v7790_v60 }
 0x3c4   :  { %4847 = vst.msk [vmem:[#allocation3 + $0x898] sm:$0xff] %vm789_vm2, %v8446_v48  ;;  %4517 = vst [vmem:[#allocation3 + $0x288] sm:$0xff] %v3197_v6  ;;  %v3431_v53 = vpop.f32.mrf.mxu1  ;;  %3786 = vmatprep.mubr.f32.mxu1 %v7790_v60 }
 0x3c5   :  { %4712 = vst [vmem:[#allocation3 + $0x8a0] sm:$0xff] %v3431_v53  ;;  %v3201_v47 = vpop.f32.mrf.mxu0  ;;  %5489 = vmatmul.mubr.f32.gmra.mxu0 %v7790_v60  ;;  %v8458_v53 = vld [vmem:[#allocation35_spill] sm:$0xff] }
 0x3c6   :  { %4521 = vst [vmem:[#allocation3 + $0x2a8] sm:$0xff] %v3201_v47  ;;  %v3435_v23 = vpop.f32.mrf.mxu1  ;;  %5491 = vmatprep.mubr.msk.f32.mxu0 %vm5780_vm9, %v7790_v60 }
 0x3c7   :  { %4809 = vst.msk [vmem:[#allocation3 + $0x2a8] sm:$0xff] %vm789_vm2, %v8447_v42  ;;  %4716 = vst [vmem:[#allocation3 + $0x8c0] sm:$0xff] %v3435_v23  ;;  %v3203_v27 = vpop.f32.mrf.mxu0  ;;  %3787 = vmatmul.mubr.f32.gmra.mxu1 %v7790_v60 }
 0x3c8   :  { %4848 = vst.msk [vmem:[#allocation3 + $0x8c0] sm:$0xff] %vm789_vm2, %v8448_v56  ;;  %4522 = vst [vmem:[#allocation3 + $0x2b0] sm:$0xff] %v3203_v27  ;;  %v3437_v52 = vpop.f32.mrf.mxu1  ;;  %3792 = vmatprep.mubr.f32.mxu1 %v7790_v60  ;;  %v8459_v56 = vld [vmem:[#allocation34_spill] sm:$0xff] }
 0x3c9   :  { %4717 = vst [vmem:[#allocation3 + $0x8c8] sm:$0xff] %v3437_v52  ;;  %v3207_v40 = vpop.f32.mrf.mxu0  ;;  %5492 = vmatmul.mubr.f32.gmra.mxu0 %v7790_v60 }
 0x3ca   :  { %4526 = vst [vmem:[#allocation3 + $0x2d0] sm:$0xff] %v3207_v40  ;;  %v3441_v10 = vpop.f32.mrf.mxu1  ;;  %5494 = vmatprep.mubr.msk.f32.mxu0 %vm5780_vm9, %v7790_v60 }
 0x3cb   :  { %4810 = vst.msk [vmem:[#allocation3 + $0x2d0] sm:$0xff] %vm789_vm2, %v8449_v59  ;;  %4721 = vst [vmem:[#allocation3 + $0x8e8] sm:$0xff] %v3441_v10  ;;  %v3209_v25 = vpop.f32.mrf.mxu0  ;;  %3793 = vmatmul.mubr.f32.gmra.mxu1 %v7790_v60 }
 0x3cc   :  { %4849 = vst.msk [vmem:[#allocation3 + $0x8e8] sm:$0x3f] %vm847_vm7, %v8450_v30  ;;  %4527 = vst [vmem:[#allocation3 + $0x2d8] sm:$0xff] %v3209_v25  ;;  %v3443_v34 = vpop.f32.mrf.mxu1  ;;  %3798 = vmatprep.mubr.f32.mxu1 %v7790_v60  ;;  %v8460_v25 = vld [vmem:[#allocation37_spill] sm:$0xff]  ;;  %vm4439_vm7 = vcmask 424960  }
 0x3cd   :  { %v3213_v43 = vpop.f32.mrf.mxu0  ;;  %5495 = vmatmul.mubr.f32.gmra.mxu0 %v7790_v60  ;;  %4722 = vst [vmem:[#allocation3 + $0x8f0] sm:$0xff] %v3443_v34 }
 0x3ce   :  { %4531 = vst [vmem:[#allocation3 + $0x2f8] sm:$0xff] %v3213_v43  ;;  %5497 = vmatprep.mubr.msk.f32.mxu0 %vm5780_vm9, %v7790_v60 }
 0x3cf   :  { %4811 = vst.msk [vmem:[#allocation3 + $0x2f8] sm:$0xff] %vm789_vm2, %v8451_v16  ;;  %v3215_v0 = vpop.f32.mrf.mxu0  ;;  %v3447_v46 = vpop.f32.mrf.mxu1  ;;  %3799 = vmatmul.mubr.f32.gmra.mxu1 %v7790_v60 }
 0x3d0   :  { %4532 = vst [vmem:[#allocation3 + $0x300] sm:$0xff] %v3215_v0  ;;  %4726 = vst [vmem:[#allocation3 + $0x910] sm:$0xff] %v3447_v46  ;;  %3804 = vmatprep.mubr.f32.mxu1 %v7790_v60  ;;  %v8461_v0 = vld [vmem:[#allocation36_spill] sm:$0xff] }
 0x3d1   :  { %v3219_v35 = vpop.f32.mrf.mxu0  ;;  %5498 = vmatmul.mubr.f32.gmra.mxu0 %v7790_v60  ;;  %v3449_v5 = vpop.f32.mrf.mxu1 }
 0x3d2   :  { %4536 = vst [vmem:[#allocation3 + $0x320] sm:$0xff] %v3219_v35  ;;  %5500 = vmatprep.mubr.msk.f32.mxu0 %vm5780_vm9, %v7790_v60  ;;  %4727 = vst [vmem:[#allocation3 + $0x918] sm:$0xff] %v3449_v5 }
 0x3d3   :  { %4812 = vst.msk [vmem:[#allocation3 + $0x320] sm:$0xff] %vm789_vm2, %v8452_v55  ;;  %v3221_v62 = vpop.f32.mrf.mxu0  ;;  %v3453_v19 = vpop.f32.mrf.mxu1  ;;  %3805 = vmatmul.mubr.f32.gmra.mxu1 %v7790_v60 }
 0x3d4   :  { %4537 = vst [vmem:[#allocation3 + $0x328] sm:$0xff] %v3221_v62  ;;  %4731 = vst [vmem:[#allocation3 + $0x938] sm:$0xff] %v3453_v19  ;;  %3810 = vmatprep.mubr.f32.mxu1 %v7790_v60  ;;  %v8462_v62 = vld [vmem:[#allocation39_spill] sm:$0xff] }
 0x3d5   :  { %v3225_v9 = vpop.f32.mrf.mxu0  ;;  %5501 = vmatmul.mubr.f32.gmra.mxu0 %v7790_v60  ;;  %v3455_v24 = vpop.f32.mrf.mxu1 }
 0x3d6   :  { %4541 = vst [vmem:[#allocation3 + $0x348] sm:$0xff] %v3225_v9  ;;  %5503 = vmatprep.mubr.msk.f32.mxu0 %vm5780_vm9, %v7790_v60  ;;  %4732 = vst [vmem:[#allocation3 + $0x940] sm:$0xff] %v3455_v24 }
 0x3d7   :  { %4813 = vst.msk [vmem:[#allocation3 + $0x348] sm:$0xff] %vm789_vm2, %v8453_v58  ;;  %v3227_v51 = vpop.f32.mrf.mxu0  ;;  %v3459_v41 = vpop.f32.mrf.mxu1  ;;  %3811 = vmatmul.mubr.f32.gmra.mxu1 %v7790_v60 }
 0x3d8   :  { %4542 = vst [vmem:[#allocation3 + $0x350] sm:$0xff] %v3227_v51  ;;  %4736 = vst [vmem:[#allocation3 + $0x960] sm:$0xff] %v3459_v41  ;;  %3816 = vmatprep.mubr.f32.mxu1 %v7790_v60  ;;  %v8463_v51 = vld [vmem:[#allocation38_spill] sm:$0xff] }
 0x3d9   :  { %v3231_v13 = vpop.f32.mrf.mxu0  ;;  %5504 = vmatmul.mubr.f32.gmra.mxu0 %v7790_v60  ;;  %v3461_v8 = vpop.f32.mrf.mxu1 }
 0x3da   :  { %4546 = vst [vmem:[#allocation3 + $0x370] sm:$0xff] %v3231_v13  ;;  %5506 = vmatprep.mubr.msk.f32.mxu0 %vm5780_vm9, %v7790_v60  ;;  %4737 = vst [vmem:[#allocation3 + $0x968] sm:$0xff] %v3461_v8 }
 0x3db   :  { %4814 = vst.msk [vmem:[#allocation3 + $0x370] sm:$0xff] %vm789_vm2, %v8454_v20  ;;  %v3233_v39 = vpop.f32.mrf.mxu0  ;;  %v3465_v32 = vpop.f32.mrf.mxu1  ;;  %3817 = vmatmul.mubr.f32.gmra.mxu1 %v7790_v60 }
 0x3dc   :  { %4547 = vst [vmem:[#allocation3 + $0x378] sm:$0xff] %v3233_v39  ;;  %4741 = vst [vmem:[#allocation3 + $0x988] sm:$0xff] %v3465_v32  ;;  %3822 = vmatprep.mubr.f32.mxu1 %v7790_v60  ;;  %v8464_v39 = vld [vmem:[#allocation41_spill] sm:$0xff] }
 0x3dd   :  { %v3237_v57 = vpop.f32.mrf.mxu0  ;;  %5507 = vmatmul.mubr.f32.gmra.mxu0 %v7790_v60  ;;  %v3467_v45 = vpop.f32.mrf.mxu1 }
 0x3de   :  { %4551 = vst [vmem:[#allocation3 + $0x398] sm:$0xff] %v3237_v57  ;;  %5509 = vmatprep.mubr.msk.f32.mxu0 %vm5780_vm9, %v7790_v60  ;;  %4742 = vst [vmem:[#allocation3 + $0x990] sm:$0xff] %v3467_v45 }
 0x3df   :  { %4815 = vst.msk [vmem:[#allocation3 + $0x398] sm:$0xff] %vm789_vm2, %v8455_v50  ;;  %v3239_v21 = vpop.f32.mrf.mxu0  ;;  %v3471_v15 = vpop.f32.mrf.mxu1  ;;  %3823 = vmatmul.mubr.f32.gmra.mxu1 %v7790_v60 }
 0x3e0   :  { %4552 = vst [vmem:[#allocation3 + $0x3a0] sm:$0xff] %v3239_v21  ;;  %4746 = vst [vmem:[#allocation3 + $0x9b0] sm:$0xff] %v3471_v15  ;;  %3828 = vmatprep.mubr.f32.mxu1 %v7790_v60  ;;  %v8465_v21 = vld [vmem:[#allocation40_spill] sm:$0xff] }
 0x3e1   :  { %v3243_v63 = vpop.f32.mrf.mxu0  ;;  %5510 = vmatmul.mubr.f32.gmra.mxu0 %v7790_v60  ;;  %v3473_v4 = vpop.f32.mrf.mxu1 }
 0x3e2   :  { %4556 = vst [vmem:[#allocation3 + $0x3c0] sm:$0xff] %v3243_v63  ;;  %5512 = vmatprep.mubr.msk.f32.mxu0 %vm5780_vm9, %v7790_v60  ;;  %4747 = vst [vmem:[#allocation3 + $0x9b8] sm:$0xff] %v3473_v4 }
 0x3e3   :  { %4816 = vst.msk [vmem:[#allocation3 + $0x3c0] sm:$0xff] %vm789_vm2, %v8456_v33  ;;  %v3245_v37 = vpop.f32.mrf.mxu0  ;;  %v3477_v12 = vpop.f32.mrf.mxu1  ;;  %3829 = vmatmul.mubr.f32.gmra.mxu1 %v7790_v60 }
 0x3e4   :  { %4557 = vst [vmem:[#allocation3 + $0x3c8] sm:$0xff] %v3245_v37  ;;  %4751 = vst [vmem:[#allocation3 + $0x9d8] sm:$0xff] %v3477_v12  ;;  %3834 = vmatprep.mubr.f32.mxu1 %v7790_v60  ;;  %v8466_v37 = vld [vmem:[#allocation43_spill] sm:$0xff] }
 0x3e5   :  { %v3249_v44 = vpop.f32.mrf.mxu0  ;;  %5513 = vmatmul.mubr.f32.gmra.mxu0 %v7790_v60  ;;  %v3479_v38 = vpop.f32.mrf.mxu1 }
 0x3e6   :  { %4561 = vst [vmem:[#allocation3 + $0x3e8] sm:$0xff] %v3249_v44  ;;  %5515 = vmatprep.mubr.msk.f32.mxu0 %vm5780_vm9, %v7790_v60  ;;  %4752 = vst [vmem:[#allocation3 + $0x9e0] sm:$0xff] %v3479_v38 }
 0x3e7   :  { %4817 = vst.msk [vmem:[#allocation3 + $0x3e8] sm:$0xff] %vm789_vm2, %v8457_v17  ;;  %v3251_v26 = vpop.f32.mrf.mxu0  ;;  %v3483_v7 = vpop.f32.mrf.mxu1  ;;  %3835 = vmatmul.mubr.f32.gmra.mxu1 %v7790_v60 }
 0x3e8   :  { %4562 = vst [vmem:[#allocation3 + $0x3f0] sm:$0xff] %v3251_v26  ;;  %4756 = vst [vmem:[#allocation3 + $0xa00] sm:$0xff] %v3483_v7  ;;  %3840 = vmatprep.mubr.f32.mxu1 %v7790_v60  ;;  %v8467_v26 = vld [vmem:[#allocation42_spill] sm:$0xff] }
 0x3e9   :  { %v3255_v6 = vpop.f32.mrf.mxu0  ;;  %5516 = vmatmul.mubr.f32.gmra.mxu0 %v7790_v60  ;;  %v3485_v48 = vpop.f32.mrf.mxu1 }
 0x3ea   :  { %4566 = vst [vmem:[#allocation3 + $0x410] sm:$0xff] %v3255_v6  ;;  %5518 = vmatprep.mubr.msk.f32.mxu0 %vm5780_vm9, %v7790_v60  ;;  %4757 = vst [vmem:[#allocation3 + $0xa08] sm:$0xff] %v3485_v48 }
 0x3eb   :  { %4818 = vst.msk [vmem:[#allocation3 + $0x410] sm:$0xff] %vm789_vm2, %v8458_v53  ;;  %v3257_v47 = vpop.f32.mrf.mxu0  ;;  %v3489_v23 = vpop.f32.mrf.mxu1  ;;  %3841 = vmatmul.mubr.f32.gmra.mxu1 %v7790_v60 }
 0x3ec   :  { %4567 = vst [vmem:[#allocation3 + $0x418] sm:$0xff] %v3257_v47  ;;  %4761 = vst [vmem:[#allocation3 + $0xa28] sm:$0xff] %v3489_v23  ;;  %3846 = vmatprep.mubr.f32.mxu1 %v7790_v60  ;;  %v8468_v47 = vld [vmem:[#allocation45_spill] sm:$0xff] }
 0x3ed   :  { %v3261_v42 = vpop.f32.mrf.mxu0  ;;  %5519 = vmatmul.mubr.f32.gmra.mxu0 %v7790_v60  ;;  %v3491_v27 = vpop.f32.mrf.mxu1 }
 0x3ee   :  { %4571 = vst [vmem:[#allocation3 + $0x438] sm:$0xff] %v3261_v42  ;;  %5521 = vmatprep.mubr.msk.f32.mxu0 %vm5780_vm9, %v7790_v60  ;;  %4762 = vst [vmem:[#allocation3 + $0xa30] sm:$0xff] %v3491_v27 }
 0x3ef   :  { %4819 = vst.msk [vmem:[#allocation3 + $0x438] sm:$0xff] %vm789_vm2, %v8459_v56  ;;  %v3263_v52 = vpop.f32.mrf.mxu0  ;;  %v3495_v40 = vpop.f32.mrf.mxu1  ;;  %3847 = vmatmul.mubr.f32.gmra.mxu1 %v7790_v60 }
 0x3f0   :  { %4572 = vst [vmem:[#allocation3 + $0x440] sm:$0xff] %v3263_v52  ;;  %4766 = vst [vmem:[#allocation3 + $0xa50] sm:$0xff] %v3495_v40  ;;  %3852 = vmatprep.mubr.f32.mxu1 %v7790_v60  ;;  %v8469_v52 = vld [vmem:[#allocation44_spill] sm:$0xff] }
 0x3f1   :  { %v3267_v10 = vpop.f32.mrf.mxu0  ;;  %5522 = vmatmul.mubr.f32.gmra.mxu0 %v7790_v60  ;;  %v3497_v59 = vpop.f32.mrf.mxu1 }
 0x3f2   :  { %4576 = vst [vmem:[#allocation3 + $0x460] sm:$0xff] %v3267_v10  ;;  %5524 = vmatprep.mubr.msk.f32.mxu0 %vm5780_vm9, %v7790_v60  ;;  %4767 = vst [vmem:[#allocation3 + $0xa58] sm:$0xff] %v3497_v59 }
 0x3f3   :  { %4820 = vst.msk [vmem:[#allocation3 + $0x460] sm:$0xff] %vm789_vm2, %v8460_v25  ;;  %v3269_v30 = vpop.f32.mrf.mxu0  ;;  %v3501_v34 = vpop.f32.mrf.mxu1  ;;  %3853 = vmatmul.mubr.f32.gmra.mxu1 %v7790_v60 }
 0x3f4   :  { %4577 = vst [vmem:[#allocation3 + $0x468] sm:$0xff] %v3269_v30  ;;  %4771 = vst [vmem:[#allocation3 + $0xa78] sm:$0xff] %v3501_v34  ;;  %3858 = vmatprep.mubr.f32.mxu1 %v7790_v60  ;;  %v8470_v30 = vld [vmem:[#allocation47_spill] sm:$0xff] }
 0x3f5   :  { %v3273_v43 = vpop.f32.mrf.mxu0  ;;  %5525 = vmatmul.mubr.f32.gmra.mxu0 %v7790_v60  ;;  %v3503_v16 = vpop.f32.mrf.mxu1 }
 0x3f6   :  { %4581 = vst [vmem:[#allocation3 + $0x488] sm:$0xff] %v3273_v43  ;;  %5527 = vmatprep.mubr.msk.f32.mxu0 %vm5780_vm9, %v7790_v60  ;;  %4772 = vst [vmem:[#allocation3 + $0xa80] sm:$0xff] %v3503_v16 }
 0x3f7   :  { %4821 = vst.msk [vmem:[#allocation3 + $0x488] sm:$0xff] %vm789_vm2, %v8461_v0  ;;  %v3275_v46 = vpop.f32.mrf.mxu0  ;;  %v3507_v35 = vpop.f32.mrf.mxu1  ;;  %3859 = vmatmul.mubr.f32.gmra.mxu1 %v7790_v60 }
 0x3f8   :  { %4582 = vst [vmem:[#allocation3 + $0x490] sm:$0xff] %v3275_v46  ;;  %4776 = vst [vmem:[#allocation3 + $0xaa0] sm:$0xff] %v3507_v35  ;;  %3864 = vmatprep.mubr.f32.mxu1 %v7790_v60 }
 0x3f9   :  { %v3279_v5 = vpop.f32.mrf.mxu0  ;;  %5528 = vmatmul.mubr.f32.gmra.mxu0 %v7790_v60  ;;  %v3509_v55 = vpop.f32.mrf.mxu1 }
 0x3fa   :  { %4586 = vst [vmem:[#allocation3 + $0x4b0] sm:$0xff] %v3279_v5  ;;  %5530 = vmatprep.mubr.msk.f32.mxu0 %vm5780_vm9, %v7790_v60  ;;  %4777 = vst [vmem:[#allocation3 + $0xaa8] sm:$0xff] %v3509_v55 }
 0x3fb   :  { %4822 = vst.msk [vmem:[#allocation3 + $0x4b0] sm:$0xff] %vm789_vm2, %v8462_v62  ;;  %v3281_v19 = vpop.f32.mrf.mxu0  ;;  %v3513_v9 = vpop.f32.mrf.mxu1  ;;  %3865 = vmatmul.mubr.f32.gmra.mxu1 %v7790_v60 }
 0x3fc   :  { %4587 = vst [vmem:[#allocation3 + $0x4b8] sm:$0xff] %v3281_v19  ;;  %4781 = vst [vmem:[#allocation3 + $0xac8] sm:$0xff] %v3513_v9  ;;  %3870 = vmatprep.mubr.f32.mxu1 %v7790_v60 }
 0x3fd   :  { %v3285_v24 = vpop.f32.mrf.mxu0  ;;  %5531 = vmatmul.mubr.f32.gmra.mxu0 %v7790_v60  ;;  %v3515_v58 = vpop.f32.mrf.mxu1 }
 0x3fe   :  { %4591 = vst [vmem:[#allocation3 + $0x4d8] sm:$0xff] %v3285_v24  ;;  %5533 = vmatprep.mubr.msk.f32.mxu0 %vm5780_vm9, %v7790_v60  ;;  %4782 = vst [vmem:[#allocation3 + $0xad0] sm:$0xff] %v3515_v58 }
 0x3ff   :  { %4823 = vst.msk [vmem:[#allocation3 + $0x4d8] sm:$0xff] %vm789_vm2, %v8463_v51  ;;  %v3287_v41 = vpop.f32.mrf.mxu0  ;;  %v3519_v13 = vpop.f32.mrf.mxu1  ;;  %3871 = vmatmul.mubr.f32.gmra.mxu1 %v7790_v60 }
 0x400   :  { %4592 = vst [vmem:[#allocation3 + $0x4e0] sm:$0xff] %v3287_v41  ;;  %4786 = vst [vmem:[#allocation3 + $0xaf0] sm:$0xf] %v3519_v13  ;;  %3876 = vmatprep.mubr.f32.mxu1 %v7790_v60 }
 0x401   :  { %v3291_v8 = vpop.f32.mrf.mxu0  ;;  %5534 = vmatmul.mubr.f32.gmra.mxu0 %v7790_v60  ;;  %v3521_v20 = vpop.f32.mrf.mxu1 }
 0x402   :  { %4596 = vst [vmem:[#allocation3 + $0x500] sm:$0xff] %v3291_v8  ;;  %5536 = vmatprep.mubr.msk.f32.mxu0 %vm5780_vm9, %v7790_v60  ;;  %4787 = vst [vmem:[#allocation3 + $0xaf8] sm:$0xf] %v3521_v20 }
 0x403   :  { %4824 = vst.msk [vmem:[#allocation3 + $0x500] sm:$0xff] %vm789_vm2, %v8464_v39  ;;  %v3293_v32 = vpop.f32.mrf.mxu0  ;;  %v3590_v57 = vpop.f32.mrf.mxu1  ;;  %3877 = vmatmul.mubr.f32.gmra.mxu1 %v7790_v60 }
 0x404   :  { %4597 = vst [vmem:[#allocation3 + $0x508] sm:$0xff] %v3293_v32  ;;  %4437 = vst [vmem:[#allocation3 + $0x10] sm:$0xff] %v3590_v57  ;;  %3882 = vmatprep.mubr.f32.mxu1 %v7790_v60 }
 0x405   :  { %v3297_v45 = vpop.f32.mrf.mxu0  ;;  %5537 = vmatmul.mubr.f32.gmra.mxu0 %v7790_v60  ;;  %v3592_v50 = vpop.f32.mrf.mxu1 }
 0x406   :  { %4601 = vst [vmem:[#allocation3 + $0x528] sm:$0xff] %v3297_v45  ;;  %5539 = vmatprep.mubr.msk.f32.mxu0 %vm5780_vm9, %v7790_v60  ;;  %4438 = vst [vmem:[#allocation3 + $0x18] sm:$0xff] %v3592_v50 }
 0x407   :  { %4825 = vst.msk [vmem:[#allocation3 + $0x528] sm:$0xff] %vm789_vm2, %v8465_v21  ;;  %v3299_v15 = vpop.f32.mrf.mxu0  ;;  %v3596_v63 = vpop.f32.mrf.mxu1  ;;  %3883 = vmatmul.mubr.f32.gmra.mxu1 %v7790_v60 }
 0x408   :  { %4602 = vst [vmem:[#allocation3 + $0x530] sm:$0xff] %v3299_v15  ;;  %4443 = vst [vmem:[#allocation3 + $0x38] sm:$0xff] %v3596_v63  ;;  %3888 = vmatprep.mubr.f32.mxu1 %v7790_v60 }
 0x409   :  { %v3303_v4 = vpop.f32.mrf.mxu0  ;;  %5540 = vmatmul.mubr.f32.gmra.mxu0 %v7790_v60  ;;  %v3598_v33 = vpop.f32.mrf.mxu1 }
 0x40a   :  { %4606 = vst [vmem:[#allocation3 + $0x550] sm:$0xff] %v3303_v4  ;;  %5542 = vmatprep.mubr.msk.f32.mxu0 %vm5780_vm9, %v7790_v60  ;;  %4444 = vst [vmem:[#allocation3 + $0x40] sm:$0xff] %v3598_v33 }
 0x40b   :  { %4826 = vst.msk [vmem:[#allocation3 + $0x550] sm:$0xff] %vm789_vm2, %v8466_v37  ;;  %v3305_v12 = vpop.f32.mrf.mxu0  ;;  %v3602_v44 = vpop.f32.mrf.mxu1  ;;  %3889 = vmatmul.mubr.f32.gmra.mxu1 %v7790_v60 }
 0x40c   :  { %4607 = vst [vmem:[#allocation3 + $0x558] sm:$0xff] %v3305_v12  ;;  %4448 = vst [vmem:[#allocation3 + $0x60] sm:$0xff] %v3602_v44  ;;  %3894 = vmatprep.mubr.f32.mxu1 %v7790_v60 }
 0x40d   :  { %v3309_v38 = vpop.f32.mrf.mxu0  ;;  %5543 = vmatmul.mubr.f32.gmra.mxu0 %v7790_v60  ;;  %v3604_v17 = vpop.f32.mrf.mxu1 }
 0x40e   :  { %4611 = vst [vmem:[#allocation3 + $0x578] sm:$0xff] %v3309_v38  ;;  %5545 = vmatprep.mubr.msk.f32.mxu0 %vm5780_vm9, %v7790_v60  ;;  %4449 = vst [vmem:[#allocation3 + $0x68] sm:$0xff] %v3604_v17 }
 0x40f   :  { %4827 = vst.msk [vmem:[#allocation3 + $0x578] sm:$0xff] %vm789_vm2, %v8467_v26  ;;  %v3311_v7 = vpop.f32.mrf.mxu0  ;;  %v3608_v6 = vpop.f32.mrf.mxu1  ;;  %3895 = vmatmul.mubr.f32.gmra.mxu1 %v7790_v60 }
 0x410   :  { %4612 = vst [vmem:[#allocation3 + $0x580] sm:$0xff] %v3311_v7  ;;  %4453 = vst [vmem:[#allocation3 + $0x88] sm:$0xff] %v3608_v6  ;;  %3900 = vmatprep.mubr.f32.mxu1 %v7790_v60 }
 0x411   :  { %v3315_v48 = vpop.f32.mrf.mxu0  ;;  %5546 = vmatmul.mubr.f32.gmra.mxu0 %v7790_v60  ;;  %v3610_v53 = vpop.f32.mrf.mxu1 }
 0x412   :  { %4616 = vst [vmem:[#allocation3 + $0x5a0] sm:$0xff] %v3315_v48  ;;  %5548 = vmatprep.mubr.msk.f32.mxu0 %vm5780_vm9, %v7790_v60  ;;  %4454 = vst [vmem:[#allocation3 + $0x90] sm:$0xff] %v3610_v53 }
 0x413   :  { %4828 = vst.msk [vmem:[#allocation3 + $0x5a0] sm:$0xff] %vm789_vm2, %v8468_v47  ;;  %v3317_v23 = vpop.f32.mrf.mxu0  ;;  %v3614_v42 = vpop.f32.mrf.mxu1  ;;  %3901 = vmatmul.mubr.f32.gmra.mxu1 %v7790_v60 }
 0x414   :  { %4617 = vst [vmem:[#allocation3 + $0x5a8] sm:$0xff] %v3317_v23  ;;  %4458 = vst [vmem:[#allocation3 + $0xb0] sm:$0xff] %v3614_v42  ;;  %3906 = vmatprep.mubr.f32.mxu1 %v7790_v60 }
 0x415   :  { %v3321_v27 = vpop.f32.mrf.mxu0  ;;  %5549 = vmatmul.mubr.f32.gmra.mxu0 %v7790_v60  ;;  %v3616_v56 = vpop.f32.mrf.mxu1 }
 0x416   :  { %4621 = vst [vmem:[#allocation3 + $0x5c8] sm:$0xff] %v3321_v27  ;;  %5551 = vmatprep.mubr.msk.f32.mxu0 %vm5780_vm9, %v7790_v60  ;;  %4459 = vst [vmem:[#allocation3 + $0xb8] sm:$0xff] %v3616_v56 }
 0x417   :  { %4829 = vst.msk [vmem:[#allocation3 + $0x5c8] sm:$0xff] %vm789_vm2, %v8469_v52  ;;  %v3323_v40 = vpop.f32.mrf.mxu0  ;;  %v3620_v10 = vpop.f32.mrf.mxu1  ;;  %3907 = vmatmul.mubr.f32.gmra.mxu1 %v7790_v60 }
 0x418   :  { %4622 = vst [vmem:[#allocation3 + $0x5d0] sm:$0xff] %v3323_v40  ;;  %4463 = vst [vmem:[#allocation3 + $0xd8] sm:$0xff] %v3620_v10  ;;  %3912 = vmatprep.mubr.f32.mxu1 %v7790_v60 }
 0x419   :  { %v3327_v59 = vpop.f32.mrf.mxu0  ;;  %5552 = vmatmul.mubr.f32.gmra.mxu0 %v7790_v60  ;;  %v3622_v25 = vpop.f32.mrf.mxu1 }
 0x41a   :  { %4626 = vst [vmem:[#allocation3 + $0x5f0] sm:$0xff] %v3327_v59  ;;  %5554 = vmatprep.mubr.msk.f32.mxu0 %vm5780_vm9, %v7790_v60  ;;  %4464 = vst [vmem:[#allocation3 + $0xe0] sm:$0xff] %v3622_v25  ;;  %v8094_v59 = vld [vmem:[#allocation2 + $0x1d0] sm:$0xff] }
 0x41b   :  { %4830 = vst.msk [vmem:[#allocation3 + $0x5f0] sm:$0xff] %vm789_vm2, %v8470_v30  ;;  %v3329_v34 = vpop.f32.mrf.mxu0  ;;  %v3626_v43 = vpop.f32.mrf.mxu1  ;;  %3913 = vmatmul.mubr.f32.gmra.mxu1 %v7790_v60 }
 0x41c   :  { %4627 = vst [vmem:[#allocation3 + $0x5f8] sm:$0xff] %v3329_v34  ;;  %4468 = vst [vmem:[#allocation3 + $0x100] sm:$0xff] %v3626_v43  ;;  %3918 = vmatprep.mubr.f32.mxu1 %v7790_v60 }
 0x41d   :  { %v4081_v16 = vpop.f32.mrf.mxu0  ;;  %5555 = vmatmul.mubr.f32.gmra.mxu0 %v7790_v60  ;;  %v3628_v0 = vpop.f32.mrf.mxu1 }
 0x41e   :  { %4440 = vst.msk [vmem:[#allocation3 + $0x20] sm:$0xff] %vm4439_vm7, %v4081_v16  ;;  %5557 = vmatprep.mubr.msk.f32.mxu0 %vm5780_vm9, %v7790_v60  ;;  %4469 = vst [vmem:[#allocation3 + $0x108] sm:$0xff] %v3628_v0 }
 0x41f   :  { %v5412_v46 = vpop.f32.mrf.mxu0  ;;  %v3632_v35 = vpop.f32.mrf.mxu1  ;;  %3919 = vmatmul.mubr.f32.gmra.mxu1 %v7790_v60 }
 0x420   :  { %4473 = vst [vmem:[#allocation3 + $0x128] sm:$0xff] %v3632_v35  ;;  %3924 = vmatprep.mubr.f32.mxu1 %v7790_v60 }
 0x421   :  { %v4086_v5 = vpop.f32.mrf.mxu0  ;;  %5558 = vmatmul.mubr.f32.gmra.mxu0 %v7790_v60  ;;  %v3634_v55 = vpop.f32.mrf.mxu1 }
 0x422   :  { %4445 = vst.msk [vmem:[#allocation3 + $0x48] sm:$0xff] %vm4439_vm7, %v4086_v5  ;;  %5560 = vmatprep.mubr.msk.f32.mxu0 %vm5780_vm9, %v7790_v60  ;;  %4474 = vst [vmem:[#allocation3 + $0x130] sm:$0xff] %v3634_v55 }
 0x423   :  { %v5415_v62 = vpop.f32.mrf.mxu0  ;;  %v3638_v19 = vpop.f32.mrf.mxu1  ;;  %3925 = vmatmul.mubr.f32.gmra.mxu1 %v7790_v60 }
 0x424   :  { %4478 = vst [vmem:[#allocation3 + $0x150] sm:$0xff] %v3638_v19  ;;  %3930 = vmatprep.mubr.f32.mxu1 %v7790_v60 }
 0x425   :  { %v4091_v9 = vpop.f32.mrf.mxu0  ;;  %5561 = vmatmul.mubr.f32.gmra.mxu0 %v7790_v60  ;;  %v3640_v24 = vpop.f32.mrf.mxu1 }
 0x426   :  { %4450 = vst.msk [vmem:[#allocation3 + $0x70] sm:$0xff] %vm4439_vm7, %v4091_v9  ;;  %5563 = vmatprep.mubr.msk.f32.mxu0 %vm5780_vm9, %v7790_v60  ;;  %4479 = vst [vmem:[#allocation3 + $0x158] sm:$0xff] %v3640_v24 }
 0x427   :  { %v5418_v58 = vpop.f32.mrf.mxu0  ;;  %v3644_v51 = vpop.f32.mrf.mxu1  ;;  %5120 = vmatmul.mubr.msk.f32.gmra.mxu1 %vm789_vm2, %v7458_v54 }
 0x428   :  { %4483 = vst [vmem:[#allocation3 + $0x178] sm:$0xff] %v3644_v51  ;;  %3936 = vmatprep.mubr.f32.mxu1 %v7790_v60 }
 0x429   :  { %v4096_v41 = vpop.f32.mrf.mxu0  ;;  %5564 = vmatmul.mubr.f32.gmra.mxu0 %v7790_v60  ;;  %v3646_v13 = vpop.f32.mrf.mxu1 }
 0x42a   :  { %4455 = vst.msk [vmem:[#allocation3 + $0x98] sm:$0xff] %vm4439_vm7, %v4096_v41  ;;  %5566 = vmatprep.mubr.msk.f32.mxu0 %vm5780_vm9, %v7790_v60  ;;  %4484 = vst [vmem:[#allocation3 + $0x180] sm:$0xff] %v3646_v13 }
 0x42b   :  { %v5421_v8 = vpop.f32.mrf.mxu0  ;;  %v3650_v20 = vpop.f32.mrf.mxu1  ;;  %5121 = vmatmul.mubr.msk.f32.gmra.mxu1 %vm789_vm2, %v7469_v36 }
 0x42c   :  { %4488 = vst [vmem:[#allocation3 + $0x1a0] sm:$0xff] %v3650_v20  ;;  %3942 = vmatprep.mubr.f32.mxu1 %v7790_v60 }
 0x42d   :  { %v4101_v39 = vpop.f32.mrf.mxu0  ;;  %5567 = vmatmul.mubr.f32.gmra.mxu0 %v7790_v60  ;;  %v3652_v32 = vpop.f32.mrf.mxu1 }
 0x42e   :  { %4460 = vst.msk [vmem:[#allocation3 + $0xc0] sm:$0xff] %vm4439_vm7, %v4101_v39  ;;  %5569 = vmatprep.mubr.msk.f32.mxu0 %vm5780_vm9, %v7790_v60  ;;  %4489 = vst [vmem:[#allocation3 + $0x1a8] sm:$0xff] %v3652_v32 }
 0x42f   :  { %v5424_v57 = vpop.f32.mrf.mxu0  ;;  %v3656_v45 = vpop.f32.mrf.mxu1  ;;  %5122 = vmatmul.mubr.msk.f32.gmra.mxu1 %vm789_vm2, %v7483_v2 }
 0x430   :  { %4493 = vst [vmem:[#allocation3 + $0x1c8] sm:$0xff] %v3656_v45  ;;  %3948 = vmatprep.mubr.f32.mxu1 %v7790_v60 }
 0x431   :  { %v4106_v50 = vpop.f32.mrf.mxu0  ;;  %5570 = vmatmul.mubr.f32.gmra.mxu0 %v7790_v60  ;;  %v3658_v21 = vpop.f32.mrf.mxu1 }
 0x432   :  { %4465 = vst.msk [vmem:[#allocation3 + $0xe8] sm:$0xff] %vm4439_vm7, %v4106_v50  ;;  %5572 = vmatprep.mubr.msk.f32.mxu0 %vm5780_vm9, %v7790_v60  ;;  %4494 = vst [vmem:[#allocation3 + $0x1d0] sm:$0xff] %v3658_v21 }
 0x433   :  { %v5427_v15 = vpop.f32.mrf.mxu0  ;;  %v3662_v63 = vpop.f32.mrf.mxu1  ;;  %5123 = vmatmul.mubr.msk.f32.gmra.mxu1 %vm789_vm2, %v7497_v3 }
 0x434   :  { %4498 = vst [vmem:[#allocation3 + $0x1f0] sm:$0xff] %v3662_v63  ;;  %3954 = vmatprep.mubr.f32.mxu1 %v7790_v60 }
 0x435   :  { %v4111_v4 = vpop.f32.mrf.mxu0  ;;  %5573 = vmatmul.mubr.f32.gmra.mxu0 %v7790_v60  ;;  %v3664_v33 = vpop.f32.mrf.mxu1 }
 0x436   :  { %4470 = vst.msk [vmem:[#allocation3 + $0x110] sm:$0xff] %vm4439_vm7, %v4111_v4  ;;  %5575 = vmatprep.mubr.msk.f32.mxu0 %vm5780_vm9, %v7790_v60  ;;  %4499 = vst [vmem:[#allocation3 + $0x1f8] sm:$0xff] %v3664_v33 }
 0x437   :  { %v5430_v37 = vpop.f32.mrf.mxu0  ;;  %v3668_v12 = vpop.f32.mrf.mxu1  ;;  %5124 = vmatmul.mubr.msk.f32.gmra.mxu1 %vm789_vm2, %v7513_v61 }
 0x438   :  { %4503 = vst [vmem:[#allocation3 + $0x218] sm:$0xff] %v3668_v12  ;;  %3960 = vmatprep.mubr.f32.mxu1 %v7790_v60 }
 0x439   :  { %v4116_v44 = vpop.f32.mrf.mxu0  ;;  %5576 = vmatmul.mubr.f32.gmra.mxu0 %v7790_v60  ;;  %v3670_v38 = vpop.f32.mrf.mxu1 }
 0x43a   :  { %4475 = vst.msk [vmem:[#allocation3 + $0x138] sm:$0xff] %vm4439_vm7, %v4116_v44  ;;  %5578 = vmatprep.mubr.msk.f32.mxu0 %vm5780_vm9, %v7790_v60  ;;  %4504 = vst [vmem:[#allocation3 + $0x220] sm:$0xff] %v3670_v38 }
 0x43b   :  { %v5433_v17 = vpop.f32.mrf.mxu0  ;;  %v3674_v26 = vpop.f32.mrf.mxu1  ;;  %5125 = vmatmul.mubr.msk.f32.gmra.mxu1 %vm789_vm2, %v7529_v29 }
 0x43c   :  { %4508 = vst [vmem:[#allocation3 + $0x240] sm:$0xff] %v3674_v26  ;;  %3966 = vmatprep.mubr.f32.mxu1 %v7790_v60 }
 0x43d   :  { %v4121_v7 = vpop.f32.mrf.mxu0  ;;  %5579 = vmatmul.mubr.f32.gmra.mxu0 %v7790_v60  ;;  %v3676_v6 = vpop.f32.mrf.mxu1 }
 0x43e   :  { %4480 = vst.msk [vmem:[#allocation3 + $0x160] sm:$0xff] %vm4439_vm7, %v4121_v7  ;;  %5581 = vmatprep.mubr.msk.f32.mxu0 %vm5780_vm9, %v7790_v60  ;;  %4509 = vst [vmem:[#allocation3 + $0x248] sm:$0xff] %v3676_v6 }
 0x43f   :  { %v5436_v48 = vpop.f32.mrf.mxu0  ;;  %v3680_v53 = vpop.f32.mrf.mxu1  ;;  %5126 = vmatmul.mubr.msk.f32.gmra.mxu1 %vm789_vm2, %v7545_v22 }
 0x440   :  { %4513 = vst [vmem:[#allocation3 + $0x268] sm:$0xff] %v3680_v53  ;;  %3972 = vmatprep.mubr.f32.mxu1 %v7790_v60 }
 0x441   :  { %v4126_v47 = vpop.f32.mrf.mxu0  ;;  %5582 = vmatmul.mubr.msk.f32.gmra.mxu0 %vm789_vm2, %v7458_v54  ;;  %v3682_v23 = vpop.f32.mrf.mxu1 }
 0x442   :  { %4485 = vst.msk [vmem:[#allocation3 + $0x188] sm:$0xff] %vm4439_vm7, %v4126_v47  ;;  %5584 = vmatprep.mubr.msk.f32.mxu0 %vm5780_vm9, %v7790_v60  ;;  %4514 = vst [vmem:[#allocation3 + $0x270] sm:$0xff] %v3682_v23 }
 0x443   :  { %v5439_v42 = vpop.f32.mrf.mxu0  ;;  %v3686_v27 = vpop.f32.mrf.mxu1  ;;  %5127 = vmatmul.mubr.msk.f32.gmra.mxu1 %vm789_vm2, %v7561_v14 }
 0x444   :  { %4518 = vst [vmem:[#allocation3 + $0x290] sm:$0xff] %v3686_v27  ;;  %3978 = vmatprep.mubr.f32.mxu1 %v7790_v60 }
 0x445   :  { %v4131_v56 = vpop.f32.mrf.mxu0  ;;  %5585 = vmatmul.mubr.msk.f32.gmra.mxu0 %vm789_vm2, %v7469_v36  ;;  %v3688_v54 = vpop.f32.mrf.mxu1 }
 0x446   :  { %4490 = vst.msk [vmem:[#allocation3 + $0x1b0] sm:$0xff] %vm4439_vm7, %v4131_v56  ;;  %5587 = vmatprep.mubr.msk.f32.mxu0 %vm5780_vm9, %v7790_v60  ;;  %4519 = vst [vmem:[#allocation3 + $0x298] sm:$0xff] %v3688_v54 }
 0x447   :  { %v5442_v52 = vpop.f32.mrf.mxu0  ;;  %v3692_v40 = vpop.f32.mrf.mxu1  ;;  %5128 = vmatmul.mubr.msk.f32.gmra.mxu1 %vm789_vm2, %v7572_v18 }
 0x448   :  { %4523 = vst [vmem:[#allocation3 + $0x2b8] sm:$0xff] %v3692_v40  ;;  %3984 = vmatprep.mubr.f32.mxu1 %v7790_v60 }
 0x449   :  { %v4136_v10 = vpop.f32.mrf.mxu0  ;;  %5588 = vmatmul.mubr.msk.f32.gmra.mxu0 %vm789_vm2, %v7483_v2  ;;  %v3694_v36 = vpop.f32.mrf.mxu1 }
 0x44a   :  { %4495 = vst.msk [vmem:[#allocation3 + $0x1d8] sm:$0xff] %vm4439_vm7, %v4136_v10  ;;  %5590 = vmatprep.mubr.msk.f32.mxu0 %vm5780_vm9, %v8094_v59  ;;  %4524 = vst [vmem:[#allocation3 + $0x2c0] sm:$0xff] %v3694_v36 }
 0x44b   :  { %v5445_v25 = vpop.f32.mrf.mxu0  ;;  %v3698_v30 = vpop.f32.mrf.mxu1  ;;  %5129 = vmatmul.mubr.msk.f32.gmra.mxu1 %vm789_vm2, %v7582_v31 }
 0x44c   :  { %4528 = vst [vmem:[#allocation3 + $0x2e0] sm:$0xff] %v3698_v30  ;;  %3990 = vmatprep.mubr.f32.mxu1 %v8094_v59 }
 0x44d   :  { %v4141_v60 = vpop.f32.mrf.mxu0  ;;  %5591 = vmatmul.mubr.msk.f32.gmra.mxu0 %vm789_vm2, %v7497_v3  ;;  %v3700_v2 = vpop.f32.mrf.mxu1 }
 0x44e   :  { %4500 = vst.msk [vmem:[#allocation3 + $0x200] sm:$0xff] %vm4439_vm7, %v4141_v60  ;;  %5593 = vmatprep.mubr.msk.f32.mxu0 %vm5780_vm9, %v8094_v59  ;;  %4529 = vst [vmem:[#allocation3 + $0x2e8] sm:$0xff] %v3700_v2 }
 0x44f   :  { %v5448_v34 = vpop.f32.mrf.mxu0  ;;  %v3704_v43 = vpop.f32.mrf.mxu1  ;;  %5130 = vmatmul.mubr.msk.f32.gmra.mxu1 %vm789_vm2, %v7592_v28 }
 0x450   :  { %4533 = vst [vmem:[#allocation3 + $0x308] sm:$0xff] %v3704_v43  ;;  %3996 = vmatprep.mubr.f32.mxu1 %v8094_v59 }
 0x451   :  { %v4146_v16 = vpop.f32.mrf.mxu0  ;;  %5594 = vmatmul.mubr.msk.f32.gmra.mxu0 %vm789_vm2, %v7513_v61  ;;  %v3706_v3 = vpop.f32.mrf.mxu1 }
 0x452   :  { %4505 = vst.msk [vmem:[#allocation3 + $0x228] sm:$0xff] %vm4439_vm7, %v4146_v16  ;;  %5596 = vmatprep.mubr.msk.f32.mxu0 %vm5780_vm9, %v8094_v59  ;;  %4534 = vst [vmem:[#allocation3 + $0x310] sm:$0xff] %v3706_v3 }
 0x453   :  { %v5451_v0 = vpop.f32.mrf.mxu0  ;;  %v3710_v46 = vpop.f32.mrf.mxu1  ;;  %5131 = vmatmul.mubr.msk.f32.gmra.mxu1 %vm789_vm2, %v7602_v1 }
 0x454   :  { %4538 = vst [vmem:[#allocation3 + $0x330] sm:$0xff] %v3710_v46  ;;  %4002 = vmatprep.mubr.f32.mxu1 %v8094_v59 }
 0x455   :  { %v4151_v35 = vpop.f32.mrf.mxu0  ;;  %5597 = vmatmul.mubr.msk.f32.gmra.mxu0 %vm789_vm2, %v7529_v29  ;;  %v3712_v61 = vpop.f32.mrf.mxu1 }
 0x456   :  { %4510 = vst.msk [vmem:[#allocation3 + $0x250] sm:$0xff] %vm4439_vm7, %v4151_v35  ;;  %5599 = vmatprep.mubr.msk.f32.mxu0 %vm5780_vm9, %v8094_v59  ;;  %4539 = vst [vmem:[#allocation3 + $0x338] sm:$0xff] %v3712_v61 }
 0x457   :  { %v5454_v5 = vpop.f32.mrf.mxu0  ;;  %v3716_v55 = vpop.f32.mrf.mxu1  ;;  %5132 = vmatmul.mubr.msk.f32.gmra.mxu1 %vm789_vm2, %v7611_v11 }
 0x458   :  { %4543 = vst [vmem:[#allocation3 + $0x358] sm:$0xff] %v3716_v55  ;;  %4008 = vmatprep.mubr.f32.mxu1 %v8094_v59 }
 0x459   :  { %v4156_v62 = vpop.f32.mrf.mxu0  ;;  %5600 = vmatmul.mubr.msk.f32.gmra.mxu0 %vm789_vm2, %v7545_v22  ;;  %v3718_v29 = vpop.f32.mrf.mxu1 }
 0x45a   :  { %4515 = vst.msk [vmem:[#allocation3 + $0x278] sm:$0xff] %vm4439_vm7, %v4156_v62  ;;  %5602 = vmatprep.mubr.msk.f32.mxu0 %vm5780_vm9, %v8094_v59  ;;  %4544 = vst [vmem:[#allocation3 + $0x360] sm:$0xff] %v3718_v29 }
 0x45b   :  { %v5457_v19 = vpop.f32.mrf.mxu0  ;;  %v3722_v9 = vpop.f32.mrf.mxu1  ;;  %5133 = vmatmul.mubr.msk.f32.gmra.mxu1 %vm789_vm2, %v7620_v49 }
 0x45c   :  { %4548 = vst [vmem:[#allocation3 + $0x380] sm:$0xff] %v3722_v9 }
 0x45d   :  { %v4161_v24 = vpop.f32.mrf.mxu0  ;;  %5603 = vmatmul.mubr.msk.f32.gmra.mxu0 %vm789_vm2, %v7561_v14  ;;  %v3724_v58 = vpop.f32.mrf.mxu1 }
 0x45e   :  { %4520 = vst.msk [vmem:[#allocation3 + $0x2a0] sm:$0xff] %vm4439_vm7, %v4161_v24  ;;  %5605 = vmatprep.mubr.msk.f32.mxu0 %vm5780_vm9, %v8094_v59  ;;  %4549 = vst [vmem:[#allocation3 + $0x388] sm:$0xff] %v3724_v58 }
 0x45f   :  { %v5460_v22 = vpop.f32.mrf.mxu0  ;;  %v3728_v51 = vpop.f32.mrf.mxu1 }
 0x460   :  { %4553 = vst [vmem:[#allocation3 + $0x3a8] sm:$0xff] %v3728_v51 }
 0x461   :  { %v4166_v41 = vpop.f32.mrf.mxu0  ;;  %5606 = vmatmul.mubr.msk.f32.gmra.mxu0 %vm789_vm2, %v7572_v18  ;;  %v3730_v13 = vpop.f32.mrf.mxu1 }
 0x462   :  { %4525 = vst.msk [vmem:[#allocation3 + $0x2c8] sm:$0xff] %vm4439_vm7, %v4166_v41  ;;  %5608 = vmatprep.mubr.msk.f32.mxu0 %vm5780_vm9, %v8094_v59  ;;  %4554 = vst [vmem:[#allocation3 + $0x3b0] sm:$0xff] %v3730_v13 }
 0x463   :  { %v5463_v14 = vpop.f32.mrf.mxu0  ;;  %v3734_v8 = vpop.f32.mrf.mxu1 }
 0x464   :  { %4558 = vst [vmem:[#allocation3 + $0x3d0] sm:$0xff] %v3734_v8 }
 0x465   :  { %v4171_v20 = vpop.f32.mrf.mxu0  ;;  %5609 = vmatmul.mubr.msk.f32.gmra.mxu0 %vm789_vm2, %v7582_v31  ;;  %v3736_v39 = vpop.f32.mrf.mxu1 }
 0x466   :  { %4530 = vst.msk [vmem:[#allocation3 + $0x2f0] sm:$0xff] %vm4439_vm7, %v4171_v20  ;;  %5611 = vmatprep.mubr.msk.f32.mxu0 %vm5780_vm9, %v8094_v59  ;;  %4559 = vst [vmem:[#allocation3 + $0x3d8] sm:$0xff] %v3736_v39 }
 0x467   :  { %v5466_v18 = vpop.f32.mrf.mxu0  ;;  %v3740_v32 = vpop.f32.mrf.mxu1 }
 0x468   :  { %4563 = vst [vmem:[#allocation3 + $0x3f8] sm:$0xff] %v3740_v32 }
 0x469   :  { %v4176_v57 = vpop.f32.mrf.mxu0  ;;  %5612 = vmatmul.mubr.msk.f32.gmra.mxu0 %vm789_vm2, %v7592_v28  ;;  %v3742_v45 = vpop.f32.mrf.mxu1 }
 0x46a   :  { %4535 = vst.msk [vmem:[#allocation3 + $0x318] sm:$0xff] %vm4439_vm7, %v4176_v57  ;;  %5614 = vmatprep.mubr.msk.f32.mxu0 %vm5780_vm9, %v8094_v59  ;;  %4564 = vst [vmem:[#allocation3 + $0x400] sm:$0xff] %v3742_v45 }
 0x46b   :  { %v5469_v31 = vpop.f32.mrf.mxu0  ;;  %v3746_v50 = vpop.f32.mrf.mxu1 }
 0x46c   :  { %4568 = vst [vmem:[#allocation3 + $0x420] sm:$0xff] %v3746_v50 }
 0x46d   :  { %v4181_v21 = vpop.f32.mrf.mxu0  ;;  %5615 = vmatmul.mubr.msk.f32.gmra.mxu0 %vm789_vm2, %v7602_v1  ;;  %v3748_v15 = vpop.f32.mrf.mxu1 }
 0x46e   :  { %4540 = vst.msk [vmem:[#allocation3 + $0x340] sm:$0xff] %vm4439_vm7, %v4181_v21  ;;  %5617 = vmatprep.mubr.msk.f32.mxu0 %vm5780_vm9, %v8094_v59  ;;  %4569 = vst [vmem:[#allocation3 + $0x428] sm:$0xff] %v3748_v15 }
 0x46f   :  { %v5472_v28 = vpop.f32.mrf.mxu0  ;;  %v3752_v63 = vpop.f32.mrf.mxu1 }
 0x470   :  { %4573 = vst [vmem:[#allocation3 + $0x448] sm:$0xff] %v3752_v63 }
 0x471   :  { %v4186_v4 = vpop.f32.mrf.mxu0  ;;  %5618 = vmatmul.mubr.msk.f32.gmra.mxu0 %vm789_vm2, %v7611_v11  ;;  %v3754_v33 = vpop.f32.mrf.mxu1 }
 0x472   :  { %4545 = vst.msk [vmem:[#allocation3 + $0x368] sm:$0xff] %vm4439_vm7, %v4186_v4  ;;  %5620 = vmatprep.mubr.msk.f32.mxu0 %vm5780_vm9, %v8094_v59  ;;  %4574 = vst [vmem:[#allocation3 + $0x450] sm:$0xff] %v3754_v33 }
 0x473   :  { %v5475_v1 = vpop.f32.mrf.mxu0  ;;  %v3758_v37 = vpop.f32.mrf.mxu1 }
 0x474   :  { %4578 = vst [vmem:[#allocation3 + $0x470] sm:$0xff] %v3758_v37 }
 0x475   :  { %v4191_v12 = vpop.f32.mrf.mxu0  ;;  %5621 = vmatmul.mubr.msk.f32.gmra.mxu0 %vm789_vm2, %v7620_v49  ;;  %v3760_v44 = vpop.f32.mrf.mxu1  ;;  %vm4790_vm2 = vcmask 420864  }
 0x476   :  { %4550 = vst.msk [vmem:[#allocation3 + $0x390] sm:$0xff] %vm4439_vm7, %v4191_v12  ;;  %4579 = vst [vmem:[#allocation3 + $0x478] sm:$0xff] %v3760_v44 }
 0x477   :  { %v5478_v38 = vpop.f32.mrf.mxu0  ;;  %v3764_v11 = vpop.f32.mrf.mxu1 }
 0x478   :  { %4583 = vst [vmem:[#allocation3 + $0x498] sm:$0xff] %v3764_v11 }
 0x479   :  { %v4196_v17 = vpop.f32.mrf.mxu0  ;;  %v3766_v26 = vpop.f32.mrf.mxu1 }
 0x47a   :  { %4555 = vst.msk [vmem:[#allocation3 + $0x3b8] sm:$0xff] %vm4439_vm7, %v4196_v17  ;;  %4584 = vst [vmem:[#allocation3 + $0x4a0] sm:$0xff] %v3766_v26 }
 0x47b   :  { %v5481_v7 = vpop.f32.mrf.mxu0  ;;  %v3770_v6 = vpop.f32.mrf.mxu1 }
 0x47c   :  { %4588 = vst [vmem:[#allocation3 + $0x4c0] sm:$0xff] %v3770_v6 }
 0x47d   :  { %v4201_v48 = vpop.f32.mrf.mxu0  ;;  %v3772_v53 = vpop.f32.mrf.mxu1 }
 0x47e   :  { %4560 = vst.msk [vmem:[#allocation3 + $0x3e0] sm:$0xff] %vm4439_vm7, %v4201_v48  ;;  %4589 = vst [vmem:[#allocation3 + $0x4c8] sm:$0xff] %v3772_v53 }
 0x47f   :  { %v5484_v49 = vpop.f32.mrf.mxu0  ;;  %v3776_v47 = vpop.f32.mrf.mxu1 }
 0x480   :  { %4593 = vst [vmem:[#allocation3 + $0x4e8] sm:$0xff] %v3776_v47 }
 0x481   :  { %v4206_v23 = vpop.f32.mrf.mxu0  ;;  %v3778_v42 = vpop.f32.mrf.mxu1 }
 0x482   :  { %4565 = vst.msk [vmem:[#allocation3 + $0x408] sm:$0xff] %vm4439_vm7, %v4206_v23  ;;  %4594 = vst [vmem:[#allocation3 + $0x4f0] sm:$0xff] %v3778_v42 }
 0x483   :  { %v5487_v27 = vpop.f32.mrf.mxu0  ;;  %v3782_v56 = vpop.f32.mrf.mxu1 }
 0x484   :  { %4598 = vst [vmem:[#allocation3 + $0x510] sm:$0xff] %v3782_v56 }
 0x485   :  { %v4211_v54 = vpop.f32.mrf.mxu0  ;;  %v3784_v52 = vpop.f32.mrf.mxu1 }
 0x486   :  { %4570 = vst.msk [vmem:[#allocation3 + $0x430] sm:$0xff] %vm4439_vm7, %v4211_v54  ;;  %4599 = vst [vmem:[#allocation3 + $0x518] sm:$0xff] %v3784_v52 }
 0x487   :  { %v5490_v40 = vpop.f32.mrf.mxu0  ;;  %v3788_v10 = vpop.f32.mrf.mxu1 }
 0x488   :  { %4603 = vst [vmem:[#allocation3 + $0x538] sm:$0xff] %v3788_v10 }
 0x489   :  { %v4216_v36 = vpop.f32.mrf.mxu0  ;;  %v3790_v59 = vpop.f32.mrf.mxu1 }
 0x48a   :  { %4575 = vst.msk [vmem:[#allocation3 + $0x458] sm:$0xff] %vm4439_vm7, %v4216_v36  ;;  %4604 = vst [vmem:[#allocation3 + $0x540] sm:$0xff] %v3790_v59 }
 0x48b   :  { %v5493_v25 = vpop.f32.mrf.mxu0  ;;  %v3794_v30 = vpop.f32.mrf.mxu1 }
 0x48c   :  { %4608 = vst [vmem:[#allocation3 + $0x560] sm:$0xff] %v3794_v30 }
 0x48d   :  { %v4221_v60 = vpop.f32.mrf.mxu0  ;;  %v3796_v2 = vpop.f32.mrf.mxu1 }
 0x48e   :  { %4580 = vst.msk [vmem:[#allocation3 + $0x480] sm:$0xff] %vm4439_vm7, %v4221_v60  ;;  %4609 = vst [vmem:[#allocation3 + $0x568] sm:$0xff] %v3796_v2 }
 0x48f   :  { %v5496_v34 = vpop.f32.mrf.mxu0  ;;  %v3800_v43 = vpop.f32.mrf.mxu1 }
 0x490   :  { %4613 = vst [vmem:[#allocation3 + $0x588] sm:$0xff] %v3800_v43 }
 0x491   :  { %v4226_v16 = vpop.f32.mrf.mxu0  ;;  %v3802_v3 = vpop.f32.mrf.mxu1 }
 0x492   :  { %4585 = vst.msk [vmem:[#allocation3 + $0x4a8] sm:$0xff] %vm4439_vm7, %v4226_v16  ;;  %4614 = vst [vmem:[#allocation3 + $0x590] sm:$0xff] %v3802_v3 }
 0x493   :  { %v5499_v0 = vpop.f32.mrf.mxu0  ;;  %v3806_v46 = vpop.f32.mrf.mxu1 }
 0x494   :  { %4618 = vst [vmem:[#allocation3 + $0x5b0] sm:$0xff] %v3806_v46 }
 0x495   :  { %v4231_v35 = vpop.f32.mrf.mxu0  ;;  %v3808_v61 = vpop.f32.mrf.mxu1 }
 0x496   :  { %4590 = vst.msk [vmem:[#allocation3 + $0x4d0] sm:$0xff] %vm4439_vm7, %v4231_v35  ;;  %4619 = vst [vmem:[#allocation3 + $0x5b8] sm:$0xff] %v3808_v61 }
 0x497   :  { %v5502_v5 = vpop.f32.mrf.mxu0  ;;  %v3812_v55 = vpop.f32.mrf.mxu1 }
 0x498   :  { %4623 = vst [vmem:[#allocation3 + $0x5d8] sm:$0xff] %v3812_v55 }
 0x499   :  { %v4236_v62 = vpop.f32.mrf.mxu0  ;;  %v3814_v29 = vpop.f32.mrf.mxu1 }
 0x49a   :  { %4595 = vst.msk [vmem:[#allocation3 + $0x4f8] sm:$0xff] %vm4439_vm7, %v4236_v62  ;;  %4624 = vst [vmem:[#allocation3 + $0x5e0] sm:$0xff] %v3814_v29 }
 0x49b   :  { %v5505_v19 = vpop.f32.mrf.mxu0  ;;  %v3818_v9 = vpop.f32.mrf.mxu1 }
 0x49c   :  { %4628 = vst [vmem:[#allocation3 + $0x600] sm:$0xff] %v3818_v9 }
 0x49d   :  { %v4241_v24 = vpop.f32.mrf.mxu0  ;;  %v3820_v58 = vpop.f32.mrf.mxu1 }
 0x49e   :  { %4600 = vst.msk [vmem:[#allocation3 + $0x520] sm:$0xff] %vm4439_vm7, %v4241_v24  ;;  %4629 = vst [vmem:[#allocation3 + $0x608] sm:$0xff] %v3820_v58 }
 0x49f   :  { %v5508_v22 = vpop.f32.mrf.mxu0  ;;  %v3824_v51 = vpop.f32.mrf.mxu1 }
 0x4a0   :  { %4633 = vst [vmem:[#allocation3 + $0x628] sm:$0xff] %v3824_v51 }
 0x4a1   :  { %v4246_v41 = vpop.f32.mrf.mxu0  ;;  %v3826_v13 = vpop.f32.mrf.mxu1 }
 0x4a2   :  { %4605 = vst.msk [vmem:[#allocation3 + $0x548] sm:$0xff] %vm4439_vm7, %v4246_v41  ;;  %4634 = vst [vmem:[#allocation3 + $0x630] sm:$0xff] %v3826_v13 }
 0x4a3   :  { %v5511_v14 = vpop.f32.mrf.mxu0  ;;  %v3830_v8 = vpop.f32.mrf.mxu1 }
 0x4a4   :  { %4638 = vst [vmem:[#allocation3 + $0x650] sm:$0xff] %v3830_v8 }
 0x4a5   :  { %v4251_v20 = vpop.f32.mrf.mxu0  ;;  %v3832_v39 = vpop.f32.mrf.mxu1 }
 0x4a6   :  { %4610 = vst.msk [vmem:[#allocation3 + $0x570] sm:$0xff] %vm4439_vm7, %v4251_v20  ;;  %4639 = vst [vmem:[#allocation3 + $0x658] sm:$0xff] %v3832_v39 }
 0x4a7   :  { %v5514_v18 = vpop.f32.mrf.mxu0  ;;  %v3836_v32 = vpop.f32.mrf.mxu1 }
 0x4a8   :  { %4643 = vst [vmem:[#allocation3 + $0x678] sm:$0xff] %v3836_v32 }
 0x4a9   :  { %v4256_v57 = vpop.f32.mrf.mxu0  ;;  %v3838_v45 = vpop.f32.mrf.mxu1 }
 0x4aa   :  { %4615 = vst.msk [vmem:[#allocation3 + $0x598] sm:$0xff] %vm4439_vm7, %v4256_v57  ;;  %4644 = vst [vmem:[#allocation3 + $0x680] sm:$0xff] %v3838_v45 }
 0x4ab   :  { %v5517_v31 = vpop.f32.mrf.mxu0  ;;  %v3842_v50 = vpop.f32.mrf.mxu1 }
 0x4ac   :  { %4648 = vst [vmem:[#allocation3 + $0x6a0] sm:$0xff] %v3842_v50 }
 0x4ad   :  { %v4261_v21 = vpop.f32.mrf.mxu0  ;;  %v3844_v15 = vpop.f32.mrf.mxu1 }
 0x4ae   :  { %4620 = vst.msk [vmem:[#allocation3 + $0x5c0] sm:$0xff] %vm4439_vm7, %v4261_v21  ;;  %4649 = vst [vmem:[#allocation3 + $0x6a8] sm:$0xff] %v3844_v15 }
 0x4af   :  { %v5520_v28 = vpop.f32.mrf.mxu0  ;;  %v3848_v63 = vpop.f32.mrf.mxu1 }
 0x4b0   :  { %4653 = vst [vmem:[#allocation3 + $0x6c8] sm:$0xff] %v3848_v63 }
 0x4b1   :  { %v4266_v4 = vpop.f32.mrf.mxu0  ;;  %v3850_v33 = vpop.f32.mrf.mxu1 }
 0x4b2   :  { %4625 = vst.msk [vmem:[#allocation3 + $0x5e8] sm:$0xff] %vm4439_vm7, %v4266_v4  ;;  %4654 = vst [vmem:[#allocation3 + $0x6d0] sm:$0xff] %v3850_v33 }
 0x4b3   :  { %v5523_v1 = vpop.f32.mrf.mxu0  ;;  %v3854_v37 = vpop.f32.mrf.mxu1 }
 0x4b4   :  { %4658 = vst [vmem:[#allocation3 + $0x6f0] sm:$0xff] %v3854_v37 }
 0x4b5   :  { %v4271_v12 = vpop.f32.mrf.mxu0  ;;  %v3856_v44 = vpop.f32.mrf.mxu1 }
 0x4b6   :  { %4630 = vst.msk [vmem:[#allocation3 + $0x610] sm:$0xff] %vm4439_vm7, %v4271_v12  ;;  %4659 = vst [vmem:[#allocation3 + $0x6f8] sm:$0xff] %v3856_v44 }
 0x4b7   :  { %v5526_v38 = vpop.f32.mrf.mxu0  ;;  %v3860_v11 = vpop.f32.mrf.mxu1 }
 0x4b8   :  { %4663 = vst [vmem:[#allocation3 + $0x718] sm:$0xff] %v3860_v11 }
 0x4b9   :  { %v4276_v17 = vpop.f32.mrf.mxu0  ;;  %v3862_v26 = vpop.f32.mrf.mxu1 }
 0x4ba   :  { %4635 = vst.msk [vmem:[#allocation3 + $0x638] sm:$0xff] %vm4439_vm7, %v4276_v17  ;;  %4664 = vst [vmem:[#allocation3 + $0x720] sm:$0xff] %v3862_v26 }
 0x4bb   :  { %v5529_v7 = vpop.f32.mrf.mxu0  ;;  %v3866_v6 = vpop.f32.mrf.mxu1 }
 0x4bc   :  { %4668 = vst [vmem:[#allocation3 + $0x740] sm:$0xff] %v3866_v6 }
 0x4bd   :  { %v4281_v48 = vpop.f32.mrf.mxu0  ;;  %v3868_v53 = vpop.f32.mrf.mxu1 }
 0x4be   :  { %4640 = vst.msk [vmem:[#allocation3 + $0x660] sm:$0xff] %vm4439_vm7, %v4281_v48  ;;  %4669 = vst [vmem:[#allocation3 + $0x748] sm:$0xff] %v3868_v53 }
 0x4bf   :  { %v5532_v49 = vpop.f32.mrf.mxu0  ;;  %v3872_v47 = vpop.f32.mrf.mxu1 }
 0x4c0   :  { %4673 = vst [vmem:[#allocation3 + $0x768] sm:$0xff] %v3872_v47 }
 0x4c1   :  { %v4286_v23 = vpop.f32.mrf.mxu0  ;;  %v3874_v42 = vpop.f32.mrf.mxu1 }
 0x4c2   :  { %4645 = vst.msk [vmem:[#allocation3 + $0x688] sm:$0xff] %vm4439_vm7, %v4286_v23  ;;  %4674 = vst [vmem:[#allocation3 + $0x770] sm:$0xff] %v3874_v42 }
 0x4c3   :  { %v5535_v27 = vpop.f32.mrf.mxu0  ;;  %v3878_v56 = vpop.f32.mrf.mxu1 }
 0x4c4   :  { %4678 = vst [vmem:[#allocation3 + $0x790] sm:$0xff] %v3878_v56 }
 0x4c5   :  { %v4291_v54 = vpop.f32.mrf.mxu0  ;;  %v3880_v52 = vpop.f32.mrf.mxu1 }
 0x4c6   :  { %4650 = vst.msk [vmem:[#allocation3 + $0x6b0] sm:$0xff] %vm4439_vm7, %v4291_v54  ;;  %4679 = vst [vmem:[#allocation3 + $0x798] sm:$0xff] %v3880_v52 }
 0x4c7   :  { %v5538_v40 = vpop.f32.mrf.mxu0  ;;  %v3884_v10 = vpop.f32.mrf.mxu1 }
 0x4c8   :  { %4683 = vst [vmem:[#allocation3 + $0x7b8] sm:$0xff] %v3884_v10 }
 0x4c9   :  { %v4296_v36 = vpop.f32.mrf.mxu0  ;;  %v3886_v59 = vpop.f32.mrf.mxu1 }
 0x4ca   :  { %4655 = vst.msk [vmem:[#allocation3 + $0x6d8] sm:$0xff] %vm4439_vm7, %v4296_v36  ;;  %4684 = vst [vmem:[#allocation3 + $0x7c0] sm:$0xff] %v3886_v59 }
 0x4cb   :  { %v5541_v25 = vpop.f32.mrf.mxu0  ;;  %v3890_v30 = vpop.f32.mrf.mxu1 }
 0x4cc   :  { %4688 = vst [vmem:[#allocation3 + $0x7e0] sm:$0xff] %v3890_v30 }
 0x4cd   :  { %v4301_v60 = vpop.f32.mrf.mxu0  ;;  %v3892_v2 = vpop.f32.mrf.mxu1 }
 0x4ce   :  { %4660 = vst.msk [vmem:[#allocation3 + $0x700] sm:$0xff] %vm4439_vm7, %v4301_v60  ;;  %4689 = vst [vmem:[#allocation3 + $0x7e8] sm:$0xff] %v3892_v2 }
 0x4cf   :  { %v5544_v34 = vpop.f32.mrf.mxu0  ;;  %v3896_v43 = vpop.f32.mrf.mxu1 }
 0x4d0   :  { %4693 = vst [vmem:[#allocation3 + $0x808] sm:$0xff] %v3896_v43 }
 0x4d1   :  { %v4306_v16 = vpop.f32.mrf.mxu0  ;;  %v3898_v3 = vpop.f32.mrf.mxu1 }
 0x4d2   :  { %4665 = vst.msk [vmem:[#allocation3 + $0x728] sm:$0xff] %vm4439_vm7, %v4306_v16  ;;  %4694 = vst [vmem:[#allocation3 + $0x810] sm:$0xff] %v3898_v3 }
 0x4d3   :  { %v5547_v0 = vpop.f32.mrf.mxu0  ;;  %v3902_v46 = vpop.f32.mrf.mxu1 }
 0x4d4   :  { %4698 = vst [vmem:[#allocation3 + $0x830] sm:$0xff] %v3902_v46 }
 0x4d5   :  { %v4311_v35 = vpop.f32.mrf.mxu0  ;;  %v3904_v61 = vpop.f32.mrf.mxu1 }
 0x4d6   :  { %4670 = vst.msk [vmem:[#allocation3 + $0x750] sm:$0xff] %vm4439_vm7, %v4311_v35  ;;  %4699 = vst [vmem:[#allocation3 + $0x838] sm:$0xff] %v3904_v61 }
 0x4d7   :  { %v5550_v5 = vpop.f32.mrf.mxu0  ;;  %v3908_v55 = vpop.f32.mrf.mxu1 }
 0x4d8   :  { %4703 = vst [vmem:[#allocation3 + $0x858] sm:$0xff] %v3908_v55 }
 0x4d9   :  { %v4316_v62 = vpop.f32.mrf.mxu0  ;;  %v3910_v29 = vpop.f32.mrf.mxu1 }
 0x4da   :  { %4675 = vst.msk [vmem:[#allocation3 + $0x778] sm:$0xff] %vm4439_vm7, %v4316_v62  ;;  %4704 = vst [vmem:[#allocation3 + $0x860] sm:$0xff] %v3910_v29 }
 0x4db   :  { %v5553_v19 = vpop.f32.mrf.mxu0  ;;  %v3914_v9 = vpop.f32.mrf.mxu1 }
 0x4dc   :  { %4708 = vst [vmem:[#allocation3 + $0x880] sm:$0xff] %v3914_v9 }
 0x4dd   :  { %v4321_v24 = vpop.f32.mrf.mxu0  ;;  %v3916_v58 = vpop.f32.mrf.mxu1 }
 0x4de   :  { %4680 = vst.msk [vmem:[#allocation3 + $0x7a0] sm:$0xff] %vm4439_vm7, %v4321_v24  ;;  %4709 = vst [vmem:[#allocation3 + $0x888] sm:$0xff] %v3916_v58 }
 0x4df   :  { %v5556_v22 = vpop.f32.mrf.mxu0  ;;  %v3920_v51 = vpop.f32.mrf.mxu1 }
 0x4e0   :  { %4713 = vst [vmem:[#allocation3 + $0x8a8] sm:$0xff] %v3920_v51 }
 0x4e1   :  { %v4326_v41 = vpop.f32.mrf.mxu0  ;;  %v3922_v13 = vpop.f32.mrf.mxu1 }
 0x4e2   :  { %4685 = vst.msk [vmem:[#allocation3 + $0x7c8] sm:$0xff] %vm4439_vm7, %v4326_v41  ;;  %4714 = vst [vmem:[#allocation3 + $0x8b0] sm:$0xff] %v3922_v13 }
 0x4e3   :  { %v5559_v14 = vpop.f32.mrf.mxu0  ;;  %v3926_v8 = vpop.f32.mrf.mxu1 }
 0x4e4   :  { %4718 = vst [vmem:[#allocation3 + $0x8d0] sm:$0xff] %v3926_v8 }
 0x4e5   :  { %v4331_v20 = vpop.f32.mrf.mxu0  ;;  %v3928_v39 = vpop.f32.mrf.mxu1 }
 0x4e6   :  { %4690 = vst.msk [vmem:[#allocation3 + $0x7f0] sm:$0xff] %vm4439_vm7, %v4331_v20  ;;  %4719 = vst [vmem:[#allocation3 + $0x8d8] sm:$0xff] %v3928_v39 }
 0x4e7   :  { %v5562_v18 = vpop.f32.mrf.mxu0  ;;  %v3932_v32 = vpop.f32.mrf.mxu1 }
 0x4e8   :  { %4723 = vst [vmem:[#allocation3 + $0x8f8] sm:$0xff] %v3932_v32 }
 0x4e9   :  { %v4336_v57 = vpop.f32.mrf.mxu0  ;;  %v3934_v45 = vpop.f32.mrf.mxu1 }
 0x4ea   :  { %4695 = vst.msk [vmem:[#allocation3 + $0x818] sm:$0xff] %vm4439_vm7, %v4336_v57  ;;  %4724 = vst [vmem:[#allocation3 + $0x900] sm:$0xff] %v3934_v45 }
 0x4eb   :  { %v5565_v31 = vpop.f32.mrf.mxu0  ;;  %v3938_v50 = vpop.f32.mrf.mxu1 }
 0x4ec   :  { %4728 = vst [vmem:[#allocation3 + $0x920] sm:$0xff] %v3938_v50 }
 0x4ed   :  { %v4341_v21 = vpop.f32.mrf.mxu0  ;;  %v3940_v15 = vpop.f32.mrf.mxu1 }
 0x4ee   :  { %4700 = vst.msk [vmem:[#allocation3 + $0x840] sm:$0xff] %vm4439_vm7, %v4341_v21  ;;  %4729 = vst [vmem:[#allocation3 + $0x928] sm:$0xff] %v3940_v15 }
 0x4ef   :  { %v5568_v28 = vpop.f32.mrf.mxu0  ;;  %v3944_v63 = vpop.f32.mrf.mxu1 }
 0x4f0   :  { %4733 = vst [vmem:[#allocation3 + $0x948] sm:$0xff] %v3944_v63 }
 0x4f1   :  { %v4346_v4 = vpop.f32.mrf.mxu0  ;;  %v3946_v33 = vpop.f32.mrf.mxu1 }
 0x4f2   :  { %4705 = vst.msk [vmem:[#allocation3 + $0x868] sm:$0xff] %vm4439_vm7, %v4346_v4  ;;  %4734 = vst [vmem:[#allocation3 + $0x950] sm:$0xff] %v3946_v33 }
 0x4f3   :  { %v5571_v1 = vpop.f32.mrf.mxu0  ;;  %v3950_v37 = vpop.f32.mrf.mxu1 }
 0x4f4   :  { %4738 = vst [vmem:[#allocation3 + $0x970] sm:$0xff] %v3950_v37 }
 0x4f5   :  { %v4351_v12 = vpop.f32.mrf.mxu0  ;;  %v3952_v44 = vpop.f32.mrf.mxu1 }
 0x4f6   :  { %4710 = vst.msk [vmem:[#allocation3 + $0x890] sm:$0xff] %vm4439_vm7, %v4351_v12  ;;  %4739 = vst [vmem:[#allocation3 + $0x978] sm:$0xff] %v3952_v44 }
 0x4f7   :  { %v5574_v38 = vpop.f32.mrf.mxu0  ;;  %v3956_v11 = vpop.f32.mrf.mxu1 }
 0x4f8   :  { %4743 = vst [vmem:[#allocation3 + $0x998] sm:$0xff] %v3956_v11 }
 0x4f9   :  { %v4356_v17 = vpop.f32.mrf.mxu0  ;;  %v3958_v26 = vpop.f32.mrf.mxu1 }
 0x4fa   :  { %4715 = vst.msk [vmem:[#allocation3 + $0x8b8] sm:$0xff] %vm4439_vm7, %v4356_v17  ;;  %4744 = vst [vmem:[#allocation3 + $0x9a0] sm:$0xff] %v3958_v26 }
 0x4fb   :  { %v5577_v7 = vpop.f32.mrf.mxu0  ;;  %v3962_v6 = vpop.f32.mrf.mxu1 }
 0x4fc   :  { %4748 = vst [vmem:[#allocation3 + $0x9c0] sm:$0xff] %v3962_v6 }
 0x4fd   :  { %v4361_v48 = vpop.f32.mrf.mxu0  ;;  %v3964_v53 = vpop.f32.mrf.mxu1 }
 0x4fe   :  { %4720 = vst.msk [vmem:[#allocation3 + $0x8e0] sm:$0xff] %vm4439_vm7, %v4361_v48  ;;  %4749 = vst [vmem:[#allocation3 + $0x9c8] sm:$0xff] %v3964_v53 }
 0x4ff   :  { %v5580_v49 = vpop.f32.mrf.mxu0  ;;  %v3968_v47 = vpop.f32.mrf.mxu1 }
 0x500   :  { %4753 = vst [vmem:[#allocation3 + $0x9e8] sm:$0xff] %v3968_v47 }
 0x501   :  { %v4366_v23 = vpop.f32.mrf.mxu0  ;;  %v3970_v42 = vpop.f32.mrf.mxu1 }
 0x502   :  { %4725 = vst.msk [vmem:[#allocation3 + $0x908] sm:$0xff] %vm4439_vm7, %v4366_v23  ;;  %4754 = vst [vmem:[#allocation3 + $0x9f0] sm:$0xff] %v3970_v42 }
 0x503   :  { %v5583_v27 = vpop.f32.mrf.mxu0  ;;  %v3974_v56 = vpop.f32.mrf.mxu1 }
 0x504   :  { %4758 = vst [vmem:[#allocation3 + $0xa10] sm:$0xff] %v3974_v56 }
 0x505   :  { %v4371_v54 = vpop.f32.mrf.mxu0  ;;  %v3976_v52 = vpop.f32.mrf.mxu1 }
 0x506   :  { %4730 = vst.msk [vmem:[#allocation3 + $0x930] sm:$0xff] %vm4439_vm7, %v4371_v54  ;;  %4759 = vst [vmem:[#allocation3 + $0xa18] sm:$0xff] %v3976_v52 }
 0x507   :  { %v5586_v40 = vpop.f32.mrf.mxu0  ;;  %v3980_v10 = vpop.f32.mrf.mxu1 }
 0x508   :  { %4763 = vst [vmem:[#allocation3 + $0xa38] sm:$0xff] %v3980_v10 }
 0x509   :  { %v4376_v36 = vpop.f32.mrf.mxu0  ;;  %v3982_v59 = vpop.f32.mrf.mxu1 }
 0x50a   :  { %4735 = vst.msk [vmem:[#allocation3 + $0x958] sm:$0xff] %vm4439_vm7, %v4376_v36  ;;  %4764 = vst [vmem:[#allocation3 + $0xa40] sm:$0xff] %v3982_v59 }
 0x50b   :  { %v5589_v25 = vpop.f32.mrf.mxu0  ;;  %v3986_v30 = vpop.f32.mrf.mxu1 }
 0x50c   :  { %4768 = vst [vmem:[#allocation3 + $0xa60] sm:$0xff] %v3986_v30 }
 0x50d   :  { %v4381_v60 = vpop.f32.mrf.mxu0  ;;  %v3988_v2 = vpop.f32.mrf.mxu1 }
 0x50e   :  { %4740 = vst.msk [vmem:[#allocation3 + $0x980] sm:$0xff] %vm4439_vm7, %v4381_v60  ;;  %4769 = vst [vmem:[#allocation3 + $0xa68] sm:$0xff] %v3988_v2 }
 0x50f   :  { %v5592_v34 = vpop.f32.mrf.mxu0  ;;  %v3992_v43 = vpop.f32.mrf.mxu1 }
 0x510   :  { %4773 = vst [vmem:[#allocation3 + $0xa88] sm:$0xff] %v3992_v43 }
 0x511   :  { %v4386_v16 = vpop.f32.mrf.mxu0  ;;  %v3994_v3 = vpop.f32.mrf.mxu1 }
 0x512   :  { %4745 = vst.msk [vmem:[#allocation3 + $0x9a8] sm:$0xff] %vm4439_vm7, %v4386_v16  ;;  %4774 = vst [vmem:[#allocation3 + $0xa90] sm:$0xff] %v3994_v3 }
 0x513   :  { %v5595_v0 = vpop.f32.mrf.mxu0  ;;  %v3998_v46 = vpop.f32.mrf.mxu1 }
 0x514   :  { %4778 = vst [vmem:[#allocation3 + $0xab0] sm:$0xff] %v3998_v46 }
 0x515   :  { %v4391_v35 = vpop.f32.mrf.mxu0  ;;  %v4000_v61 = vpop.f32.mrf.mxu1 }
 0x516   :  { %4750 = vst.msk [vmem:[#allocation3 + $0x9d0] sm:$0xff] %vm4439_vm7, %v4391_v35  ;;  %4779 = vst [vmem:[#allocation3 + $0xab8] sm:$0xff] %v4000_v61 }
 0x517   :  { %v5598_v5 = vpop.f32.mrf.mxu0  ;;  %v4004_v55 = vpop.f32.mrf.mxu1 }
 0x518   :  { %4783 = vst [vmem:[#allocation3 + $0xad8] sm:$0xff] %v4004_v55 }
 0x519   :  { %v4396_v62 = vpop.f32.mrf.mxu0  ;;  %v4006_v29 = vpop.f32.mrf.mxu1 }
 0x51a   :  { %4755 = vst.msk [vmem:[#allocation3 + $0x9f8] sm:$0xff] %vm4439_vm7, %v4396_v62  ;;  %4784 = vst [vmem:[#allocation3 + $0xae0] sm:$0xff] %v4006_v29 }
 0x51b   :  { %v5601_v19 = vpop.f32.mrf.mxu0  ;;  %v4010_v9 = vpop.f32.mrf.mxu1 }
 0x51c   :  { %4788 = vst [vmem:[#allocation3 + $0xb00] sm:$0xf] %v4010_v9 }
 0x51d   :  { %v4401_v24 = vpop.f32.mrf.mxu0  ;;  %v4012_v58 = vpop.f32.mrf.mxu1 }
 0x51e   :  { %4760 = vst.msk [vmem:[#allocation3 + $0xa20] sm:$0xff] %vm4439_vm7, %v4401_v24  ;;  %4789 = vst [vmem:[#allocation3 + $0xb08] sm:$0xf] %v4012_v58 }
 0x51f   :  { %v5604_v22 = vpop.f32.mrf.mxu0 }
 0x521   :  { %v4406_v51 = vpop.f32.mrf.mxu0 }
 0x522   :  { %4765 = vst.msk [vmem:[#allocation3 + $0xa48] sm:$0xff] %vm4439_vm7, %v4406_v51 }
 0x523   :  { %v5607_v41 = vpop.f32.mrf.mxu0 }
 0x525   :  { %v4411_v13 = vpop.f32.mrf.mxu0 }
 0x526   :  { %4770 = vst.msk [vmem:[#allocation3 + $0xa70] sm:$0xff] %vm4439_vm7, %v4411_v13 }
 0x527   :  { %v5610_v14 = vpop.f32.mrf.mxu0 }
 0x529   :  { %v4416_v8 = vpop.f32.mrf.mxu0 }
 0x52a   :  { %4775 = vst.msk [vmem:[#allocation3 + $0xa98] sm:$0xff] %vm4439_vm7, %v4416_v8 }
 0x52b   :  { %v5613_v20 = vpop.f32.mrf.mxu0 }
 0x52d   :  { %v4421_v39 = vpop.f32.mrf.mxu0 }
 0x52e   :  { %4780 = vst.msk [vmem:[#allocation3 + $0xac0] sm:$0xff] %vm4439_vm7, %v4421_v39 }
 0x52f   :  { %v5616_v18 = vpop.f32.mrf.mxu0 }
 0x531   :  { %v4426_v32 = vpop.f32.mrf.mxu0 }
 0x532   :  { %4785 = vst.msk [vmem:[#allocation3 + $0xae8] sm:$0xff] %vm4439_vm7, %v4426_v32 }
 0x533   :  { %v5619_v57 = vpop.f32.mrf.mxu0 }
 0x535   :  { %v4431_v45 = vpop.f32.mrf.mxu0 }
 0x536   :  { %4791 = vst.msk [vmem:[#allocation3 + $0xb10] sm:$0xf] %vm4790_vm2, %v4431_v45 }
 0x537   :  { %v5622_v31 = vpop.f32.mrf.mxu0 }
 0x538   :  { %5767 = shalt.err (!%p5764_p4)
}
 0x539   :  { %s5782_s1 = smov 640   ;;  %s5783_s22 = smov 40  }
 0x53a   :  { %4861 = dma.vmem_to_hbm [thread:$0]  %s4856_s20, 45440, %s8218_s3, [#allocation4], %s5782_s1, %s5782_s1, %s5783_s22  }
 0x53b   :  { %5776 = dma.done.wait [#allocation4], 45440  }
 0x53c   :  { %5777 = vsyncadd [#allocation4], 4294921856 }
 0x53d   :  { %4865 = vsyncpa [#allocation4], 1 }

</bundles_post_ra>
